<compile_context>
chip_gen: v7x
topology: tpu7x:2x2x1
jax: 0.10.0
libtpu: 0.0.40
codegen_flags: <defaults>
</compile_context>

<pallas_src>
import jax
import jax.numpy as jnp
from jax.experimental import pallas as pl
from jax.experimental.pallas import tpu as pltpu

# Geometry from the PyTorch module.
H = 14
W = 14
HW = H * W                       # 196 -> lane dim
C_SPLITS = (160, 224, 64, 64)    # channels of x88, x94, x100, x104
C_TOT = sum(C_SPLITS)            # 512 -> sublane dim
PADF = 16                        # flat-index pad per side (>= W + 1)
BUFW = PADF + HW + PADF          # 228 scratch width


def _neg_identity(dtype):
    """Dtype-aware identity element for max."""
    if jnp.issubdtype(dtype, jnp.floating):
        return jnp.array(-jnp.inf, dtype=dtype)
    return jnp.array(jnp.iinfo(dtype).min, dtype=dtype)


def _cat_maxpool_kernel(x0_ref, x1_ref, x2_ref, x3_ref, o_ref, buf_ref):
    """Fused channel-concat + separable 3x3/s1/p1 max pool on one batch element.

    x*_ref: (C_i, H*W) VMEM tiles, o_ref: (C_TOT, H*W), buf_ref: (C_TOT, BUFW).
    """
    dtype = o_ref.dtype
    neg = _neg_identity(dtype)

    # Fill only the flat-index padding columns with the identity; the interior
    # is fully overwritten below (no full-buffer fill, no -inf concatenates).
    buf_ref[:, 0:PADF] = jnp.full((C_TOT, PADF), neg, dtype=dtype)
    buf_ref[:, PADF + HW:BUFW] = jnp.full((C_TOT, BUFW - PADF - HW), neg,
                                          dtype=dtype)

    # w coordinate of every flattened position (hoisted; W-boundary masks for
    # the +/-1 lane shifts -- flat wrap-around at row edges must be masked).
    wpos = jax.lax.broadcasted_iota(jnp.int32, (1, HW), 1) % W
    has_left = wpos != 0
    has_right = wpos != (W - 1)

    off = 0
    for ref in (x0_ref, x1_ref, x2_ref, x3_ref):
        c = ref.shape[0]

        # In-kernel channel concat: stage this chunk into its channel rows.
        x = ref[...]
        buf_ref[off:off + c, PADF:PADF + HW] = x

        # Pass 1 (vertical, dh in {-1, 0, +1}): +/-W lane shifts out of the
        # padded scratch; H boundaries hit the -inf pad, centre reuses `x`.
        up = buf_ref[off:off + c, PADF - W:PADF - W + HW]
        dn = buf_ref[off:off + c, PADF + W:PADF + W + HW]
        vmax = jnp.maximum(x, jnp.maximum(up, dn))

        # Overwrite the interior with the column max; the pad columns at
        # PADF-1 / PADF+HW stay -inf so the +/-1 shifts see the identity at
        # the ends of the flat range.
        buf_ref[off:off + c, PADF:PADF + HW] = vmax

        # Pass 2 (horizontal, dw in {-1, 0, +1}) on the column max.
        lf = jnp.where(has_left, buf_ref[off:off + c, PADF - 1:PADF - 1 + HW],
                       neg)
        rt = jnp.where(has_right, buf_ref[off:off + c, PADF + 1:PADF + 1 + HW],
                       neg)
        o_ref[off:off + c, :] = jnp.maximum(vmax, jnp.maximum(lf, rt))
        off += c


@jax.jit
def forward(x88, x94, x100, x104):
    """Inputs NCHW (PyTorch convention); returns NCHW output of cat + maxpool."""
    N = x88.shape[0]
    dtype = x88.dtype
    # Free reshapes of contiguous NCHW tensors: (N, C, H, W) -> (N, C, H*W).
    ins = [x.reshape(N, x.shape[1], HW) for x in (x88, x94, x100, x104)]
    out_flat = pl.pallas_call(
        _cat_maxpool_kernel,
        out_shape=jax.ShapeDtypeStruct((N, C_TOT, HW), dtype),
        grid=(N,),
        in_specs=[
            pl.BlockSpec((pl.Squeezed(), c, HW), lambda n: (n, 0, 0))
            for c in C_SPLITS
        ],
        out_specs=pl.BlockSpec((pl.Squeezed(), C_TOT, HW), lambda n: (n, 0, 0)),
        scratch_shapes=[pltpu.VMEM((C_TOT, BUFW), dtype)],
        compiler_params=pltpu.CompilerParams(
            dimension_semantics=("parallel",)),
    )(*ins)
    return out_flat.reshape(N, C_TOT, H, W)


def _reference(x88, x94, x100, x104):
    """Pure-JAX reference (concat + reduce_window) for validation."""
    cat = jnp.concatenate([x88, x94, x100, x104], axis=1)
    return jax.lax.reduce_window(
        cat, -jnp.inf, jax.lax.max,
        window_dimensions=(1, 1, 3, 3),
        window_strides=(1, 1, 1, 1),
        padding=((0, 0), (0, 0), (1, 1), (1, 1)))


if __name__ == "__main__":
    key = jax.random.PRNGKey(0)
    k1, k2, k3, k4 = jax.random.split(key, 4)

    # Shapes from the module spec (already small).
    x88 = jax.random.normal(k1, (1, 160, 14, 14), dtype=jnp.float32)
    x94 = jax.random.normal(k2, (1, 224, 14, 14), dtype=jnp.float32)
    x100 = jax.random.normal(k3, (1, 64, 14, 14), dtype=jnp.float32)
    x104 = jax.random.normal(k4, (1, 64, 14, 14), dtype=jnp.float32)

    out = forward(x88, x94, x100, x104)
    out = jax.block_until_ready(out)

    ref = _reference(x88, x94, x100, x104)
    assert out.shape == (1, 512, 14, 14), out.shape
    assert jnp.allclose(out, ref), "mismatch vs reference"

    print("KERNEL_OK")
</pallas_src>

<mosaic_0001>
module attributes {stable_mosaic.version = 11 : i64} {
  func.func @_cat_maxpool_kernel(%arg0: i32, %arg1: memref<1x160x196xf32, #tpu.memory_space<vmem>>, %arg2: memref<1x224x196xf32, #tpu.memory_space<vmem>>, %arg3: memref<1x64x196xf32, #tpu.memory_space<vmem>>, %arg4: memref<1x64x196xf32, #tpu.memory_space<vmem>>, %arg5: memref<1x512x196xf32, #tpu.memory_space<vmem>>, %arg6: memref<512x228xf32, #tpu.memory_space<vmem>>) attributes {dimension_semantics = [#tpu.dimension_semantics<parallel>], iteration_bounds = array<i64: 1>, scalar_prefetch = 0 : i64, scratch_operands = 1 : i64, tpu.core_type = #tpu.core_type<tc>, window_params = [{transform_indices = @transform_0, window_bounds = array<i64: 1, 160, 196>}, {transform_indices = @transform_1, window_bounds = array<i64: 1, 224, 196>}, {transform_indices = @transform_2, window_bounds = array<i64: 1, 64, 196>}, {transform_indices = @transform_3, window_bounds = array<i64: 1, 64, 196>}, {transform_indices = @transform_4, window_bounds = array<i64: 1, 512, 196>}]} {
    %cst = arith.constant 0xFF800000 : f32
    %0 = vector.broadcast %cst : f32 to vector<512x16xf32>
    %c0 = arith.constant 0 : index
    %c0_0 = arith.constant 0 : index
    %1 = vector.load %arg6[%c0, %c0_0] : memref<512x228xf32, #tpu.memory_space<vmem>>, vector<512x16xf32>
    tpu.vector_store %arg6[%c0, %c0_0], %0 {strides = array<i32>} : memref<512x228xf32, #tpu.memory_space<vmem>>, vector<512x16xf32>,
    %cst_1 = arith.constant 0xFF800000 : f32
    %2 = vector.broadcast %cst_1 : f32 to vector<512x16xf32>
    %c0_2 = arith.constant 0 : index
    %c212 = arith.constant 212 : index
    %3 = vector.load %arg6[%c0_2, %c212] : memref<512x228xf32, #tpu.memory_space<vmem>>, vector<512x16xf32>
    tpu.vector_store %arg6[%c0_2, %c212], %2 {strides = array<i32>} : memref<512x228xf32, #tpu.memory_space<vmem>>, vector<512x16xf32>,
    %4 = tpu.iota {dimensions = array<i32: 1>} : vector<1x196xi32>
    %c14_i32 = arith.constant 14 : i32
    %c0_i32 = arith.constant 0 : i32
    %5 = arith.cmpi eq, %c14_i32, %c0_i32 : i32
    %c1_i32 = arith.constant 1 : i32
    %6 = arith.select %5, %c1_i32, %c14_i32 : i32
    %7 = vector.broadcast %6 : i32 to vector<1x196xi32>
    %8 = arith.remsi %4, %7 : vector<1x196xi32>
    %c0_i32_3 = arith.constant 0 : i32
    %9 = vector.broadcast %c0_i32_3 : i32 to vector<1x196xi32>
    %10 = arith.cmpi ne, %8, %9 : vector<1x196xi32>
    %c0_i32_4 = arith.constant 0 : i32
    %11 = vector.broadcast %c0_i32_4 : i32 to vector<1x196xi32>
    %12 = arith.cmpi slt, %8, %11 : vector<1x196xi32>
    %c0_i32_5 = arith.constant 0 : i32
    %13 = arith.cmpi slt, %6, %c0_i32_5 : i32
    %14 = vector.broadcast %13 : i1 to vector<1x196xi1>
    %15 = vector.broadcast %14 : vector<1x196xi1> to vector<1x196xi1>
    %16 = arith.xori %12, %15 : vector<1x196xi1>
    %17 = arith.andi %16, %10 : vector<1x196xi1>
    %18 = vector.broadcast %6 : i32 to vector<1x196xi32>
    %19 = arith.addi %8, %18 : vector<1x196xi32>
    %20 = arith.select %17, %19, %8 : vector<1x196xi1>, vector<1x196xi32>
    %c0_i32_6 = arith.constant 0 : i32
    %21 = vector.broadcast %c0_i32_6 : i32 to vector<1x196xi32>
    %22 = arith.cmpi ne, %20, %21 : vector<1x196xi32>
    %c13_i32 = arith.constant 13 : i32
    %23 = vector.broadcast %c13_i32 : i32 to vector<1x196xi32>
    %24 = arith.cmpi ne, %20, %23 : vector<1x196xi32>
    %c0_7 = arith.constant 0 : index
    %c0_8 = arith.constant 0 : index
    %c0_9 = arith.constant 0 : index
    %25 = vector.load %arg1[%c0_7, %c0_8, %c0_9] : memref<1x160x196xf32, #tpu.memory_space<vmem>>, vector<1x160x196xf32>
    %26 = vector.shape_cast %25 : vector<1x160x196xf32> to vector<160x196xf32>
    %c0_10 = arith.constant 0 : index
    %c16 = arith.constant 16 : index
    %27 = vector.load %arg6[%c0_10, %c16] : memref<512x228xf32, #tpu.memory_space<vmem>>, vector<160x196xf32>
    tpu.vector_store %arg6[%c0_10, %c16], %26 {strides = array<i32>} : memref<512x228xf32, #tpu.memory_space<vmem>>, vector<160x196xf32>,
    %c0_11 = arith.constant 0 : index
    %c2 = arith.constant 2 : index
    %28 = vector.load %arg6[%c0_11, %c2] : memref<512x228xf32, #tpu.memory_space<vmem>>, vector<160x196xf32>
    %c0_12 = arith.constant 0 : index
    %c30 = arith.constant 30 : index
    %29 = vector.load %arg6[%c0_12, %c30] : memref<512x228xf32, #tpu.memory_space<vmem>>, vector<160x196xf32>
    %30 = arith.maximumf %28, %29 : vector<160x196xf32>
    %31 = arith.maximumf %26, %30 : vector<160x196xf32>
    %c0_13 = arith.constant 0 : index
    %c16_14 = arith.constant 16 : index
    %32 = vector.load %arg6[%c0_13, %c16_14] : memref<512x228xf32, #tpu.memory_space<vmem>>, vector<160x196xf32>
    tpu.vector_store %arg6[%c0_13, %c16_14], %31 {strides = array<i32>} : memref<512x228xf32, #tpu.memory_space<vmem>>, vector<160x196xf32>,
    %c0_15 = arith.constant 0 : index
    %c15 = arith.constant 15 : index
    %33 = vector.load %arg6[%c0_15, %c15] : memref<512x228xf32, #tpu.memory_space<vmem>>, vector<160x196xf32>
    %cst_16 = arith.constant 0xFF800000 : f32
    %34 = vector.shape_cast %22 : vector<1x196xi1> to vector<1x196xi1>
    %35 = vector.broadcast %34 : vector<1x196xi1> to vector<160x196xi1>
    %36 = vector.broadcast %cst_16 : f32 to vector<160x196xf32>
    %37 = arith.select %35, %33, %36 : vector<160x196xi1>, vector<160x196xf32>
    %c0_17 = arith.constant 0 : index
    %c17 = arith.constant 17 : index
    %38 = vector.load %arg6[%c0_17, %c17] : memref<512x228xf32, #tpu.memory_space<vmem>>, vector<160x196xf32>
    %cst_18 = arith.constant 0xFF800000 : f32
    %39 = vector.shape_cast %24 : vector<1x196xi1> to vector<1x196xi1>
    %40 = vector.broadcast %39 : vector<1x196xi1> to vector<160x196xi1>
    %41 = vector.broadcast %cst_18 : f32 to vector<160x196xf32>
    %42 = arith.select %40, %38, %41 : vector<160x196xi1>, vector<160x196xf32>
    %43 = arith.maximumf %37, %42 : vector<160x196xf32>
    %44 = arith.maximumf %31, %43 : vector<160x196xf32>
    %c0_19 = arith.constant 0 : index
    %c0_20 = arith.constant 0 : index
    %c0_21 = arith.constant 0 : index
    %45 = vector.load %arg5[%c0_19, %c0_20, %c0_21] : memref<1x512x196xf32, #tpu.memory_space<vmem>>, vector<1x160x196xf32>
    %46 = vector.shape_cast %45 : vector<1x160x196xf32> to vector<160x196xf32>
    %47 = vector.shape_cast %44 : vector<160x196xf32> to vector<1x160x196xf32>
    tpu.vector_store %arg5[%c0_19, %c0_20, %c0_21], %47 {strides = array<i32>} : memref<1x512x196xf32, #tpu.memory_space<vmem>>, vector<1x160x196xf32>,
    %c0_22 = arith.constant 0 : index
    %c0_23 = arith.constant 0 : index
    %c0_24 = arith.constant 0 : index
    %48 = vector.load %arg2[%c0_22, %c0_23, %c0_24] : memref<1x224x196xf32, #tpu.memory_space<vmem>>, vector<1x224x196xf32>
    %49 = vector.shape_cast %48 : vector<1x224x196xf32> to vector<224x196xf32>
    %c160 = arith.constant 160 : index
    %c16_25 = arith.constant 16 : index
    %50 = vector.load %arg6[%c160, %c16_25] : memref<512x228xf32, #tpu.memory_space<vmem>>, vector<224x196xf32>
    tpu.vector_store %arg6[%c160, %c16_25], %49 {strides = array<i32>} : memref<512x228xf32, #tpu.memory_space<vmem>>, vector<224x196xf32>,
    %c160_26 = arith.constant 160 : index
    %c2_27 = arith.constant 2 : index
    %51 = vector.load %arg6[%c160_26, %c2_27] : memref<512x228xf32, #tpu.memory_space<vmem>>, vector<224x196xf32>
    %c160_28 = arith.constant 160 : index
    %c30_29 = arith.constant 30 : index
    %52 = vector.load %arg6[%c160_28, %c30_29] : memref<512x228xf32, #tpu.memory_space<vmem>>, vector<224x196xf32>
    %53 = arith.maximumf %51, %52 : vector<224x196xf32>
    %54 = arith.maximumf %49, %53 : vector<224x196xf32>
    %c160_30 = arith.constant 160 : index
    %c16_31 = arith.constant 16 : index
    %55 = vector.load %arg6[%c160_30, %c16_31] : memref<512x228xf32, #tpu.memory_space<vmem>>, vector<224x196xf32>
    tpu.vector_store %arg6[%c160_30, %c16_31], %54 {strides = array<i32>} : memref<512x228xf32, #tpu.memory_space<vmem>>, vector<224x196xf32>,
    %c160_32 = arith.constant 160 : index
    %c15_33 = arith.constant 15 : index
    %56 = vector.load %arg6[%c160_32, %c15_33] : memref<512x228xf32, #tpu.memory_space<vmem>>, vector<224x196xf32>
    %cst_34 = arith.constant 0xFF800000 : f32
    %57 = vector.shape_cast %22 : vector<1x196xi1> to vector<1x196xi1>
    %58 = vector.broadcast %57 : vector<1x196xi1> to vector<224x196xi1>
    %59 = vector.broadcast %cst_34 : f32 to vector<224x196xf32>
    %60 = arith.select %58, %56, %59 : vector<224x196xi1>, vector<224x196xf32>
    %c160_35 = arith.constant 160 : index
    %c17_36 = arith.constant 17 : index
    %61 = vector.load %arg6[%c160_35, %c17_36] : memref<512x228xf32, #tpu.memory_space<vmem>>, vector<224x196xf32>
    %cst_37 = arith.constant 0xFF800000 : f32
    %62 = vector.shape_cast %24 : vector<1x196xi1> to vector<1x196xi1>
    %63 = vector.broadcast %62 : vector<1x196xi1> to vector<224x196xi1>
    %64 = vector.broadcast %cst_37 : f32 to vector<224x196xf32>
    %65 = arith.select %63, %61, %64 : vector<224x196xi1>, vector<224x196xf32>
    %66 = arith.maximumf %60, %65 : vector<224x196xf32>
    %67 = arith.maximumf %54, %66 : vector<224x196xf32>
    %c0_38 = arith.constant 0 : index
    %c160_39 = arith.constant 160 : index
    %c0_40 = arith.constant 0 : index
    %68 = vector.load %arg5[%c0_38, %c160_39, %c0_40] : memref<1x512x196xf32, #tpu.memory_space<vmem>>, vector<1x224x196xf32>
    %69 = vector.shape_cast %68 : vector<1x224x196xf32> to vector<224x196xf32>
    %70 = vector.shape_cast %67 : vector<224x196xf32> to vector<1x224x196xf32>
    tpu.vector_store %arg5[%c0_38, %c160_39, %c0_40], %70 {strides = array<i32>} : memref<1x512x196xf32, #tpu.memory_space<vmem>>, vector<1x224x196xf32>,
    %c0_41 = arith.constant 0 : index
    %c0_42 = arith.constant 0 : index
    %c0_43 = arith.constant 0 : index
    %71 = vector.load %arg3[%c0_41, %c0_42, %c0_43] : memref<1x64x196xf32, #tpu.memory_space<vmem>>, vector<1x64x196xf32>
    %72 = vector.shape_cast %71 : vector<1x64x196xf32> to vector<64x196xf32>
    %c384 = arith.constant 384 : index
    %c16_44 = arith.constant 16 : index
    %73 = vector.load %arg6[%c384, %c16_44] : memref<512x228xf32, #tpu.memory_space<vmem>>, vector<64x196xf32>
    tpu.vector_store %arg6[%c384, %c16_44], %72 {strides = array<i32>} : memref<512x228xf32, #tpu.memory_space<vmem>>, vector<64x196xf32>,
    %c384_45 = arith.constant 384 : index
    %c2_46 = arith.constant 2 : index
    %74 = vector.load %arg6[%c384_45, %c2_46] : memref<512x228xf32, #tpu.memory_space<vmem>>, vector<64x196xf32>
    %c384_47 = arith.constant 384 : index
    %c30_48 = arith.constant 30 : index
    %75 = vector.load %arg6[%c384_47, %c30_48] : memref<512x228xf32, #tpu.memory_space<vmem>>, vector<64x196xf32>
    %76 = arith.maximumf %74, %75 : vector<64x196xf32>
    %77 = arith.maximumf %72, %76 : vector<64x196xf32>
    %c384_49 = arith.constant 384 : index
    %c16_50 = arith.constant 16 : index
    %78 = vector.load %arg6[%c384_49, %c16_50] : memref<512x228xf32, #tpu.memory_space<vmem>>, vector<64x196xf32>
    tpu.vector_store %arg6[%c384_49, %c16_50], %77 {strides = array<i32>} : memref<512x228xf32, #tpu.memory_space<vmem>>, vector<64x196xf32>,
    %c384_51 = arith.constant 384 : index
    %c15_52 = arith.constant 15 : index
    %79 = vector.load %arg6[%c384_51, %c15_52] : memref<512x228xf32, #tpu.memory_space<vmem>>, vector<64x196xf32>
    %cst_53 = arith.constant 0xFF800000 : f32
    %80 = vector.shape_cast %22 : vector<1x196xi1> to vector<1x196xi1>
    %81 = vector.broadcast %80 : vector<1x196xi1> to vector<64x196xi1>
    %82 = vector.broadcast %cst_53 : f32 to vector<64x196xf32>
    %83 = arith.select %81, %79, %82 : vector<64x196xi1>, vector<64x196xf32>
    %c384_54 = arith.constant 384 : index
    %c17_55 = arith.constant 17 : index
    %84 = vector.load %arg6[%c384_54, %c17_55] : memref<512x228xf32, #tpu.memory_space<vmem>>, vector<64x196xf32>
    %cst_56 = arith.constant 0xFF800000 : f32
    %85 = vector.shape_cast %24 : vector<1x196xi1> to vector<1x196xi1>
    %86 = vector.broadcast %85 : vector<1x196xi1> to vector<64x196xi1>
    %87 = vector.broadcast %cst_56 : f32 to vector<64x196xf32>
    %88 = arith.select %86, %84, %87 : vector<64x196xi1>, vector<64x196xf32>
    %89 = arith.maximumf %83, %88 : vector<64x196xf32>
    %90 = arith.maximumf %77, %89 : vector<64x196xf32>
    %c0_57 = arith.constant 0 : index
    %c384_58 = arith.constant 384 : index
    %c0_59 = arith.constant 0 : index
    %91 = vector.load %arg5[%c0_57, %c384_58, %c0_59] : memref<1x512x196xf32, #tpu.memory_space<vmem>>, vector<1x64x196xf32>
    %92 = vector.shape_cast %91 : vector<1x64x196xf32> to vector<64x196xf32>
    %93 = vector.shape_cast %90 : vector<64x196xf32> to vector<1x64x196xf32>
    tpu.vector_store %arg5[%c0_57, %c384_58, %c0_59], %93 {strides = array<i32>} : memref<1x512x196xf32, #tpu.memory_space<vmem>>, vector<1x64x196xf32>,
    %c0_60 = arith.constant 0 : index
    %c0_61 = arith.constant 0 : index
    %c0_62 = arith.constant 0 : index
    %94 = vector.load %arg4[%c0_60, %c0_61, %c0_62] : memref<1x64x196xf32, #tpu.memory_space<vmem>>, vector<1x64x196xf32>
    %95 = vector.shape_cast %94 : vector<1x64x196xf32> to vector<64x196xf32>
    %c448 = arith.constant 448 : index
    %c16_63 = arith.constant 16 : index
    %96 = vector.load %arg6[%c448, %c16_63] : memref<512x228xf32, #tpu.memory_space<vmem>>, vector<64x196xf32>
    tpu.vector_store %arg6[%c448, %c16_63], %95 {strides = array<i32>} : memref<512x228xf32, #tpu.memory_space<vmem>>, vector<64x196xf32>,
    %c448_64 = arith.constant 448 : index
    %c2_65 = arith.constant 2 : index
    %97 = vector.load %arg6[%c448_64, %c2_65] : memref<512x228xf32, #tpu.memory_space<vmem>>, vector<64x196xf32>
    %c448_66 = arith.constant 448 : index
    %c30_67 = arith.constant 30 : index
    %98 = vector.load %arg6[%c448_66, %c30_67] : memref<512x228xf32, #tpu.memory_space<vmem>>, vector<64x196xf32>
    %99 = arith.maximumf %97, %98 : vector<64x196xf32>
    %100 = arith.maximumf %95, %99 : vector<64x196xf32>
    %c448_68 = arith.constant 448 : index
    %c16_69 = arith.constant 16 : index
    %101 = vector.load %arg6[%c448_68, %c16_69] : memref<512x228xf32, #tpu.memory_space<vmem>>, vector<64x196xf32>
    tpu.vector_store %arg6[%c448_68, %c16_69], %100 {strides = array<i32>} : memref<512x228xf32, #tpu.memory_space<vmem>>, vector<64x196xf32>,
    %c448_70 = arith.constant 448 : index
    %c15_71 = arith.constant 15 : index
    %102 = vector.load %arg6[%c448_70, %c15_71] : memref<512x228xf32, #tpu.memory_space<vmem>>, vector<64x196xf32>
    %cst_72 = arith.constant 0xFF800000 : f32
    %103 = vector.shape_cast %22 : vector<1x196xi1> to vector<1x196xi1>
    %104 = vector.broadcast %103 : vector<1x196xi1> to vector<64x196xi1>
    %105 = vector.broadcast %cst_72 : f32 to vector<64x196xf32>
    %106 = arith.select %104, %102, %105 : vector<64x196xi1>, vector<64x196xf32>
    %c448_73 = arith.constant 448 : index
    %c17_74 = arith.constant 17 : index
    %107 = vector.load %arg6[%c448_73, %c17_74] : memref<512x228xf32, #tpu.memory_space<vmem>>, vector<64x196xf32>
    %cst_75 = arith.constant 0xFF800000 : f32
    %108 = vector.shape_cast %24 : vector<1x196xi1> to vector<1x196xi1>
    %109 = vector.broadcast %108 : vector<1x196xi1> to vector<64x196xi1>
    %110 = vector.broadcast %cst_75 : f32 to vector<64x196xf32>
    %111 = arith.select %109, %107, %110 : vector<64x196xi1>, vector<64x196xf32>
    %112 = arith.maximumf %106, %111 : vector<64x196xf32>
    %113 = arith.maximumf %100, %112 : vector<64x196xf32>
    %c0_76 = arith.constant 0 : index
    %c448_77 = arith.constant 448 : index
    %c0_78 = arith.constant 0 : index
    %114 = vector.load %arg5[%c0_76, %c448_77, %c0_78] : memref<1x512x196xf32, #tpu.memory_space<vmem>>, vector<1x64x196xf32>
    %115 = vector.shape_cast %114 : vector<1x64x196xf32> to vector<64x196xf32>
    %116 = vector.shape_cast %113 : vector<64x196xf32> to vector<1x64x196xf32>
    tpu.vector_store %arg5[%c0_76, %c448_77, %c0_78], %116 {strides = array<i32>} : memref<1x512x196xf32, #tpu.memory_space<vmem>>, vector<1x64x196xf32>,
    return
  }
  func.func @transform_0(%arg0: i32) -> (i32, i32, i32) {
    %c0_i32 = arith.constant 0 : i32
    %c0_i32_0 = arith.constant 0 : i32
    %c0_i32_1 = arith.constant 0 : i32
    return %arg0, %c0_i32, %c0_i32_0 : i32, i32, i32
  }
  func.func @transform_1(%arg0: i32) -> (i32, i32, i32) {
    %c0_i32 = arith.constant 0 : i32
    %c0_i32_0 = arith.constant 0 : i32
    %c0_i32_1 = arith.constant 0 : i32
    return %arg0, %c0_i32, %c0_i32_0 : i32, i32, i32
  }
  func.func @transform_2(%arg0: i32) -> (i32, i32, i32) {
    %c0_i32 = arith.constant 0 : i32
    %c0_i32_0 = arith.constant 0 : i32
    %c0_i32_1 = arith.constant 0 : i32
    return %arg0, %c0_i32, %c0_i32_0 : i32, i32, i32
  }
  func.func @transform_3(%arg0: i32) -> (i32, i32, i32) {
    %c0_i32 = arith.constant 0 : i32
    %c0_i32_0 = arith.constant 0 : i32
    %c0_i32_1 = arith.constant 0 : i32
    return %arg0, %c0_i32, %c0_i32_0 : i32, i32, i32
  }
  func.func @transform_4(%arg0: i32) -> (i32, i32, i32) {
    %c0_i32 = arith.constant 0 : i32
    %c0_i32_0 = arith.constant 0 : i32
    %c0_i32_1 = arith.constant 0 : i32
    return %arg0, %c0_i32, %c0_i32_0 : i32, i32, i32
  }
}

</mosaic_0001>

<bundles_post_ra>
// kernel: forward.1
= control target key start
LH: loop header
LB: loop body
LE: loop exit
PB: predicated region body
PF: predicated region fallthrough
CT: control target
= control target key end

     0   :  { %vm17_vm0 = vcmask 130048   ;;  %vm82_vm1 = vcmask 818848   ;;  %v5160_v2 = vmov -inf   ;;  %s5161_s19 = smov 16   ;;  %vm412_vm2 = vcmask 1047680   ;;  %s5162_s21 = smov 100   ;;  %s10613_s0 = inlined_call_operand.vmem [shape: f32[1,160,196], index: 0, kind: input, shape index: {}]   ;;  %s10614_s1 = inlined_call_operand.vmem [shape: f32[1,224,196], index: 1, kind: input, shape index: {}]   ;;  %s10615_s4 = inlined_call_operand.vmem [shape: f32[1,512,196], index: 4, kind: output, shape index: {}]   ;;  %s10616_s2 = inlined_call_operand.vmem [shape: f32[1,64,196], index: 2, kind: input, shape index: {}]   ;;  %s10617_s3 = inlined_call_operand.vmem [shape: f32[1,64,196], index: 3, kind: input, shape index: {}]  }
   0x1   :  { %v5195_v0 = vld [vmem:[%s10613_s0 + $0x10] sm:$0xff]  ;;  %v5200_v1 = vld [vmem:[%s10613_s0] sm:$0xff]  ;;  %19 = vst.msk [vmem:[#allocation2 + $0x10] sm:$0xff] %vm17_vm0, %v5160_v2  ;;  %18 = vst.msk [vmem:[#allocation2] sm:$0xff] %vm17_vm0, %v5160_v2  ;;  %vm414_vm3 = vcmask 687104   ;;  %vm614_vm4 = vcmask 818176  }
   0x2   :  { %20 = vst.msk [vmem:[#allocation2 + $0x20] sm:$0xff] %vm17_vm0, %v5160_v2  ;;  %21 = vst.msk [vmem:[#allocation2 + $0x30] sm:$0xff] %vm17_vm0, %v5160_v2  ;;  %276 = vrot.lane.b32.xlu1 %v5195_v0, %s5161_s19  ;;  %272 = vrot.lane.b32.xlu0 %v5200_v1, %s5161_s19  ;;  %v5465_v3 = vld [vmem:[%s10613_s0 + $0x18] sm:$0xff]  ;;  %v5470_v4 = vld [vmem:[%s10613_s0 + $0x8] sm:$0xff]  ;;  %s5163_s28 = smov 126   ;;  %vm835_vm5 = vcmask 1031168  }
   0x3   :  { %22 = vst.msk [vmem:[#allocation2 + $0x40] sm:$0xff] %vm17_vm0, %v5160_v2  ;;  %23 = vst.msk [vmem:[#allocation2 + $0x50] sm:$0xff] %vm17_vm0, %v5160_v2  ;;  %v5479_v5 = vld [vmem:[%s10613_s0 + $0x28] sm:$0xff]  ;;  %v5484_v6 = vld [vmem:[%s10613_s0 + $0x20] sm:$0xff]  ;;  %s5165_s9 = smov 111   ;;  %vm1320_vm14 = vcmask 924672  }
   0x4   :  { %24 = vst.msk [vmem:[#allocation2 + $0x60] sm:$0xff] %vm17_vm0, %v5160_v2  ;;  %25 = vst.msk [vmem:[#allocation2 + $0x70] sm:$0xff] %vm17_vm0, %v5160_v2  ;;  %v5493_v7 = vld [vmem:[%s10613_s0 + $0x38] sm:$0xff]  ;;  %v5498_v8 = vld [vmem:[%s10613_s0 + $0x30] sm:$0xff] }
   0x5   :  { %26 = vst.msk [vmem:[#allocation2 + $0x80] sm:$0xff] %vm17_vm0, %v5160_v2  ;;  %27 = vst.msk [vmem:[#allocation2 + $0x90] sm:$0xff] %vm17_vm0, %v5160_v2  ;;  %v5507_v9 = vld [vmem:[%s10613_s0 + $0x48] sm:$0xff]  ;;  %v5512_v10 = vld [vmem:[%s10613_s0 + $0x40] sm:$0xff] }
   0x6   :  { %28 = vst.msk [vmem:[#allocation2 + $0xa0] sm:$0xff] %vm17_vm0, %v5160_v2  ;;  %29 = vst.msk [vmem:[#allocation2 + $0xb0] sm:$0xff] %vm17_vm0, %v5160_v2  ;;  %278 = vrot.lane.b32.xlu1 %v5465_v3, %s5161_s19  ;;  %274 = vrot.lane.b32.xlu0 %v5470_v4, %s5161_s19  ;;  %v5521_v11 = vld [vmem:[%s10613_s0 + $0x58] sm:$0xff]  ;;  %v5526_v12 = vld [vmem:[%s10613_s0 + $0x50] sm:$0xff] }
   0x7   :  { %30 = vst.msk [vmem:[#allocation2 + $0xc0] sm:$0xff] %vm17_vm0, %v5160_v2  ;;  %31 = vst.msk [vmem:[#allocation2 + $0xd0] sm:$0xff] %vm17_vm0, %v5160_v2  ;;  %v5535_v13 = vld [vmem:[%s10613_s0 + $0x68] sm:$0xff]  ;;  %v5540_v14 = vld [vmem:[%s10613_s0 + $0x60] sm:$0xff] }
   0x8   :  { %32 = vst.msk [vmem:[#allocation2 + $0xe0] sm:$0xff] %vm17_vm0, %v5160_v2  ;;  %33 = vst.msk [vmem:[#allocation2 + $0xf0] sm:$0xff] %vm17_vm0, %v5160_v2  ;;  %v5549_v15 = vld [vmem:[%s10613_s0 + $0x78] sm:$0xff]  ;;  %v5554_v16 = vld [vmem:[%s10613_s0 + $0x70] sm:$0xff] }
   0x9   :  { %34 = vst.msk [vmem:[#allocation2 + $0x100] sm:$0xff] %vm17_vm0, %v5160_v2  ;;  %35 = vst.msk [vmem:[#allocation2 + $0x110] sm:$0xff] %vm17_vm0, %v5160_v2  ;;  %v5563_v17 = vld [vmem:[%s10613_s0 + $0x88] sm:$0xff]  ;;  %v5568_v18 = vld [vmem:[%s10613_s0 + $0x80] sm:$0xff] }
   0xa   :  { %36 = vst.msk [vmem:[#allocation2 + $0x120] sm:$0xff] %vm17_vm0, %v5160_v2  ;;  %37 = vst.msk [vmem:[#allocation2 + $0x130] sm:$0xff] %vm17_vm0, %v5160_v2  ;;  %282 = vrot.lane.b32.xlu1 %v5479_v5, %s5161_s19  ;;  %280 = vrot.lane.b32.xlu0 %v5484_v6, %s5161_s19  ;;  %v5577_v19 = vld [vmem:[%s10613_s0 + $0x98] sm:$0xff]  ;;  %v5582_v20 = vld [vmem:[%s10613_s0 + $0x90] sm:$0xff] }
   0xb   :  { %38 = vst.msk [vmem:[#allocation2 + $0x140] sm:$0xff] %vm17_vm0, %v5160_v2  ;;  %39 = vst.msk [vmem:[#allocation2 + $0x150] sm:$0xff] %vm17_vm0, %v5160_v2  ;;  %v5591_v21 = vld [vmem:[%s10613_s0 + $0xa8] sm:$0xff]  ;;  %v5596_v22 = vld [vmem:[%s10613_s0 + $0xa0] sm:$0xff] }
   0xc   :  { %40 = vst.msk [vmem:[#allocation2 + $0x160] sm:$0xff] %vm17_vm0, %v5160_v2  ;;  %41 = vst.msk [vmem:[#allocation2 + $0x170] sm:$0xff] %vm17_vm0, %v5160_v2  ;;  %v5605_v23 = vld [vmem:[%s10613_s0 + $0xb8] sm:$0xff]  ;;  %v5610_v24 = vld [vmem:[%s10613_s0 + $0xb0] sm:$0xff] }
   0xd   :  { %42 = vst.msk [vmem:[#allocation2 + $0x180] sm:$0xff] %vm17_vm0, %v5160_v2  ;;  %43 = vst.msk [vmem:[#allocation2 + $0x190] sm:$0xff] %vm17_vm0, %v5160_v2  ;;  %v5619_v25 = vld [vmem:[%s10613_s0 + $0xc8] sm:$0xff]  ;;  %v5624_v26 = vld [vmem:[%s10613_s0 + $0xc0] sm:$0xff] }
   0xe   :  { %44 = vst.msk [vmem:[#allocation2 + $0x1a0] sm:$0xff] %vm17_vm0, %v5160_v2  ;;  %45 = vst.msk [vmem:[#allocation2 + $0x1b0] sm:$0xff] %vm17_vm0, %v5160_v2  ;;  %286 = vrot.lane.b32.xlu1 %v5493_v7, %s5161_s19  ;;  %284 = vrot.lane.b32.xlu0 %v5498_v8, %s5161_s19  ;;  %v5633_v27 = vld [vmem:[%s10613_s0 + $0xd8] sm:$0xff]  ;;  %v5638_v28 = vld [vmem:[%s10613_s0 + $0xd0] sm:$0xff] }
   0xf   :  { %46 = vst.msk [vmem:[#allocation2 + $0x1c0] sm:$0xff] %vm17_vm0, %v5160_v2  ;;  %47 = vst.msk [vmem:[#allocation2 + $0x1d0] sm:$0xff] %vm17_vm0, %v5160_v2  ;;  %v5647_v29 = vld [vmem:[%s10613_s0 + $0xe8] sm:$0xff]  ;;  %v5652_v30 = vld [vmem:[%s10613_s0 + $0xe0] sm:$0xff] }
  0x10   :  { %48 = vst.msk [vmem:[#allocation2 + $0x1e0] sm:$0xff] %vm17_vm0, %v5160_v2  ;;  %49 = vst.msk [vmem:[#allocation2 + $0x1f0] sm:$0xff] %vm17_vm0, %v5160_v2  ;;  %v5661_v31 = vld [vmem:[%s10613_s0 + $0xf8] sm:$0xff]  ;;  %v5666_v32 = vld [vmem:[%s10613_s0 + $0xf0] sm:$0xff] }
  0x11   :  { %50 = vst.msk [vmem:[#allocation2 + $0x200] sm:$0xff] %vm17_vm0, %v5160_v2  ;;  %51 = vst.msk [vmem:[#allocation2 + $0x210] sm:$0xff] %vm17_vm0, %v5160_v2  ;;  %v5675_v33 = vld [vmem:[%s10613_s0 + $0x108] sm:$0xff]  ;;  %v5680_v34 = vld [vmem:[%s10613_s0 + $0x100] sm:$0xff] }
  0x12   :  { %52 = vst.msk [vmem:[#allocation2 + $0x220] sm:$0xff] %vm17_vm0, %v5160_v2  ;;  %53 = vst.msk [vmem:[#allocation2 + $0x230] sm:$0xff] %vm17_vm0, %v5160_v2  ;;  %290 = vrot.lane.b32.xlu1 %v5507_v9, %s5161_s19  ;;  %288 = vrot.lane.b32.xlu0 %v5512_v10, %s5161_s19  ;;  %v5689_v35 = vld [vmem:[%s10613_s0 + $0x118] sm:$0xff]  ;;  %v5694_v36 = vld [vmem:[%s10613_s0 + $0x110] sm:$0xff] }
  0x13   :  { %54 = vst.msk [vmem:[#allocation2 + $0x240] sm:$0xff] %vm17_vm0, %v5160_v2  ;;  %55 = vst.msk [vmem:[#allocation2 + $0x250] sm:$0xff] %vm17_vm0, %v5160_v2  ;;  %v5703_v37 = vld [vmem:[%s10613_s0 + $0x128] sm:$0xff]  ;;  %v5708_v38 = vld [vmem:[%s10613_s0 + $0x120] sm:$0xff] }
  0x14   :  { %56 = vst.msk [vmem:[#allocation2 + $0x260] sm:$0xff] %vm17_vm0, %v5160_v2  ;;  %57 = vst.msk [vmem:[#allocation2 + $0x270] sm:$0xff] %vm17_vm0, %v5160_v2  ;;  %v5717_v39 = vld [vmem:[%s10613_s0 + $0x138] sm:$0xff]  ;;  %v5722_v40 = vld [vmem:[%s10613_s0 + $0x130] sm:$0xff] }
  0x15   :  { %58 = vst.msk [vmem:[#allocation2 + $0x280] sm:$0xff] %vm17_vm0, %v5160_v2  ;;  %59 = vst.msk [vmem:[#allocation2 + $0x290] sm:$0xff] %vm17_vm0, %v5160_v2 }
  0x16   :  { %60 = vst.msk [vmem:[#allocation2 + $0x2a0] sm:$0xff] %vm17_vm0, %v5160_v2  ;;  %61 = vst.msk [vmem:[#allocation2 + $0x2b0] sm:$0xff] %vm17_vm0, %v5160_v2  ;;  %294 = vrot.lane.b32.xlu1 %v5521_v11, %s5161_s19  ;;  %292 = vrot.lane.b32.xlu0 %v5526_v12, %s5161_s19 }
  0x17   :  { %62 = vst.msk [vmem:[#allocation2 + $0x2c0] sm:$0xff] %vm17_vm0, %v5160_v2  ;;  %63 = vst.msk [vmem:[#allocation2 + $0x2d0] sm:$0xff] %vm17_vm0, %v5160_v2 }
  0x18   :  { %64 = vst.msk [vmem:[#allocation2 + $0x2e0] sm:$0xff] %vm17_vm0, %v5160_v2  ;;  %65 = vst.msk [vmem:[#allocation2 + $0x2f0] sm:$0xff] %vm17_vm0, %v5160_v2 }
  0x19   :  { %66 = vst.msk [vmem:[#allocation2 + $0x300] sm:$0xff] %vm17_vm0, %v5160_v2  ;;  %67 = vst.msk [vmem:[#allocation2 + $0x310] sm:$0xff] %vm17_vm0, %v5160_v2 }
  0x1a   :  { %68 = vst.msk [vmem:[#allocation2 + $0x320] sm:$0xff] %vm17_vm0, %v5160_v2  ;;  %69 = vst.msk [vmem:[#allocation2 + $0x330] sm:$0xff] %vm17_vm0, %v5160_v2  ;;  %298 = vrot.lane.b32.xlu1 %v5535_v13, %s5161_s19  ;;  %296 = vrot.lane.b32.xlu0 %v5540_v14, %s5161_s19 }
  0x1b   :  { %70 = vst.msk [vmem:[#allocation2 + $0x340] sm:$0xff] %vm17_vm0, %v5160_v2  ;;  %71 = vst.msk [vmem:[#allocation2 + $0x350] sm:$0xff] %vm17_vm0, %v5160_v2 }
  0x1c   :  { %72 = vst.msk [vmem:[#allocation2 + $0x360] sm:$0xff] %vm17_vm0, %v5160_v2  ;;  %73 = vst.msk [vmem:[#allocation2 + $0x370] sm:$0xff] %vm17_vm0, %v5160_v2 }
  0x1d   :  { %74 = vst.msk [vmem:[#allocation2 + $0x380] sm:$0xff] %vm17_vm0, %v5160_v2  ;;  %75 = vst.msk [vmem:[#allocation2 + $0x390] sm:$0xff] %vm17_vm0, %v5160_v2 }
  0x1e   :  { %76 = vst.msk [vmem:[#allocation2 + $0x3a0] sm:$0xff] %vm17_vm0, %v5160_v2  ;;  %77 = vst.msk [vmem:[#allocation2 + $0x3b0] sm:$0xff] %vm17_vm0, %v5160_v2  ;;  %302 = vrot.lane.b32.xlu1 %v5549_v15, %s5161_s19  ;;  %300 = vrot.lane.b32.xlu0 %v5554_v16, %s5161_s19 }
  0x1f   :  { %78 = vst.msk [vmem:[#allocation2 + $0x3c0] sm:$0xff] %vm17_vm0, %v5160_v2  ;;  %79 = vst.msk [vmem:[#allocation2 + $0x3d0] sm:$0xff] %vm17_vm0, %v5160_v2 }
  0x20   :  { %80 = vst.msk [vmem:[#allocation2 + $0x3e0] sm:$0xff] %vm17_vm0, %v5160_v2  ;;  %81 = vst.msk [vmem:[#allocation2 + $0x3f0] sm:$0xff] %vm17_vm0, %v5160_v2 }
  0x21   :  { %84 = vst.msk [vmem:[#allocation2 + $0x18] sm:$0xff] %vm82_vm1, %v5160_v2  ;;  %83 = vst.msk [vmem:[#allocation2 + $0x8] sm:$0xff] %vm82_vm1, %v5160_v2 }
  0x22   :  { %85 = vst.msk [vmem:[#allocation2 + $0x28] sm:$0xff] %vm82_vm1, %v5160_v2  ;;  %86 = vst.msk [vmem:[#allocation2 + $0x38] sm:$0xff] %vm82_vm1, %v5160_v2  ;;  %306 = vrot.lane.b32.xlu1 %v5563_v17, %s5161_s19  ;;  %304 = vrot.lane.b32.xlu0 %v5568_v18, %s5161_s19 }
  0x23   :  { %87 = vst.msk [vmem:[#allocation2 + $0x48] sm:$0xff] %vm82_vm1, %v5160_v2  ;;  %88 = vst.msk [vmem:[#allocation2 + $0x58] sm:$0xff] %vm82_vm1, %v5160_v2 }
  0x24   :  { %89 = vst.msk [vmem:[#allocation2 + $0x68] sm:$0xff] %vm82_vm1, %v5160_v2  ;;  %90 = vst.msk [vmem:[#allocation2 + $0x78] sm:$0xff] %vm82_vm1, %v5160_v2 }
  0x25   :  { %91 = vst.msk [vmem:[#allocation2 + $0x88] sm:$0xff] %vm82_vm1, %v5160_v2  ;;  %92 = vst.msk [vmem:[#allocation2 + $0x98] sm:$0xff] %vm82_vm1, %v5160_v2 }
  0x26   :  { %93 = vst.msk [vmem:[#allocation2 + $0xa8] sm:$0xff] %vm82_vm1, %v5160_v2  ;;  %94 = vst.msk [vmem:[#allocation2 + $0xb8] sm:$0xff] %vm82_vm1, %v5160_v2  ;;  %310 = vrot.lane.b32.xlu1 %v5577_v19, %s5161_s19  ;;  %308 = vrot.lane.b32.xlu0 %v5582_v20, %s5161_s19 }
  0x27   :  { %95 = vst.msk [vmem:[#allocation2 + $0xc8] sm:$0xff] %vm82_vm1, %v5160_v2  ;;  %96 = vst.msk [vmem:[#allocation2 + $0xd8] sm:$0xff] %vm82_vm1, %v5160_v2 }
  0x28   :  { %97 = vst.msk [vmem:[#allocation2 + $0xe8] sm:$0xff] %vm82_vm1, %v5160_v2  ;;  %98 = vst.msk [vmem:[#allocation2 + $0xf8] sm:$0xff] %vm82_vm1, %v5160_v2 }
  0x29   :  { %99 = vst.msk [vmem:[#allocation2 + $0x108] sm:$0xff] %vm82_vm1, %v5160_v2  ;;  %100 = vst.msk [vmem:[#allocation2 + $0x118] sm:$0xff] %vm82_vm1, %v5160_v2 }
  0x2a   :  { %101 = vst.msk [vmem:[#allocation2 + $0x128] sm:$0xff] %vm82_vm1, %v5160_v2  ;;  %102 = vst.msk [vmem:[#allocation2 + $0x138] sm:$0xff] %vm82_vm1, %v5160_v2  ;;  %314 = vrot.lane.b32.xlu1 %v5591_v21, %s5161_s19  ;;  %312 = vrot.lane.b32.xlu0 %v5596_v22, %s5161_s19 }
  0x2b   :  { %103 = vst.msk [vmem:[#allocation2 + $0x148] sm:$0xff] %vm82_vm1, %v5160_v2  ;;  %104 = vst.msk [vmem:[#allocation2 + $0x158] sm:$0xff] %vm82_vm1, %v5160_v2 }
  0x2c   :  { %105 = vst.msk [vmem:[#allocation2 + $0x168] sm:$0xff] %vm82_vm1, %v5160_v2  ;;  %106 = vst.msk [vmem:[#allocation2 + $0x178] sm:$0xff] %vm82_vm1, %v5160_v2 }
  0x2d   :  { %107 = vst.msk [vmem:[#allocation2 + $0x188] sm:$0xff] %vm82_vm1, %v5160_v2  ;;  %108 = vst.msk [vmem:[#allocation2 + $0x198] sm:$0xff] %vm82_vm1, %v5160_v2 }
  0x2e   :  { %109 = vst.msk [vmem:[#allocation2 + $0x1a8] sm:$0xff] %vm82_vm1, %v5160_v2  ;;  %110 = vst.msk [vmem:[#allocation2 + $0x1b8] sm:$0xff] %vm82_vm1, %v5160_v2  ;;  %318 = vrot.lane.b32.xlu1 %v5605_v23, %s5161_s19  ;;  %316 = vrot.lane.b32.xlu0 %v5610_v24, %s5161_s19 }
  0x2f   :  { %111 = vst.msk [vmem:[#allocation2 + $0x1c8] sm:$0xff] %vm82_vm1, %v5160_v2  ;;  %112 = vst.msk [vmem:[#allocation2 + $0x1d8] sm:$0xff] %vm82_vm1, %v5160_v2 }
  0x30   :  { %113 = vst.msk [vmem:[#allocation2 + $0x1e8] sm:$0xff] %vm82_vm1, %v5160_v2  ;;  %114 = vst.msk [vmem:[#allocation2 + $0x1f8] sm:$0xff] %vm82_vm1, %v5160_v2 }
  0x31   :  { %115 = vst.msk [vmem:[#allocation2 + $0x208] sm:$0xff] %vm82_vm1, %v5160_v2  ;;  %116 = vst.msk [vmem:[#allocation2 + $0x218] sm:$0xff] %vm82_vm1, %v5160_v2 }
  0x32   :  { %117 = vst.msk [vmem:[#allocation2 + $0x228] sm:$0xff] %vm82_vm1, %v5160_v2  ;;  %118 = vst.msk [vmem:[#allocation2 + $0x238] sm:$0xff] %vm82_vm1, %v5160_v2  ;;  %322 = vrot.lane.b32.xlu1 %v5619_v25, %s5161_s19  ;;  %320 = vrot.lane.b32.xlu0 %v5624_v26, %s5161_s19 }
  0x33   :  { %119 = vst.msk [vmem:[#allocation2 + $0x248] sm:$0xff] %vm82_vm1, %v5160_v2  ;;  %120 = vst.msk [vmem:[#allocation2 + $0x258] sm:$0xff] %vm82_vm1, %v5160_v2 }
  0x34   :  { %121 = vst.msk [vmem:[#allocation2 + $0x268] sm:$0xff] %vm82_vm1, %v5160_v2  ;;  %122 = vst.msk [vmem:[#allocation2 + $0x278] sm:$0xff] %vm82_vm1, %v5160_v2 }
  0x35   :  { %123 = vst.msk [vmem:[#allocation2 + $0x288] sm:$0xff] %vm82_vm1, %v5160_v2  ;;  %124 = vst.msk [vmem:[#allocation2 + $0x298] sm:$0xff] %vm82_vm1, %v5160_v2 }
  0x36   :  { %125 = vst.msk [vmem:[#allocation2 + $0x2a8] sm:$0xff] %vm82_vm1, %v5160_v2  ;;  %126 = vst.msk [vmem:[#allocation2 + $0x2b8] sm:$0xff] %vm82_vm1, %v5160_v2  ;;  %326 = vrot.lane.b32.xlu1 %v5633_v27, %s5161_s19  ;;  %324 = vrot.lane.b32.xlu0 %v5638_v28, %s5161_s19 }
  0x37   :  { %127 = vst.msk [vmem:[#allocation2 + $0x2c8] sm:$0xff] %vm82_vm1, %v5160_v2  ;;  %128 = vst.msk [vmem:[#allocation2 + $0x2d8] sm:$0xff] %vm82_vm1, %v5160_v2 }
  0x38   :  { %129 = vst.msk [vmem:[#allocation2 + $0x2e8] sm:$0xff] %vm82_vm1, %v5160_v2  ;;  %130 = vst.msk [vmem:[#allocation2 + $0x2f8] sm:$0xff] %vm82_vm1, %v5160_v2 }
  0x39   :  { %131 = vst.msk [vmem:[#allocation2 + $0x308] sm:$0xff] %vm82_vm1, %v5160_v2  ;;  %132 = vst.msk [vmem:[#allocation2 + $0x318] sm:$0xff] %vm82_vm1, %v5160_v2 }
  0x3a   :  { %133 = vst.msk [vmem:[#allocation2 + $0x328] sm:$0xff] %vm82_vm1, %v5160_v2  ;;  %134 = vst.msk [vmem:[#allocation2 + $0x338] sm:$0xff] %vm82_vm1, %v5160_v2  ;;  %330 = vrot.lane.b32.xlu1 %v5647_v29, %s5161_s19  ;;  %328 = vrot.lane.b32.xlu0 %v5652_v30, %s5161_s19 }
  0x3b   :  { %135 = vst.msk [vmem:[#allocation2 + $0x348] sm:$0xff] %vm82_vm1, %v5160_v2  ;;  %136 = vst.msk [vmem:[#allocation2 + $0x358] sm:$0xff] %vm82_vm1, %v5160_v2 }
  0x3c   :  { %137 = vst.msk [vmem:[#allocation2 + $0x368] sm:$0xff] %vm82_vm1, %v5160_v2  ;;  %138 = vst.msk [vmem:[#allocation2 + $0x378] sm:$0xff] %vm82_vm1, %v5160_v2 }
  0x3d   :  { %139 = vst.msk [vmem:[#allocation2 + $0x388] sm:$0xff] %vm82_vm1, %v5160_v2  ;;  %140 = vst.msk [vmem:[#allocation2 + $0x398] sm:$0xff] %vm82_vm1, %v5160_v2 }
  0x3e   :  { %141 = vst.msk [vmem:[#allocation2 + $0x3a8] sm:$0xff] %vm82_vm1, %v5160_v2  ;;  %142 = vst.msk [vmem:[#allocation2 + $0x3b8] sm:$0xff] %vm82_vm1, %v5160_v2  ;;  %334 = vrot.lane.b32.xlu1 %v5661_v31, %s5161_s19  ;;  %332 = vrot.lane.b32.xlu0 %v5666_v32, %s5161_s19 }
  0x3f   :  { %143 = vst.msk [vmem:[#allocation2 + $0x3c8] sm:$0xff] %vm82_vm1, %v5160_v2  ;;  %144 = vst.msk [vmem:[#allocation2 + $0x3d8] sm:$0xff] %vm82_vm1, %v5160_v2 }
  0x40   :  { %145 = vst.msk [vmem:[#allocation2 + $0x3e8] sm:$0xff] %vm82_vm1, %v5160_v2  ;;  %146 = vst.msk [vmem:[#allocation2 + $0x3f8] sm:$0xff] %vm82_vm1, %v5160_v2 }
  0x41   :  { %10744 = vst [vmem:[#allocation3_spill] sm:$0xff] %v5549_v15  ;;  %10745 = vst [vmem:[#allocation4_spill] sm:$0xff] %v5554_v16 }
  0x42   :  { %10746 = vst [vmem:[#allocation5_spill] sm:$0xff] %v5563_v17  ;;  %10747 = vst [vmem:[#allocation6_spill] sm:$0xff] %v5568_v18  ;;  %338 = vrot.lane.b32.xlu1 %v5675_v33, %s5161_s19  ;;  %336 = vrot.lane.b32.xlu0 %v5680_v34, %s5161_s19 }
  0x43   :  { %10748 = vst [vmem:[#allocation7_spill] sm:$0xff] %v5577_v19  ;;  %10749 = vst [vmem:[#allocation8_spill] sm:$0xff] %v5582_v20 }
  0x44   :  { %10750 = vst [vmem:[#allocation9_spill] sm:$0xff] %v5591_v21  ;;  %10751 = vst [vmem:[#allocation10_spill] sm:$0xff] %v5596_v22 }
  0x45   :  { %10752 = vst [vmem:[#allocation11_spill] sm:$0xff] %v5605_v23  ;;  %10753 = vst [vmem:[#allocation12_spill] sm:$0xff] %v5610_v24  ;;  %v1728_v24 = vld [vmem:[%s10614_s1 + $0x8] sm:$0xff] }
  0x46   :  { %10754 = vst [vmem:[#allocation13_spill] sm:$0xff] %v5619_v25  ;;  %10755 = vst [vmem:[#allocation14_spill] sm:$0xff] %v5624_v26  ;;  %342 = vrot.lane.b32.xlu1 %v5689_v35, %s5161_s19  ;;  %340 = vrot.lane.b32.xlu0 %v5694_v36, %s5161_s19  ;;  %v1729_v25 = vld [vmem:[%s10614_s1 + $0x10] sm:$0xff] }
  0x47   :  { %10756 = vst [vmem:[#allocation15_spill] sm:$0xff] %v5633_v27  ;;  %10757 = vst [vmem:[#allocation16_spill] sm:$0xff] %v5638_v28 }
  0x48   :  { %10758 = vst [vmem:[#allocation17_spill] sm:$0xff] %v5647_v29  ;;  %10759 = vst [vmem:[#allocation18_spill] sm:$0xff] %v5652_v30 }
  0x49   :  { %10760 = vst [vmem:[#allocation19_spill] sm:$0xff] %v5661_v31  ;;  %10761 = vst [vmem:[#allocation20_spill] sm:$0xff] %v5666_v32 }
  0x4a   :  { %10762 = vst [vmem:[#allocation21_spill] sm:$0xff] %v5675_v33  ;;  %10763 = vst [vmem:[#allocation22_spill] sm:$0xff] %v5680_v34  ;;  %346 = vrot.lane.b32.xlu1 %v5703_v37, %s5161_s19  ;;  %344 = vrot.lane.b32.xlu0 %v5708_v38, %s5161_s19 }
  0x4b   :  { %10764 = vst [vmem:[#allocation23_spill] sm:$0xff] %v5689_v35  ;;  %10765 = vst [vmem:[#allocation24_spill] sm:$0xff] %v5694_v36 }
  0x4c   :  { %10766 = vst [vmem:[#allocation25_spill] sm:$0xff] %v5703_v37  ;;  %10767 = vst [vmem:[#allocation26_spill] sm:$0xff] %v5708_v38 }
  0x4d   :  { %10768 = vst [vmem:[#allocation27_spill] sm:$0xff] %v5717_v39  ;;  %10769 = vst [vmem:[#allocation28_spill] sm:$0xff] %v5722_v40 }
  0x4e   :  { %350 = vrot.lane.b32.xlu1 %v5717_v39, %s5161_s19  ;;  %348 = vrot.lane.b32.xlu0 %v5722_v40, %s5161_s19 }
  0x74   :  { %v277_v41 = vpop.permute.xlu1 %276  ;;  %v273_v42 = vpop.permute.xlu0 %272 }
  0x75   :  { %416 = vst.msk [vmem:[#allocation2 + $0x10] sm:$0xff] %vm412_vm2, %v277_v41  ;;  %413 = vst.msk [vmem:[#allocation2] sm:$0xff] %vm412_vm2, %v273_v42 }
  0x78   :  { %v279_v43 = vpop.permute.xlu1 %278  ;;  %v275_v44 = vpop.permute.xlu0 %274 }
  0x79   :  { %v353_v45 = vsel %vm17_vm0, %v277_v41, %v279_v43  ;;  %v352_v46 = vsel %vm17_vm0, %v273_v42, %v275_v44 }
  0x7a   :  { %417 = vst.msk [vmem:[#allocation2 + $0x18] sm:$0xff] %vm414_vm3, %v353_v45  ;;  %415 = vst.msk [vmem:[#allocation2 + $0x8] sm:$0xff] %vm414_vm3, %v352_v46 }
  0x7c   :  { %v5734_v47 = vld [vmem:[#allocation2] sm:$0xff]  ;;  %v283_v48 = vpop.permute.xlu1 %282  ;;  %v281_v49 = vpop.permute.xlu0 %280  ;;  %v5741_v51 = vld [vmem:[#allocation2 + $0x10] sm:$0xff] }
  0x7d   :  { %534 = vrot.lane.b32.xlu0 %v5734_v47, %s5162_s21  ;;  %v354_v50 = vsel %vm17_vm0, %v281_v49, %v283_v48  ;;  %418 = vst.msk [vmem:[#allocation2 + $0x20] sm:$0xff] %vm412_vm2, %v281_v49 }
  0x7e   :  { %419 = vst.msk [vmem:[#allocation2 + $0x28] sm:$0xff] %vm414_vm3, %v354_v50 }
  0x80   :  { %v287_v52 = vpop.permute.xlu1 %286  ;;  %v285_v53 = vpop.permute.xlu0 %284 }
  0x81   :  { %538 = vrot.lane.b32.xlu0 %v5741_v51, %s5162_s21  ;;  %v5745_v54 = vld [vmem:[#allocation2 + $0x8] sm:$0xff]  ;;  %v355_v55 = vsel %vm17_vm0, %v285_v53, %v287_v52  ;;  %420 = vst.msk [vmem:[#allocation2 + $0x30] sm:$0xff] %vm412_vm2, %v285_v53  ;;  %v5754_v59 = vld [vmem:[#allocation2 + $0x18] sm:$0xff] }
  0x82   :  { %536 = vrot.lane.b32.xlu1 %v5745_v54, %s5162_s21  ;;  %421 = vst.msk [vmem:[#allocation2 + $0x38] sm:$0xff] %vm414_vm3, %v355_v55 }
  0x84   :  { %v291_v56 = vpop.permute.xlu1 %290  ;;  %v289_v57 = vpop.permute.xlu0 %288  ;;  %v5752_v58 = vld [vmem:[#allocation2 + $0x20] sm:$0xff] }
  0x85   :  { %v356_v60 = vsel %vm17_vm0, %v289_v57, %v291_v56  ;;  %422 = vst.msk [vmem:[#allocation2 + $0x40] sm:$0xff] %vm412_vm2, %v289_v57  ;;  %542 = vrot.lane.b32.xlu0 %v5752_v58, %s5162_s21  ;;  %v5763_v61 = vld [vmem:[#allocation2 + $0x28] sm:$0xff] }
  0x86   :  { %540 = vrot.lane.b32.xlu1 %v5754_v59, %s5162_s21  ;;  %423 = vst.msk [vmem:[#allocation2 + $0x48] sm:$0xff] %vm414_vm3, %v356_v60 }
  0x88   :  { %v295_v62 = vpop.permute.xlu1 %294  ;;  %v293_v63 = vpop.permute.xlu0 %292  ;;  %v5765_v0 = vld [vmem:[#allocation2 + $0x30] sm:$0xff] }
  0x89   :  { %v357_v1 = vsel %vm17_vm0, %v293_v63, %v295_v62  ;;  %424 = vst.msk [vmem:[#allocation2 + $0x50] sm:$0xff] %vm412_vm2, %v293_v63  ;;  %546 = vrot.lane.b32.xlu0 %v5765_v0, %s5162_s21  ;;  %v5774_v2 = vld [vmem:[#allocation2 + $0x38] sm:$0xff] }
  0x8a   :  { %544 = vrot.lane.b32.xlu1 %v5763_v61, %s5162_s21  ;;  %425 = vst.msk [vmem:[#allocation2 + $0x58] sm:$0xff] %vm414_vm3, %v357_v1 }
  0x8c   :  { %v299_v41 = vpop.permute.xlu1 %298  ;;  %v297_v42 = vpop.permute.xlu0 %296  ;;  %v5776_v43 = vld [vmem:[#allocation2 + $0x40] sm:$0xff] }
  0x8d   :  { %v358_v44 = vsel %vm17_vm0, %v297_v42, %v299_v41  ;;  %426 = vst.msk [vmem:[#allocation2 + $0x60] sm:$0xff] %vm412_vm2, %v297_v42  ;;  %550 = vrot.lane.b32.xlu0 %v5776_v43, %s5162_s21  ;;  %v5785_v45 = vld [vmem:[#allocation2 + $0x48] sm:$0xff] }
  0x8e   :  { %548 = vrot.lane.b32.xlu1 %v5774_v2, %s5162_s21  ;;  %427 = vst.msk [vmem:[#allocation2 + $0x68] sm:$0xff] %vm414_vm3, %v358_v44 }
  0x90   :  { %v303_v46 = vpop.permute.xlu1 %302  ;;  %v301_v48 = vpop.permute.xlu0 %300  ;;  %v5787_v49 = vld [vmem:[#allocation2 + $0x50] sm:$0xff] }
  0x91   :  { %v359_v50 = vsel %vm17_vm0, %v301_v48, %v303_v46  ;;  %428 = vst.msk [vmem:[#allocation2 + $0x70] sm:$0xff] %vm412_vm2, %v301_v48  ;;  %554 = vrot.lane.b32.xlu0 %v5787_v49, %s5162_s21  ;;  %v5796_v52 = vld [vmem:[#allocation2 + $0x58] sm:$0xff] }
  0x92   :  { %552 = vrot.lane.b32.xlu1 %v5785_v45, %s5162_s21  ;;  %429 = vst.msk [vmem:[#allocation2 + $0x78] sm:$0xff] %vm414_vm3, %v359_v50 }
  0x94   :  { %v307_v53 = vpop.permute.xlu1 %306  ;;  %v305_v55 = vpop.permute.xlu0 %304  ;;  %v5798_v56 = vld [vmem:[#allocation2 + $0x60] sm:$0xff] }
  0x95   :  { %v360_v57 = vsel %vm17_vm0, %v305_v55, %v307_v53  ;;  %430 = vst.msk [vmem:[#allocation2 + $0x80] sm:$0xff] %vm412_vm2, %v305_v55  ;;  %558 = vrot.lane.b32.xlu0 %v5798_v56, %s5162_s21  ;;  %v5807_v60 = vld [vmem:[#allocation2 + $0x68] sm:$0xff] }
  0x96   :  { %556 = vrot.lane.b32.xlu1 %v5796_v52, %s5162_s21  ;;  %431 = vst.msk [vmem:[#allocation2 + $0x88] sm:$0xff] %vm414_vm3, %v360_v57 }
  0x98   :  { %v311_v62 = vpop.permute.xlu1 %310  ;;  %v309_v63 = vpop.permute.xlu0 %308  ;;  %v5809_v1 = vld [vmem:[#allocation2 + $0x70] sm:$0xff] }
  0x99   :  { %v361_v41 = vsel %vm17_vm0, %v309_v63, %v311_v62  ;;  %432 = vst.msk [vmem:[#allocation2 + $0x90] sm:$0xff] %vm412_vm2, %v309_v63  ;;  %562 = vrot.lane.b32.xlu0 %v5809_v1, %s5162_s21  ;;  %v5818_v42 = vld [vmem:[#allocation2 + $0x78] sm:$0xff] }
  0x9a   :  { %560 = vrot.lane.b32.xlu1 %v5807_v60, %s5162_s21  ;;  %433 = vst.msk [vmem:[#allocation2 + $0x98] sm:$0xff] %vm414_vm3, %v361_v41 }
  0x9c   :  { %v315_v44 = vpop.permute.xlu1 %314  ;;  %v313_v46 = vpop.permute.xlu0 %312  ;;  %v5820_v48 = vld [vmem:[#allocation2 + $0x80] sm:$0xff] }
  0x9d   :  { %v362_v50 = vsel %vm17_vm0, %v313_v46, %v315_v44  ;;  %434 = vst.msk [vmem:[#allocation2 + $0xa0] sm:$0xff] %vm412_vm2, %v313_v46  ;;  %566 = vrot.lane.b32.xlu0 %v5820_v48, %s5162_s21  ;;  %v5829_v53 = vld [vmem:[#allocation2 + $0x88] sm:$0xff] }
  0x9e   :  { %564 = vrot.lane.b32.xlu1 %v5818_v42, %s5162_s21  ;;  %435 = vst.msk [vmem:[#allocation2 + $0xa8] sm:$0xff] %vm414_vm3, %v362_v50 }
  0xa0   :  { %v319_v55 = vpop.permute.xlu1 %318  ;;  %v317_v57 = vpop.permute.xlu0 %316  ;;  %v5831_v62 = vld [vmem:[#allocation2 + $0x90] sm:$0xff] }
  0xa1   :  { %v363_v63 = vsel %vm17_vm0, %v317_v57, %v319_v55  ;;  %436 = vst.msk [vmem:[#allocation2 + $0xb0] sm:$0xff] %vm412_vm2, %v317_v57  ;;  %570 = vrot.lane.b32.xlu0 %v5831_v62, %s5162_s21  ;;  %v5840_v41 = vld [vmem:[#allocation2 + $0x98] sm:$0xff] }
  0xa2   :  { %568 = vrot.lane.b32.xlu1 %v5829_v53, %s5162_s21  ;;  %437 = vst.msk [vmem:[#allocation2 + $0xb8] sm:$0xff] %vm414_vm3, %v363_v63 }
  0xa4   :  { %v323_v44 = vpop.permute.xlu1 %322  ;;  %v321_v46 = vpop.permute.xlu0 %320  ;;  %v5842_v50 = vld [vmem:[#allocation2 + $0xa0] sm:$0xff] }
  0xa5   :  { %v364_v40 = vsel %vm17_vm0, %v321_v46, %v323_v44  ;;  %438 = vst.msk [vmem:[#allocation2 + $0xc0] sm:$0xff] %vm412_vm2, %v321_v46  ;;  %574 = vrot.lane.b32.xlu0 %v5842_v50, %s5162_s21  ;;  %v5851_v55 = vld [vmem:[#allocation2 + $0xa8] sm:$0xff] }
  0xa6   :  { %572 = vrot.lane.b32.xlu1 %v5840_v41, %s5162_s21  ;;  %439 = vst.msk [vmem:[#allocation2 + $0xc8] sm:$0xff] %vm414_vm3, %v364_v40 }
  0xa8   :  { %v327_v57 = vpop.permute.xlu1 %326  ;;  %v325_v63 = vpop.permute.xlu0 %324  ;;  %v5853_v39 = vld [vmem:[#allocation2 + $0xb0] sm:$0xff] }
  0xa9   :  { %v365_v38 = vsel %vm17_vm0, %v325_v63, %v327_v57  ;;  %440 = vst.msk [vmem:[#allocation2 + $0xd0] sm:$0xff] %vm412_vm2, %v325_v63  ;;  %578 = vrot.lane.b32.xlu0 %v5853_v39, %s5162_s21  ;;  %v5862_v44 = vld [vmem:[#allocation2 + $0xb8] sm:$0xff] }
  0xaa   :  { %576 = vrot.lane.b32.xlu1 %v5851_v55, %s5162_s21  ;;  %441 = vst.msk [vmem:[#allocation2 + $0xd8] sm:$0xff] %vm414_vm3, %v365_v38 }
  0xac   :  { %v331_v40 = vpop.permute.xlu1 %330  ;;  %v329_v46 = vpop.permute.xlu0 %328  ;;  %v5864_v37 = vld [vmem:[#allocation2 + $0xc0] sm:$0xff] }
  0xad   :  { %v366_v36 = vsel %vm17_vm0, %v329_v46, %v331_v40  ;;  %442 = vst.msk [vmem:[#allocation2 + $0xe0] sm:$0xff] %vm412_vm2, %v329_v46  ;;  %582 = vrot.lane.b32.xlu0 %v5864_v37, %s5162_s21  ;;  %v5873_v57 = vld [vmem:[#allocation2 + $0xc8] sm:$0xff] }
  0xae   :  { %580 = vrot.lane.b32.xlu1 %v5862_v44, %s5162_s21  ;;  %443 = vst.msk [vmem:[#allocation2 + $0xe8] sm:$0xff] %vm414_vm3, %v366_v36 }
  0xb0   :  { %v335_v38 = vpop.permute.xlu1 %334  ;;  %v333_v63 = vpop.permute.xlu0 %332  ;;  %v5875_v35 = vld [vmem:[#allocation2 + $0xd0] sm:$0xff] }
  0xb1   :  { %v367_v34 = vsel %vm17_vm0, %v333_v63, %v335_v38  ;;  %444 = vst.msk [vmem:[#allocation2 + $0xf0] sm:$0xff] %vm412_vm2, %v333_v63  ;;  %586 = vrot.lane.b32.xlu0 %v5875_v35, %s5162_s21  ;;  %v5884_v40 = vld [vmem:[#allocation2 + $0xd8] sm:$0xff] }
  0xb2   :  { %584 = vrot.lane.b32.xlu1 %v5873_v57, %s5162_s21  ;;  %445 = vst.msk [vmem:[#allocation2 + $0xf8] sm:$0xff] %vm414_vm3, %v367_v34 }
  0xb4   :  { %v339_v36 = vpop.permute.xlu1 %338  ;;  %v337_v46 = vpop.permute.xlu0 %336  ;;  %v5886_v33 = vld [vmem:[#allocation2 + $0xe0] sm:$0xff] }
  0xb5   :  { %v368_v32 = vsel %vm17_vm0, %v337_v46, %v339_v36  ;;  %446 = vst.msk [vmem:[#allocation2 + $0x100] sm:$0xff] %vm412_vm2, %v337_v46  ;;  %590 = vrot.lane.b32.xlu0 %v5886_v33, %s5162_s21  ;;  %v5895_v38 = vld [vmem:[#allocation2 + $0xe8] sm:$0xff] }
  0xb6   :  { %588 = vrot.lane.b32.xlu1 %v5884_v40, %s5162_s21  ;;  %447 = vst.msk [vmem:[#allocation2 + $0x108] sm:$0xff] %vm414_vm3, %v368_v32 }
  0xb8   :  { %v343_v34 = vpop.permute.xlu1 %342  ;;  %v341_v63 = vpop.permute.xlu0 %340  ;;  %v5897_v31 = vld [vmem:[#allocation2 + $0xf0] sm:$0xff] }
  0xb9   :  { %v369_v30 = vsel %vm17_vm0, %v341_v63, %v343_v34  ;;  %448 = vst.msk [vmem:[#allocation2 + $0x110] sm:$0xff] %vm412_vm2, %v341_v63  ;;  %594 = vrot.lane.b32.xlu0 %v5897_v31, %s5162_s21  ;;  %v5906_v36 = vld [vmem:[#allocation2 + $0xf8] sm:$0xff] }
  0xba   :  { %592 = vrot.lane.b32.xlu1 %v5895_v38, %s5162_s21  ;;  %449 = vst.msk [vmem:[#allocation2 + $0x118] sm:$0xff] %vm414_vm3, %v369_v30 }
  0xbc   :  { %v347_v32 = vpop.permute.xlu1 %346  ;;  %v345_v46 = vpop.permute.xlu0 %344  ;;  %v5908_v29 = vld [vmem:[#allocation2 + $0x100] sm:$0xff] }
  0xbd   :  { %v370_v28 = vsel %vm17_vm0, %v345_v46, %v347_v32  ;;  %450 = vst.msk [vmem:[#allocation2 + $0x120] sm:$0xff] %vm412_vm2, %v345_v46  ;;  %598 = vrot.lane.b32.xlu0 %v5908_v29, %s5162_s21  ;;  %v5917_v34 = vld [vmem:[#allocation2 + $0x108] sm:$0xff] }
  0xbe   :  { %596 = vrot.lane.b32.xlu1 %v5906_v36, %s5162_s21  ;;  %451 = vst.msk [vmem:[#allocation2 + $0x128] sm:$0xff] %vm414_vm3, %v370_v28 }
  0xc0   :  { %v351_v30 = vpop.permute.xlu1 %350  ;;  %v349_v63 = vpop.permute.xlu0 %348  ;;  %v5919_v27 = vld [vmem:[#allocation2 + $0x110] sm:$0xff] }
  0xc1   :  { %v371_v26 = vsel %vm17_vm0, %v349_v63, %v351_v30  ;;  %452 = vst.msk [vmem:[#allocation2 + $0x130] sm:$0xff] %vm412_vm2, %v349_v63  ;;  %602 = vrot.lane.b32.xlu0 %v5919_v27, %s5162_s21  ;;  %v5928_v32 = vld [vmem:[#allocation2 + $0x118] sm:$0xff] }
  0xc2   :  { %600 = vrot.lane.b32.xlu1 %v5917_v34, %s5162_s21  ;;  %453 = vst.msk [vmem:[#allocation2 + $0x138] sm:$0xff] %vm414_vm3, %v371_v26  ;;  %v1727_v26 = vld [vmem:[%s10614_s1] sm:$0xff] }
  0xc4   :  { %v5930_v28 = vld [vmem:[#allocation2 + $0x120] sm:$0xff] }
  0xc5   :  { %606 = vrot.lane.b32.xlu0 %v5930_v28, %s5162_s21  ;;  %v5936_v46 = vld [vmem:[#allocation2 + $0x128] sm:$0xff] }
  0xc6   :  { %604 = vrot.lane.b32.xlu1 %v5928_v32, %s5162_s21 }
  0xc8   :  { %v5938_v30 = vld [vmem:[#allocation2 + $0x130] sm:$0xff] }
  0xc9   :  { %610 = vrot.lane.b32.xlu0 %v5938_v30, %s5162_s21  ;;  %v5947_v63 = vld [vmem:[#allocation2 + $0x138] sm:$0xff] }
  0xca   :  { %608 = vrot.lane.b32.xlu1 %v5936_v46, %s5162_s21 }
  0xcd   :  { %1839 = vrot.lane.b32.xlu0 %v1727_v26, %s5161_s19 }
  0xce   :  { %612 = vrot.lane.b32.xlu1 %v5947_v63, %s5162_s21 }
  0xd1   :  { %1843 = vrot.lane.b32.xlu0 %v1729_v25, %s5161_s19 }
  0xd2   :  { %1841 = vrot.lane.b32.xlu1 %v1728_v24, %s5161_s19 }
  0xef   :  { %v535_v23 = vpop.permute.xlu0 %534 }
  0xf3   :  { %v539_v22 = vpop.permute.xlu0 %538 }
  0xf4   :  { %v537_v21 = vpop.permute.xlu1 %536 }
  0xf5   :  { %v615_v26 = vsel %vm614_vm4, %v535_v23, %v537_v21  ;;  %v676_v20 = vmax.f32 %v5745_v54, %v537_v21 }
  0xf6   :  { %v675_v19 = vmax.f32 %v5734_v47, %v615_v26 }
  0xf7   :  { %757 = vrot.lane.b32.xlu1 %v676_v20, %s5163_s28  ;;  %v543_v18 = vpop.permute.xlu0 %542 }
  0xf8   :  { %v541_v17 = vpop.permute.xlu1 %540  ;;  %755 = vrot.lane.b32.xlu0 %v675_v19, %s5163_s28 }
  0xf9   :  { %v616_v25 = vsel %vm614_vm4, %v539_v22, %v541_v17  ;;  %v678_v24 = vmax.f32 %v5754_v59, %v541_v17 }
  0xfa   :  { %v677_v16 = vmax.f32 %v5741_v51, %v616_v25 }
  0xfb   :  { %761 = vrot.lane.b32.xlu1 %v678_v24, %s5163_s28  ;;  %v547_v23 = vpop.permute.xlu0 %546 }
  0xfc   :  { %v545_v15 = vpop.permute.xlu1 %544  ;;  %759 = vrot.lane.b32.xlu0 %v677_v16, %s5163_s28 }
  0xfd   :  { %v617_v21 = vsel %vm614_vm4, %v543_v18, %v545_v15  ;;  %v680_v20 = vmax.f32 %v5763_v61, %v545_v15 }
  0xfe   :  { %v679_v47 = vmax.f32 %v5752_v58, %v617_v21 }
  0xff   :  { %765 = vrot.lane.b32.xlu1 %v680_v20, %s5163_s28  ;;  %v551_v19 = vpop.permute.xlu0 %550 }
 0x100   :  { %v549_v22 = vpop.permute.xlu1 %548  ;;  %763 = vrot.lane.b32.xlu0 %v679_v47, %s5163_s28 }
 0x101   :  { %v618_v17 = vsel %vm614_vm4, %v547_v23, %v549_v22  ;;  %v682_v51 = vmax.f32 %v5774_v2, %v549_v22 }
 0x102   :  { %v681_v54 = vmax.f32 %v5765_v0, %v618_v17 }
 0x103   :  { %769 = vrot.lane.b32.xlu1 %v682_v51, %s5163_s28  ;;  %v555_v16 = vpop.permute.xlu0 %554 }
 0x104   :  { %v553_v18 = vpop.permute.xlu1 %552  ;;  %767 = vrot.lane.b32.xlu0 %v681_v54, %s5163_s28 }
 0x105   :  { %v619_v15 = vsel %vm614_vm4, %v551_v19, %v553_v18  ;;  %v684_v58 = vmax.f32 %v5785_v45, %v553_v18 }
 0x106   :  { %v683_v59 = vmax.f32 %v5776_v43, %v619_v15 }
 0x107   :  { %773 = vrot.lane.b32.xlu1 %v684_v58, %s5163_s28  ;;  %v559_v61 = vpop.permute.xlu0 %558 }
 0x108   :  { %v557_v26 = vpop.permute.xlu1 %556  ;;  %771 = vrot.lane.b32.xlu0 %v683_v59, %s5163_s28 }
 0x109   :  { %v620_v0 = vsel %vm614_vm4, %v555_v16, %v557_v26  ;;  %v686_v2 = vmax.f32 %v5796_v52, %v557_v26 }
 0x10a   :  { %v685_v25 = vmax.f32 %v5787_v49, %v620_v0 }
 0x10b   :  { %777 = vrot.lane.b32.xlu1 %v686_v2, %s5163_s28  ;;  %v563_v24 = vpop.permute.xlu0 %562 }
 0x10c   :  { %v561_v23 = vpop.permute.xlu1 %560  ;;  %775 = vrot.lane.b32.xlu0 %v685_v25, %s5163_s28 }
 0x10d   :  { %v621_v43 = vsel %vm614_vm4, %v559_v61, %v561_v23  ;;  %v688_v45 = vmax.f32 %v5807_v60, %v561_v23 }
 0x10e   :  { %v687_v21 = vmax.f32 %v5798_v56, %v621_v43 }
 0x10f   :  { %781 = vrot.lane.b32.xlu1 %v688_v45, %s5163_s28  ;;  %v567_v20 = vpop.permute.xlu0 %566 }
 0x110   :  { %v565_v47 = vpop.permute.xlu1 %564  ;;  %779 = vrot.lane.b32.xlu0 %v687_v21, %s5163_s28 }
 0x111   :  { %v622_v49 = vsel %vm614_vm4, %v563_v24, %v565_v47  ;;  %v690_v52 = vmax.f32 %v5818_v42, %v565_v47 }
 0x112   :  { %v689_v19 = vmax.f32 %v5809_v1, %v622_v49 }
 0x113   :  { %785 = vrot.lane.b32.xlu1 %v690_v52, %s5163_s28  ;;  %v571_v22 = vpop.permute.xlu0 %570 }
 0x114   :  { %v569_v17 = vpop.permute.xlu1 %568  ;;  %783 = vrot.lane.b32.xlu0 %v689_v19, %s5163_s28 }
 0x115   :  { %v623_v56 = vsel %vm614_vm4, %v567_v20, %v569_v17  ;;  %v692_v60 = vmax.f32 %v5829_v53, %v569_v17 }
 0x116   :  { %v691_v51 = vmax.f32 %v5820_v48, %v623_v56 }
 0x117   :  { %789 = vrot.lane.b32.xlu1 %v692_v60, %s5163_s28  ;;  %v575_v54 = vpop.permute.xlu0 %574 }
 0x118   :  { %v573_v16 = vpop.permute.xlu1 %572  ;;  %787 = vrot.lane.b32.xlu0 %v691_v51, %s5163_s28 }
 0x119   :  { %v624_v1 = vsel %vm614_vm4, %v571_v22, %v573_v16  ;;  %v694_v42 = vmax.f32 %v5840_v41, %v573_v16 }
 0x11a   :  { %v693_v18 = vmax.f32 %v5831_v62, %v624_v1 }
 0x11b   :  { %793 = vrot.lane.b32.xlu1 %v694_v42, %s5163_s28  ;;  %v579_v15 = vpop.permute.xlu0 %578 }
 0x11c   :  { %v577_v58 = vpop.permute.xlu1 %576  ;;  %791 = vrot.lane.b32.xlu0 %v693_v18, %s5163_s28 }
 0x11d   :  { %v625_v48 = vsel %vm614_vm4, %v575_v54, %v577_v58  ;;  %v696_v53 = vmax.f32 %v5851_v55, %v577_v58 }
 0x11e   :  { %v695_v59 = vmax.f32 %v5842_v50, %v625_v48 }
 0x11f   :  { %797 = vrot.lane.b32.xlu1 %v696_v53, %s5163_s28  ;;  %v583_v61 = vpop.permute.xlu0 %582 }
 0x120   :  { %v581_v26 = vpop.permute.xlu1 %580  ;;  %795 = vrot.lane.b32.xlu0 %v695_v59, %s5163_s28 }
 0x121   :  { %v626_v62 = vsel %vm614_vm4, %v579_v15, %v581_v26  ;;  %v698_v41 = vmax.f32 %v5862_v44, %v581_v26  ;;  %v5086_v26 = vld [vmem:[%s10613_s0] sm:$0xff] }
 0x122   :  { %v697_v0 = vmax.f32 %v5853_v39, %v626_v62 }
 0x123   :  { %801 = vrot.lane.b32.xlu1 %v698_v41, %s5163_s28  ;;  %v587_v2 = vpop.permute.xlu0 %586 }
 0x124   :  { %v585_v25 = vpop.permute.xlu1 %584  ;;  %799 = vrot.lane.b32.xlu0 %v697_v0, %s5163_s28 }
 0x125   :  { %v627_v50 = vsel %vm614_vm4, %v583_v61, %v585_v25  ;;  %v700_v55 = vmax.f32 %v5873_v57, %v585_v25  ;;  %v5087_v25 = vld [vmem:[%s10613_s0 + $0x10] sm:$0xff]  ;;  %s5164_s0 = smov 113  }
 0x126   :  { %v699_v24 = vmax.f32 %v5864_v37, %v627_v50 }
 0x127   :  { %805 = vrot.lane.b32.xlu1 %v700_v55, %s5163_s28  ;;  %v591_v23 = vpop.permute.xlu0 %590 }
 0x128   :  { %v589_v43 = vpop.permute.xlu1 %588  ;;  %803 = vrot.lane.b32.xlu0 %v699_v24, %s5163_s28 }
 0x129   :  { %v628_v39 = vsel %vm614_vm4, %v587_v2, %v589_v43  ;;  %v702_v44 = vmax.f32 %v5884_v40, %v589_v43 }
 0x12a   :  { %v701_v45 = vmax.f32 %v5875_v35, %v628_v39 }
 0x12b   :  { %809 = vrot.lane.b32.xlu1 %v702_v44, %s5163_s28  ;;  %v595_v21 = vpop.permute.xlu0 %594 }
 0x12c   :  { %v593_v20 = vpop.permute.xlu1 %592  ;;  %807 = vrot.lane.b32.xlu0 %v701_v45, %s5163_s28 }
 0x12d   :  { %v629_v37 = vsel %vm614_vm4, %v591_v23, %v593_v20  ;;  %v704_v57 = vmax.f32 %v5895_v38, %v593_v20 }
 0x12e   :  { %v703_v47 = vmax.f32 %v5886_v33, %v629_v37 }
 0x12f   :  { %813 = vrot.lane.b32.xlu1 %v704_v57, %s5163_s28  ;;  %v599_v49 = vpop.permute.xlu0 %598 }
 0x130   :  { %v597_v52 = vpop.permute.xlu1 %596  ;;  %811 = vrot.lane.b32.xlu0 %v703_v47, %s5163_s28 }
 0x131   :  { %v630_v35 = vsel %vm614_vm4, %v595_v21, %v597_v52  ;;  %v706_v40 = vmax.f32 %v5906_v36, %v597_v52 }
 0x132   :  { %v705_v19 = vmax.f32 %v5897_v31, %v630_v35 }
 0x133   :  { %817 = vrot.lane.b32.xlu1 %v706_v40, %s5163_s28  ;;  %v603_v22 = vpop.permute.xlu0 %602 }
 0x134   :  { %v601_v17 = vpop.permute.xlu1 %600  ;;  %815 = vrot.lane.b32.xlu0 %v705_v19, %s5163_s28 }
 0x135   :  { %v631_v33 = vsel %vm614_vm4, %v599_v49, %v601_v17  ;;  %v708_v38 = vmax.f32 %v5917_v34, %v601_v17 }
 0x136   :  { %v707_v56 = vmax.f32 %v5908_v29, %v631_v33 }
 0x137   :  { %821 = vrot.lane.b32.xlu1 %v708_v38, %s5163_s28  ;;  %v607_v60 = vpop.permute.xlu0 %606  ;;  %v10771_v38 = vld [vmem:[#allocation4_spill] sm:$0xff] }
 0x138   :  { %v605_v51 = vpop.permute.xlu1 %604  ;;  %819 = vrot.lane.b32.xlu0 %v707_v56, %s5163_s28 }
 0x139   :  { %v632_v31 = vsel %vm614_vm4, %v603_v22, %v605_v51  ;;  %v710_v36 = vmax.f32 %v5928_v32, %v605_v51  ;;  %v10770_v22 = vld [vmem:[#allocation3_spill] sm:$0xff] }
 0x13a   :  { %v709_v54 = vmax.f32 %v5919_v27, %v632_v31 }
 0x13b   :  { %825 = vrot.lane.b32.xlu1 %v710_v36, %s5163_s28  ;;  %v611_v16 = vpop.permute.xlu0 %610 }
 0x13c   :  { %v609_v1 = vpop.permute.xlu1 %608  ;;  %823 = vrot.lane.b32.xlu0 %v709_v54, %s5163_s28  ;;  %v10773_v54 = vld [vmem:[#allocation6_spill] sm:$0xff] }
 0x13d   :  { %v633_v29 = vsel %vm614_vm4, %v607_v60, %v609_v1  ;;  %v712_v34 = vmax.f32 %v5936_v46, %v609_v1  ;;  %v10772_v60 = vld [vmem:[#allocation5_spill] sm:$0xff] }
 0x13e   :  { %v711_v42 = vmax.f32 %v5930_v28, %v633_v29  ;;  %v1730_v28 = vld [vmem:[%s10614_s1 + $0x18] sm:$0xff]  ;;  %v10774_v29 = vld [vmem:[#allocation7_spill] sm:$0xff] }
 0x13f   :  { %829 = vrot.lane.b32.xlu1 %v712_v34, %s5163_s28  ;;  %v1840_v18 = vpop.permute.xlu0 %1839 }
 0x140   :  { %v613_v15 = vpop.permute.xlu1 %612  ;;  %827 = vrot.lane.b32.xlu0 %v711_v42, %s5163_s28  ;;  %2035 = vst.msk [vmem:[#allocation2 + $0x140] sm:$0xff] %vm412_vm2, %v1840_v18 }
 0x141   :  { %v634_v27 = vsel %vm614_vm4, %v611_v16, %v613_v15  ;;  %v714_v32 = vmax.f32 %v5947_v63, %v613_v15  ;;  %v10775_v15 = vld [vmem:[#allocation8_spill] sm:$0xff] }
 0x142   :  { %v713_v58 = vmax.f32 %v5938_v30, %v634_v27 }
 0x143   :  { %833 = vrot.lane.b32.xlu1 %v714_v32, %s5163_s28  ;;  %v6060_v48 = vpop.permute.xlu0 %1843 }
 0x144   :  { %831 = vrot.lane.b32.xlu0 %v713_v58, %s5163_s28  ;;  %v1842_v46 = vpop.permute.xlu1 %1841  ;;  %2037 = vst.msk [vmem:[#allocation2 + $0x150] sm:$0xff] %vm412_vm2, %v6060_v48  ;;  %v10776_v58 = vld [vmem:[#allocation9_spill] sm:$0xff] }
 0x145   :  { %v1951_v53 = vsel %vm17_vm0, %v1840_v18, %v1842_v46 }
 0x146   :  { %2036 = vst.msk [vmem:[#allocation2 + $0x148] sm:$0xff] %vm414_vm3, %v1951_v53 }
 0x147   :  { %1845 = vrot.lane.b32.xlu1 %v1730_v28, %s5161_s19 }
 0x169   :  { %v758_v30 = vpop.permute.xlu1 %757 }
 0x16a   :  { %v6072_v63 = vmax.f32 %v5470_v4, %v758_v30  ;;  %v756_v59 = vpop.permute.xlu0 %755 }
 0x16b   :  { %v836_v61 = vsel %vm835_vm5, %v756_v59, %v758_v30  ;;  %v10777_v30 = vld [vmem:[#allocation10_spill] sm:$0xff] }
 0x16c   :  { %v6078_v62 = vmax.f32 %v5086_v26, %v836_v61  ;;  %978 = vrot.lane.b32.xlu1 %v6072_v63, %s5161_s19  ;;  %v10778_v26 = vld [vmem:[#allocation11_spill] sm:$0xff] }
 0x16d   :  { %v762_v41 = vpop.permute.xlu1 %761 }
 0x16e   :  { %v6083_v0 = vmax.f32 %v5465_v3, %v762_v41  ;;  %976 = vrot.lane.b32.xlu0 %v6078_v62, %s5161_s19  ;;  %v760_v4 = vpop.permute.xlu0 %759 }
 0x16f   :  { %v837_v2 = vsel %vm835_vm5, %v760_v4, %v762_v41 }
 0x170   :  { %v6091_v50 = vmax.f32 %v5087_v25, %v837_v2  ;;  %982 = vrot.lane.b32.xlu1 %v6083_v0, %s5161_s19  ;;  %v10779_v25 = vld [vmem:[#allocation12_spill] sm:$0xff] }
 0x171   :  { %v766_v55 = vpop.permute.xlu1 %765 }
 0x172   :  { %v6096_v24 = vmax.f32 %v5479_v5, %v766_v55  ;;  %980 = vrot.lane.b32.xlu0 %v6091_v50, %s5161_s19  ;;  %v764_v3 = vpop.permute.xlu0 %763 }
 0x173   :  { %v838_v23 = vsel %vm835_vm5, %v764_v3, %v766_v55 }
 0x174   :  { %v6102_v43 = vmax.f32 %v5484_v6, %v838_v23  ;;  %986 = vrot.lane.b32.xlu1 %v6096_v24, %s5161_s19  ;;  %v10781_v23 = vld [vmem:[#allocation13_spill] sm:$0xff] }
 0x175   :  { %v770_v39 = vpop.permute.xlu1 %769 }
 0x176   :  { %v6107_v44 = vmax.f32 %v5493_v7, %v770_v39  ;;  %984 = vrot.lane.b32.xlu0 %v6102_v43, %s5161_s19  ;;  %v768_v5 = vpop.permute.xlu0 %767 }
 0x177   :  { %v839_v45 = vsel %vm835_vm5, %v768_v5, %v770_v39 }
 0x178   :  { %v6113_v21 = vmax.f32 %v5498_v8, %v839_v45  ;;  %990 = vrot.lane.b32.xlu1 %v6107_v44, %s5161_s19 }
 0x179   :  { %v774_v6 = vpop.permute.xlu1 %773 }
 0x17a   :  { %v6118_v20 = vmax.f32 %v5507_v9, %v774_v6  ;;  %988 = vrot.lane.b32.xlu0 %v6113_v21, %s5161_s19  ;;  %v772_v7 = vpop.permute.xlu0 %771 }
 0x17b   :  { %v840_v37 = vsel %vm835_vm5, %v772_v7, %v774_v6  ;;  %v10783_v6 = vld [vmem:[#allocation14_spill] sm:$0xff] }
 0x17c   :  { %v6124_v57 = vmax.f32 %v5512_v10, %v840_v37  ;;  %994 = vrot.lane.b32.xlu1 %v6118_v20, %s5161_s19 }
 0x17d   :  { %v778_v8 = vpop.permute.xlu1 %777 }
 0x17e   :  { %v6129_v47 = vmax.f32 %v5521_v11, %v778_v8  ;;  %992 = vrot.lane.b32.xlu0 %v6124_v57, %s5161_s19  ;;  %v776_v9 = vpop.permute.xlu0 %775 }
 0x17f   :  { %v841_v49 = vsel %vm835_vm5, %v776_v9, %v778_v8  ;;  %v10785_v8 = vld [vmem:[#allocation15_spill] sm:$0xff] }
 0x180   :  { %v6135_v52 = vmax.f32 %v5526_v12, %v841_v49  ;;  %998 = vrot.lane.b32.xlu1 %v6129_v47, %s5161_s19 }
 0x181   :  { %v782_v10 = vpop.permute.xlu1 %781 }
 0x182   :  { %v6140_v35 = vmax.f32 %v5535_v13, %v782_v10  ;;  %996 = vrot.lane.b32.xlu0 %v6135_v52, %s5161_s19  ;;  %v780_v11 = vpop.permute.xlu0 %779 }
 0x183   :  { %v842_v40 = vsel %vm835_vm5, %v780_v11, %v782_v10  ;;  %v10787_v11 = vld [vmem:[#allocation16_spill] sm:$0xff] }
 0x184   :  { %v6146_v19 = vmax.f32 %v5540_v14, %v842_v40  ;;  %1002 = vrot.lane.b32.xlu1 %v6140_v35, %s5161_s19 }
 0x185   :  { %v786_v12 = vpop.permute.xlu1 %785 }
 0x186   :  { %v6151_v17 = vmax.f32 %v10770_v22, %v786_v12  ;;  %1000 = vrot.lane.b32.xlu0 %v6146_v19, %s5161_s19  ;;  %v784_v13 = vpop.permute.xlu0 %783  ;;  %v10789_v22 = vld [vmem:[#allocation17_spill] sm:$0xff] }
 0x187   :  { %v843_v33 = vsel %vm835_vm5, %v784_v13, %v786_v12 }
 0x188   :  { %v6157_v56 = vmax.f32 %v10771_v38, %v843_v33  ;;  %1006 = vrot.lane.b32.xlu1 %v6151_v17, %s5161_s19 }
 0x189   :  { %v790_v14 = vpop.permute.xlu1 %789 }
 0x18a   :  { %v6162_v51 = vmax.f32 %v10772_v60, %v790_v14  ;;  %1004 = vrot.lane.b32.xlu0 %v6157_v56, %s5161_s19  ;;  %v788_v31 = vpop.permute.xlu0 %787 }
 0x18b   :  { %v844_v36 = vsel %vm835_vm5, %v788_v31, %v790_v14  ;;  %v10791_v14 = vld [vmem:[#allocation18_spill] sm:$0xff] }
 0x18c   :  { %v6168_v16 = vmax.f32 %v10773_v54, %v844_v36  ;;  %1010 = vrot.lane.b32.xlu1 %v6162_v51, %s5161_s19  ;;  %v10793_v36 = vld [vmem:[#allocation19_spill] sm:$0xff] }
 0x18d   :  { %v794_v1 = vpop.permute.xlu1 %793 }
 0x18e   :  { %v6173_v34 = vmax.f32 %v10774_v29, %v794_v1  ;;  %1008 = vrot.lane.b32.xlu0 %v6168_v16, %s5161_s19  ;;  %v792_v42 = vpop.permute.xlu0 %791 }
 0x18f   :  { %v845_v18 = vsel %vm835_vm5, %v792_v42, %v794_v1  ;;  %v10795_v42 = vld [vmem:[#allocation20_spill] sm:$0xff] }
 0x190   :  { %v6179_v27 = vmax.f32 %v10775_v15, %v845_v18  ;;  %1014 = vrot.lane.b32.xlu1 %v6173_v34, %s5161_s19 }
 0x191   :  { %v798_v32 = vpop.permute.xlu1 %797 }
 0x192   :  { %v6184_v28 = vmax.f32 %v10776_v58, %v798_v32  ;;  %1012 = vrot.lane.b32.xlu0 %v6179_v27, %s5161_s19  ;;  %v796_v46 = vpop.permute.xlu0 %795 }
 0x193   :  { %v846_v53 = vsel %vm835_vm5, %v796_v46, %v798_v32  ;;  %v10797_v32 = vld [vmem:[#allocation21_spill] sm:$0xff] }
 0x194   :  { %v6190_v59 = vmax.f32 %v10777_v30, %v846_v53  ;;  %1018 = vrot.lane.b32.xlu1 %v6184_v28, %s5161_s19  ;;  %v10799_v30 = vld [vmem:[#allocation22_spill] sm:$0xff] }
 0x195   :  { %v802_v61 = vpop.permute.xlu1 %801 }
 0x196   :  { %v6195_v41 = vmax.f32 %v10778_v26, %v802_v61  ;;  %1016 = vrot.lane.b32.xlu0 %v6190_v59, %s5161_s19  ;;  %v800_v4 = vpop.permute.xlu0 %799 }
 0x197   :  { %v847_v2 = vsel %vm835_vm5, %v800_v4, %v802_v61  ;;  %v10801_v4 = vld [vmem:[#allocation23_spill] sm:$0xff] }
 0x198   :  { %v6201_v55 = vmax.f32 %v10779_v25, %v847_v2  ;;  %1022 = vrot.lane.b32.xlu1 %v6195_v41, %s5161_s19 }
 0x199   :  { %v806_v3 = vpop.permute.xlu1 %805 }
 0x19a   :  { %10780 = vst [vmem:[#allocation3_spill] sm:$0xff] %v6201_v55  ;;  %v6206_v39 = vmax.f32 %v10781_v23, %v806_v3  ;;  %1020 = vrot.lane.b32.xlu0 %v6201_v55, %s5161_s19  ;;  %v804_v5 = vpop.permute.xlu0 %803  ;;  %v10803_v23 = vld [vmem:[#allocation24_spill] sm:$0xff] }
 0x19b   :  { %v848_v45 = vsel %vm835_vm5, %v804_v5, %v806_v3 }
 0x19c   :  { %10782 = vst [vmem:[#allocation4_spill] sm:$0xff] %v6206_v39  ;;  %v6212_v7 = vmax.f32 %v10783_v6, %v848_v45  ;;  %1026 = vrot.lane.b32.xlu1 %v6206_v39, %s5161_s19  ;;  %v10805_v6 = vld [vmem:[#allocation25_spill] sm:$0xff] }
 0x19d   :  { %v810_v37 = vpop.permute.xlu1 %809 }
 0x19e   :  { %10784 = vst [vmem:[#allocation5_spill] sm:$0xff] %v6212_v7  ;;  %v6217_v9 = vmax.f32 %v10785_v8, %v810_v37  ;;  %1024 = vrot.lane.b32.xlu0 %v6212_v7, %s5161_s19  ;;  %v808_v49 = vpop.permute.xlu0 %807 }
 0x19f   :  { %v849_v10 = vsel %vm835_vm5, %v808_v49, %v810_v37 }
 0x1a0   :  { %10786 = vst [vmem:[#allocation6_spill] sm:$0xff] %v6217_v9  ;;  %v6223_v40 = vmax.f32 %v10787_v11, %v849_v10  ;;  %1030 = vrot.lane.b32.xlu1 %v6217_v9, %s5161_s19  ;;  %v10807_v10 = vld [vmem:[#allocation26_spill] sm:$0xff] }
 0x1a1   :  { %v814_v12 = vpop.permute.xlu1 %813 }
 0x1a2   :  { %10788 = vst [vmem:[#allocation7_spill] sm:$0xff] %v6223_v40  ;;  %v6228_v13 = vmax.f32 %v10789_v22, %v814_v12  ;;  %1028 = vrot.lane.b32.xlu0 %v6223_v40, %s5161_s19  ;;  %v812_v33 = vpop.permute.xlu0 %811  ;;  %v10809_v22 = vld [vmem:[#allocation27_spill] sm:$0xff] }
 0x1a3   :  { %v850_v38 = vsel %vm835_vm5, %v812_v33, %v814_v12 }
 0x1a4   :  { %10790 = vst [vmem:[#allocation8_spill] sm:$0xff] %v6228_v13  ;;  %v6234_v60 = vmax.f32 %v10791_v14, %v850_v38  ;;  %1034 = vrot.lane.b32.xlu1 %v6228_v13, %s5161_s19 }
 0x1a5   :  { %v818_v31 = vpop.permute.xlu1 %817 }
 0x1a6   :  { %10792 = vst [vmem:[#allocation9_spill] sm:$0xff] %v6234_v60  ;;  %v6239_v54 = vmax.f32 %v10793_v36, %v818_v31  ;;  %1032 = vrot.lane.b32.xlu0 %v6234_v60, %s5161_s19  ;;  %v816_v1 = vpop.permute.xlu0 %815 }
 0x1a7   :  { %v851_v29 = vsel %vm835_vm5, %v816_v1, %v818_v31  ;;  %v10811_v31 = vld [vmem:[#allocation28_spill] sm:$0xff] }
 0x1a8   :  { %10794 = vst [vmem:[#allocation10_spill] sm:$0xff] %v6239_v54  ;;  %v6245_v18 = vmax.f32 %v10795_v42, %v851_v29  ;;  %1038 = vrot.lane.b32.xlu1 %v6239_v54, %s5161_s19 }
 0x1a9   :  { %v822_v15 = vpop.permute.xlu1 %821 }
 0x1aa   :  { %10796 = vst [vmem:[#allocation11_spill] sm:$0xff] %v6245_v18  ;;  %v6250_v58 = vmax.f32 %v10797_v32, %v822_v15  ;;  %1036 = vrot.lane.b32.xlu0 %v6245_v18, %s5161_s19  ;;  %v820_v46 = vpop.permute.xlu0 %819 }
 0x1ab   :  { %v852_v53 = vsel %vm835_vm5, %v820_v46, %v822_v15 }
 0x1ac   :  { %10798 = vst [vmem:[#allocation12_spill] sm:$0xff] %v6250_v58  ;;  %v6256_v61 = vmax.f32 %v10799_v30, %v852_v53  ;;  %1042 = vrot.lane.b32.xlu1 %v6250_v58, %s5161_s19 }
 0x1ad   :  { %v826_v26 = vpop.permute.xlu1 %825 }
 0x1ae   :  { %10800 = vst [vmem:[#allocation13_spill] sm:$0xff] %v6256_v61  ;;  %v6261_v2 = vmax.f32 %v10801_v4, %v826_v26  ;;  %1040 = vrot.lane.b32.xlu0 %v6256_v61, %s5161_s19  ;;  %v824_v25 = vpop.permute.xlu0 %823 }
 0x1af   :  { %v853_v3 = vsel %vm835_vm5, %v824_v25, %v826_v26 }
 0x1b0   :  { %10802 = vst [vmem:[#allocation14_spill] sm:$0xff] %v6261_v2  ;;  %v6267_v5 = vmax.f32 %v10803_v23, %v853_v3  ;;  %1046 = vrot.lane.b32.xlu1 %v6261_v2, %s5161_s19 }
 0x1b1   :  { %v830_v45 = vpop.permute.xlu1 %829 }
 0x1b2   :  { %10804 = vst [vmem:[#allocation15_spill] sm:$0xff] %v6267_v5  ;;  %v6272_v37 = vmax.f32 %v10805_v6, %v830_v45  ;;  %1044 = vrot.lane.b32.xlu0 %v6267_v5, %s5161_s19  ;;  %v828_v8 = vpop.permute.xlu0 %827 }
 0x1b3   :  { %v854_v49 = vsel %vm835_vm5, %v828_v8, %v830_v45 }
 0x1b4   :  { %10806 = vst [vmem:[#allocation16_spill] sm:$0xff] %v6272_v37  ;;  %v6278_v11 = vmax.f32 %v10807_v10, %v854_v49  ;;  %1050 = vrot.lane.b32.xlu1 %v6272_v37, %s5161_s19 }
 0x1b5   :  { %v834_v12 = vpop.permute.xlu1 %833 }
 0x1b6   :  { %10808 = vst [vmem:[#allocation17_spill] sm:$0xff] %v6278_v11  ;;  %v6283_v33 = vmax.f32 %v10809_v22, %v834_v12  ;;  %1048 = vrot.lane.b32.xlu0 %v6278_v11, %s5161_s19  ;;  %v832_v38 = vpop.permute.xlu0 %831 }
 0x1b7   :  { %v855_v14 = vsel %vm835_vm5, %v832_v38, %v834_v12 }
 0x1b8   :  { %10810 = vst [vmem:[#allocation18_spill] sm:$0xff] %v6283_v33  ;;  %v6289_v36 = vmax.f32 %v10811_v31, %v855_v14  ;;  %1054 = vrot.lane.b32.xlu1 %v6283_v33, %s5161_s19 }
 0x1b9   :  { %v1846_v1 = vpop.permute.xlu1 %1845 }
 0x1ba   :  { %10812 = vst [vmem:[#allocation19_spill] sm:$0xff] %v6289_v36  ;;  %v1952_v29 = vsel %vm17_vm0, %v6060_v48, %v1846_v1  ;;  %1052 = vrot.lane.b32.xlu0 %v6289_v36, %s5161_s19 }
 0x1bb   :  { %2038 = vst.msk [vmem:[#allocation2 + $0x158] sm:$0xff] %vm414_vm3, %v1952_v29 }
 0x1de   :  { %v979_v42 = vpop.permute.xlu1 %978 }
 0x1e0   :  { %v977_v15 = vpop.permute.xlu0 %976 }
 0x1e1   :  { %v1056_v32 = vsel %vm17_vm0, %v977_v15, %v979_v42  ;;  %1116 = vst.msk [vmem:[#allocation2] sm:$0xff] %vm412_vm2, %v977_v15 }
 0x1e2   :  { %1117 = vst.msk [vmem:[#allocation2 + $0x8] sm:$0xff] %vm414_vm3, %v1056_v32  ;;  %v983_v46 = vpop.permute.xlu1 %982 }
 0x1e4   :  { %v981_v53 = vpop.permute.xlu0 %980 }
 0x1e5   :  { %v1057_v30 = vsel %vm17_vm0, %v981_v53, %v983_v46  ;;  %1118 = vst.msk [vmem:[#allocation2 + $0x10] sm:$0xff] %vm412_vm2, %v981_v53 }
 0x1e6   :  { %1119 = vst.msk [vmem:[#allocation2 + $0x18] sm:$0xff] %vm414_vm3, %v1057_v30  ;;  %v987_v48 = vpop.permute.xlu1 %986 }
 0x1e8   :  { %v985_v26 = vpop.permute.xlu0 %984  ;;  %v6304_v4 = vld [vmem:[#allocation2] sm:$0xff] }
 0x1e9   :  { %v1058_v25 = vsel %vm17_vm0, %v985_v26, %v987_v48  ;;  %1120 = vst.msk [vmem:[#allocation2 + $0x20] sm:$0xff] %vm412_vm2, %v985_v26  ;;  %1240 = vrot.lane.b32.xlu0 %v6304_v4, %s5164_s0  ;;  %v6310_v3 = vld [vmem:[#allocation2 + $0x8] sm:$0xff] }
 0x1ea   :  { %1121 = vst.msk [vmem:[#allocation2 + $0x28] sm:$0xff] %vm414_vm3, %v1058_v25  ;;  %v991_v23 = vpop.permute.xlu1 %990  ;;  %1242 = vrot.lane.b32.xlu1 %v6310_v3, %s5164_s0 }
 0x1ec   :  { %v989_v45 = vpop.permute.xlu0 %988  ;;  %v6315_v6 = vld [vmem:[#allocation2 + $0x10] sm:$0xff] }
 0x1ed   :  { %v1059_v8 = vsel %vm17_vm0, %v989_v45, %v991_v23  ;;  %1122 = vst.msk [vmem:[#allocation2 + $0x30] sm:$0xff] %vm412_vm2, %v989_v45  ;;  %1244 = vrot.lane.b32.xlu0 %v6315_v6, %s5164_s0  ;;  %v6321_v49 = vld [vmem:[#allocation2 + $0x18] sm:$0xff] }
 0x1ee   :  { %1123 = vst.msk [vmem:[#allocation2 + $0x38] sm:$0xff] %vm414_vm3, %v1059_v8  ;;  %v995_v10 = vpop.permute.xlu1 %994  ;;  %1246 = vrot.lane.b32.xlu1 %v6321_v49, %s5164_s0 }
 0x1f0   :  { %v993_v12 = vpop.permute.xlu0 %992  ;;  %v6326_v22 = vld [vmem:[#allocation2 + $0x20] sm:$0xff] }
 0x1f1   :  { %v1060_v38 = vsel %vm17_vm0, %v993_v12, %v995_v10  ;;  %1124 = vst.msk [vmem:[#allocation2 + $0x40] sm:$0xff] %vm412_vm2, %v993_v12  ;;  %1248 = vrot.lane.b32.xlu0 %v6326_v22, %s5164_s0  ;;  %v6332_v14 = vld [vmem:[#allocation2 + $0x28] sm:$0xff] }
 0x1f2   :  { %1125 = vst.msk [vmem:[#allocation2 + $0x48] sm:$0xff] %vm414_vm3, %v1060_v38  ;;  %v999_v31 = vpop.permute.xlu1 %998  ;;  %1250 = vrot.lane.b32.xlu1 %v6332_v14, %s5164_s0 }
 0x1f4   :  { %v997_v1 = vpop.permute.xlu0 %996  ;;  %v6337_v29 = vld [vmem:[#allocation2 + $0x30] sm:$0xff] }
 0x1f5   :  { %v1061_v42 = vsel %vm17_vm0, %v997_v1, %v999_v31  ;;  %1126 = vst.msk [vmem:[#allocation2 + $0x50] sm:$0xff] %vm412_vm2, %v997_v1  ;;  %1252 = vrot.lane.b32.xlu0 %v6337_v29, %s5164_s0  ;;  %v6343_v15 = vld [vmem:[#allocation2 + $0x38] sm:$0xff] }
 0x1f6   :  { %1127 = vst.msk [vmem:[#allocation2 + $0x58] sm:$0xff] %vm414_vm3, %v1061_v42  ;;  %v1003_v32 = vpop.permute.xlu1 %1002  ;;  %1254 = vrot.lane.b32.xlu1 %v6343_v15, %s5164_s0 }
 0x1f8   :  { %v1001_v46 = vpop.permute.xlu0 %1000  ;;  %v6348_v53 = vld [vmem:[#allocation2 + $0x40] sm:$0xff] }
 0x1f9   :  { %v1062_v30 = vsel %vm17_vm0, %v1001_v46, %v1003_v32  ;;  %1128 = vst.msk [vmem:[#allocation2 + $0x60] sm:$0xff] %vm412_vm2, %v1001_v46  ;;  %1256 = vrot.lane.b32.xlu0 %v6348_v53, %s5164_s0  ;;  %v6354_v48 = vld [vmem:[#allocation2 + $0x48] sm:$0xff] }
 0x1fa   :  { %1129 = vst.msk [vmem:[#allocation2 + $0x68] sm:$0xff] %vm414_vm3, %v1062_v30  ;;  %v1007_v26 = vpop.permute.xlu1 %1006  ;;  %1258 = vrot.lane.b32.xlu1 %v6354_v48, %s5164_s0 }
 0x1fc   :  { %v1005_v25 = vpop.permute.xlu0 %1004  ;;  %v6359_v23 = vld [vmem:[#allocation2 + $0x50] sm:$0xff] }
 0x1fd   :  { %v1063_v45 = vsel %vm17_vm0, %v1005_v25, %v1007_v26  ;;  %1130 = vst.msk [vmem:[#allocation2 + $0x70] sm:$0xff] %vm412_vm2, %v1005_v25  ;;  %1260 = vrot.lane.b32.xlu0 %v6359_v23, %s5164_s0  ;;  %v6365_v8 = vld [vmem:[#allocation2 + $0x58] sm:$0xff] }
 0x1fe   :  { %1131 = vst.msk [vmem:[#allocation2 + $0x78] sm:$0xff] %vm414_vm3, %v1063_v45  ;;  %v1011_v10 = vpop.permute.xlu1 %1010  ;;  %1262 = vrot.lane.b32.xlu1 %v6365_v8, %s5164_s0 }
 0x200   :  { %v1009_v12 = vpop.permute.xlu0 %1008  ;;  %v6370_v38 = vld [vmem:[#allocation2 + $0x60] sm:$0xff] }
 0x201   :  { %v1064_v31 = vsel %vm17_vm0, %v1009_v12, %v1011_v10  ;;  %1132 = vst.msk [vmem:[#allocation2 + $0x80] sm:$0xff] %vm412_vm2, %v1009_v12  ;;  %1264 = vrot.lane.b32.xlu0 %v6370_v38, %s5164_s0  ;;  %v6376_v1 = vld [vmem:[#allocation2 + $0x68] sm:$0xff] }
 0x202   :  { %1133 = vst.msk [vmem:[#allocation2 + $0x88] sm:$0xff] %vm414_vm3, %v1064_v31  ;;  %v1015_v42 = vpop.permute.xlu1 %1014  ;;  %1266 = vrot.lane.b32.xlu1 %v6376_v1, %s5164_s0 }
 0x204   :  { %v1013_v32 = vpop.permute.xlu0 %1012  ;;  %v6381_v46 = vld [vmem:[#allocation2 + $0x70] sm:$0xff] }
 0x205   :  { %v1065_v30 = vsel %vm17_vm0, %v1013_v32, %v1015_v42  ;;  %1134 = vst.msk [vmem:[#allocation2 + $0x90] sm:$0xff] %vm412_vm2, %v1013_v32  ;;  %1268 = vrot.lane.b32.xlu0 %v6381_v46, %s5164_s0  ;;  %v6387_v26 = vld [vmem:[#allocation2 + $0x78] sm:$0xff] }
 0x206   :  { %1135 = vst.msk [vmem:[#allocation2 + $0x98] sm:$0xff] %vm414_vm3, %v1065_v30  ;;  %v1019_v25 = vpop.permute.xlu1 %1018  ;;  %1270 = vrot.lane.b32.xlu1 %v6387_v26, %s5164_s0 }
 0x208   :  { %v1017_v45 = vpop.permute.xlu0 %1016  ;;  %v6392_v10 = vld [vmem:[#allocation2 + $0x80] sm:$0xff] }
 0x209   :  { %v1066_v12 = vsel %vm17_vm0, %v1017_v45, %v1019_v25  ;;  %1136 = vst.msk [vmem:[#allocation2 + $0xa0] sm:$0xff] %vm412_vm2, %v1017_v45  ;;  %1272 = vrot.lane.b32.xlu0 %v6392_v10, %s5164_s0  ;;  %v6398_v31 = vld [vmem:[#allocation2 + $0x88] sm:$0xff] }
 0x20a   :  { %1137 = vst.msk [vmem:[#allocation2 + $0xa8] sm:$0xff] %vm414_vm3, %v1066_v12  ;;  %v1023_v42 = vpop.permute.xlu1 %1022  ;;  %1274 = vrot.lane.b32.xlu1 %v6398_v31, %s5164_s0 }
 0x20c   :  { %v1021_v32 = vpop.permute.xlu0 %1020  ;;  %v6403_v30 = vld [vmem:[#allocation2 + $0x90] sm:$0xff] }
 0x20d   :  { %v1067_v36 = vsel %vm17_vm0, %v1021_v32, %v1023_v42  ;;  %1138 = vst.msk [vmem:[#allocation2 + $0xb0] sm:$0xff] %vm412_vm2, %v1021_v32  ;;  %1276 = vrot.lane.b32.xlu0 %v6403_v30, %s5164_s0  ;;  %v6409_v25 = vld [vmem:[#allocation2 + $0x98] sm:$0xff] }
 0x20e   :  { %1139 = vst.msk [vmem:[#allocation2 + $0xb8] sm:$0xff] %vm414_vm3, %v1067_v36  ;;  %v1027_v45 = vpop.permute.xlu1 %1026  ;;  %1278 = vrot.lane.b32.xlu1 %v6409_v25, %s5164_s0 }
 0x210   :  { %v1025_v12 = vpop.permute.xlu0 %1024  ;;  %v6414_v33 = vld [vmem:[#allocation2 + $0xa0] sm:$0xff] }
 0x211   :  { %v1068_v11 = vsel %vm17_vm0, %v1025_v12, %v1027_v45  ;;  %1140 = vst.msk [vmem:[#allocation2 + $0xc0] sm:$0xff] %vm412_vm2, %v1025_v12  ;;  %1280 = vrot.lane.b32.xlu0 %v6414_v33, %s5164_s0  ;;  %v6420_v42 = vld [vmem:[#allocation2 + $0xa8] sm:$0xff] }
 0x212   :  { %1141 = vst.msk [vmem:[#allocation2 + $0xc8] sm:$0xff] %vm414_vm3, %v1068_v11  ;;  %v1031_v32 = vpop.permute.xlu1 %1030  ;;  %1282 = vrot.lane.b32.xlu1 %v6420_v42, %s5164_s0 }
 0x214   :  { %v1029_v36 = vpop.permute.xlu0 %1028  ;;  %v6425_v37 = vld [vmem:[#allocation2 + $0xb0] sm:$0xff] }
 0x215   :  { %v1069_v5 = vsel %vm17_vm0, %v1029_v36, %v1031_v32  ;;  %1142 = vst.msk [vmem:[#allocation2 + $0xd0] sm:$0xff] %vm412_vm2, %v1029_v36  ;;  %1284 = vrot.lane.b32.xlu0 %v6425_v37, %s5164_s0  ;;  %v6431_v45 = vld [vmem:[#allocation2 + $0xb8] sm:$0xff] }
 0x216   :  { %1143 = vst.msk [vmem:[#allocation2 + $0xd8] sm:$0xff] %vm414_vm3, %v1069_v5  ;;  %v1035_v12 = vpop.permute.xlu1 %1034  ;;  %1286 = vrot.lane.b32.xlu1 %v6431_v45, %s5164_s0 }
 0x218   :  { %v1033_v11 = vpop.permute.xlu0 %1032  ;;  %v6436_v2 = vld [vmem:[#allocation2 + $0xc0] sm:$0xff] }
 0x219   :  { %v1070_v61 = vsel %vm17_vm0, %v1033_v11, %v1035_v12  ;;  %1144 = vst.msk [vmem:[#allocation2 + $0xe0] sm:$0xff] %vm412_vm2, %v1033_v11  ;;  %1288 = vrot.lane.b32.xlu0 %v6436_v2, %s5164_s0  ;;  %v6442_v32 = vld [vmem:[#allocation2 + $0xc8] sm:$0xff] }
 0x21a   :  { %1145 = vst.msk [vmem:[#allocation2 + $0xe8] sm:$0xff] %vm414_vm3, %v1070_v61  ;;  %v1039_v36 = vpop.permute.xlu1 %1038  ;;  %1290 = vrot.lane.b32.xlu1 %v6442_v32, %s5164_s0 }
 0x21c   :  { %v1037_v5 = vpop.permute.xlu0 %1036  ;;  %v6447_v58 = vld [vmem:[#allocation2 + $0xd0] sm:$0xff] }
 0x21d   :  { %v1071_v18 = vsel %vm17_vm0, %v1037_v5, %v1039_v36  ;;  %1146 = vst.msk [vmem:[#allocation2 + $0xf0] sm:$0xff] %vm412_vm2, %v1037_v5  ;;  %1292 = vrot.lane.b32.xlu0 %v6447_v58, %s5164_s0  ;;  %v6453_v12 = vld [vmem:[#allocation2 + $0xd8] sm:$0xff] }
 0x21e   :  { %1147 = vst.msk [vmem:[#allocation2 + $0xf8] sm:$0xff] %vm414_vm3, %v1071_v18  ;;  %v1043_v11 = vpop.permute.xlu1 %1042  ;;  %1294 = vrot.lane.b32.xlu1 %v6453_v12, %s5164_s0 }
 0x220   :  { %v1041_v61 = vpop.permute.xlu0 %1040  ;;  %v6458_v54 = vld [vmem:[#allocation2 + $0xe0] sm:$0xff] }
 0x221   :  { %v1072_v60 = vsel %vm17_vm0, %v1041_v61, %v1043_v11  ;;  %1148 = vst.msk [vmem:[#allocation2 + $0x100] sm:$0xff] %vm412_vm2, %v1041_v61  ;;  %1296 = vrot.lane.b32.xlu0 %v6458_v54, %s5164_s0  ;;  %v6464_v36 = vld [vmem:[#allocation2 + $0xe8] sm:$0xff] }
 0x222   :  { %1149 = vst.msk [vmem:[#allocation2 + $0x108] sm:$0xff] %vm414_vm3, %v1072_v60  ;;  %v1047_v5 = vpop.permute.xlu1 %1046  ;;  %1298 = vrot.lane.b32.xlu1 %v6464_v36, %s5164_s0 }
 0x224   :  { %v1045_v18 = vpop.permute.xlu0 %1044  ;;  %v6469_v13 = vld [vmem:[#allocation2 + $0xf0] sm:$0xff] }
 0x225   :  { %v1073_v40 = vsel %vm17_vm0, %v1045_v18, %v1047_v5  ;;  %1150 = vst.msk [vmem:[#allocation2 + $0x110] sm:$0xff] %vm412_vm2, %v1045_v18  ;;  %1300 = vrot.lane.b32.xlu0 %v6469_v13, %s5164_s0  ;;  %v6475_v11 = vld [vmem:[#allocation2 + $0xf8] sm:$0xff] }
 0x226   :  { %1151 = vst.msk [vmem:[#allocation2 + $0x118] sm:$0xff] %vm414_vm3, %v1073_v40  ;;  %v1051_v61 = vpop.permute.xlu1 %1050  ;;  %1302 = vrot.lane.b32.xlu1 %v6475_v11, %s5164_s0 }
 0x228   :  { %v1049_v60 = vpop.permute.xlu0 %1048  ;;  %v6480_v9 = vld [vmem:[#allocation2 + $0x100] sm:$0xff] }
 0x229   :  { %v1074_v7 = vsel %vm17_vm0, %v1049_v60, %v1051_v61  ;;  %1152 = vst.msk [vmem:[#allocation2 + $0x120] sm:$0xff] %vm412_vm2, %v1049_v60  ;;  %1304 = vrot.lane.b32.xlu0 %v6480_v9, %s5164_s0  ;;  %v6486_v5 = vld [vmem:[#allocation2 + $0x108] sm:$0xff] }
 0x22a   :  { %1153 = vst.msk [vmem:[#allocation2 + $0x128] sm:$0xff] %vm414_vm3, %v1074_v7  ;;  %1306 = vrot.lane.b32.xlu1 %v6486_v5, %s5164_s0  ;;  %v1055_v40 = vpop.permute.xlu1 %1054 }
 0x22c   :  { %v1053_v18 = vpop.permute.xlu0 %1052  ;;  %v6491_v39 = vld [vmem:[#allocation2 + $0x110] sm:$0xff] }
 0x22d   :  { %v1075_v55 = vsel %vm17_vm0, %v1053_v18, %v1055_v40  ;;  %1154 = vst.msk [vmem:[#allocation2 + $0x130] sm:$0xff] %vm412_vm2, %v1053_v18  ;;  %1308 = vrot.lane.b32.xlu0 %v6491_v39, %s5164_s0  ;;  %v6497_v61 = vld [vmem:[#allocation2 + $0x118] sm:$0xff] }
 0x22e   :  { %1155 = vst.msk [vmem:[#allocation2 + $0x138] sm:$0xff] %vm414_vm3, %v1075_v55  ;;  %1310 = vrot.lane.b32.xlu1 %v6497_v61, %s5164_s0 }
 0x230   :  { %v6502_v7 = vld [vmem:[#allocation2 + $0x120] sm:$0xff] }
 0x231   :  { %1312 = vrot.lane.b32.xlu0 %v6502_v7, %s5164_s0  ;;  %v6506_v60 = vld [vmem:[#allocation2 + $0x128] sm:$0xff] }
 0x232   :  { %1314 = vrot.lane.b32.xlu1 %v6506_v60, %s5164_s0 }
 0x234   :  { %v6510_v40 = vld [vmem:[#allocation2 + $0x130] sm:$0xff] }
 0x235   :  { %1316 = vrot.lane.b32.xlu0 %v6510_v40, %s5164_s0  ;;  %v6514_v18 = vld [vmem:[#allocation2 + $0x138] sm:$0xff] }
 0x236   :  { %1318 = vrot.lane.b32.xlu1 %v6514_v18, %s5164_s0 }
 0x239   :  { %1425 = vrot.lane.b32.xlu0 %v6304_v4, %s5165_s9 }
 0x23a   :  { %1427 = vrot.lane.b32.xlu1 %v6310_v3, %s5165_s9 }
 0x23d   :  { %1429 = vrot.lane.b32.xlu0 %v6315_v6, %s5165_s9 }
 0x23e   :  { %1431 = vrot.lane.b32.xlu1 %v6321_v49, %s5165_s9 }
 0x241   :  { %1433 = vrot.lane.b32.xlu0 %v6326_v22, %s5165_s9 }
 0x242   :  { %1435 = vrot.lane.b32.xlu1 %v6332_v14, %s5165_s9 }
 0x245   :  { %1437 = vrot.lane.b32.xlu0 %v6337_v29, %s5165_s9 }
 0x246   :  { %1439 = vrot.lane.b32.xlu1 %v6343_v15, %s5165_s9 }
 0x249   :  { %1441 = vrot.lane.b32.xlu0 %v6348_v53, %s5165_s9 }
 0x24a   :  { %1443 = vrot.lane.b32.xlu1 %v6354_v48, %s5165_s9 }
 0x24d   :  { %1445 = vrot.lane.b32.xlu0 %v6359_v23, %s5165_s9 }
 0x24e   :  { %1447 = vrot.lane.b32.xlu1 %v6365_v8, %s5165_s9 }
 0x251   :  { %1449 = vrot.lane.b32.xlu0 %v6370_v38, %s5165_s9 }
 0x252   :  { %1451 = vrot.lane.b32.xlu1 %v6376_v1, %s5165_s9 }
 0x255   :  { %1453 = vrot.lane.b32.xlu0 %v6381_v46, %s5165_s9 }
 0x256   :  { %1455 = vrot.lane.b32.xlu1 %v6387_v26, %s5165_s9 }
 0x259   :  { %1457 = vrot.lane.b32.xlu0 %v6392_v10, %s5165_s9 }
 0x25a   :  { %1459 = vrot.lane.b32.xlu1 %v6398_v31, %s5165_s9 }
 0x25b   :  { %v6554_v55 = vpop.permute.xlu0 %1240 }
 0x25c   :  { %v6556_v4 = vpop.permute.xlu1 %1242 }
 0x25d   :  { %1461 = vrot.lane.b32.xlu0 %v6403_v30, %s5165_s9 }
 0x25e   :  { %1463 = vrot.lane.b32.xlu1 %v6409_v25, %s5165_s9 }
 0x25f   :  { %v6562_v3 = vpop.permute.xlu0 %1244 }
 0x260   :  { %v6564_v6 = vpop.permute.xlu1 %1246 }
 0x261   :  { %1465 = vrot.lane.b32.xlu0 %v6414_v33, %s5165_s9 }
 0x262   :  { %1467 = vrot.lane.b32.xlu1 %v6420_v42, %s5165_s9  ;;  %v1732_v42 = vld [vmem:[%s10614_s1 + $0x28] sm:$0xff] }
 0x263   :  { %v6570_v49 = vpop.permute.xlu0 %1248 }
 0x264   :  { %v6572_v22 = vpop.permute.xlu1 %1250 }
 0x265   :  { %1469 = vrot.lane.b32.xlu0 %v6425_v37, %s5165_s9 }
 0x266   :  { %1471 = vrot.lane.b32.xlu1 %v6431_v45, %s5165_s9 }
 0x267   :  { %v6578_v14 = vpop.permute.xlu0 %1252 }
 0x268   :  { %v6580_v29 = vpop.permute.xlu1 %1254 }
 0x269   :  { %1473 = vrot.lane.b32.xlu0 %v6436_v2, %s5165_s9 }
 0x26a   :  { %1475 = vrot.lane.b32.xlu1 %v6442_v32, %s5165_s9 }
 0x26b   :  { %v6586_v33 = vpop.permute.xlu0 %1256 }
 0x26c   :  { %v6588_v15 = vpop.permute.xlu1 %1258 }
 0x26d   :  { %1477 = vrot.lane.b32.xlu0 %v6447_v58, %s5165_s9 }
 0x26e   :  { %1479 = vrot.lane.b32.xlu1 %v6453_v12, %s5165_s9 }
 0x26f   :  { %v6594_v37 = vpop.permute.xlu0 %1260 }
 0x270   :  { %v6596_v53 = vpop.permute.xlu1 %1262 }
 0x271   :  { %1481 = vrot.lane.b32.xlu0 %v6458_v54, %s5165_s9  ;;  %v147_v54 = vlaneseq }
 0x272   :  { %1483 = vrot.lane.b32.xlu1 %v6464_v36, %s5165_s9  ;;  %v1733_v36 = vld [vmem:[%s10614_s1 + $0x30] sm:$0xff] }
 0x273   :  { %v6602_v2 = vpop.permute.xlu0 %1264 }
 0x274   :  { %v6604_v48 = vpop.permute.xlu1 %1266 }
 0x275   :  { %1485 = vrot.lane.b32.xlu0 %v6469_v13, %s5165_s9  ;;  %v148_v13 = vand.u32 127, %v147_v54 }
 0x276   :  { %1487 = vrot.lane.b32.xlu1 %v6475_v11, %s5165_s9 }
 0x277   :  { %v6610_v58 = vpop.permute.xlu0 %1268  ;;  %v6653_v45 = vmul.u32.u64.low 2454267026, %v148_v13  ;;  %v6654_v32 = vmul.u32.u64.high 2454267026, %v148_v13, %v6653_v45 }
 0x278   :  { %v6612_v23 = vpop.permute.xlu1 %1270 }
 0x279   :  { %1489 = vrot.lane.b32.xlu0 %v6480_v9, %s5165_s9  ;;  %v149_v9 = vadd.s32 128, %v148_v13  ;;  %vm156_vm7 = vc.u32 %v6653_v45, 2454267026 }
 0x27a   :  { %1491 = vrot.lane.b32.xlu1 %v6486_v5, %s5165_s9  ;;  %v1734_v5 = vld [vmem:[%s10614_s1 + $0x38] sm:$0xff] }
 0x27b   :  { %v6618_v8 = vpop.permute.xlu0 %1272  ;;  %v6645_v31 = vmul.u32.u64.low 2454267026, %v149_v9  ;;  %v6646_v30 = vmul.u32.u64.high 2454267026, %v149_v9, %v6645_v31 }
 0x27c   :  { %v6620_v38 = vpop.permute.xlu1 %1274 }
 0x27d   :  { %1493 = vrot.lane.b32.xlu0 %v6491_v39, %s5165_s9  ;;  %v1731_v39 = vld [vmem:[%s10614_s1 + $0x20] sm:$0xff]  ;;  %vm170_vm6 = vc.u32 %v6645_v31, 2454267026 }
 0x27e   :  { %1495 = vrot.lane.b32.xlu1 %v6497_v61, %s5165_s9 }
 0x27f   :  { %v6626_v1 = vpop.permute.xlu0 %1276 }
 0x280   :  { %v6628_v46 = vpop.permute.xlu1 %1278 }
 0x281   :  { %1497 = vrot.lane.b32.xlu0 %v6502_v7, %s5165_s9  ;;  %v5166_v7 = vmov 0  }
 0x282   :  { %1499 = vrot.lane.b32.xlu1 %v6506_v60, %s5165_s9  ;;  %v171_v60 = vsel %vm170_vm6, 1, %v5166_v7  ;;  %vm1505_vm6 = vcmask 908288  }
 0x283   :  { %v6634_v26 = vpop.permute.xlu0 %1280 }
 0x284   :  { %v6636_v10 = vpop.permute.xlu1 %1282 }
 0x285   :  { %1501 = vrot.lane.b32.xlu0 %v6510_v40, %s5165_s9  ;;  %v1735_v40 = vld [vmem:[%s10614_s1 + $0x40] sm:$0xff] }
 0x286   :  { %1503 = vrot.lane.b32.xlu1 %v6514_v18, %s5165_s9  ;;  %v157_v18 = vsel %vm156_vm7, 1, %v5166_v7  ;;  %v1738_v7 = vld [vmem:[%s10614_s1 + $0x58] sm:$0xff] }
 0x287   :  { %v6648_v25 = vpop.permute.xlu0 %1284  ;;  %v158_v45 = vadd.s32 %v6654_v32, %v157_v18  ;;  %v1739_v32 = vld [vmem:[%s10614_s1 + $0x60] sm:$0xff] }
 0x288   :  { %v6656_v12 = vpop.permute.xlu1 %1286 }
 0x289   :  { %1847 = vrot.lane.b32.xlu0 %v1731_v39, %s5161_s19  ;;  %v1736_v39 = vld [vmem:[%s10614_s1 + $0x48] sm:$0xff] }
 0x28a   :  { %1849 = vrot.lane.b32.xlu1 %v1732_v42, %s5161_s19  ;;  %v172_v42 = vadd.s32 %v6646_v30, %v171_v60  ;;  %v159_v30 = vshrl.u32 %v158_v45, 3  ;;  %v1741_v45 = vld [vmem:[%s10614_s1 + $0x70] sm:$0xff] }
 0x28b   :  { %v6663_v11 = vpop.permute.xlu0 %1288 }
 0x28c   :  { %v6668_v61 = vpop.permute.xlu1 %1290 }
 0x28d   :  { %1851 = vrot.lane.b32.xlu0 %v1733_v36, %s5161_s19  ;;  %v1737_v36 = vld [vmem:[%s10614_s1 + $0x50] sm:$0xff] }
 0x28e   :  { %1853 = vrot.lane.b32.xlu1 %v1734_v5, %s5161_s19 }
 0x28f   :  { %v6675_v54 = vpop.permute.xlu0 %1292 }
 0x290   :  { %10813 = vst [vmem:[#allocation20_spill] sm:$0xff] %v6675_v54  ;;  %v6680_v31 = vpop.permute.xlu1 %1294 }
 0x291   :  { %10814 = vst [vmem:[#allocation21_spill] sm:$0xff] %v6680_v31  ;;  %1855 = vrot.lane.b32.xlu0 %v1735_v40, %s5161_s19  ;;  %v173_v31 = vshrl.u32 %v172_v42, 3  ;;  %v1740_v40 = vld [vmem:[%s10614_s1 + $0x68] sm:$0xff]  ;;  %v160_v42 = vmul.u32 14, %v159_v30  ;;  %v1743_v30 = vld [vmem:[%s10614_s1 + $0x80] sm:$0xff] }
 0x292   :  { %1857 = vrot.lane.b32.xlu1 %v1736_v39, %s5161_s19 }
 0x293   :  { %v6689_v5 = vpop.permute.xlu0 %1296  ;;  %v174_v39 = vmul.u32 14, %v173_v31  ;;  %v161_v31 = vsub.s32 %v148_v13, %v160_v42  ;;  %v1745_v13 = vld [vmem:[%s10614_s1 + $0x90] sm:$0xff]  ;;  %v1746_v42 = vld [vmem:[%s10614_s1 + $0x98] sm:$0xff] }
 0x294   :  { %10815 = vst [vmem:[#allocation22_spill] sm:$0xff] %v6689_v5  ;;  %v6694_v54 = vpop.permute.xlu1 %1298 }
 0x295   :  { %1859 = vrot.lane.b32.xlu0 %v1737_v36, %s5161_s19  ;;  %v175_v5 = vsub.s32 %v149_v9, %v174_v39  ;;  %vm178_vm10 = vcmp.ne.s32.totalorder %v161_v31, 0  ;;  %vm180_vm11 = vcmp.lt.s32.totalorder %v161_v31, 0 }
 0x296   :  { %1861 = vrot.lane.b32.xlu1 %v1738_v7, %s5161_s19  ;;  %v1742_v7 = vld [vmem:[%s10614_s1 + $0x78] sm:$0xff]  ;;  %vm182_vm13 = vmand %vm180_vm11, %vm178_vm10 }
 0x297   :  { %v6701_v60 = vpop.permute.xlu0 %1300  ;;  %vm179_vm8 = vcmp.ne.s32.totalorder %v175_v5, 0  ;;  %vm181_vm9 = vcmp.lt.s32.totalorder %v175_v5, 0  ;;  %v185_v9 = vadd.s32 14, %v175_v5 }
 0x298   :  { %10816 = vst [vmem:[#allocation23_spill] sm:$0xff] %v6701_v60  ;;  %v6706_v18 = vpop.permute.xlu1 %1302  ;;  %vm183_vm12 = vmand %vm181_vm9, %vm179_vm8  ;;  %vm1687_vm9 = vcmask 556032  }
 0x299   :  { %1863 = vrot.lane.b32.xlu0 %v1739_v32, %s5161_s19 }
 0x29a   :  { %1865 = vrot.lane.b32.xlu1 %v1740_v40, %s5161_s19  ;;  %v1744_v40 = vld [vmem:[%s10614_s1 + $0x88] sm:$0xff] }
 0x29b   :  { %v6713_v36 = vpop.permute.xlu0 %1304 }
 0x29c   :  { %10817 = vst [vmem:[#allocation24_spill] sm:$0xff] %v6713_v36  ;;  %v6718_v60 = vpop.permute.xlu1 %1306 }
 0x29d   :  { %10818 = vst [vmem:[#allocation25_spill] sm:$0xff] %v6718_v60  ;;  %1867 = vrot.lane.b32.xlu0 %v1741_v45, %s5161_s19  ;;  %v184_v45 = vadd.s32 14, %v161_v31 }
 0x29e   :  { %1869 = vrot.lane.b32.xlu1 %v1742_v7, %s5161_s19 }
 0x29f   :  { %v6725_v32 = vpop.permute.xlu0 %1308 }
 0x2a0   :  { %10819 = vst [vmem:[#allocation26_spill] sm:$0xff] %v6725_v32  ;;  %v6730_v36 = vpop.permute.xlu1 %1310  ;;  %v1748_v32 = vld [vmem:[%s10614_s1 + $0xa8] sm:$0xff] }
 0x2a1   :  { %10820 = vst [vmem:[#allocation27_spill] sm:$0xff] %v6730_v36  ;;  %1871 = vrot.lane.b32.xlu0 %v1743_v30, %s5161_s19  ;;  %v1747_v30 = vld [vmem:[%s10614_s1 + $0xa0] sm:$0xff]  ;;  %v6756_v36 = vsel %vm182_vm13, %v184_v45, %v161_v31  ;;  %v1321_v31 = vsel %vm1320_vm14, %v6554_v55, %v6556_v4 }
 0x2a2   :  { %1873 = vrot.lane.b32.xlu1 %v1744_v40, %s5161_s19  ;;  %v6749_v40 = vsel %vm183_vm12, %v185_v9, %v175_v5  ;;  %10825 = vst [vmem:[#allocation32_spill] sm:$0xff] %v6756_v36  ;;  %v1749_v5 = vld [vmem:[%s10614_s1 + $0xb0] sm:$0xff]  ;;  %vm188_vm7 = vcmp.ne.s32.totalorder %v6756_v36, 0  ;;  %vm190_vm8 = vcmp.ne.s32.totalorder %v6756_v36, 13 }
 0x2a3   :  { %v6737_v39 = vpop.permute.xlu0 %1312  ;;  %10823 = vst [vmem:[#allocation30_spill] sm:$0xff] %v6749_v40  ;;  %vm189_vm15 = vcmp.ne.s32.totalorder %v6749_v40, 0  ;;  %vm191_vm1 = vcmp.ne.s32.totalorder %v6749_v40, 13  ;;  %v1381_v55 = vsel %vm188_vm7, %v1321_v31, -inf  ;;  %v1752_v31 = vld [vmem:[%s10614_s1 + $0xc8] sm:$0xff] }
 0x2a4   :  { %10821 = vst [vmem:[#allocation28_spill] sm:$0xff] %v6737_v39  ;;  %v6742_v7 = vpop.permute.xlu1 %1314 }
 0x2a5   :  { %10822 = vst [vmem:[#allocation29_spill] sm:$0xff] %v6742_v7  ;;  %1875 = vrot.lane.b32.xlu0 %v1745_v13, %s5161_s19 }
 0x2a6   :  { %1877 = vrot.lane.b32.xlu1 %v1746_v42, %s5161_s19  ;;  %v1382_v42 = vsel %vm189_vm15, %v6556_v4, -inf  ;;  %v1751_v4 = vld [vmem:[%s10614_s1 + $0xc0] sm:$0xff] }
 0x2a7   :  { %v6751_v39 = vpop.permute.xlu0 %1316 }
 0x2a8   :  { %10824 = vst [vmem:[#allocation31_spill] sm:$0xff] %v6751_v39  ;;  %v6758_v7 = vpop.permute.xlu1 %1318 }
 0x2a9   :  { %10826 = vst [vmem:[#allocation33_spill] sm:$0xff] %v6758_v7  ;;  %1879 = vrot.lane.b32.xlu0 %v1747_v30, %s5161_s19 }
 0x2aa   :  { %1881 = vrot.lane.b32.xlu1 %v1748_v32, %s5161_s19  ;;  %v1750_v32 = vld [vmem:[%s10614_s1 + $0xb8] sm:$0xff] }
 0x2ab   :  { %v1426_v13 = vpop.permute.xlu0 %1425 }
 0x2ac   :  { %v1428_v9 = vpop.permute.xlu1 %1427 }
 0x2ad   :  { %v1506_v45 = vsel %vm1505_vm6, %v1426_v13, %v1428_v9  ;;  %v1567_v30 = vsel %vm191_vm1, %v1428_v9, -inf  ;;  %1883 = vrot.lane.b32.xlu0 %v1749_v5, %s5161_s19  ;;  %v1322_v13 = vsel %vm1320_vm14, %v6562_v3, %v6564_v6 }
 0x2ae   :  { %v1566_v39 = vsel %vm190_vm8, %v1506_v45, -inf  ;;  %v1607_v7 = vmax.f32 %v1382_v42, %v1567_v30  ;;  %1885 = vrot.lane.b32.xlu1 %v1750_v32, %s5161_s19  ;;  %v1384_v32 = vsel %vm189_vm15, %v6564_v6, -inf }
 0x2af   :  { %v1606_v9 = vmax.f32 %v1381_v55, %v1566_v39  ;;  %v1430_v5 = vpop.permute.xlu0 %1429  ;;  %v1383_v39 = vsel %vm188_vm7, %v1322_v13, -inf }
 0x2b0   :  { %v1647_v45 = vmax.f32 %v6072_v63, %v1607_v7  ;;  %v1432_v42 = vpop.permute.xlu1 %1431  ;;  %v1323_v7 = vsel %vm1320_vm14, %v6570_v49, %v6572_v22 }
 0x2b1   :  { %v1646_v30 = vmax.f32 %v6078_v62, %v1606_v9  ;;  %v1507_v60 = vsel %vm1505_vm6, %v1430_v5, %v1432_v42  ;;  %v1569_v3 = vsel %vm191_vm1, %v1432_v42, -inf  ;;  %1887 = vrot.lane.b32.xlu0 %v1751_v4, %s5161_s19  ;;  %v1753_v62 = vld [vmem:[%s10614_s1 + $0xd0] sm:$0xff]  ;;  %v1386_v5 = vsel %vm189_vm15, %v6572_v22, -inf }
 0x2b2   :  { %1688 = vst.msk [vmem:[%s10615_s4 + $0x8] sm:$0xff] %vm1687_vm9, %v1647_v45  ;;  %v1568_v63 = vsel %vm190_vm8, %v1507_v60, -inf  ;;  %v1609_v6 = vmax.f32 %v1384_v32, %v1569_v3  ;;  %1889 = vrot.lane.b32.xlu1 %v1752_v31, %s5161_s19  ;;  %v1754_v60 = vld [vmem:[%s10614_s1 + $0xd8] sm:$0xff]  ;;  %v1385_v42 = vsel %vm188_vm7, %v1323_v7, -inf  ;;  %v1324_v32 = vsel %vm1320_vm14, %v6578_v14, %v6580_v29 }
 0x2b3   :  { %1686 = vst [vmem:[%s10615_s4] sm:$0xff] %v1646_v30  ;;  %v1608_v55 = vmax.f32 %v1383_v39, %v1568_v63  ;;  %v1434_v4 = vpop.permute.xlu0 %1433  ;;  %v1756_v39 = vld [vmem:[%s10614_s1 + $0xe8] sm:$0xff] }
 0x2b4   :  { %v1649_v13 = vmax.f32 %v6083_v0, %v1609_v6  ;;  %v1436_v9 = vpop.permute.xlu1 %1435 }
 0x2b5   :  { %v1648_v31 = vmax.f32 %v6091_v50, %v1608_v55  ;;  %v1508_v49 = vsel %vm1505_vm6, %v1434_v4, %v1436_v9  ;;  %v1571_v45 = vsel %vm191_vm1, %v1436_v9, -inf  ;;  %1891 = vrot.lane.b32.xlu0 %v1753_v62, %s5161_s19  ;;  %v1755_v50 = vld [vmem:[%s10614_s1 + $0xe0] sm:$0xff]  ;;  %v1388_v62 = vsel %vm189_vm15, %v6580_v29, -inf }
 0x2b6   :  { %1690 = vst.msk [vmem:[%s10615_s4 + $0x18] sm:$0xff] %vm1687_vm9, %v1649_v13  ;;  %v1570_v0 = vsel %vm190_vm8, %v1508_v49, -inf  ;;  %v1611_v22 = vmax.f32 %v1386_v5, %v1571_v45  ;;  %1893 = vrot.lane.b32.xlu1 %v1754_v60, %s5161_s19  ;;  %v1387_v4 = vsel %vm188_vm7, %v1324_v32, -inf  ;;  %v1325_v60 = vsel %vm1320_vm14, %v6586_v33, %v6588_v15  ;;  %v1758_v5 = vld [vmem:[%s10614_s1 + $0xf8] sm:$0xff] }
 0x2b7   :  { %1689 = vst [vmem:[%s10615_s4 + $0x10] sm:$0xff] %v1648_v31  ;;  %v1610_v30 = vmax.f32 %v1385_v42, %v1570_v0  ;;  %v1438_v3 = vpop.permute.xlu0 %1437  ;;  %v1390_v45 = vsel %vm189_vm15, %v6588_v15, -inf }
 0x2b8   :  { %v1651_v63 = vmax.f32 %v6096_v24, %v1611_v22  ;;  %v1440_v6 = vpop.permute.xlu1 %1439  ;;  %v1389_v22 = vsel %vm188_vm7, %v1325_v60, -inf }
 0x2b9   :  { %v1650_v7 = vmax.f32 %v6102_v43, %v1610_v30  ;;  %v1509_v14 = vsel %vm1505_vm6, %v1438_v3, %v1440_v6  ;;  %v1573_v55 = vsel %vm191_vm1, %v1440_v6, -inf  ;;  %1895 = vrot.lane.b32.xlu0 %v1755_v50, %s5161_s19  ;;  %v1757_v43 = vld [vmem:[%s10614_s1 + $0xf0] sm:$0xff]  ;;  %v1326_v50 = vsel %vm1320_vm14, %v6594_v37, %v6596_v53  ;;  %v1760_v3 = vld [vmem:[%s10614_s1 + $0x108] sm:$0xff] }
 0x2ba   :  { %1692 = vst.msk [vmem:[%s10615_s4 + $0x28] sm:$0xff] %vm1687_vm9, %v1651_v63  ;;  %v1572_v24 = vsel %vm190_vm8, %v1509_v14, -inf  ;;  %v1613_v29 = vmax.f32 %v1388_v62, %v1573_v55  ;;  %1897 = vrot.lane.b32.xlu1 %v1756_v39, %s5161_s19  ;;  %v1392_v6 = vsel %vm189_vm15, %v6596_v53, -inf  ;;  %v1391_v14 = vsel %vm188_vm7, %v1326_v50, -inf }
 0x2bb   :  { %1691 = vst [vmem:[%s10615_s4 + $0x20] sm:$0xff] %v1650_v7  ;;  %v1612_v13 = vmax.f32 %v1387_v4, %v1572_v24  ;;  %v1442_v9 = vpop.permute.xlu0 %1441  ;;  %v1327_v55 = vsel %vm1320_vm14, %v6602_v2, %v6604_v48 }
 0x2bc   :  { %v1653_v31 = vmax.f32 %v6107_v44, %v1613_v29  ;;  %v1444_v49 = vpop.permute.xlu1 %1443  ;;  %v1762_v29 = vld [vmem:[%s10614_s1 + $0x118] sm:$0xff] }
 0x2bd   :  { %v1652_v42 = vmax.f32 %v6113_v21, %v1612_v13  ;;  %v1510_v33 = vsel %vm1505_vm6, %v1442_v9, %v1444_v49  ;;  %v1575_v0 = vsel %vm191_vm1, %v1444_v49, -inf  ;;  %1899 = vrot.lane.b32.xlu0 %v1757_v43, %s5161_s19  ;;  %v1759_v21 = vld [vmem:[%s10614_s1 + $0x100] sm:$0xff]  ;;  %v1394_v13 = vsel %vm189_vm15, %v6604_v48, -inf }
 0x2be   :  { %1694 = vst.msk [vmem:[%s10615_s4 + $0x38] sm:$0xff] %vm1687_vm9, %v1653_v31  ;;  %v1574_v44 = vsel %vm190_vm8, %v1510_v33, -inf  ;;  %v1615_v15 = vmax.f32 %v1390_v45, %v1575_v0  ;;  %1901 = vrot.lane.b32.xlu1 %v1758_v5, %s5161_s19  ;;  %v1393_v31 = vsel %vm188_vm7, %v1327_v55, -inf  ;;  %v1328_v49 = vsel %vm1320_vm14, %v6610_v58, %v6612_v23  ;;  %v1764_v33 = vld [vmem:[%s10614_s1 + $0x128] sm:$0xff] }
 0x2bf   :  { %1693 = vst [vmem:[%s10615_s4 + $0x30] sm:$0xff] %v1652_v42  ;;  %v1614_v32 = vmax.f32 %v1389_v22, %v1574_v44  ;;  %v1446_v30 = vpop.permute.xlu0 %1445  ;;  %v1396_v44 = vsel %vm189_vm15, %v6612_v23, -inf  ;;  %v1395_v50 = vsel %vm188_vm7, %v1328_v49, -inf  ;;  %v1768_v55 = vld [vmem:[%s10614_s1 + $0x148] sm:$0xff] }
 0x2c0   :  { %v1655_v39 = vmax.f32 %v6118_v20, %v1615_v15  ;;  %v1448_v63 = vpop.permute.xlu1 %1447 }
 0x2c1   :  { %v1654_v62 = vmax.f32 %v6124_v57, %v1614_v32  ;;  %v1511_v37 = vsel %vm1505_vm6, %v1446_v30, %v1448_v63  ;;  %v1577_v7 = vsel %vm191_vm1, %v1448_v63, -inf  ;;  %1903 = vrot.lane.b32.xlu0 %v1759_v21, %s5161_s19  ;;  %v1761_v57 = vld [vmem:[%s10614_s1 + $0x110] sm:$0xff]  ;;  %v1329_v32 = vsel %vm1320_vm14, %v6618_v8, %v6620_v38 }
 0x2c2   :  { %1696 = vst.msk [vmem:[%s10615_s4 + $0x48] sm:$0xff] %vm1687_vm9, %v1655_v39  ;;  %v1576_v20 = vsel %vm190_vm8, %v1511_v37, -inf  ;;  %v1617_v53 = vmax.f32 %v1392_v6, %v1577_v7  ;;  %1905 = vrot.lane.b32.xlu1 %v1760_v3, %s5161_s19  ;;  %v1766_v39 = vld [vmem:[%s10614_s1 + $0x138] sm:$0xff] }
 0x2c3   :  { %1695 = vst [vmem:[%s10615_s4 + $0x40] sm:$0xff] %v1654_v62  ;;  %v1616_v4 = vmax.f32 %v1391_v14, %v1576_v20  ;;  %v1450_v24 = vpop.permute.xlu0 %1449  ;;  %v1398_v62 = vsel %vm189_vm15, %v6620_v38, -inf  ;;  %v1397_v14 = vsel %vm188_vm7, %v1329_v32, -inf  ;;  %v1330_v20 = vsel %vm1320_vm14, %v6626_v1, %v6628_v46 }
 0x2c4   :  { %v1657_v43 = vmax.f32 %v6129_v47, %v1617_v53  ;;  %v1452_v60 = vpop.permute.xlu1 %1451 }
 0x2c5   :  { %v1656_v9 = vmax.f32 %v6135_v52, %v1616_v4  ;;  %v1512_v2 = vsel %vm1505_vm6, %v1450_v24, %v1452_v60  ;;  %v1579_v5 = vsel %vm191_vm1, %v1452_v60, -inf  ;;  %1907 = vrot.lane.b32.xlu0 %v1761_v57, %s5161_s19  ;;  %v1763_v52 = vld [vmem:[%s10614_s1 + $0x120] sm:$0xff] }
 0x2c6   :  { %1698 = vst.msk [vmem:[%s10615_s4 + $0x58] sm:$0xff] %vm1687_vm9, %v1657_v43  ;;  %v1578_v47 = vsel %vm190_vm8, %v1512_v2, -inf  ;;  %v1619_v48 = vmax.f32 %v1394_v13, %v1579_v5  ;;  %1909 = vrot.lane.b32.xlu1 %v1762_v29, %s5161_s19  ;;  %v1400_v29 = vsel %vm189_vm15, %v6628_v46, -inf  ;;  %v1399_v13 = vsel %vm188_vm7, %v1330_v20, -inf }
 0x2c7   :  { %1697 = vst [vmem:[%s10615_s4 + $0x50] sm:$0xff] %v1656_v9  ;;  %v1618_v45 = vmax.f32 %v1393_v31, %v1578_v47  ;;  %v1454_v42 = vpop.permute.xlu0 %1453  ;;  %v1331_v9 = vsel %vm1320_vm14, %v6634_v26, %v6636_v10  ;;  %v1770_v31 = vld [vmem:[%s10614_s1 + $0x158] sm:$0xff] }
 0x2c8   :  { %v1659_v0 = vmax.f32 %v6140_v35, %v1619_v48  ;;  %v1456_v22 = vpop.permute.xlu1 %1455 }
 0x2c9   :  { %v1658_v15 = vmax.f32 %v6146_v19, %v1618_v45  ;;  %v1513_v58 = vsel %vm1505_vm6, %v1454_v42, %v1456_v22  ;;  %v1581_v21 = vsel %vm191_vm1, %v1456_v22, -inf  ;;  %1911 = vrot.lane.b32.xlu0 %v1763_v52, %s5161_s19  ;;  %v1765_v19 = vld [vmem:[%s10614_s1 + $0x130] sm:$0xff]  ;;  %v1402_v52 = vsel %vm189_vm15, %v6636_v10, -inf }
 0x2ca   :  { %1700 = vst.msk [vmem:[%s10615_s4 + $0x68] sm:$0xff] %vm1687_vm9, %v1659_v0  ;;  %v1580_v35 = vsel %vm190_vm8, %v1513_v58, -inf  ;;  %v1621_v23 = vmax.f32 %v1396_v44, %v1581_v21  ;;  %1913 = vrot.lane.b32.xlu1 %v1764_v33, %s5161_s19  ;;  %v1401_v42 = vsel %vm188_vm7, %v1331_v9, -inf  ;;  %v1332_v33 = vsel %vm1320_vm14, %v6648_v25, %v6656_v12  ;;  %v1772_v44 = vld [vmem:[%s10614_s1 + $0x168] sm:$0xff]  ;;  %v1777_v9 = vld [vmem:[%s10614_s1 + $0x190] sm:$0xff] }
 0x2cb   :  { %1699 = vst [vmem:[%s10615_s4 + $0x60] sm:$0xff] %v1658_v15  ;;  %v1620_v30 = vmax.f32 %v1395_v50, %v1580_v35  ;;  %v1458_v3 = vpop.permute.xlu0 %1457  ;;  %v1404_v21 = vsel %vm189_vm15, %v6656_v12, -inf }
 0x2cc   :  { %v1661_v63 = vmax.f32 %v6151_v17, %v1621_v23  ;;  %v1460_v6 = vpop.permute.xlu1 %1459  ;;  %v1403_v23 = vsel %vm188_vm7, %v1332_v33, -inf }
 0x2cd   :  { %v1660_v37 = vmax.f32 %v6157_v56, %v1620_v30  ;;  %v1514_v8 = vsel %vm1505_vm6, %v1458_v3, %v1460_v6  ;;  %v1583_v7 = vsel %vm191_vm1, %v1460_v6, -inf  ;;  %1915 = vrot.lane.b32.xlu0 %v1765_v19, %s5161_s19  ;;  %v1767_v56 = vld [vmem:[%s10614_s1 + $0x140] sm:$0xff]  ;;  %v1333_v19 = vsel %vm1320_vm14, %v6663_v11, %v6668_v61  ;;  %v1774_v3 = vld [vmem:[%s10614_s1 + $0x178] sm:$0xff] }
 0x2ce   :  { %1702 = vst.msk [vmem:[%s10615_s4 + $0x78] sm:$0xff] %vm1687_vm9, %v1661_v63  ;;  %v1582_v17 = vsel %vm190_vm8, %v1514_v8, -inf  ;;  %v1623_v38 = vmax.f32 %v1398_v62, %v1583_v7  ;;  %1917 = vrot.lane.b32.xlu1 %v1766_v39, %s5161_s19  ;;  %v1406_v6 = vsel %vm189_vm15, %v6668_v61, -inf  ;;  %v10827_v62 = vld [vmem:[#allocation3_spill] sm:$0xff]  ;;  %v1405_v7 = vsel %vm188_vm7, %v1333_v19, -inf }
 0x2cf   :  { %1701 = vst [vmem:[%s10615_s4 + $0x70] sm:$0xff] %v1660_v37  ;;  %v1622_v53 = vmax.f32 %v1397_v14, %v1582_v17  ;;  %v1462_v57 = vpop.permute.xlu0 %1461  ;;  %v1775_v14 = vld [vmem:[%s10614_s1 + $0x180] sm:$0xff]  ;;  %v10828_v17 = vld [vmem:[#allocation21_spill] sm:$0xff] }
 0x2d0   :  { %v1663_v4 = vmax.f32 %v6162_v51, %v1623_v38  ;;  %v1464_v24 = vpop.permute.xlu1 %1463  ;;  %v10829_v38 = vld [vmem:[#allocation20_spill] sm:$0xff] }
 0x2d1   :  { %v1662_v43 = vmax.f32 %v6168_v16, %v1622_v53  ;;  %v1515_v1 = vsel %vm1505_vm6, %v1462_v57, %v1464_v24  ;;  %v1585_v60 = vsel %vm191_vm1, %v1464_v24, -inf  ;;  %1919 = vrot.lane.b32.xlu0 %v1767_v56, %s5161_s19  ;;  %v1769_v16 = vld [vmem:[%s10614_s1 + $0x150] sm:$0xff]  ;;  %v1334_v56 = vsel %vm1320_vm14, %v10829_v38, %v10828_v17  ;;  %v1776_v57 = vld [vmem:[%s10614_s1 + $0x188] sm:$0xff] }
 0x2d2   :  { %1704 = vst.msk [vmem:[%s10615_s4 + $0x88] sm:$0xff] %vm1687_vm9, %v1663_v4  ;;  %v1584_v51 = vsel %vm190_vm8, %v1515_v1, -inf  ;;  %v1625_v46 = vmax.f32 %v1400_v29, %v1585_v60  ;;  %1921 = vrot.lane.b32.xlu1 %v1768_v55, %s5161_s19  ;;  %v10830_v55 = vld [vmem:[#allocation4_spill] sm:$0xff]  ;;  %v1408_v29 = vsel %vm189_vm15, %v10828_v17, -inf  ;;  %v10841_v17 = vld [vmem:[#allocation11_spill] sm:$0xff] }
 0x2d3   :  { %1703 = vst [vmem:[%s10615_s4 + $0x80] sm:$0xff] %v1662_v43  ;;  %v1624_v2 = vmax.f32 %v1399_v13, %v1584_v51  ;;  %v1466_v5 = vpop.permute.xlu0 %1465  ;;  %v10831_v43 = vld [vmem:[#allocation5_spill] sm:$0xff]  ;;  %v1407_v51 = vsel %vm188_vm7, %v1334_v56, -inf }
 0x2d4   :  { %v1665_v47 = vmax.f32 %v6173_v34, %v1625_v46  ;;  %v1468_v48 = vpop.permute.xlu1 %1467 }
 0x2d5   :  { %v1664_v49 = vmax.f32 %v6179_v27, %v1624_v2  ;;  %v1516_v26 = vsel %vm1505_vm6, %v1466_v5, %v1468_v48  ;;  %v1587_v45 = vsel %vm191_vm1, %v1468_v48, -inf  ;;  %1923 = vrot.lane.b32.xlu0 %v1769_v16, %s5161_s19  ;;  %v1771_v27 = vld [vmem:[%s10614_s1 + $0x160] sm:$0xff]  ;;  %v10832_v2 = vld [vmem:[#allocation22_spill] sm:$0xff] }
 0x2d6   :  { %1706 = vst.msk [vmem:[%s10615_s4 + $0x98] sm:$0xff] %vm1687_vm9, %v1665_v47  ;;  %v1586_v34 = vsel %vm190_vm8, %v1516_v26, -inf  ;;  %v1627_v10 = vmax.f32 %v1402_v52, %v1587_v45  ;;  %1925 = vrot.lane.b32.xlu1 %v1770_v31, %s5161_s19  ;;  %v1335_v5 = vsel %vm1320_vm14, %v10832_v2, %v6694_v54  ;;  %v1778_v48 = vld [vmem:[%s10614_s1 + $0x198] sm:$0xff]  ;;  %v1410_v45 = vsel %vm189_vm15, %v6694_v54, -inf }
 0x2d7   :  { %1705 = vst [vmem:[%s10615_s4 + $0x90] sm:$0xff] %v1664_v49  ;;  %v1626_v0 = vmax.f32 %v1401_v42, %v1586_v34  ;;  %v1470_v22 = vpop.permute.xlu0 %1469  ;;  %v10833_v52 = vld [vmem:[#allocation6_spill] sm:$0xff]  ;;  %v10834_v42 = vld [vmem:[#allocation7_spill] sm:$0xff]  ;;  %v1409_v33 = vsel %vm188_vm7, %v1335_v5, -inf }
 0x2d8   :  { %v1667_v15 = vmax.f32 %v6184_v28, %v1627_v10  ;;  %v1472_v58 = vpop.permute.xlu1 %1471 }
 0x2d9   :  { %v1666_v50 = vmax.f32 %v6190_v59, %v1626_v0  ;;  %v1517_v25 = vsel %vm1505_vm6, %v1470_v22, %v1472_v58  ;;  %v1589_v35 = vsel %vm191_vm1, %v1472_v58, -inf  ;;  %1927 = vrot.lane.b32.xlu0 %v1771_v27, %s5161_s19  ;;  %v1773_v59 = vld [vmem:[%s10614_s1 + $0x170] sm:$0xff]  ;;  %v1779_v22 = vld [vmem:[%s10614_s1 + $0x1a0] sm:$0xff] }
 0x2da   :  { %1708 = vst.msk [vmem:[%s10615_s4 + $0xa8] sm:$0xff] %vm1687_vm9, %v1667_v15  ;;  %v1588_v28 = vsel %vm190_vm8, %v1517_v25, -inf  ;;  %v1629_v12 = vmax.f32 %v1404_v21, %v1589_v35  ;;  %1929 = vrot.lane.b32.xlu1 %v1772_v44, %s5161_s19  ;;  %v10835_v44 = vld [vmem:[#allocation23_spill] sm:$0xff]  ;;  %v10836_v25 = vld [vmem:[#allocation8_spill] sm:$0xff] }
 0x2db   :  { %1707 = vst [vmem:[%s10615_s4 + $0xa0] sm:$0xff] %v1666_v50  ;;  %v1628_v32 = vmax.f32 %v1403_v23, %v1588_v28  ;;  %v1474_v30 = vpop.permute.xlu0 %1473  ;;  %v1336_v15 = vsel %vm1320_vm14, %v10835_v44, %v6706_v18  ;;  %v1780_v50 = vld [vmem:[%s10614_s1 + $0x1a8] sm:$0xff]  ;;  %v1412_v28 = vsel %vm189_vm15, %v6706_v18, -inf  ;;  %v10849_v44 = vld [vmem:[#allocation15_spill] sm:$0xff] }
 0x2dc   :  { %v1669_v39 = vmax.f32 %v6195_v41, %v1629_v12  ;;  %v1476_v63 = vpop.permute.xlu1 %1475  ;;  %v10837_v12 = vld [vmem:[#allocation9_spill] sm:$0xff] }
 0x2dd   :  { %v1668_v37 = vmax.f32 %v10827_v62, %v1628_v32  ;;  %v1518_v11 = vsel %vm1505_vm6, %v1474_v30, %v1476_v63  ;;  %v1591_v8 = vsel %vm191_vm1, %v1476_v63, -inf  ;;  %1931 = vrot.lane.b32.xlu0 %v1773_v59, %s5161_s19  ;;  %v1411_v30 = vsel %vm188_vm7, %v1336_v15, -inf  ;;  %v10838_v63 = vld [vmem:[#allocation25_spill] sm:$0xff] }
 0x2de   :  { %1710 = vst.msk [vmem:[%s10615_s4 + $0xb8] sm:$0xff] %vm1687_vm9, %v1669_v39  ;;  %v1590_v41 = vsel %vm190_vm8, %v1518_v11, -inf  ;;  %v1631_v61 = vmax.f32 %v1406_v6, %v1591_v8  ;;  %1933 = vrot.lane.b32.xlu1 %v1774_v3, %s5161_s19  ;;  %v1781_v39 = vld [vmem:[%s10614_s1 + $0x1b0] sm:$0xff]  ;;  %v10839_v6 = vld [vmem:[#allocation24_spill] sm:$0xff]  ;;  %v1782_v8 = vld [vmem:[%s10614_s1 + $0x1b8] sm:$0xff] }
 0x2df   :  { %1709 = vst [vmem:[%s10615_s4 + $0xb0] sm:$0xff] %v1668_v37  ;;  %v1630_v20 = vmax.f32 %v1405_v7, %v1590_v41  ;;  %v1478_v53 = vpop.permute.xlu0 %1477  ;;  %v1337_v62 = vsel %vm1320_vm14, %v10839_v6, %v10838_v63  ;;  %v10840_v7 = vld [vmem:[#allocation10_spill] sm:$0xff] }
 0x2e0   :  { %v1671_v4 = vmax.f32 %v10830_v55, %v1631_v61  ;;  %v1480_v24 = vpop.permute.xlu1 %1479 }
 0x2e1   :  { %v1670_v1 = vmax.f32 %v10831_v43, %v1630_v20  ;;  %v1519_v60 = vsel %vm1505_vm6, %v1478_v53, %v1480_v24  ;;  %v1593_v13 = vsel %vm191_vm1, %v1480_v24, -inf  ;;  %1935 = vrot.lane.b32.xlu0 %v1775_v14, %s5161_s19  ;;  %v1414_v14 = vsel %vm189_vm15, %v10838_v63, -inf  ;;  %v10843_v24 = vld [vmem:[#allocation26_spill] sm:$0xff]  ;;  %v10853_v63 = vld [vmem:[#allocation17_spill] sm:$0xff] }
 0x2e2   :  { %1712 = vst.msk [vmem:[%s10615_s4 + $0xc8] sm:$0xff] %vm1687_vm9, %v1671_v4  ;;  %v1592_v46 = vsel %vm190_vm8, %v1519_v60, -inf  ;;  %v1633_v16 = vmax.f32 %v1408_v29, %v1593_v13  ;;  %1937 = vrot.lane.b32.xlu1 %v1776_v57, %s5161_s19  ;;  %v1413_v53 = vsel %vm188_vm7, %v1337_v62, -inf  ;;  %v10842_v4 = vld [vmem:[#allocation27_spill] sm:$0xff]  ;;  %v10844_v60 = vld [vmem:[#allocation12_spill] sm:$0xff] }
 0x2e3   :  { %1711 = vst [vmem:[%s10615_s4 + $0xc0] sm:$0xff] %v1670_v1  ;;  %v1632_v31 = vmax.f32 %v1407_v51, %v1592_v46  ;;  %v1482_v47 = vpop.permute.xlu0 %1481  ;;  %v1338_v29 = vsel %vm1320_vm14, %v10843_v24, %v10842_v4  ;;  %v7271_v46 = vld [vmem:[#allocation2 + $0x140] sm:$0xff] }
 0x2e4   :  { %v1673_v49 = vmax.f32 %v10833_v52, %v1633_v16  ;;  %v1484_v26 = vpop.permute.xlu1 %1483  ;;  %v1416_v16 = vsel %vm189_vm15, %v10842_v4, -inf }
 0x2e5   :  { %v1672_v34 = vmax.f32 %v10834_v42, %v1632_v31  ;;  %v1520_v10 = vsel %vm1505_vm6, %v1482_v47, %v1484_v26  ;;  %v1595_v27 = vsel %vm191_vm1, %v1484_v26, -inf  ;;  %1939 = vrot.lane.b32.xlu0 %v1777_v9, %s5161_s19  ;;  %v10845_v9 = vld [vmem:[#allocation13_spill] sm:$0xff]  ;;  %v7282_v47 = vld [vmem:[#allocation2 + $0x148] sm:$0xff] }
 0x2e6   :  { %1714 = vst.msk [vmem:[%s10615_s4 + $0xd8] sm:$0xff] %vm1687_vm9, %v1673_v49  ;;  %v1594_v54 = vsel %vm190_vm8, %v1520_v10, -inf  ;;  %v1635_v0 = vmax.f32 %v1410_v45, %v1595_v27  ;;  %1941 = vrot.lane.b32.xlu1 %v1778_v48, %s5161_s19  ;;  %v1415_v48 = vsel %vm188_vm7, %v1338_v29, -inf  ;;  %v10846_v26 = vld [vmem:[#allocation29_spill] sm:$0xff]  ;;  %v10847_v45 = vld [vmem:[#allocation28_spill] sm:$0xff]  ;;  %v10848_v27 = vld [vmem:[#allocation14_spill] sm:$0xff] }
 0x2e7   :  { %1713 = vst [vmem:[%s10615_s4 + $0xd0] sm:$0xff] %v1672_v34  ;;  %v1634_v58 = vmax.f32 %v1409_v33, %v1594_v54  ;;  %v1486_v21 = vpop.permute.xlu0 %1485  ;;  %v1339_v42 = vsel %vm1320_vm14, %v10847_v45, %v10846_v26 }
 0x2e8   :  { %v1675_v35 = vmax.f32 %v10836_v25, %v1635_v0  ;;  %v1488_v23 = vpop.permute.xlu1 %1487  ;;  %v7301_v0 = vld [vmem:[#allocation2 + $0x150] sm:$0xff]  ;;  %v1417_v25 = vsel %vm188_vm7, %v1339_v42, -inf }
 0x2e9   :  { %v1674_v59 = vmax.f32 %v10837_v12, %v1634_v58  ;;  %v1521_v19 = vsel %vm1505_vm6, %v1486_v21, %v1488_v23  ;;  %v1597_v32 = vsel %vm191_vm1, %v1488_v23, -inf  ;;  %1943 = vrot.lane.b32.xlu0 %v1779_v22, %s5161_s19  ;;  %v1418_v22 = vsel %vm189_vm15, %v10846_v26, -inf  ;;  %v10851_v12 = vld [vmem:[#allocation31_spill] sm:$0xff] }
 0x2ea   :  { %1716 = vst.msk [vmem:[%s10615_s4 + $0xe8] sm:$0xff] %vm1687_vm9, %v1675_v35  ;;  %v1596_v18 = vsel %vm190_vm8, %v1521_v19, -inf  ;;  %v1637_v3 = vmax.f32 %v1412_v28, %v1597_v32  ;;  %1945 = vrot.lane.b32.xlu1 %v1780_v50, %s5161_s19  ;;  %v7312_v50 = vld [vmem:[#allocation2 + $0x158] sm:$0xff]  ;;  %v10850_v28 = vld [vmem:[#allocation33_spill] sm:$0xff] }
 0x2eb   :  { %1715 = vst [vmem:[%s10615_s4 + $0xe0] sm:$0xff] %v1674_v59  ;;  %v1636_v37 = vmax.f32 %v1411_v30, %v1596_v18  ;;  %v1490_v11 = vpop.permute.xlu0 %1489  ;;  %v1340_v59 = vsel %vm1320_vm14, %v10851_v12, %v10850_v28  ;;  %v10852_v30 = vld [vmem:[#allocation16_spill] sm:$0xff] }
 0x2ec   :  { %v1677_v41 = vmax.f32 %v10840_v7, %v1637_v3  ;;  %v1492_v61 = vpop.permute.xlu1 %1491 }
 0x2ed   :  { %v1676_v38 = vmax.f32 %v10841_v17, %v1636_v37  ;;  %v1522_v56 = vsel %vm1505_vm6, %v1490_v11, %v1492_v61  ;;  %v1599_v20 = vsel %vm191_vm1, %v1492_v61, -inf  ;;  %1947 = vrot.lane.b32.xlu0 %v1781_v39, %s5161_s19  ;;  %v1420_v39 = vsel %vm189_vm15, %v10850_v28, -inf }
 0x2ee   :  { %1718 = vst.msk [vmem:[%s10615_s4 + $0xf8] sm:$0xff] %vm1687_vm9, %v1677_v41  ;;  %v1598_v57 = vsel %vm190_vm8, %v1522_v56, -inf  ;;  %v1639_v55 = vmax.f32 %v1414_v14, %v1599_v20  ;;  %1949 = vrot.lane.b32.xlu1 %v1782_v8, %s5161_s19  ;;  %v1419_v11 = vsel %vm188_vm7, %v1340_v59, -inf  ;;  %v10854_v14 = vld [vmem:[#allocation18_spill] sm:$0xff]  ;;  %v10855_v56 = vld [vmem:[#allocation19_spill] sm:$0xff] }
 0x2ef   :  { %1717 = vst [vmem:[%s10615_s4 + $0xf0] sm:$0xff] %v1676_v38  ;;  %v1638_v43 = vmax.f32 %v1413_v53, %v1598_v57  ;;  %v1494_v1 = vpop.permute.xlu0 %1493 }
 0x2f0   :  { %v1679_v13 = vmax.f32 %v10844_v60, %v1639_v55  ;;  %v1496_v51 = vpop.permute.xlu1 %1495 }
 0x2f1   :  { %v1678_v2 = vmax.f32 %v10845_v9, %v1638_v43  ;;  %v1523_v5 = vsel %vm1505_vm6, %v1494_v1, %v1496_v51  ;;  %v1601_v31 = vsel %vm191_vm1, %v1496_v51, -inf  ;;  %2203 = vrot.lane.b32.xlu0 %v7271_v46, %s5162_s21 }
 0x2f2   :  { %1720 = vst.msk [vmem:[%s10615_s4 + $0x108] sm:$0xff] %vm1687_vm9, %v1679_v13  ;;  %v1600_v52 = vsel %vm190_vm8, %v1523_v5, -inf  ;;  %v1641_v49 = vmax.f32 %v1416_v16, %v1601_v31  ;;  %2205 = vrot.lane.b32.xlu1 %v7282_v47, %s5162_s21 }
 0x2f3   :  { %1719 = vst [vmem:[%s10615_s4 + $0x100] sm:$0xff] %v1678_v2  ;;  %v1640_v34 = vmax.f32 %v1415_v48, %v1600_v52  ;;  %v1498_v10 = vpop.permute.xlu0 %1497 }
 0x2f4   :  { %v1681_v33 = vmax.f32 %v10848_v27, %v1641_v49  ;;  %v1500_v54 = vpop.permute.xlu1 %1499 }
 0x2f5   :  { %v1680_v15 = vmax.f32 %v10849_v44, %v1640_v34  ;;  %v1524_v58 = vsel %vm1505_vm6, %v1498_v10, %v1500_v54  ;;  %v1603_v21 = vsel %vm191_vm1, %v1500_v54, -inf  ;;  %2207 = vrot.lane.b32.xlu0 %v7301_v0, %s5162_s21 }
 0x2f6   :  { %1722 = vst.msk [vmem:[%s10615_s4 + $0x118] sm:$0xff] %vm1687_vm9, %v1681_v33  ;;  %v1602_v35 = vsel %vm190_vm8, %v1524_v58, -inf  ;;  %v1643_v23 = vmax.f32 %v1418_v22, %v1603_v21  ;;  %2209 = vrot.lane.b32.xlu1 %v7312_v50, %s5162_s21 }
 0x2f7   :  { %1721 = vst [vmem:[%s10615_s4 + $0x110] sm:$0xff] %v1680_v15  ;;  %v1642_v19 = vmax.f32 %v1417_v25, %v1602_v35  ;;  %v1502_v32 = vpop.permute.xlu0 %1501 }
 0x2f8   :  { %v1683_v18 = vmax.f32 %v10852_v30, %v1643_v23  ;;  %v1504_v3 = vpop.permute.xlu1 %1503 }
 0x2f9   :  { %v1682_v6 = vmax.f32 %v10853_v63, %v1642_v19  ;;  %v1525_v62 = vsel %vm1505_vm6, %v1502_v32, %v1504_v3  ;;  %v1605_v37 = vsel %vm191_vm1, %v1504_v3, -inf }
 0x2fa   :  { %1724 = vst.msk [vmem:[%s10615_s4 + $0x128] sm:$0xff] %vm1687_vm9, %v1683_v18  ;;  %v1604_v8 = vsel %vm190_vm8, %v1525_v62, -inf  ;;  %v1645_v7 = vmax.f32 %v1420_v39, %v1605_v37 }
 0x2fb   :  { %1723 = vst [vmem:[%s10615_s4 + $0x120] sm:$0xff] %v1682_v6  ;;  %v1644_v41 = vmax.f32 %v1419_v11, %v1604_v8  ;;  %v1848_v61 = vpop.permute.xlu0 %1847 }
 0x2fc   :  { %v1685_v17 = vmax.f32 %v10854_v14, %v1645_v7  ;;  %2039 = vst.msk [vmem:[#allocation2 + $0x160] sm:$0xff] %vm412_vm2, %v1848_v61  ;;  %v1850_v38 = vpop.permute.xlu1 %1849 }
 0x2fd   :  { %v1684_v20 = vmax.f32 %v10855_v56, %v1644_v41  ;;  %v1953_v53 = vsel %vm17_vm0, %v1848_v61, %v1850_v38 }
 0x2fe   :  { %1726 = vst.msk [vmem:[%s10615_s4 + $0x138] sm:$0xff] %vm1687_vm9, %v1685_v17 }
 0x2ff   :  { %2040 = vst.msk [vmem:[#allocation2 + $0x168] sm:$0xff] %vm414_vm3, %v1953_v53  ;;  %1725 = vst [vmem:[%s10615_s4 + $0x130] sm:$0xff] %v1684_v20  ;;  %v1852_v57 = vpop.permute.xlu0 %1851 }
 0x300   :  { %2041 = vst.msk [vmem:[#allocation2 + $0x170] sm:$0xff] %vm412_vm2, %v1852_v57  ;;  %v1854_v55 = vpop.permute.xlu1 %1853 }
 0x301   :  { %v1954_v4 = vsel %vm17_vm0, %v1852_v57, %v1854_v55 }
 0x302   :  { %2042 = vst.msk [vmem:[#allocation2 + $0x178] sm:$0xff] %vm414_vm3, %v1954_v4 }
 0x303   :  { %v1856_v24 = vpop.permute.xlu0 %1855  ;;  %v7364_v29 = vld [vmem:[#allocation2 + $0x160] sm:$0xff] }
 0x304   :  { %2043 = vst.msk [vmem:[#allocation2 + $0x180] sm:$0xff] %vm412_vm2, %v1856_v24  ;;  %v1858_v43 = vpop.permute.xlu1 %1857  ;;  %2211 = vrot.lane.b32.xlu0 %v7364_v29, %s5162_s21 }
 0x305   :  { %v1955_v1 = vsel %vm17_vm0, %v1856_v24, %v1858_v43 }
 0x306   :  { %v7370_v60 = vld [vmem:[#allocation2 + $0x168] sm:$0xff]  ;;  %2044 = vst.msk [vmem:[#allocation2 + $0x188] sm:$0xff] %vm414_vm3, %v1955_v1 }
 0x307   :  { %2213 = vrot.lane.b32.xlu1 %v7370_v60, %s5162_s21  ;;  %v1860_v13 = vpop.permute.xlu0 %1859  ;;  %v7375_v51 = vld [vmem:[#allocation2 + $0x170] sm:$0xff] }
 0x308   :  { %2045 = vst.msk [vmem:[#allocation2 + $0x190] sm:$0xff] %vm412_vm2, %v1860_v13  ;;  %v1862_v16 = vpop.permute.xlu1 %1861  ;;  %2215 = vrot.lane.b32.xlu0 %v7375_v51, %s5162_s21 }
 0x309   :  { %v1956_v9 = vsel %vm17_vm0, %v1860_v13, %v1862_v16  ;;  %v7381_v2 = vld [vmem:[#allocation2 + $0x178] sm:$0xff] }
 0x30a   :  { %2046 = vst.msk [vmem:[#allocation2 + $0x198] sm:$0xff] %vm414_vm3, %v1956_v9 }
 0x30b   :  { %2217 = vrot.lane.b32.xlu1 %v7381_v2, %s5162_s21  ;;  %v1864_v5 = vpop.permute.xlu0 %1863  ;;  %v7386_v31 = vld [vmem:[#allocation2 + $0x180] sm:$0xff] }
 0x30c   :  { %2047 = vst.msk [vmem:[#allocation2 + $0x1a0] sm:$0xff] %vm412_vm2, %v1864_v5  ;;  %v1866_v48 = vpop.permute.xlu1 %1865  ;;  %2219 = vrot.lane.b32.xlu0 %v7386_v31, %s5162_s21 }
 0x30d   :  { %v1957_v52 = vsel %vm17_vm0, %v1864_v5, %v1866_v48  ;;  %v7392_v49 = vld [vmem:[#allocation2 + $0x188] sm:$0xff] }
 0x30e   :  { %2048 = vst.msk [vmem:[#allocation2 + $0x1a8] sm:$0xff] %vm414_vm3, %v1957_v52 }
 0x30f   :  { %2221 = vrot.lane.b32.xlu1 %v7392_v49, %s5162_s21  ;;  %v1868_v26 = vpop.permute.xlu0 %1867  ;;  %v7397_v45 = vld [vmem:[#allocation2 + $0x190] sm:$0xff] }
 0x310   :  { %2049 = vst.msk [vmem:[#allocation2 + $0x1b0] sm:$0xff] %vm412_vm2, %v1868_v26  ;;  %v1870_v42 = vpop.permute.xlu1 %1869  ;;  %2223 = vrot.lane.b32.xlu0 %v7397_v45, %s5162_s21 }
 0x311   :  { %v1958_v34 = vsel %vm17_vm0, %v1868_v26, %v1870_v42  ;;  %v7403_v10 = vld [vmem:[#allocation2 + $0x198] sm:$0xff] }
 0x312   :  { %2050 = vst.msk [vmem:[#allocation2 + $0x1b8] sm:$0xff] %vm414_vm3, %v1958_v34 }
 0x313   :  { %2225 = vrot.lane.b32.xlu1 %v7403_v10, %s5162_s21  ;;  %v1872_v27 = vpop.permute.xlu0 %1871  ;;  %v7408_v33 = vld [vmem:[#allocation2 + $0x1a0] sm:$0xff] }
 0x314   :  { %2051 = vst.msk [vmem:[#allocation2 + $0x1c0] sm:$0xff] %vm412_vm2, %v1872_v27  ;;  %v1874_v54 = vpop.permute.xlu1 %1873  ;;  %2227 = vrot.lane.b32.xlu0 %v7408_v33, %s5162_s21 }
 0x315   :  { %v1959_v22 = vsel %vm17_vm0, %v1872_v27, %v1874_v54  ;;  %v7414_v44 = vld [vmem:[#allocation2 + $0x1a8] sm:$0xff] }
 0x316   :  { %2052 = vst.msk [vmem:[#allocation2 + $0x1c8] sm:$0xff] %vm414_vm3, %v1959_v22 }
 0x317   :  { %2229 = vrot.lane.b32.xlu1 %v7414_v44, %s5162_s21  ;;  %v1876_v15 = vpop.permute.xlu0 %1875  ;;  %v7419_v58 = vld [vmem:[#allocation2 + $0x1b0] sm:$0xff] }
 0x318   :  { %2053 = vst.msk [vmem:[#allocation2 + $0x1d0] sm:$0xff] %vm412_vm2, %v1876_v15  ;;  %v1878_v21 = vpop.permute.xlu1 %1877  ;;  %2231 = vrot.lane.b32.xlu0 %v7419_v58, %s5162_s21 }
 0x319   :  { %v1960_v25 = vsel %vm17_vm0, %v1876_v15, %v1878_v21  ;;  %v7425_v35 = vld [vmem:[#allocation2 + $0x1b8] sm:$0xff] }
 0x31a   :  { %2054 = vst.msk [vmem:[#allocation2 + $0x1d8] sm:$0xff] %vm414_vm3, %v1960_v25 }
 0x31b   :  { %2233 = vrot.lane.b32.xlu1 %v7425_v35, %s5162_s21  ;;  %v1880_v23 = vpop.permute.xlu0 %1879  ;;  %v7430_v28 = vld [vmem:[#allocation2 + $0x1c0] sm:$0xff] }
 0x31c   :  { %2055 = vst.msk [vmem:[#allocation2 + $0x1e0] sm:$0xff] %vm412_vm2, %v1880_v23  ;;  %v1882_v12 = vpop.permute.xlu1 %1881  ;;  %2235 = vrot.lane.b32.xlu0 %v7430_v28, %s5162_s21 }
 0x31d   :  { %v1961_v59 = vsel %vm17_vm0, %v1880_v23, %v1882_v12  ;;  %v7436_v19 = vld [vmem:[#allocation2 + $0x1c8] sm:$0xff] }
 0x31e   :  { %2056 = vst.msk [vmem:[#allocation2 + $0x1e8] sm:$0xff] %vm414_vm3, %v1961_v59 }
 0x31f   :  { %2237 = vrot.lane.b32.xlu1 %v7436_v19, %s5162_s21  ;;  %v1884_v32 = vpop.permute.xlu0 %1883  ;;  %v7441_v30 = vld [vmem:[#allocation2 + $0x1d0] sm:$0xff] }
 0x320   :  { %2057 = vst.msk [vmem:[#allocation2 + $0x1f0] sm:$0xff] %vm412_vm2, %v1884_v32  ;;  %v1886_v18 = vpop.permute.xlu1 %1885  ;;  %2239 = vrot.lane.b32.xlu0 %v7441_v30, %s5162_s21 }
 0x321   :  { %v1962_v3 = vsel %vm17_vm0, %v1884_v32, %v1886_v18  ;;  %v7447_v39 = vld [vmem:[#allocation2 + $0x1d8] sm:$0xff] }
 0x322   :  { %2058 = vst.msk [vmem:[#allocation2 + $0x1f8] sm:$0xff] %vm414_vm3, %v1962_v3 }
 0x323   :  { %2241 = vrot.lane.b32.xlu1 %v7447_v39, %s5162_s21  ;;  %v1888_v63 = vpop.permute.xlu0 %1887  ;;  %v7452_v6 = vld [vmem:[#allocation2 + $0x1e0] sm:$0xff] }
 0x324   :  { %2059 = vst.msk [vmem:[#allocation2 + $0x200] sm:$0xff] %vm412_vm2, %v1888_v63  ;;  %v1890_v62 = vpop.permute.xlu1 %1889  ;;  %2243 = vrot.lane.b32.xlu0 %v7452_v6, %s5162_s21 }
 0x325   :  { %v1963_v37 = vsel %vm17_vm0, %v1888_v63, %v1890_v62  ;;  %v7458_v11 = vld [vmem:[#allocation2 + $0x1e8] sm:$0xff] }
 0x326   :  { %2060 = vst.msk [vmem:[#allocation2 + $0x208] sm:$0xff] %vm414_vm3, %v1963_v37 }
 0x327   :  { %2245 = vrot.lane.b32.xlu1 %v7458_v11, %s5162_s21  ;;  %v1892_v8 = vpop.permute.xlu0 %1891  ;;  %v7463_v7 = vld [vmem:[#allocation2 + $0x1f0] sm:$0xff] }
 0x328   :  { %2061 = vst.msk [vmem:[#allocation2 + $0x210] sm:$0xff] %vm412_vm2, %v1892_v8  ;;  %v1894_v41 = vpop.permute.xlu1 %1893  ;;  %2247 = vrot.lane.b32.xlu0 %v7463_v7, %s5162_s21 }
 0x329   :  { %v1964_v61 = vsel %vm17_vm0, %v1892_v8, %v1894_v41  ;;  %v7469_v14 = vld [vmem:[#allocation2 + $0x1f8] sm:$0xff] }
 0x32a   :  { %2062 = vst.msk [vmem:[#allocation2 + $0x218] sm:$0xff] %vm414_vm3, %v1964_v61 }
 0x32b   :  { %2249 = vrot.lane.b32.xlu1 %v7469_v14, %s5162_s21  ;;  %v1896_v17 = vpop.permute.xlu0 %1895  ;;  %v7474_v38 = vld [vmem:[#allocation2 + $0x200] sm:$0xff] }
 0x32c   :  { %2063 = vst.msk [vmem:[#allocation2 + $0x220] sm:$0xff] %vm412_vm2, %v1896_v17  ;;  %v1898_v56 = vpop.permute.xlu1 %1897  ;;  %2251 = vrot.lane.b32.xlu0 %v7474_v38, %s5162_s21 }
 0x32d   :  { %v1965_v20 = vsel %vm17_vm0, %v1896_v17, %v1898_v56  ;;  %v7480_v53 = vld [vmem:[#allocation2 + $0x208] sm:$0xff] }
 0x32e   :  { %2064 = vst.msk [vmem:[#allocation2 + $0x228] sm:$0xff] %vm414_vm3, %v1965_v20 }
 0x32f   :  { %2253 = vrot.lane.b32.xlu1 %v7480_v53, %s5162_s21  ;;  %v1900_v57 = vpop.permute.xlu0 %1899  ;;  %v7485_v55 = vld [vmem:[#allocation2 + $0x210] sm:$0xff] }
 0x330   :  { %2065 = vst.msk [vmem:[#allocation2 + $0x230] sm:$0xff] %vm412_vm2, %v1900_v57  ;;  %v1902_v4 = vpop.permute.xlu1 %1901  ;;  %2255 = vrot.lane.b32.xlu0 %v7485_v55, %s5162_s21 }
 0x331   :  { %v1966_v24 = vsel %vm17_vm0, %v1900_v57, %v1902_v4  ;;  %v7491_v43 = vld [vmem:[#allocation2 + $0x218] sm:$0xff] }
 0x332   :  { %2066 = vst.msk [vmem:[#allocation2 + $0x238] sm:$0xff] %vm414_vm3, %v1966_v24 }
 0x333   :  { %2257 = vrot.lane.b32.xlu1 %v7491_v43, %s5162_s21  ;;  %v1904_v1 = vpop.permute.xlu0 %1903  ;;  %v7496_v13 = vld [vmem:[#allocation2 + $0x220] sm:$0xff] }
 0x334   :  { %2067 = vst.msk [vmem:[#allocation2 + $0x240] sm:$0xff] %vm412_vm2, %v1904_v1  ;;  %v1906_v16 = vpop.permute.xlu1 %1905  ;;  %2259 = vrot.lane.b32.xlu0 %v7496_v13, %s5162_s21 }
 0x335   :  { %v1967_v9 = vsel %vm17_vm0, %v1904_v1, %v1906_v16  ;;  %v7502_v5 = vld [vmem:[#allocation2 + $0x228] sm:$0xff] }
 0x336   :  { %2068 = vst.msk [vmem:[#allocation2 + $0x248] sm:$0xff] %vm414_vm3, %v1967_v9 }
 0x337   :  { %2261 = vrot.lane.b32.xlu1 %v7502_v5, %s5162_s21  ;;  %v1908_v48 = vpop.permute.xlu0 %1907  ;;  %v7507_v52 = vld [vmem:[#allocation2 + $0x230] sm:$0xff] }
 0x338   :  { %2069 = vst.msk [vmem:[#allocation2 + $0x250] sm:$0xff] %vm412_vm2, %v1908_v48  ;;  %v1910_v26 = vpop.permute.xlu1 %1909  ;;  %2263 = vrot.lane.b32.xlu0 %v7507_v52, %s5162_s21 }
 0x339   :  { %v1968_v42 = vsel %vm17_vm0, %v1908_v48, %v1910_v26  ;;  %v7513_v34 = vld [vmem:[#allocation2 + $0x238] sm:$0xff] }
 0x33a   :  { %2070 = vst.msk [vmem:[#allocation2 + $0x258] sm:$0xff] %vm414_vm3, %v1968_v42 }
 0x33b   :  { %2265 = vrot.lane.b32.xlu1 %v7513_v34, %s5162_s21  ;;  %v1912_v27 = vpop.permute.xlu0 %1911  ;;  %v7518_v54 = vld [vmem:[#allocation2 + $0x240] sm:$0xff] }
 0x33c   :  { %2071 = vst.msk [vmem:[#allocation2 + $0x260] sm:$0xff] %vm412_vm2, %v1912_v27  ;;  %v1914_v22 = vpop.permute.xlu1 %1913  ;;  %2267 = vrot.lane.b32.xlu0 %v7518_v54, %s5162_s21 }
 0x33d   :  { %v1969_v15 = vsel %vm17_vm0, %v1912_v27, %v1914_v22  ;;  %v7524_v21 = vld [vmem:[#allocation2 + $0x248] sm:$0xff] }
 0x33e   :  { %2072 = vst.msk [vmem:[#allocation2 + $0x268] sm:$0xff] %vm414_vm3, %v1969_v15 }
 0x33f   :  { %2269 = vrot.lane.b32.xlu1 %v7524_v21, %s5162_s21  ;;  %v1916_v25 = vpop.permute.xlu0 %1915  ;;  %v7529_v23 = vld [vmem:[#allocation2 + $0x250] sm:$0xff] }
 0x340   :  { %2073 = vst.msk [vmem:[#allocation2 + $0x270] sm:$0xff] %vm412_vm2, %v1916_v25  ;;  %v1918_v12 = vpop.permute.xlu1 %1917  ;;  %2271 = vrot.lane.b32.xlu0 %v7529_v23, %s5162_s21 }
 0x341   :  { %v1970_v59 = vsel %vm17_vm0, %v1916_v25, %v1918_v12  ;;  %v7535_v32 = vld [vmem:[#allocation2 + $0x258] sm:$0xff] }
 0x342   :  { %2074 = vst.msk [vmem:[#allocation2 + $0x278] sm:$0xff] %vm414_vm3, %v1970_v59 }
 0x343   :  { %2273 = vrot.lane.b32.xlu1 %v7535_v32, %s5162_s21  ;;  %v1920_v18 = vpop.permute.xlu0 %1919  ;;  %v7540_v3 = vld [vmem:[#allocation2 + $0x260] sm:$0xff] }
 0x344   :  { %2075 = vst.msk [vmem:[#allocation2 + $0x280] sm:$0xff] %vm412_vm2, %v1920_v18  ;;  %v1922_v63 = vpop.permute.xlu1 %1921  ;;  %2275 = vrot.lane.b32.xlu0 %v7540_v3, %s5162_s21 }
 0x345   :  { %v1971_v62 = vsel %vm17_vm0, %v1920_v18, %v1922_v63  ;;  %v7546_v37 = vld [vmem:[#allocation2 + $0x268] sm:$0xff] }
 0x346   :  { %2076 = vst.msk [vmem:[#allocation2 + $0x288] sm:$0xff] %vm414_vm3, %v1971_v62 }
 0x347   :  { %2277 = vrot.lane.b32.xlu1 %v7546_v37, %s5162_s21  ;;  %v1924_v8 = vpop.permute.xlu0 %1923  ;;  %v7551_v41 = vld [vmem:[#allocation2 + $0x270] sm:$0xff] }
 0x348   :  { %2077 = vst.msk [vmem:[#allocation2 + $0x290] sm:$0xff] %vm412_vm2, %v1924_v8  ;;  %v1926_v61 = vpop.permute.xlu1 %1925  ;;  %2279 = vrot.lane.b32.xlu0 %v7551_v41, %s5162_s21 }
 0x349   :  { %v1972_v17 = vsel %vm17_vm0, %v1924_v8, %v1926_v61  ;;  %v7557_v56 = vld [vmem:[#allocation2 + $0x278] sm:$0xff] }
 0x34a   :  { %2078 = vst.msk [vmem:[#allocation2 + $0x298] sm:$0xff] %vm414_vm3, %v1972_v17 }
 0x34b   :  { %2281 = vrot.lane.b32.xlu1 %v7557_v56, %s5162_s21  ;;  %v1928_v20 = vpop.permute.xlu0 %1927  ;;  %v7562_v57 = vld [vmem:[#allocation2 + $0x280] sm:$0xff] }
 0x34c   :  { %2079 = vst.msk [vmem:[#allocation2 + $0x2a0] sm:$0xff] %vm412_vm2, %v1928_v20  ;;  %v1930_v4 = vpop.permute.xlu1 %1929  ;;  %2283 = vrot.lane.b32.xlu0 %v7562_v57, %s5162_s21 }
 0x34d   :  { %v1973_v24 = vsel %vm17_vm0, %v1928_v20, %v1930_v4  ;;  %v7568_v1 = vld [vmem:[#allocation2 + $0x288] sm:$0xff] }
 0x34e   :  { %2080 = vst.msk [vmem:[#allocation2 + $0x2a8] sm:$0xff] %vm414_vm3, %v1973_v24 }
 0x34f   :  { %2285 = vrot.lane.b32.xlu1 %v7568_v1, %s5162_s21  ;;  %v1932_v16 = vpop.permute.xlu0 %1931  ;;  %v7573_v9 = vld [vmem:[#allocation2 + $0x290] sm:$0xff] }
 0x350   :  { %2081 = vst.msk [vmem:[#allocation2 + $0x2b0] sm:$0xff] %vm412_vm2, %v1932_v16  ;;  %v1934_v48 = vpop.permute.xlu1 %1933  ;;  %2287 = vrot.lane.b32.xlu0 %v7573_v9, %s5162_s21 }
 0x351   :  { %v1974_v26 = vsel %vm17_vm0, %v1932_v16, %v1934_v48  ;;  %v7579_v42 = vld [vmem:[#allocation2 + $0x298] sm:$0xff] }
 0x352   :  { %2082 = vst.msk [vmem:[#allocation2 + $0x2b8] sm:$0xff] %vm414_vm3, %v1974_v26 }
 0x353   :  { %2289 = vrot.lane.b32.xlu1 %v7579_v42, %s5162_s21  ;;  %v1936_v27 = vpop.permute.xlu0 %1935  ;;  %v7584_v22 = vld [vmem:[#allocation2 + $0x2a0] sm:$0xff] }
 0x354   :  { %2083 = vst.msk [vmem:[#allocation2 + $0x2c0] sm:$0xff] %vm412_vm2, %v1936_v27  ;;  %v1938_v15 = vpop.permute.xlu1 %1937  ;;  %2291 = vrot.lane.b32.xlu0 %v7584_v22, %s5162_s21 }
 0x355   :  { %v1975_v25 = vsel %vm17_vm0, %v1936_v27, %v1938_v15  ;;  %v7590_v12 = vld [vmem:[#allocation2 + $0x2a8] sm:$0xff] }
 0x356   :  { %2084 = vst.msk [vmem:[#allocation2 + $0x2c8] sm:$0xff] %vm414_vm3, %v1975_v25 }
 0x357   :  { %2293 = vrot.lane.b32.xlu1 %v7590_v12, %s5162_s21  ;;  %v1940_v59 = vpop.permute.xlu0 %1939  ;;  %v7595_v18 = vld [vmem:[#allocation2 + $0x2b0] sm:$0xff] }
 0x358   :  { %2085 = vst.msk [vmem:[#allocation2 + $0x2d0] sm:$0xff] %vm412_vm2, %v1940_v59  ;;  %v1942_v63 = vpop.permute.xlu1 %1941  ;;  %2295 = vrot.lane.b32.xlu0 %v7595_v18, %s5162_s21 }
 0x359   :  { %v1976_v62 = vsel %vm17_vm0, %v1940_v59, %v1942_v63  ;;  %v7601_v8 = vld [vmem:[#allocation2 + $0x2b8] sm:$0xff] }
 0x35a   :  { %2086 = vst.msk [vmem:[#allocation2 + $0x2d8] sm:$0xff] %vm414_vm3, %v1976_v62 }
 0x35b   :  { %2297 = vrot.lane.b32.xlu1 %v7601_v8, %s5162_s21  ;;  %v1944_v61 = vpop.permute.xlu0 %1943  ;;  %v7606_v17 = vld [vmem:[#allocation2 + $0x2c0] sm:$0xff] }
 0x35c   :  { %2087 = vst.msk [vmem:[#allocation2 + $0x2e0] sm:$0xff] %vm412_vm2, %v1944_v61  ;;  %v1946_v20 = vpop.permute.xlu1 %1945  ;;  %2299 = vrot.lane.b32.xlu0 %v7606_v17, %s5162_s21 }
 0x35d   :  { %v1977_v4 = vsel %vm17_vm0, %v1944_v61, %v1946_v20  ;;  %v7612_v24 = vld [vmem:[#allocation2 + $0x2c8] sm:$0xff] }
 0x35e   :  { %2088 = vst.msk [vmem:[#allocation2 + $0x2e8] sm:$0xff] %vm414_vm3, %v1977_v4 }
 0x35f   :  { %2301 = vrot.lane.b32.xlu1 %v7612_v24, %s5162_s21  ;;  %v1948_v16 = vpop.permute.xlu0 %1947  ;;  %v7617_v48 = vld [vmem:[#allocation2 + $0x2d0] sm:$0xff] }
 0x360   :  { %2089 = vst.msk [vmem:[#allocation2 + $0x2f0] sm:$0xff] %vm412_vm2, %v1948_v16  ;;  %v1950_v26 = vpop.permute.xlu1 %1949  ;;  %2303 = vrot.lane.b32.xlu0 %v7617_v48, %s5162_s21 }
 0x361   :  { %v1978_v27 = vsel %vm17_vm0, %v1948_v16, %v1950_v26  ;;  %v7623_v15 = vld [vmem:[#allocation2 + $0x2d8] sm:$0xff] }
 0x362   :  { %2090 = vst.msk [vmem:[#allocation2 + $0x2f8] sm:$0xff] %vm414_vm3, %v1978_v27 }
 0x363   :  { %2305 = vrot.lane.b32.xlu1 %v7623_v15, %s5162_s21  ;;  %v2204_v25 = vpop.permute.xlu0 %2203  ;;  %v7628_v59 = vld [vmem:[#allocation2 + $0x2e0] sm:$0xff] }
 0x364   :  { %10856 = vst [vmem:[#allocation3_spill] sm:$0xff] %v7628_v59  ;;  %v2206_v63 = vpop.permute.xlu1 %2205  ;;  %2307 = vrot.lane.b32.xlu0 %v7628_v59, %s5162_s21 }
 0x365   :  { %v7632_v62 = vld [vmem:[#allocation2 + $0x2e8] sm:$0xff]  ;;  %v2315_v61 = vsel %vm614_vm4, %v2204_v25, %v2206_v63  ;;  %v2400_v40 = vmax.f32 %v7282_v47, %v2206_v63 }
 0x366   :  { %v2399_v27 = vmax.f32 %v7271_v46, %v2315_v61 }
 0x367   :  { %2309 = vrot.lane.b32.xlu1 %v7632_v62, %s5162_s21  ;;  %v7637_v20 = vld [vmem:[#allocation2 + $0x2f0] sm:$0xff]  ;;  %v2208_v4 = vpop.permute.xlu0 %2207 }
 0x368   :  { %10857 = vst [vmem:[#allocation21_spill] sm:$0xff] %v7637_v20  ;;  %v2210_v16 = vpop.permute.xlu1 %2209  ;;  %2311 = vrot.lane.b32.xlu0 %v7637_v20, %s5162_s21 }
 0x369   :  { %v7641_v26 = vld [vmem:[#allocation2 + $0x2f8] sm:$0xff]  ;;  %v2316_v36 = vsel %vm614_vm4, %v2208_v4, %v2210_v16  ;;  %v2402_v59 = vmax.f32 %v7312_v50, %v2210_v16 }
 0x36a   :  { %v2401_v25 = vmax.f32 %v7301_v0, %v2316_v36 }
 0x36b   :  { %2313 = vrot.lane.b32.xlu1 %v7641_v26, %s5162_s21 }
 0x36c   :  { %2511 = vrot.lane.b32.xlu0 %v2399_v27, %s5163_s28 }
 0x36f   :  { %2513 = vrot.lane.b32.xlu1 %v2400_v40, %s5163_s28 }
 0x370   :  { %2515 = vrot.lane.b32.xlu0 %v2401_v25, %s5163_s28 }
 0x373   :  { %2517 = vrot.lane.b32.xlu1 %v2402_v59, %s5163_s28 }
 0x376   :  { %v2212_v46 = vpop.permute.xlu0 %2211 }
 0x379   :  { %v2214_v61 = vpop.permute.xlu1 %2213 }
 0x37a   :  { %v2317_v20 = vsel %vm614_vm4, %v2212_v46, %v2214_v61  ;;  %v2404_v4 = vmax.f32 %v7370_v60, %v2214_v61  ;;  %v2216_v63 = vpop.permute.xlu0 %2215 }
 0x37b   :  { %v2403_v47 = vmax.f32 %v7364_v29, %v2317_v20 }
 0x37c   :  { %2521 = vrot.lane.b32.xlu1 %v2404_v4, %s5163_s28 }
 0x37d   :  { %v2218_v36 = vpop.permute.xlu1 %2217  ;;  %2519 = vrot.lane.b32.xlu0 %v2403_v47, %s5163_s28 }
 0x37e   :  { %v2318_v40 = vsel %vm614_vm4, %v2216_v63, %v2218_v36  ;;  %v2406_v0 = vmax.f32 %v7381_v2, %v2218_v36  ;;  %v2220_v59 = vpop.permute.xlu0 %2219 }
 0x37f   :  { %v2405_v50 = vmax.f32 %v7375_v51, %v2318_v40 }
 0x380   :  { %2525 = vrot.lane.b32.xlu1 %v2406_v0, %s5163_s28 }
 0x381   :  { %v2222_v16 = vpop.permute.xlu1 %2221  ;;  %2523 = vrot.lane.b32.xlu0 %v2405_v50, %s5163_s28 }
 0x382   :  { %v2319_v29 = vsel %vm614_vm4, %v2220_v59, %v2222_v16  ;;  %v2408_v60 = vmax.f32 %v7392_v49, %v2222_v16  ;;  %v2224_v27 = vpop.permute.xlu0 %2223 }
 0x383   :  { %v2407_v20 = vmax.f32 %v7386_v31, %v2319_v29 }
 0x384   :  { %2529 = vrot.lane.b32.xlu1 %v2408_v60, %s5163_s28 }
 0x385   :  { %v2226_v25 = vpop.permute.xlu1 %2225  ;;  %2527 = vrot.lane.b32.xlu0 %v2407_v20, %s5163_s28 }
 0x386   :  { %v2320_v51 = vsel %vm614_vm4, %v2224_v27, %v2226_v25  ;;  %v2410_v2 = vmax.f32 %v7403_v10, %v2226_v25  ;;  %v2228_v61 = vpop.permute.xlu0 %2227 }
 0x387   :  { %v2409_v46 = vmax.f32 %v7397_v45, %v2320_v51 }
 0x388   :  { %2533 = vrot.lane.b32.xlu1 %v2410_v2, %s5163_s28 }
 0x389   :  { %v2230_v4 = vpop.permute.xlu1 %2229  ;;  %2531 = vrot.lane.b32.xlu0 %v2409_v46, %s5163_s28 }
 0x38a   :  { %v2321_v31 = vsel %vm614_vm4, %v2228_v61, %v2230_v4  ;;  %v2412_v49 = vmax.f32 %v7414_v44, %v2230_v4  ;;  %v2232_v63 = vpop.permute.xlu0 %2231 }
 0x38b   :  { %v2411_v47 = vmax.f32 %v7408_v33, %v2321_v31 }
 0x38c   :  { %2537 = vrot.lane.b32.xlu1 %v2412_v49, %s5163_s28 }
 0x38d   :  { %v2234_v36 = vpop.permute.xlu1 %2233  ;;  %2535 = vrot.lane.b32.xlu0 %v2411_v47, %s5163_s28 }
 0x38e   :  { %v2322_v45 = vsel %vm614_vm4, %v2232_v63, %v2234_v36  ;;  %v2414_v10 = vmax.f32 %v7425_v35, %v2234_v36  ;;  %v2236_v0 = vpop.permute.xlu0 %2235 }
 0x38f   :  { %v2413_v40 = vmax.f32 %v7419_v58, %v2322_v45 }
 0x390   :  { %2541 = vrot.lane.b32.xlu1 %v2414_v10, %s5163_s28 }
 0x391   :  { %v2238_v50 = vpop.permute.xlu1 %2237  ;;  %2539 = vrot.lane.b32.xlu0 %v2413_v40, %s5163_s28 }
 0x392   :  { %v2323_v33 = vsel %vm614_vm4, %v2236_v0, %v2238_v50  ;;  %v2416_v44 = vmax.f32 %v7436_v19, %v2238_v50  ;;  %v2240_v16 = vpop.permute.xlu0 %2239 }
 0x393   :  { %v2415_v59 = vmax.f32 %v7430_v28, %v2323_v33 }
 0x394   :  { %2545 = vrot.lane.b32.xlu1 %v2416_v44, %s5163_s28 }
 0x395   :  { %v2242_v29 = vpop.permute.xlu1 %2241  ;;  %2543 = vrot.lane.b32.xlu0 %v2415_v59, %s5163_s28 }
 0x396   :  { %v2324_v58 = vsel %vm614_vm4, %v2240_v16, %v2242_v29  ;;  %v2418_v35 = vmax.f32 %v7447_v39, %v2242_v29  ;;  %v2244_v20 = vpop.permute.xlu0 %2243 }
 0x397   :  { %v2417_v60 = vmax.f32 %v7441_v30, %v2324_v58 }
 0x398   :  { %2549 = vrot.lane.b32.xlu1 %v2418_v35, %s5163_s28 }
 0x399   :  { %v2246_v27 = vpop.permute.xlu1 %2245  ;;  %2547 = vrot.lane.b32.xlu0 %v2417_v60, %s5163_s28 }
 0x39a   :  { %v2325_v28 = vsel %vm614_vm4, %v2244_v20, %v2246_v27  ;;  %v2420_v19 = vmax.f32 %v7458_v11, %v2246_v27  ;;  %v2248_v51 = vpop.permute.xlu0 %2247 }
 0x39b   :  { %v2419_v25 = vmax.f32 %v7452_v6, %v2325_v28 }
 0x39c   :  { %2553 = vrot.lane.b32.xlu1 %v2420_v19, %s5163_s28 }
 0x39d   :  { %v2250_v2 = vpop.permute.xlu1 %2249  ;;  %2551 = vrot.lane.b32.xlu0 %v2419_v25, %s5163_s28 }
 0x39e   :  { %v2326_v30 = vsel %vm614_vm4, %v2248_v51, %v2250_v2  ;;  %v2422_v39 = vmax.f32 %v7469_v14, %v2250_v2  ;;  %v2252_v61 = vpop.permute.xlu0 %2251 }
 0x39f   :  { %v2421_v46 = vmax.f32 %v7463_v7, %v2326_v30 }
 0x3a0   :  { %2557 = vrot.lane.b32.xlu1 %v2422_v39, %s5163_s28 }
 0x3a1   :  { %v2254_v4 = vpop.permute.xlu1 %2253  ;;  %2555 = vrot.lane.b32.xlu0 %v2421_v46, %s5163_s28 }
 0x3a2   :  { %v2327_v6 = vsel %vm614_vm4, %v2252_v61, %v2254_v4  ;;  %v2424_v11 = vmax.f32 %v7480_v53, %v2254_v4  ;;  %v2256_v49 = vpop.permute.xlu0 %2255 }
 0x3a3   :  { %v2423_v31 = vmax.f32 %v7474_v38, %v2327_v6 }
 0x3a4   :  { %2561 = vrot.lane.b32.xlu1 %v2424_v11, %s5163_s28 }
 0x3a5   :  { %v2258_v47 = vpop.permute.xlu1 %2257  ;;  %2559 = vrot.lane.b32.xlu0 %v2423_v31, %s5163_s28 }
 0x3a6   :  { %v2328_v7 = vsel %vm614_vm4, %v2256_v49, %v2258_v47  ;;  %v2426_v14 = vmax.f32 %v7491_v43, %v2258_v47  ;;  %v2260_v36 = vpop.permute.xlu0 %2259 }
 0x3a7   :  { %v2425_v63 = vmax.f32 %v7485_v55, %v2328_v7 }
 0x3a8   :  { %2565 = vrot.lane.b32.xlu1 %v2426_v14, %s5163_s28 }
 0x3a9   :  { %v2262_v45 = vpop.permute.xlu1 %2261  ;;  %2563 = vrot.lane.b32.xlu0 %v2425_v63, %s5163_s28 }
 0x3aa   :  { %v2329_v38 = vsel %vm614_vm4, %v2260_v36, %v2262_v45  ;;  %v2428_v53 = vmax.f32 %v7502_v5, %v2262_v45  ;;  %v2264_v40 = vpop.permute.xlu0 %2263 }
 0x3ab   :  { %v2427_v10 = vmax.f32 %v7496_v13, %v2329_v38 }
 0x3ac   :  { %2569 = vrot.lane.b32.xlu1 %v2428_v53, %s5163_s28 }
 0x3ad   :  { %v2266_v0 = vpop.permute.xlu1 %2265  ;;  %2567 = vrot.lane.b32.xlu0 %v2427_v10, %s5163_s28  ;;  %v10858_v10 = vld [vmem:[#allocation3_spill] sm:$0xff] }
 0x3ae   :  { %v2330_v55 = vsel %vm614_vm4, %v2264_v40, %v2266_v0  ;;  %v2430_v43 = vmax.f32 %v7513_v34, %v2266_v0  ;;  %v2268_v33 = vpop.permute.xlu0 %2267 }
 0x3af   :  { %v2429_v50 = vmax.f32 %v7507_v52, %v2330_v55 }
 0x3b0   :  { %2573 = vrot.lane.b32.xlu1 %v2430_v43, %s5163_s28  ;;  %v10859_v43 = vld [vmem:[#allocation21_spill] sm:$0xff] }
 0x3b1   :  { %v2270_v44 = vpop.permute.xlu1 %2269  ;;  %2571 = vrot.lane.b32.xlu0 %v2429_v50, %s5163_s28 }
 0x3b2   :  { %v2331_v13 = vsel %vm614_vm4, %v2268_v33, %v2270_v44  ;;  %v2432_v5 = vmax.f32 %v7524_v21, %v2270_v44  ;;  %v2272_v16 = vpop.permute.xlu0 %2271 }
 0x3b3   :  { %v2431_v59 = vmax.f32 %v7518_v54, %v2331_v13  ;;  %v5088_v13 = vld [vmem:[%s10614_s1 + $0x8] sm:$0xff] }
 0x3b4   :  { %2577 = vrot.lane.b32.xlu1 %v2432_v5, %s5163_s28 }
 0x3b5   :  { %v2274_v29 = vpop.permute.xlu1 %2273  ;;  %2575 = vrot.lane.b32.xlu0 %v2431_v59, %s5163_s28 }
 0x3b6   :  { %v2332_v52 = vsel %vm614_vm4, %v2272_v16, %v2274_v29  ;;  %v2434_v34 = vmax.f32 %v7535_v32, %v2274_v29  ;;  %v2276_v35 = vpop.permute.xlu0 %2275 }
 0x3b7   :  { %v2433_v58 = vmax.f32 %v7529_v23, %v2332_v52 }
 0x3b8   :  { %2581 = vrot.lane.b32.xlu1 %v2434_v34, %s5163_s28  ;;  %v5090_v34 = vld [vmem:[%s10614_s1 + $0x18] sm:$0xff] }
 0x3b9   :  { %v2278_v60 = vpop.permute.xlu1 %2277  ;;  %2579 = vrot.lane.b32.xlu0 %v2433_v58, %s5163_s28 }
 0x3ba   :  { %v2333_v54 = vsel %vm614_vm4, %v2276_v35, %v2278_v60  ;;  %v2436_v21 = vmax.f32 %v7546_v37, %v2278_v60  ;;  %v2280_v27 = vpop.permute.xlu0 %2279  ;;  %v5091_v35 = vld [vmem:[%s10614_s1 + $0x10] sm:$0xff] }
 0x3bb   :  { %v2435_v20 = vmax.f32 %v7540_v3, %v2333_v54 }
 0x3bc   :  { %2585 = vrot.lane.b32.xlu1 %v2436_v21, %s5163_s28  ;;  %v5092_v21 = vld [vmem:[%s10614_s1 + $0x28] sm:$0xff] }
 0x3bd   :  { %v2282_v28 = vpop.permute.xlu1 %2281  ;;  %2583 = vrot.lane.b32.xlu0 %v2435_v20, %s5163_s28 }
 0x3be   :  { %v2334_v23 = vsel %vm614_vm4, %v2280_v27, %v2282_v28  ;;  %v2438_v32 = vmax.f32 %v7557_v56, %v2282_v28  ;;  %v2284_v25 = vpop.permute.xlu0 %2283 }
 0x3bf   :  { %v2437_v19 = vmax.f32 %v7551_v41, %v2334_v23  ;;  %v5093_v23 = vld [vmem:[%s10614_s1 + $0x20] sm:$0xff] }
 0x3c0   :  { %2589 = vrot.lane.b32.xlu1 %v2438_v32, %s5163_s28 }
 0x3c1   :  { %v2286_v51 = vpop.permute.xlu1 %2285  ;;  %2587 = vrot.lane.b32.xlu0 %v2437_v19, %s5163_s28 }
 0x3c2   :  { %v2335_v3 = vsel %vm614_vm4, %v2284_v25, %v2286_v51  ;;  %v2440_v37 = vmax.f32 %v7568_v1, %v2286_v51  ;;  %v2288_v30 = vpop.permute.xlu0 %2287  ;;  %v5094_v25 = vld [vmem:[%s10614_s1 + $0x38] sm:$0xff] }
 0x3c3   :  { %v2439_v2 = vmax.f32 %v7562_v57, %v2335_v3 }
 0x3c4   :  { %2593 = vrot.lane.b32.xlu1 %v2440_v37, %s5163_s28 }
 0x3c5   :  { %v2290_v39 = vpop.permute.xlu1 %2289  ;;  %2591 = vrot.lane.b32.xlu0 %v2439_v2, %s5163_s28  ;;  %v5095_v2 = vld [vmem:[%s10614_s1 + $0x30] sm:$0xff] }
 0x3c6   :  { %v2336_v41 = vsel %vm614_vm4, %v2288_v30, %v2290_v39  ;;  %v2442_v56 = vmax.f32 %v7579_v42, %v2290_v39  ;;  %v2292_v61 = vpop.permute.xlu0 %2291 }
 0x3c7   :  { %v2441_v46 = vmax.f32 %v7573_v9, %v2336_v41  ;;  %v5096_v41 = vld [vmem:[%s10614_s1 + $0x48] sm:$0xff] }
 0x3c8   :  { %2597 = vrot.lane.b32.xlu1 %v2442_v56, %s5163_s28 }
 0x3c9   :  { %v2294_v4 = vpop.permute.xlu1 %2293  ;;  %2595 = vrot.lane.b32.xlu0 %v2441_v46, %s5163_s28 }
 0x3ca   :  { %v2337_v57 = vsel %vm614_vm4, %v2292_v61, %v2294_v4  ;;  %v2444_v1 = vmax.f32 %v7590_v12, %v2294_v4  ;;  %v2296_v11 = vpop.permute.xlu0 %2295  ;;  %v5097_v4 = vld [vmem:[%s10614_s1 + $0x40] sm:$0xff] }
 0x3cb   :  { %v2443_v6 = vmax.f32 %v7584_v22, %v2337_v57 }
 0x3cc   :  { %2601 = vrot.lane.b32.xlu1 %v2444_v1, %s5163_s28 }
 0x3cd   :  { %v2298_v31 = vpop.permute.xlu1 %2297  ;;  %2599 = vrot.lane.b32.xlu0 %v2443_v6, %s5163_s28  ;;  %v5098_v6 = vld [vmem:[%s10614_s1 + $0x58] sm:$0xff] }
 0x3ce   :  { %v2338_v9 = vsel %vm614_vm4, %v2296_v11, %v2298_v31  ;;  %v2446_v42 = vmax.f32 %v7601_v8, %v2298_v31  ;;  %v2300_v47 = vpop.permute.xlu0 %2299 }
 0x3cf   :  { %v2445_v49 = vmax.f32 %v7595_v18, %v2338_v9 }
 0x3d0   :  { %2605 = vrot.lane.b32.xlu1 %v2446_v42, %s5163_s28  ;;  %v5099_v42 = vld [vmem:[%s10614_s1 + $0x50] sm:$0xff] }
 0x3d1   :  { %v2302_v7 = vpop.permute.xlu1 %2301  ;;  %2603 = vrot.lane.b32.xlu0 %v2445_v49, %s5163_s28 }
 0x3d2   :  { %v2339_v22 = vsel %vm614_vm4, %v2300_v47, %v2302_v7  ;;  %v2448_v12 = vmax.f32 %v7612_v24, %v2302_v7  ;;  %v2304_v63 = vpop.permute.xlu0 %2303  ;;  %v5100_v7 = vld [vmem:[%s10614_s1 + $0x68] sm:$0xff] }
 0x3d3   :  { %v2447_v14 = vmax.f32 %v7606_v17, %v2339_v22 }
 0x3d4   :  { %2609 = vrot.lane.b32.xlu1 %v2448_v12, %s5163_s28 }
 0x3d5   :  { %v2306_v36 = vpop.permute.xlu1 %2305  ;;  %2607 = vrot.lane.b32.xlu0 %v2447_v14, %s5163_s28 }
 0x3d6   :  { %v2340_v18 = vsel %vm614_vm4, %v2304_v63, %v2306_v36  ;;  %v2450_v8 = vmax.f32 %v7623_v15, %v2306_v36  ;;  %v2308_v38 = vpop.permute.xlu0 %2307  ;;  %v5101_v63 = vld [vmem:[%s10614_s1 + $0x60] sm:$0xff] }
 0x3d7   :  { %v2449_v45 = vmax.f32 %v7617_v48, %v2340_v18 }
 0x3d8   :  { %2613 = vrot.lane.b32.xlu1 %v2450_v8, %s5163_s28  ;;  %v5102_v8 = vld [vmem:[%s10614_s1 + $0x78] sm:$0xff] }
 0x3d9   :  { %v2310_v53 = vpop.permute.xlu1 %2309  ;;  %2611 = vrot.lane.b32.xlu0 %v2449_v45, %s5163_s28 }
 0x3da   :  { %v2341_v17 = vsel %vm614_vm4, %v2308_v38, %v2310_v53  ;;  %v2452_v24 = vmax.f32 %v7632_v62, %v2310_v53  ;;  %v2312_v0 = vpop.permute.xlu0 %2311 }
 0x3db   :  { %v2451_v40 = vmax.f32 %v10858_v10, %v2341_v17  ;;  %v5103_v17 = vld [vmem:[%s10614_s1 + $0x70] sm:$0xff] }
 0x3dc   :  { %2617 = vrot.lane.b32.xlu1 %v2452_v24, %s5163_s28 }
 0x3dd   :  { %v2314_v55 = vpop.permute.xlu1 %2313  ;;  %2615 = vrot.lane.b32.xlu0 %v2451_v40, %s5163_s28  ;;  %v5104_v40 = vld [vmem:[%s10614_s1 + $0x88] sm:$0xff] }
 0x3de   :  { %v2342_v48 = vsel %vm614_vm4, %v2312_v0, %v2314_v55  ;;  %v2454_v15 = vmax.f32 %v7641_v26, %v2314_v55  ;;  %v2512_v33 = vpop.permute.xlu0 %2511  ;;  %v5089_v26 = vld [vmem:[%s10614_s1] sm:$0xff] }
 0x3df   :  { %v2453_v50 = vmax.f32 %v10859_v43, %v2342_v48 }
 0x3e0   :  { %2621 = vrot.lane.b32.xlu1 %v2454_v15, %s5163_s28  ;;  %v5105_v15 = vld [vmem:[%s10614_s1 + $0x80] sm:$0xff] }
 0x3e1   :  { %v2514_v44 = vpop.permute.xlu1 %2513  ;;  %2619 = vrot.lane.b32.xlu0 %v2453_v50, %s5163_s28 }
 0x3e2   :  { %v2623_v62 = vsel %vm835_vm5, %v2512_v33, %v2514_v44  ;;  %v7788_v5 = vmax.f32 %v5088_v13, %v2514_v44  ;;  %v2516_v16 = vpop.permute.xlu0 %2515  ;;  %v5106_v33 = vld [vmem:[%s10614_s1 + $0x98] sm:$0xff] }
 0x3e3   :  { %v7793_v59 = vmax.f32 %v5089_v26, %v2623_v62  ;;  %v5107_v26 = vld [vmem:[%s10614_s1 + $0x90] sm:$0xff] }
 0x3e4   :  { %2821 = vrot.lane.b32.xlu1 %v7788_v5, %s5161_s19 }
 0x3e5   :  { %v2518_v29 = vpop.permute.xlu1 %2517  ;;  %2819 = vrot.lane.b32.xlu0 %v7793_v59, %s5161_s19 }
 0x3e6   :  { %v2624_v52 = vsel %vm835_vm5, %v2516_v16, %v2518_v29  ;;  %v7803_v58 = vmax.f32 %v5090_v34, %v2518_v29 }
 0x3e7   :  { %v7808_v60 = vmax.f32 %v5091_v35, %v2624_v52  ;;  %v5108_v52 = vld [vmem:[%s10614_s1 + $0xa8] sm:$0xff] }
 0x3e8   :  { %2825 = vrot.lane.b32.xlu1 %v7803_v58, %s5161_s19 }
 0x3e9   :  { %10860 = vst [vmem:[#allocation20_spill] sm:$0xff] %v7808_v60  ;;  %2823 = vrot.lane.b32.xlu0 %v7808_v60, %s5161_s19 }
 0x3ee   :  { %v2522_v54 = vpop.permute.xlu1 %2521 }
 0x3ef   :  { %v7817_v20 = vmax.f32 %v5092_v21, %v2522_v54  ;;  %v2520_v27 = vpop.permute.xlu0 %2519  ;;  %v5109_v21 = vld [vmem:[%s10614_s1 + $0xa0] sm:$0xff] }
 0x3f0   :  { %v2625_v28 = vsel %vm835_vm5, %v2520_v27, %v2522_v54 }
 0x3f1   :  { %10861 = vst [vmem:[#allocation4_spill] sm:$0xff] %v7817_v20  ;;  %v7823_v32 = vmax.f32 %v5093_v23, %v2625_v28  ;;  %2829 = vrot.lane.b32.xlu1 %v7817_v20, %s5161_s19  ;;  %v5110_v23 = vld [vmem:[%s10614_s1 + $0xb8] sm:$0xff] }
 0x3f2   :  { %v2526_v19 = vpop.permute.xlu1 %2525 }
 0x3f3   :  { %10862 = vst [vmem:[#allocation5_spill] sm:$0xff] %v7823_v32  ;;  %v7830_v51 = vmax.f32 %v5094_v25, %v2526_v19  ;;  %2827 = vrot.lane.b32.xlu0 %v7823_v32, %s5161_s19  ;;  %v2524_v3 = vpop.permute.xlu0 %2523 }
 0x3f4   :  { %v2626_v37 = vsel %vm835_vm5, %v2524_v3, %v2526_v19 }
 0x3f5   :  { %10863 = vst [vmem:[#allocation22_spill] sm:$0xff] %v7830_v51  ;;  %v7838_v30 = vmax.f32 %v5095_v2, %v2626_v37  ;;  %2833 = vrot.lane.b32.xlu1 %v7830_v51, %s5161_s19  ;;  %v5111_v37 = vld [vmem:[%s10614_s1 + $0xb0] sm:$0xff] }
 0x3f6   :  { %v2530_v39 = vpop.permute.xlu1 %2529 }
 0x3f7   :  { %10864 = vst [vmem:[#allocation6_spill] sm:$0xff] %v7838_v30  ;;  %v7845_v56 = vmax.f32 %v5096_v41, %v2530_v39  ;;  %2831 = vrot.lane.b32.xlu0 %v7838_v30, %s5161_s19  ;;  %v2528_v46 = vpop.permute.xlu0 %2527  ;;  %v5112_v41 = vld [vmem:[%s10614_s1 + $0xc8] sm:$0xff] }
 0x3f8   :  { %v2627_v61 = vsel %vm835_vm5, %v2528_v46, %v2530_v39 }
 0x3f9   :  { %10865 = vst [vmem:[#allocation7_spill] sm:$0xff] %v7845_v56  ;;  %v7853_v57 = vmax.f32 %v5097_v4, %v2627_v61  ;;  %2837 = vrot.lane.b32.xlu1 %v7845_v56, %s5161_s19 }
 0x3fa   :  { %v2534_v1 = vpop.permute.xlu1 %2533 }
 0x3fb   :  { %10866 = vst [vmem:[#allocation23_spill] sm:$0xff] %v7853_v57  ;;  %v7860_v11 = vmax.f32 %v5098_v6, %v2534_v1  ;;  %2835 = vrot.lane.b32.xlu0 %v7853_v57, %s5161_s19  ;;  %v2532_v31 = vpop.permute.xlu0 %2531 }
 0x3fc   :  { %v2628_v9 = vsel %vm835_vm5, %v2532_v31, %v2534_v1  ;;  %v5113_v1 = vld [vmem:[%s10614_s1 + $0xc0] sm:$0xff] }
 0x3fd   :  { %10867 = vst [vmem:[#allocation8_spill] sm:$0xff] %v7860_v11  ;;  %v7868_v49 = vmax.f32 %v5099_v42, %v2628_v9  ;;  %2841 = vrot.lane.b32.xlu1 %v7860_v11, %s5161_s19  ;;  %v5114_v9 = vld [vmem:[%s10614_s1 + $0xd8] sm:$0xff] }
 0x3fe   :  { %v2538_v47 = vpop.permute.xlu1 %2537 }
 0x3ff   :  { %10868 = vst [vmem:[#allocation9_spill] sm:$0xff] %v7868_v49  ;;  %v7875_v22 = vmax.f32 %v5100_v7, %v2538_v47  ;;  %2839 = vrot.lane.b32.xlu0 %v7868_v49, %s5161_s19  ;;  %v2536_v12 = vpop.permute.xlu0 %2535 }
 0x400   :  { %v2629_v14 = vsel %vm835_vm5, %v2536_v12, %v2538_v47  ;;  %v5115_v12 = vld [vmem:[%s10614_s1 + $0xd0] sm:$0xff] }
 0x401   :  { %10869 = vst [vmem:[#allocation25_spill] sm:$0xff] %v7875_v22  ;;  %v7883_v36 = vmax.f32 %v5101_v63, %v2629_v14  ;;  %2845 = vrot.lane.b32.xlu1 %v7875_v22, %s5161_s19 }
 0x402   :  { %v2542_v18 = vpop.permute.xlu1 %2541 }
 0x403   :  { %10870 = vst [vmem:[#allocation24_spill] sm:$0xff] %v7883_v36  ;;  %v7890_v45 = vmax.f32 %v5102_v8, %v2542_v18  ;;  %2843 = vrot.lane.b32.xlu0 %v7883_v36, %s5161_s19  ;;  %v2540_v38 = vpop.permute.xlu0 %2539 }
 0x404   :  { %v2630_v53 = vsel %vm835_vm5, %v2540_v38, %v2542_v18  ;;  %v5116_v18 = vld [vmem:[%s10614_s1 + $0xe8] sm:$0xff] }
 0x405   :  { %10871 = vst [vmem:[#allocation10_spill] sm:$0xff] %v7890_v45  ;;  %v7898_v24 = vmax.f32 %v5103_v17, %v2630_v53  ;;  %2849 = vrot.lane.b32.xlu1 %v7890_v45, %s5161_s19  ;;  %v5117_v17 = vld [vmem:[%s10614_s1 + $0xe0] sm:$0xff] }
 0x406   :  { %v2546_v10 = vpop.permute.xlu1 %2545 }
 0x407   :  { %10872 = vst [vmem:[#allocation11_spill] sm:$0xff] %v7898_v24  ;;  %v7905_v0 = vmax.f32 %v5104_v40, %v2546_v10  ;;  %2847 = vrot.lane.b32.xlu0 %v7898_v24, %s5161_s19  ;;  %v2544_v55 = vpop.permute.xlu0 %2543 }
 0x408   :  { %v2631_v48 = vsel %vm835_vm5, %v2544_v55, %v2546_v10  ;;  %v5118_v55 = vld [vmem:[%s10614_s1 + $0xf8] sm:$0xff] }
 0x409   :  { %10873 = vst [vmem:[#allocation27_spill] sm:$0xff] %v7905_v0  ;;  %v7913_v43 = vmax.f32 %v5105_v15, %v2631_v48  ;;  %2853 = vrot.lane.b32.xlu1 %v7905_v0, %s5161_s19 }
 0x40a   :  { %v2550_v50 = vpop.permute.xlu1 %2549 }
 0x40b   :  { %10874 = vst [vmem:[#allocation26_spill] sm:$0xff] %v7913_v43  ;;  %v7920_v44 = vmax.f32 %v5106_v33, %v2550_v50  ;;  %2851 = vrot.lane.b32.xlu0 %v7913_v43, %s5161_s19  ;;  %v2548_v62 = vpop.permute.xlu0 %2547  ;;  %v5119_v33 = vld [vmem:[%s10614_s1 + $0xf0] sm:$0xff] }
 0x40c   :  { %v2632_v13 = vsel %vm835_vm5, %v2548_v62, %v2550_v50 }
 0x40d   :  { %10875 = vst [vmem:[#allocation12_spill] sm:$0xff] %v7920_v44  ;;  %v7928_v16 = vmax.f32 %v5107_v26, %v2632_v13  ;;  %2857 = vrot.lane.b32.xlu1 %v7920_v44, %s5161_s19  ;;  %v5120_v26 = vld [vmem:[%s10614_s1 + $0x108] sm:$0xff] }
 0x40e   :  { %v2554_v29 = vpop.permute.xlu1 %2553 }
 0x40f   :  { %10876 = vst [vmem:[#allocation13_spill] sm:$0xff] %v7928_v16  ;;  %v7935_v34 = vmax.f32 %v5108_v52, %v2554_v29  ;;  %2855 = vrot.lane.b32.xlu0 %v7928_v16, %s5161_s19  ;;  %v2552_v35 = vpop.permute.xlu0 %2551 }
 0x410   :  { %v2633_v54 = vsel %vm835_vm5, %v2552_v35, %v2554_v29 }
 0x411   :  { %10877 = vst [vmem:[#allocation29_spill] sm:$0xff] %v7935_v34  ;;  %v7943_v27 = vmax.f32 %v5109_v21, %v2633_v54  ;;  %2861 = vrot.lane.b32.xlu1 %v7935_v34, %s5161_s19  ;;  %v5121_v54 = vld [vmem:[%s10614_s1 + $0x100] sm:$0xff] }
 0x412   :  { %v2558_v28 = vpop.permute.xlu1 %2557 }
 0x413   :  { %10878 = vst [vmem:[#allocation28_spill] sm:$0xff] %v7943_v27  ;;  %v7950_v19 = vmax.f32 %v5110_v23, %v2558_v28  ;;  %2859 = vrot.lane.b32.xlu0 %v7943_v27, %s5161_s19  ;;  %v2556_v25 = vpop.permute.xlu0 %2555  ;;  %v5122_v23 = vld [vmem:[%s10614_s1 + $0x118] sm:$0xff] }
 0x414   :  { %v2634_v3 = vsel %vm835_vm5, %v2556_v25, %v2558_v28 }
 0x415   :  { %10879 = vst [vmem:[#allocation14_spill] sm:$0xff] %v7950_v19  ;;  %v7958_v2 = vmax.f32 %v5111_v37, %v2634_v3  ;;  %2865 = vrot.lane.b32.xlu1 %v7950_v19, %s5161_s19 }
 0x416   :  { %v2562_v39 = vpop.permute.xlu1 %2561 }
 0x417   :  { %10880 = vst [vmem:[#allocation15_spill] sm:$0xff] %v7958_v2  ;;  %v7965_v46 = vmax.f32 %v5112_v41, %v2562_v39  ;;  %2863 = vrot.lane.b32.xlu0 %v7958_v2, %s5161_s19  ;;  %v2560_v61 = vpop.permute.xlu0 %2559 }
 0x418   :  { %v2635_v4 = vsel %vm835_vm5, %v2560_v61, %v2562_v39  ;;  %v5123_v39 = vld [vmem:[%s10614_s1 + $0x110] sm:$0xff] }
 0x419   :  { %10881 = vst [vmem:[#allocation33_spill] sm:$0xff] %v7965_v46  ;;  %v7973_v6 = vmax.f32 %v5113_v1, %v2635_v4  ;;  %2869 = vrot.lane.b32.xlu1 %v7965_v46, %s5161_s19  ;;  %v5124_v4 = vld [vmem:[%s10614_s1 + $0x128] sm:$0xff] }
 0x41a   :  { %v2566_v31 = vpop.permute.xlu1 %2565 }
 0x41b   :  { %10882 = vst [vmem:[#allocation31_spill] sm:$0xff] %v7973_v6  ;;  %v7980_v42 = vmax.f32 %v5114_v9, %v2566_v31  ;;  %2867 = vrot.lane.b32.xlu0 %v7973_v6, %s5161_s19  ;;  %v2564_v47 = vpop.permute.xlu0 %2563 }
 0x41c   :  { %v2636_v7 = vsel %vm835_vm5, %v2564_v47, %v2566_v31  ;;  %v5125_v47 = vld [vmem:[%s10614_s1 + $0x120] sm:$0xff] }
 0x41d   :  { %10883 = vst [vmem:[#allocation16_spill] sm:$0xff] %v7980_v42  ;;  %v7988_v14 = vmax.f32 %v5115_v12, %v2636_v7  ;;  %2873 = vrot.lane.b32.xlu1 %v7980_v42, %s5161_s19 }
 0x41e   :  { %v2570_v63 = vpop.permute.xlu1 %2569 }
 0x41f   :  { %10884 = vst [vmem:[#allocation17_spill] sm:$0xff] %v7988_v14  ;;  %v7995_v8 = vmax.f32 %v5116_v18, %v2570_v63  ;;  %2871 = vrot.lane.b32.xlu0 %v7988_v14, %s5161_s19  ;;  %v2568_v38 = vpop.permute.xlu0 %2567 }
 0x420   :  { %v2637_v53 = vsel %vm835_vm5, %v2568_v38, %v2570_v63  ;;  %v5126_v63 = vld [vmem:[%s10614_s1 + $0x138] sm:$0xff] }
 0x421   :  { %10885 = vst [vmem:[#allocation18_spill] sm:$0xff] %v7995_v8  ;;  %v8003_v10 = vmax.f32 %v5117_v17, %v2637_v53  ;;  %2877 = vrot.lane.b32.xlu1 %v7995_v8, %s5161_s19  ;;  %v5127_v17 = vld [vmem:[%s10614_s1 + $0x130] sm:$0xff] }
 0x422   :  { %v2574_v40 = vpop.permute.xlu1 %2573 }
 0x423   :  { %10886 = vst [vmem:[#allocation19_spill] sm:$0xff] %v8003_v10  ;;  %v8010_v48 = vmax.f32 %v5118_v55, %v2574_v40  ;;  %2875 = vrot.lane.b32.xlu0 %v8003_v10, %s5161_s19  ;;  %v2572_v15 = vpop.permute.xlu0 %2571 }
 0x424   :  { %v2638_v50 = vsel %vm835_vm5, %v2572_v15, %v2574_v40  ;;  %v5128_v15 = vld [vmem:[%s10614_s1 + $0x148] sm:$0xff] }
 0x425   :  { %10887 = vst [vmem:[#allocation3_spill] sm:$0xff] %v8010_v48  ;;  %v8018_v62 = vmax.f32 %v5119_v33, %v2638_v50  ;;  %2881 = vrot.lane.b32.xlu1 %v8010_v48, %s5161_s19 }
 0x426   :  { %v2578_v13 = vpop.permute.xlu1 %2577 }
 0x427   :  { %10888 = vst [vmem:[#allocation21_spill] sm:$0xff] %v8018_v62  ;;  %v8025_v29 = vmax.f32 %v5120_v26, %v2578_v13  ;;  %2879 = vrot.lane.b32.xlu0 %v8018_v62, %s5161_s19  ;;  %v2576_v52 = vpop.permute.xlu0 %2575  ;;  %v5129_v26 = vld [vmem:[%s10614_s1 + $0x140] sm:$0xff] }
 0x428   :  { %v2639_v35 = vsel %vm835_vm5, %v2576_v52, %v2578_v13 }
 0x429   :  { %10889 = vst [vmem:[#allocation34_spill] sm:$0xff] %v8025_v29  ;;  %v8033_v21 = vmax.f32 %v5121_v54, %v2639_v35  ;;  %2885 = vrot.lane.b32.xlu1 %v8025_v29, %s5161_s19  ;;  %v5130_v54 = vld [vmem:[%s10614_s1 + $0x158] sm:$0xff] }
 0x42a   :  { %v2582_v28 = vpop.permute.xlu1 %2581 }
 0x42b   :  { %10890 = vst [vmem:[#allocation35_spill] sm:$0xff] %v8033_v21  ;;  %v8040_v25 = vmax.f32 %v5122_v23, %v2582_v28  ;;  %2883 = vrot.lane.b32.xlu0 %v8033_v21, %s5161_s19  ;;  %v2580_v3 = vpop.permute.xlu0 %2579 }
 0x42c   :  { %v2640_v37 = vsel %vm835_vm5, %v2580_v3, %v2582_v28 }
 0x42d   :  { %10891 = vst [vmem:[#allocation36_spill] sm:$0xff] %v8040_v25  ;;  %v8048_v41 = vmax.f32 %v5123_v39, %v2640_v37  ;;  %2889 = vrot.lane.b32.xlu1 %v8040_v25, %s5161_s19  ;;  %v5131_v37 = vld [vmem:[%s10614_s1 + $0x150] sm:$0xff] }
 0x42e   :  { %v2586_v61 = vpop.permute.xlu1 %2585 }
 0x42f   :  { %10892 = vst [vmem:[#allocation37_spill] sm:$0xff] %v8048_v41  ;;  %v8055_v1 = vmax.f32 %v5124_v4, %v2586_v61  ;;  %2887 = vrot.lane.b32.xlu0 %v8048_v41, %s5161_s19  ;;  %v2584_v31 = vpop.permute.xlu0 %2583  ;;  %v5132_v4 = vld [vmem:[%s10614_s1 + $0x168] sm:$0xff] }
 0x430   :  { %v2641_v9 = vsel %vm835_vm5, %v2584_v31, %v2586_v61 }
 0x431   :  { %10893 = vst [vmem:[#allocation38_spill] sm:$0xff] %v8055_v1  ;;  %v8063_v7 = vmax.f32 %v5125_v47, %v2641_v9  ;;  %2893 = vrot.lane.b32.xlu1 %v8055_v1, %s5161_s19 }
 0x432   :  { %v2590_v12 = vpop.permute.xlu1 %2589 }
 0x433   :  { %10894 = vst [vmem:[#allocation39_spill] sm:$0xff] %v8063_v7  ;;  %v8070_v18 = vmax.f32 %v5126_v63, %v2590_v12  ;;  %2891 = vrot.lane.b32.xlu0 %v8063_v7, %s5161_s19  ;;  %v2588_v38 = vpop.permute.xlu0 %2587 }
 0x434   :  { %v2642_v53 = vsel %vm835_vm5, %v2588_v38, %v2590_v12  ;;  %v5133_v12 = vld [vmem:[%s10614_s1 + $0x160] sm:$0xff] }
 0x435   :  { %10895 = vst [vmem:[#allocation40_spill] sm:$0xff] %v8070_v18  ;;  %v8078_v40 = vmax.f32 %v5127_v17, %v2642_v53  ;;  %2897 = vrot.lane.b32.xlu1 %v8070_v18, %s5161_s19  ;;  %v5134_v53 = vld [vmem:[%s10614_s1 + $0x178] sm:$0xff] }
 0x436   :  { %v2594_v55 = vpop.permute.xlu1 %2593 }
 0x437   :  { %10896 = vst [vmem:[#allocation41_spill] sm:$0xff] %v8078_v40  ;;  %v8085_v50 = vmax.f32 %v5128_v15, %v2594_v55  ;;  %2895 = vrot.lane.b32.xlu0 %v8078_v40, %s5161_s19  ;;  %v2592_v33 = vpop.permute.xlu0 %2591 }
 0x438   :  { %v2643_v13 = vsel %vm835_vm5, %v2592_v33, %v2594_v55  ;;  %v5135_v33 = vld [vmem:[%s10614_s1 + $0x170] sm:$0xff] }
 0x439   :  { %10897 = vst [vmem:[#allocation42_spill] sm:$0xff] %v8085_v50  ;;  %v8093_v52 = vmax.f32 %v5129_v26, %v2643_v13  ;;  %2901 = vrot.lane.b32.xlu1 %v8085_v50, %s5161_s19 }
 0x43a   :  { %v2598_v35 = vpop.permute.xlu1 %2597 }
 0x43b   :  { %10898 = vst [vmem:[#allocation43_spill] sm:$0xff] %v8093_v52  ;;  %v8100_v28 = vmax.f32 %v5130_v54, %v2598_v35  ;;  %2899 = vrot.lane.b32.xlu0 %v8093_v52, %s5161_s19  ;;  %v2596_v23 = vpop.permute.xlu0 %2595 }
 0x43c   :  { %v2644_v3 = vsel %vm835_vm5, %v2596_v23, %v2598_v35  ;;  %v5136_v35 = vld [vmem:[%s10614_s1 + $0x188] sm:$0xff] }
 0x43d   :  { %10899 = vst [vmem:[#allocation44_spill] sm:$0xff] %v8100_v28  ;;  %v8108_v39 = vmax.f32 %v5131_v37, %v2644_v3  ;;  %2905 = vrot.lane.b32.xlu1 %v8100_v28, %s5161_s19  ;;  %v5137_v37 = vld [vmem:[%s10614_s1 + $0x180] sm:$0xff] }
 0x43e   :  { %v2602_v61 = vpop.permute.xlu1 %2601 }
 0x43f   :  { %10900 = vst [vmem:[#allocation45_spill] sm:$0xff] %v8108_v39  ;;  %v8115_v31 = vmax.f32 %v5132_v4, %v2602_v61  ;;  %2903 = vrot.lane.b32.xlu0 %v8108_v39, %s5161_s19  ;;  %v2600_v9 = vpop.permute.xlu0 %2599 }
 0x440   :  { %v2645_v47 = vsel %vm835_vm5, %v2600_v9, %v2602_v61  ;;  %v5138_v9 = vld [vmem:[%s10614_s1 + $0x198] sm:$0xff] }
 0x441   :  { %10901 = vst [vmem:[#allocation46_spill] sm:$0xff] %v8115_v31  ;;  %v8123_v63 = vmax.f32 %v5133_v12, %v2645_v47  ;;  %2909 = vrot.lane.b32.xlu1 %v8115_v31, %s5161_s19 }
 0x442   :  { %v2606_v38 = vpop.permute.xlu1 %2605 }
 0x443   :  { %10902 = vst [vmem:[#allocation47_spill] sm:$0xff] %v8123_v63  ;;  %v8130_v17 = vmax.f32 %v5134_v53, %v2606_v38  ;;  %2907 = vrot.lane.b32.xlu0 %v8123_v63, %s5161_s19  ;;  %v2604_v55 = vpop.permute.xlu0 %2603  ;;  %v5139_v53 = vld [vmem:[%s10614_s1 + $0x190] sm:$0xff] }
 0x444   :  { %v2646_v15 = vsel %vm835_vm5, %v2604_v55, %v2606_v38 }
 0x445   :  { %10903 = vst [vmem:[#allocation48_spill] sm:$0xff] %v8130_v17  ;;  %v8138_v13 = vmax.f32 %v5135_v33, %v2646_v15  ;;  %2913 = vrot.lane.b32.xlu1 %v8130_v17, %s5161_s19  ;;  %v5140_v33 = vld [vmem:[%s10614_s1 + $0x1a8] sm:$0xff] }
 0x446   :  { %v2610_v26 = vpop.permute.xlu1 %2609 }
 0x447   :  { %10904 = vst [vmem:[#allocation49_spill] sm:$0xff] %v8138_v13  ;;  %v8145_v54 = vmax.f32 %v5136_v35, %v2610_v26  ;;  %2911 = vrot.lane.b32.xlu0 %v8138_v13, %s5161_s19  ;;  %v2608_v23 = vpop.permute.xlu0 %2607 }
 0x448   :  { %v2647_v3 = vsel %vm835_vm5, %v2608_v23, %v2610_v26 }
 0x449   :  { %10905 = vst [vmem:[#allocation50_spill] sm:$0xff] %v8145_v54  ;;  %v8153_v61 = vmax.f32 %v5137_v37, %v2647_v3  ;;  %2917 = vrot.lane.b32.xlu1 %v8145_v54, %s5161_s19  ;;  %v5141_v3 = vld [vmem:[%s10614_s1 + $0x1a0] sm:$0xff] }
 0x44a   :  { %v2614_v4 = vpop.permute.xlu1 %2613 }
 0x44b   :  { %10906 = vst [vmem:[#allocation51_spill] sm:$0xff] %v8153_v61  ;;  %v8160_v47 = vmax.f32 %v5138_v9, %v2614_v4  ;;  %2915 = vrot.lane.b32.xlu0 %v8153_v61, %s5161_s19  ;;  %v2612_v12 = vpop.permute.xlu0 %2611  ;;  %v5142_v9 = vld [vmem:[%s10614_s1 + $0x1b8] sm:$0xff] }
 0x44c   :  { %v2648_v38 = vsel %vm835_vm5, %v2612_v12, %v2614_v4 }
 0x44d   :  { %10907 = vst [vmem:[#allocation52_spill] sm:$0xff] %v8160_v47  ;;  %v8168_v55 = vmax.f32 %v5139_v53, %v2648_v38  ;;  %2921 = vrot.lane.b32.xlu1 %v8160_v47, %s5161_s19 }
 0x44e   :  { %v2618_v15 = vpop.permute.xlu1 %2617 }
 0x44f   :  { %10908 = vst [vmem:[#allocation53_spill] sm:$0xff] %v8168_v55  ;;  %v8175_v26 = vmax.f32 %v5140_v33, %v2618_v15  ;;  %2919 = vrot.lane.b32.xlu0 %v8168_v55, %s5161_s19  ;;  %v2616_v35 = vpop.permute.xlu0 %2615 }
 0x450   :  { %v2649_v23 = vsel %vm835_vm5, %v2616_v35, %v2618_v15  ;;  %v5143_v15 = vld [vmem:[%s10614_s1 + $0x1b0] sm:$0xff] }
 0x451   :  { %10909 = vst [vmem:[#allocation54_spill] sm:$0xff] %v8175_v26  ;;  %v8183_v37 = vmax.f32 %v5141_v3, %v2649_v23  ;;  %2925 = vrot.lane.b32.xlu1 %v8175_v26, %s5161_s19 }
 0x452   :  { %v2622_v4 = vpop.permute.xlu1 %2621 }
 0x453   :  { %10910 = vst [vmem:[#allocation55_spill] sm:$0xff] %v8183_v37  ;;  %v8190_v12 = vmax.f32 %v5142_v9, %v2622_v4  ;;  %2923 = vrot.lane.b32.xlu0 %v8183_v37, %s5161_s19  ;;  %v2620_v38 = vpop.permute.xlu0 %2619 }
 0x454   :  { %v2650_v53 = vsel %vm835_vm5, %v2620_v38, %v2622_v4 }
 0x455   :  { %10911 = vst [vmem:[#allocation56_spill] sm:$0xff] %v8190_v12  ;;  %v8198_v33 = vmax.f32 %v5143_v15, %v2650_v53  ;;  %2929 = vrot.lane.b32.xlu1 %v8190_v12, %s5161_s19 }
 0x456   :  { %v2822_v35 = vpop.permute.xlu1 %2821 }
 0x457   :  { %10912 = vst [vmem:[#allocation57_spill] sm:$0xff] %v8198_v33  ;;  %2927 = vrot.lane.b32.xlu0 %v8198_v33, %s5161_s19  ;;  %v2820_v23 = vpop.permute.xlu0 %2819 }
 0x458   :  { %v2931_v3 = vsel %vm17_vm0, %v2820_v23, %v2822_v35  ;;  %3015 = vst.msk [vmem:[#allocation2 + $0x140] sm:$0xff] %vm412_vm2, %v2820_v23 }
 0x459   :  { %3016 = vst.msk [vmem:[#allocation2 + $0x148] sm:$0xff] %vm414_vm3, %v2931_v3 }
 0x45a   :  { %v2826_v4 = vpop.permute.xlu1 %2825 }
 0x45b   :  { %v2824_v9 = vpop.permute.xlu0 %2823 }
 0x45c   :  { %v2932_v38 = vsel %vm17_vm0, %v2824_v9, %v2826_v4  ;;  %3017 = vst.msk [vmem:[#allocation2 + $0x150] sm:$0xff] %vm412_vm2, %v2824_v9 }
 0x45d   :  { %3018 = vst.msk [vmem:[#allocation2 + $0x158] sm:$0xff] %vm414_vm3, %v2932_v38 }
 0x45f   :  { %v8210_v53 = vld [vmem:[#allocation2 + $0x140] sm:$0xff] }
 0x460   :  { %3183 = vrot.lane.b32.xlu0 %v8210_v53, %s5164_s0  ;;  %v8214_v15 = vld [vmem:[#allocation2 + $0x148] sm:$0xff] }
 0x461   :  { %3185 = vrot.lane.b32.xlu1 %v8214_v15, %s5164_s0 }
 0x463   :  { %v2830_v35 = vpop.permute.xlu1 %2829  ;;  %v8218_v23 = vld [vmem:[#allocation2 + $0x150] sm:$0xff] }
 0x464   :  { %3187 = vrot.lane.b32.xlu0 %v8218_v23, %s5164_s0  ;;  %v8222_v3 = vld [vmem:[#allocation2 + $0x158] sm:$0xff] }
 0x465   :  { %3189 = vrot.lane.b32.xlu1 %v8222_v3, %s5164_s0  ;;  %v2828_v4 = vpop.permute.xlu0 %2827 }
 0x466   :  { %v2933_v9 = vsel %vm17_vm0, %v2828_v4, %v2830_v35  ;;  %3019 = vst.msk [vmem:[#allocation2 + $0x160] sm:$0xff] %vm412_vm2, %v2828_v4 }
 0x467   :  { %3020 = vst.msk [vmem:[#allocation2 + $0x168] sm:$0xff] %vm414_vm3, %v2933_v9  ;;  %v2834_v38 = vpop.permute.xlu1 %2833 }
 0x469   :  { %v2832_v33 = vpop.permute.xlu0 %2831 }
 0x46a   :  { %v2934_v12 = vsel %vm17_vm0, %v2832_v33, %v2834_v38  ;;  %3021 = vst.msk [vmem:[#allocation2 + $0x170] sm:$0xff] %vm412_vm2, %v2832_v33 }
 0x46b   :  { %3022 = vst.msk [vmem:[#allocation2 + $0x178] sm:$0xff] %vm414_vm3, %v2934_v12  ;;  %v2838_v37 = vpop.permute.xlu1 %2837 }
 0x46d   :  { %v2836_v26 = vpop.permute.xlu0 %2835  ;;  %v8232_v55 = vld [vmem:[#allocation2 + $0x160] sm:$0xff] }
 0x46e   :  { %v2935_v47 = vsel %vm17_vm0, %v2836_v26, %v2838_v37  ;;  %3023 = vst.msk [vmem:[#allocation2 + $0x180] sm:$0xff] %vm412_vm2, %v2836_v26  ;;  %3191 = vrot.lane.b32.xlu0 %v8232_v55, %s5164_s0  ;;  %v8238_v35 = vld [vmem:[#allocation2 + $0x168] sm:$0xff] }
 0x46f   :  { %3024 = vst.msk [vmem:[#allocation2 + $0x188] sm:$0xff] %vm414_vm3, %v2935_v47  ;;  %v2842_v4 = vpop.permute.xlu1 %2841  ;;  %3193 = vrot.lane.b32.xlu1 %v8238_v35, %s5164_s0 }
 0x471   :  { %v2840_v12 = vpop.permute.xlu0 %2839  ;;  %v8243_v33 = vld [vmem:[#allocation2 + $0x170] sm:$0xff] }
 0x472   :  { %v2936_v9 = vsel %vm17_vm0, %v2840_v12, %v2842_v4  ;;  %3025 = vst.msk [vmem:[#allocation2 + $0x190] sm:$0xff] %vm412_vm2, %v2840_v12  ;;  %3195 = vrot.lane.b32.xlu0 %v8243_v33, %s5164_s0  ;;  %v8249_v26 = vld [vmem:[#allocation2 + $0x178] sm:$0xff] }
 0x473   :  { %3026 = vst.msk [vmem:[#allocation2 + $0x198] sm:$0xff] %vm414_vm3, %v2936_v9  ;;  %v2846_v37 = vpop.permute.xlu1 %2845  ;;  %3197 = vrot.lane.b32.xlu1 %v8249_v26, %s5164_s0 }
 0x475   :  { %v2844_v47 = vpop.permute.xlu0 %2843  ;;  %v8254_v38 = vld [vmem:[#allocation2 + $0x180] sm:$0xff] }
 0x476   :  { %v2937_v61 = vsel %vm17_vm0, %v2844_v47, %v2846_v37  ;;  %3027 = vst.msk [vmem:[#allocation2 + $0x1a0] sm:$0xff] %vm412_vm2, %v2844_v47  ;;  %3199 = vrot.lane.b32.xlu0 %v8254_v38, %s5164_s0  ;;  %v8260_v4 = vld [vmem:[#allocation2 + $0x188] sm:$0xff] }
 0x477   :  { %3028 = vst.msk [vmem:[#allocation2 + $0x1a8] sm:$0xff] %vm414_vm3, %v2937_v61  ;;  %v2850_v12 = vpop.permute.xlu1 %2849  ;;  %3201 = vrot.lane.b32.xlu1 %v8260_v4, %s5164_s0 }
 0x479   :  { %v2848_v9 = vpop.permute.xlu0 %2847  ;;  %v8265_v54 = vld [vmem:[#allocation2 + $0x190] sm:$0xff] }
 0x47a   :  { %v2938_v13 = vsel %vm17_vm0, %v2848_v9, %v2850_v12  ;;  %3029 = vst.msk [vmem:[#allocation2 + $0x1b0] sm:$0xff] %vm412_vm2, %v2848_v9  ;;  %3203 = vrot.lane.b32.xlu0 %v8265_v54, %s5164_s0  ;;  %v8271_v37 = vld [vmem:[#allocation2 + $0x198] sm:$0xff] }
 0x47b   :  { %3030 = vst.msk [vmem:[#allocation2 + $0x1b8] sm:$0xff] %vm414_vm3, %v2938_v13  ;;  %v2854_v47 = vpop.permute.xlu1 %2853  ;;  %3205 = vrot.lane.b32.xlu1 %v8271_v37, %s5164_s0 }
 0x47d   :  { %v2852_v61 = vpop.permute.xlu0 %2851  ;;  %v8276_v17 = vld [vmem:[#allocation2 + $0x1a0] sm:$0xff] }
 0x47e   :  { %v2939_v63 = vsel %vm17_vm0, %v2852_v61, %v2854_v47  ;;  %3031 = vst.msk [vmem:[#allocation2 + $0x1c0] sm:$0xff] %vm412_vm2, %v2852_v61  ;;  %3207 = vrot.lane.b32.xlu0 %v8276_v17, %s5164_s0  ;;  %v8282_v12 = vld [vmem:[#allocation2 + $0x1a8] sm:$0xff] }
 0x47f   :  { %3032 = vst.msk [vmem:[#allocation2 + $0x1c8] sm:$0xff] %vm414_vm3, %v2939_v63  ;;  %v2858_v9 = vpop.permute.xlu1 %2857  ;;  %3209 = vrot.lane.b32.xlu1 %v8282_v12, %s5164_s0 }
 0x481   :  { %v2856_v13 = vpop.permute.xlu0 %2855  ;;  %v8287_v31 = vld [vmem:[#allocation2 + $0x1b0] sm:$0xff] }
 0x482   :  { %v2940_v39 = vsel %vm17_vm0, %v2856_v13, %v2858_v9  ;;  %3033 = vst.msk [vmem:[#allocation2 + $0x1d0] sm:$0xff] %vm412_vm2, %v2856_v13  ;;  %3211 = vrot.lane.b32.xlu0 %v8287_v31, %s5164_s0  ;;  %v8293_v47 = vld [vmem:[#allocation2 + $0x1b8] sm:$0xff] }
 0x483   :  { %3034 = vst.msk [vmem:[#allocation2 + $0x1d8] sm:$0xff] %vm414_vm3, %v2940_v39  ;;  %v2862_v61 = vpop.permute.xlu1 %2861  ;;  %3213 = vrot.lane.b32.xlu1 %v8293_v47, %s5164_s0 }
 0x485   :  { %v2860_v63 = vpop.permute.xlu0 %2859  ;;  %v8298_v28 = vld [vmem:[#allocation2 + $0x1c0] sm:$0xff] }
 0x486   :  { %v2941_v52 = vsel %vm17_vm0, %v2860_v63, %v2862_v61  ;;  %3035 = vst.msk [vmem:[#allocation2 + $0x1e0] sm:$0xff] %vm412_vm2, %v2860_v63  ;;  %3215 = vrot.lane.b32.xlu0 %v8298_v28, %s5164_s0  ;;  %v8304_v9 = vld [vmem:[#allocation2 + $0x1c8] sm:$0xff] }
 0x487   :  { %3036 = vst.msk [vmem:[#allocation2 + $0x1e8] sm:$0xff] %vm414_vm3, %v2941_v52  ;;  %v2866_v13 = vpop.permute.xlu1 %2865  ;;  %3217 = vrot.lane.b32.xlu1 %v8304_v9, %s5164_s0 }
 0x489   :  { %v2864_v39 = vpop.permute.xlu0 %2863  ;;  %v8309_v50 = vld [vmem:[#allocation2 + $0x1d0] sm:$0xff] }
 0x48a   :  { %v2942_v40 = vsel %vm17_vm0, %v2864_v39, %v2866_v13  ;;  %3037 = vst.msk [vmem:[#allocation2 + $0x1f0] sm:$0xff] %vm412_vm2, %v2864_v39  ;;  %3219 = vrot.lane.b32.xlu0 %v8309_v50, %s5164_s0  ;;  %v8315_v61 = vld [vmem:[#allocation2 + $0x1d8] sm:$0xff] }
 0x48b   :  { %3038 = vst.msk [vmem:[#allocation2 + $0x1f8] sm:$0xff] %vm414_vm3, %v2942_v40  ;;  %v2870_v63 = vpop.permute.xlu1 %2869  ;;  %3221 = vrot.lane.b32.xlu1 %v8315_v61, %s5164_s0 }
 0x48d   :  { %v2868_v52 = vpop.permute.xlu0 %2867  ;;  %v8320_v18 = vld [vmem:[#allocation2 + $0x1e0] sm:$0xff] }
 0x48e   :  { %v2943_v7 = vsel %vm17_vm0, %v2868_v52, %v2870_v63  ;;  %3039 = vst.msk [vmem:[#allocation2 + $0x200] sm:$0xff] %vm412_vm2, %v2868_v52  ;;  %3223 = vrot.lane.b32.xlu0 %v8320_v18, %s5164_s0  ;;  %v8326_v13 = vld [vmem:[#allocation2 + $0x1e8] sm:$0xff] }
 0x48f   :  { %3040 = vst.msk [vmem:[#allocation2 + $0x208] sm:$0xff] %vm414_vm3, %v2943_v7  ;;  %v2874_v39 = vpop.permute.xlu1 %2873  ;;  %3225 = vrot.lane.b32.xlu1 %v8326_v13, %s5164_s0 }
 0x491   :  { %v2872_v40 = vpop.permute.xlu0 %2871  ;;  %v8331_v1 = vld [vmem:[#allocation2 + $0x1f0] sm:$0xff] }
 0x492   :  { %v2944_v41 = vsel %vm17_vm0, %v2872_v40, %v2874_v39  ;;  %3041 = vst.msk [vmem:[#allocation2 + $0x210] sm:$0xff] %vm412_vm2, %v2872_v40  ;;  %3227 = vrot.lane.b32.xlu0 %v8331_v1, %s5164_s0  ;;  %v8337_v63 = vld [vmem:[#allocation2 + $0x1f8] sm:$0xff] }
 0x493   :  { %3042 = vst.msk [vmem:[#allocation2 + $0x218] sm:$0xff] %vm414_vm3, %v2944_v41  ;;  %v2878_v52 = vpop.permute.xlu1 %2877  ;;  %3229 = vrot.lane.b32.xlu1 %v8337_v63, %s5164_s0 }
 0x495   :  { %v2876_v7 = vpop.permute.xlu0 %2875  ;;  %v8342_v25 = vld [vmem:[#allocation2 + $0x200] sm:$0xff] }
 0x496   :  { %v2945_v21 = vsel %vm17_vm0, %v2876_v7, %v2878_v52  ;;  %3043 = vst.msk [vmem:[#allocation2 + $0x220] sm:$0xff] %vm412_vm2, %v2876_v7  ;;  %3231 = vrot.lane.b32.xlu0 %v8342_v25, %s5164_s0  ;;  %v8348_v39 = vld [vmem:[#allocation2 + $0x208] sm:$0xff] }
 0x497   :  { %3044 = vst.msk [vmem:[#allocation2 + $0x228] sm:$0xff] %vm414_vm3, %v2945_v21  ;;  %v2882_v40 = vpop.permute.xlu1 %2881  ;;  %3233 = vrot.lane.b32.xlu1 %v8348_v39, %s5164_s0 }
 0x499   :  { %v2880_v41 = vpop.permute.xlu0 %2879  ;;  %v8353_v29 = vld [vmem:[#allocation2 + $0x210] sm:$0xff] }
 0x49a   :  { %v2946_v62 = vsel %vm17_vm0, %v2880_v41, %v2882_v40  ;;  %3045 = vst.msk [vmem:[#allocation2 + $0x230] sm:$0xff] %vm412_vm2, %v2880_v41  ;;  %3235 = vrot.lane.b32.xlu0 %v8353_v29, %s5164_s0  ;;  %v8359_v52 = vld [vmem:[#allocation2 + $0x218] sm:$0xff] }
 0x49b   :  { %3046 = vst.msk [vmem:[#allocation2 + $0x238] sm:$0xff] %vm414_vm3, %v2946_v62  ;;  %v2886_v7 = vpop.permute.xlu1 %2885  ;;  %3237 = vrot.lane.b32.xlu1 %v8359_v52, %s5164_s0 }
 0x49d   :  { %v2884_v21 = vpop.permute.xlu0 %2883  ;;  %v8364_v48 = vld [vmem:[#allocation2 + $0x220] sm:$0xff] }
 0x49e   :  { %v2947_v10 = vsel %vm17_vm0, %v2884_v21, %v2886_v7  ;;  %3047 = vst.msk [vmem:[#allocation2 + $0x240] sm:$0xff] %vm412_vm2, %v2884_v21  ;;  %3239 = vrot.lane.b32.xlu0 %v8364_v48, %s5164_s0  ;;  %v8370_v40 = vld [vmem:[#allocation2 + $0x228] sm:$0xff] }
 0x49f   :  { %3048 = vst.msk [vmem:[#allocation2 + $0x248] sm:$0xff] %vm414_vm3, %v2947_v10  ;;  %v2890_v41 = vpop.permute.xlu1 %2889  ;;  %3241 = vrot.lane.b32.xlu1 %v8370_v40, %s5164_s0 }
 0x4a1   :  { %v2888_v62 = vpop.permute.xlu0 %2887  ;;  %v8375_v8 = vld [vmem:[#allocation2 + $0x230] sm:$0xff] }
 0x4a2   :  { %v2948_v14 = vsel %vm17_vm0, %v2888_v62, %v2890_v41  ;;  %3049 = vst.msk [vmem:[#allocation2 + $0x250] sm:$0xff] %vm412_vm2, %v2888_v62  ;;  %3243 = vrot.lane.b32.xlu0 %v8375_v8, %s5164_s0  ;;  %v8381_v7 = vld [vmem:[#allocation2 + $0x238] sm:$0xff] }
 0x4a3   :  { %3050 = vst.msk [vmem:[#allocation2 + $0x258] sm:$0xff] %vm414_vm3, %v2948_v14  ;;  %v2894_v21 = vpop.permute.xlu1 %2893  ;;  %3245 = vrot.lane.b32.xlu1 %v8381_v7, %s5164_s0 }
 0x4a5   :  { %v2892_v10 = vpop.permute.xlu0 %2891  ;;  %v8386_v42 = vld [vmem:[#allocation2 + $0x240] sm:$0xff] }
 0x4a6   :  { %v2949_v6 = vsel %vm17_vm0, %v2892_v10, %v2894_v21  ;;  %3051 = vst.msk [vmem:[#allocation2 + $0x260] sm:$0xff] %vm412_vm2, %v2892_v10  ;;  %3247 = vrot.lane.b32.xlu0 %v8386_v42, %s5164_s0  ;;  %v8392_v41 = vld [vmem:[#allocation2 + $0x248] sm:$0xff] }
 0x4a7   :  { %3052 = vst.msk [vmem:[#allocation2 + $0x268] sm:$0xff] %vm414_vm3, %v2949_v6  ;;  %v2898_v62 = vpop.permute.xlu1 %2897  ;;  %3249 = vrot.lane.b32.xlu1 %v8392_v41, %s5164_s0 }
 0x4a9   :  { %v2896_v14 = vpop.permute.xlu0 %2895  ;;  %v8397_v46 = vld [vmem:[#allocation2 + $0x250] sm:$0xff] }
 0x4aa   :  { %v2950_v2 = vsel %vm17_vm0, %v2896_v14, %v2898_v62  ;;  %3053 = vst.msk [vmem:[#allocation2 + $0x270] sm:$0xff] %vm412_vm2, %v2896_v14  ;;  %3251 = vrot.lane.b32.xlu0 %v8397_v46, %s5164_s0  ;;  %v8403_v21 = vld [vmem:[#allocation2 + $0x258] sm:$0xff] }
 0x4ab   :  { %3054 = vst.msk [vmem:[#allocation2 + $0x278] sm:$0xff] %vm414_vm3, %v2950_v2  ;;  %v2902_v10 = vpop.permute.xlu1 %2901  ;;  %3253 = vrot.lane.b32.xlu1 %v8403_v21, %s5164_s0 }
 0x4ad   :  { %v2900_v6 = vpop.permute.xlu0 %2899  ;;  %v8408_v19 = vld [vmem:[#allocation2 + $0x260] sm:$0xff] }
 0x4ae   :  { %v2951_v27 = vsel %vm17_vm0, %v2900_v6, %v2902_v10  ;;  %3055 = vst.msk [vmem:[#allocation2 + $0x280] sm:$0xff] %vm412_vm2, %v2900_v6  ;;  %3255 = vrot.lane.b32.xlu0 %v8408_v19, %s5164_s0  ;;  %v8414_v62 = vld [vmem:[#allocation2 + $0x268] sm:$0xff] }
 0x4af   :  { %3056 = vst.msk [vmem:[#allocation2 + $0x288] sm:$0xff] %vm414_vm3, %v2951_v27  ;;  %v2906_v14 = vpop.permute.xlu1 %2905  ;;  %3257 = vrot.lane.b32.xlu1 %v8414_v62, %s5164_s0 }
 0x4b1   :  { %v2904_v2 = vpop.permute.xlu0 %2903  ;;  %v8419_v34 = vld [vmem:[#allocation2 + $0x270] sm:$0xff] }
 0x4b2   :  { %v2952_v16 = vsel %vm17_vm0, %v2904_v2, %v2906_v14  ;;  %3057 = vst.msk [vmem:[#allocation2 + $0x290] sm:$0xff] %vm412_vm2, %v2904_v2  ;;  %3259 = vrot.lane.b32.xlu0 %v8419_v34, %s5164_s0  ;;  %v8425_v10 = vld [vmem:[#allocation2 + $0x278] sm:$0xff] }
 0x4b3   :  { %3058 = vst.msk [vmem:[#allocation2 + $0x298] sm:$0xff] %vm414_vm3, %v2952_v16  ;;  %v2910_v6 = vpop.permute.xlu1 %2909  ;;  %3261 = vrot.lane.b32.xlu1 %v8425_v10, %s5164_s0 }
 0x4b5   :  { %v2908_v27 = vpop.permute.xlu0 %2907  ;;  %v8430_v44 = vld [vmem:[#allocation2 + $0x280] sm:$0xff] }
 0x4b6   :  { %v2953_v43 = vsel %vm17_vm0, %v2908_v27, %v2910_v6  ;;  %3059 = vst.msk [vmem:[#allocation2 + $0x2a0] sm:$0xff] %vm412_vm2, %v2908_v27  ;;  %3263 = vrot.lane.b32.xlu0 %v8430_v44, %s5164_s0  ;;  %v8436_v14 = vld [vmem:[#allocation2 + $0x288] sm:$0xff] }
 0x4b7   :  { %3060 = vst.msk [vmem:[#allocation2 + $0x2a8] sm:$0xff] %vm414_vm3, %v2953_v43  ;;  %v2914_v2 = vpop.permute.xlu1 %2913  ;;  %3265 = vrot.lane.b32.xlu1 %v8436_v14, %s5164_s0 }
 0x4b9   :  { %v2912_v16 = vpop.permute.xlu0 %2911  ;;  %v8441_v0 = vld [vmem:[#allocation2 + $0x290] sm:$0xff] }
 0x4ba   :  { %v2954_v24 = vsel %vm17_vm0, %v2912_v16, %v2914_v2  ;;  %3061 = vst.msk [vmem:[#allocation2 + $0x2b0] sm:$0xff] %vm412_vm2, %v2912_v16  ;;  %3267 = vrot.lane.b32.xlu0 %v8441_v0, %s5164_s0  ;;  %v8447_v6 = vld [vmem:[#allocation2 + $0x298] sm:$0xff] }
 0x4bb   :  { %3062 = vst.msk [vmem:[#allocation2 + $0x2b8] sm:$0xff] %vm414_vm3, %v2954_v24  ;;  %v2918_v27 = vpop.permute.xlu1 %2917  ;;  %3269 = vrot.lane.b32.xlu1 %v8447_v6, %s5164_s0 }
 0x4bd   :  { %v2916_v43 = vpop.permute.xlu0 %2915  ;;  %v8452_v45 = vld [vmem:[#allocation2 + $0x2a0] sm:$0xff] }
 0x4be   :  { %v2955_v36 = vsel %vm17_vm0, %v2916_v43, %v2918_v27  ;;  %3063 = vst.msk [vmem:[#allocation2 + $0x2c0] sm:$0xff] %vm412_vm2, %v2916_v43  ;;  %3271 = vrot.lane.b32.xlu0 %v8452_v45, %s5164_s0  ;;  %v8458_v2 = vld [vmem:[#allocation2 + $0x2a8] sm:$0xff] }
 0x4bf   :  { %3064 = vst.msk [vmem:[#allocation2 + $0x2c8] sm:$0xff] %vm414_vm3, %v2955_v36  ;;  %v2922_v16 = vpop.permute.xlu1 %2921  ;;  %3273 = vrot.lane.b32.xlu1 %v8458_v2, %s5164_s0 }
 0x4c1   :  { %v2920_v24 = vpop.permute.xlu0 %2919  ;;  %v8463_v22 = vld [vmem:[#allocation2 + $0x2b0] sm:$0xff] }
 0x4c2   :  { %v2956_v49 = vsel %vm17_vm0, %v2920_v24, %v2922_v16  ;;  %3065 = vst.msk [vmem:[#allocation2 + $0x2d0] sm:$0xff] %vm412_vm2, %v2920_v24  ;;  %3275 = vrot.lane.b32.xlu0 %v8463_v22, %s5164_s0  ;;  %v8469_v27 = vld [vmem:[#allocation2 + $0x2b8] sm:$0xff] }
 0x4c3   :  { %3066 = vst.msk [vmem:[#allocation2 + $0x2d8] sm:$0xff] %vm414_vm3, %v2956_v49  ;;  %v2926_v43 = vpop.permute.xlu1 %2925  ;;  %3277 = vrot.lane.b32.xlu1 %v8469_v27, %s5164_s0 }
 0x4c5   :  { %v2924_v36 = vpop.permute.xlu0 %2923  ;;  %v8474_v11 = vld [vmem:[#allocation2 + $0x2c0] sm:$0xff] }
 0x4c6   :  { %v2957_v57 = vsel %vm17_vm0, %v2924_v36, %v2926_v43  ;;  %3067 = vst.msk [vmem:[#allocation2 + $0x2e0] sm:$0xff] %vm412_vm2, %v2924_v36  ;;  %3279 = vrot.lane.b32.xlu0 %v8474_v11, %s5164_s0  ;;  %v8480_v16 = vld [vmem:[#allocation2 + $0x2c8] sm:$0xff] }
 0x4c7   :  { %3068 = vst.msk [vmem:[#allocation2 + $0x2e8] sm:$0xff] %vm414_vm3, %v2957_v57  ;;  %3281 = vrot.lane.b32.xlu1 %v8480_v16, %s5164_s0  ;;  %v2930_v49 = vpop.permute.xlu1 %2929 }
 0x4c9   :  { %v2928_v24 = vpop.permute.xlu0 %2927  ;;  %v8485_v56 = vld [vmem:[#allocation2 + $0x2d0] sm:$0xff] }
 0x4ca   :  { %v2958_v30 = vsel %vm17_vm0, %v2928_v24, %v2930_v49  ;;  %3069 = vst.msk [vmem:[#allocation2 + $0x2f0] sm:$0xff] %vm412_vm2, %v2928_v24  ;;  %3283 = vrot.lane.b32.xlu0 %v8485_v56, %s5164_s0  ;;  %v8491_v43 = vld [vmem:[#allocation2 + $0x2d8] sm:$0xff] }
 0x4cb   :  { %3070 = vst.msk [vmem:[#allocation2 + $0x2f8] sm:$0xff] %vm414_vm3, %v2958_v30  ;;  %3285 = vrot.lane.b32.xlu1 %v8491_v43, %s5164_s0 }
 0x4cd   :  { %v8496_v57 = vld [vmem:[#allocation2 + $0x2e0] sm:$0xff] }
 0x4ce   :  { %3287 = vrot.lane.b32.xlu0 %v8496_v57, %s5164_s0  ;;  %v8500_v36 = vld [vmem:[#allocation2 + $0x2e8] sm:$0xff] }
 0x4cf   :  { %3289 = vrot.lane.b32.xlu1 %v8500_v36, %s5164_s0 }
 0x4d1   :  { %v8504_v49 = vld [vmem:[#allocation2 + $0x2f0] sm:$0xff] }
 0x4d2   :  { %3291 = vrot.lane.b32.xlu0 %v8504_v49, %s5164_s0  ;;  %v8508_v24 = vld [vmem:[#allocation2 + $0x2f8] sm:$0xff]  ;;  %v8512_v30 = vpop.permute.xlu0 %3183 }
 0x4d3   :  { %3293 = vrot.lane.b32.xlu1 %v8508_v24, %s5164_s0  ;;  %v8516_v51 = vpop.permute.xlu1 %3185 }
 0x4d6   :  { %3435 = vrot.lane.b32.xlu0 %v8210_v53, %s5165_s9  ;;  %v8524_v32 = vpop.permute.xlu0 %3187 }
 0x4d7   :  { %3437 = vrot.lane.b32.xlu1 %v8214_v15, %s5165_s9  ;;  %v8526_v20 = vpop.permute.xlu1 %3189 }
 0x4da   :  { %3439 = vrot.lane.b32.xlu0 %v8218_v23, %s5165_s9 }
 0x4db   :  { %3441 = vrot.lane.b32.xlu1 %v8222_v3, %s5165_s9 }
 0x4de   :  { %3443 = vrot.lane.b32.xlu0 %v8232_v55, %s5165_s9 }
 0x4df   :  { %3445 = vrot.lane.b32.xlu1 %v8238_v35, %s5165_s9 }
 0x4e0   :  { %v8532_v53 = vpop.permute.xlu0 %3191 }
 0x4e1   :  { %v8534_v60 = vpop.permute.xlu1 %3193 }
 0x4e2   :  { %3447 = vrot.lane.b32.xlu0 %v8243_v33, %s5165_s9 }
 0x4e3   :  { %3449 = vrot.lane.b32.xlu1 %v8249_v26, %s5165_s9 }
 0x4e4   :  { %v8540_v15 = vpop.permute.xlu0 %3195 }
 0x4e5   :  { %v8542_v23 = vpop.permute.xlu1 %3197 }
 0x4e6   :  { %3451 = vrot.lane.b32.xlu0 %v8254_v38, %s5165_s9 }
 0x4e7   :  { %3453 = vrot.lane.b32.xlu1 %v8260_v4, %s5165_s9 }
 0x4e8   :  { %v8548_v55 = vpop.permute.xlu0 %3199 }
 0x4e9   :  { %v8550_v3 = vpop.permute.xlu1 %3201 }
 0x4ea   :  { %3455 = vrot.lane.b32.xlu0 %v8265_v54, %s5165_s9 }
 0x4eb   :  { %3457 = vrot.lane.b32.xlu1 %v8271_v37, %s5165_s9 }
 0x4ec   :  { %v8556_v35 = vpop.permute.xlu0 %3203 }
 0x4ed   :  { %v8558_v33 = vpop.permute.xlu1 %3205 }
 0x4ee   :  { %3459 = vrot.lane.b32.xlu0 %v8276_v17, %s5165_s9 }
 0x4ef   :  { %3461 = vrot.lane.b32.xlu1 %v8282_v12, %s5165_s9 }
 0x4f0   :  { %v8564_v26 = vpop.permute.xlu0 %3207 }
 0x4f1   :  { %v8566_v38 = vpop.permute.xlu1 %3209 }
 0x4f2   :  { %3463 = vrot.lane.b32.xlu0 %v8287_v31, %s5165_s9 }
 0x4f3   :  { %3465 = vrot.lane.b32.xlu1 %v8293_v47, %s5165_s9 }
 0x4f4   :  { %v8572_v54 = vpop.permute.xlu0 %3211 }
 0x4f5   :  { %v8574_v4 = vpop.permute.xlu1 %3213 }
 0x4f6   :  { %3467 = vrot.lane.b32.xlu0 %v8298_v28, %s5165_s9 }
 0x4f7   :  { %3469 = vrot.lane.b32.xlu1 %v8304_v9, %s5165_s9 }
 0x4f8   :  { %v8580_v17 = vpop.permute.xlu0 %3215 }
 0x4f9   :  { %v8582_v37 = vpop.permute.xlu1 %3217 }
 0x4fa   :  { %3471 = vrot.lane.b32.xlu0 %v8309_v50, %s5165_s9 }
 0x4fb   :  { %3473 = vrot.lane.b32.xlu1 %v8315_v61, %s5165_s9 }
 0x4fc   :  { %v8588_v31 = vpop.permute.xlu0 %3219 }
 0x4fd   :  { %v8590_v12 = vpop.permute.xlu1 %3221 }
 0x4fe   :  { %3475 = vrot.lane.b32.xlu0 %v8320_v18, %s5165_s9 }
 0x4ff   :  { %3477 = vrot.lane.b32.xlu1 %v8326_v13, %s5165_s9 }
 0x500   :  { %v8596_v28 = vpop.permute.xlu0 %3223 }
 0x501   :  { %v8598_v47 = vpop.permute.xlu1 %3225 }
 0x502   :  { %3479 = vrot.lane.b32.xlu0 %v8331_v1, %s5165_s9 }
 0x503   :  { %3481 = vrot.lane.b32.xlu1 %v8337_v63, %s5165_s9 }
 0x504   :  { %v8604_v50 = vpop.permute.xlu0 %3227 }
 0x505   :  { %v8606_v9 = vpop.permute.xlu1 %3229 }
 0x506   :  { %3483 = vrot.lane.b32.xlu0 %v8342_v25, %s5165_s9 }
 0x507   :  { %3485 = vrot.lane.b32.xlu1 %v8348_v39, %s5165_s9 }
 0x508   :  { %v8612_v18 = vpop.permute.xlu0 %3231 }
 0x509   :  { %v8614_v61 = vpop.permute.xlu1 %3233 }
 0x50a   :  { %3487 = vrot.lane.b32.xlu0 %v8353_v29, %s5165_s9 }
 0x50b   :  { %3489 = vrot.lane.b32.xlu1 %v8359_v52, %s5165_s9 }
 0x50c   :  { %v8620_v1 = vpop.permute.xlu0 %3235 }
 0x50d   :  { %v8622_v13 = vpop.permute.xlu1 %3237 }
 0x50e   :  { %3491 = vrot.lane.b32.xlu0 %v8364_v48, %s5165_s9 }
 0x50f   :  { %3493 = vrot.lane.b32.xlu1 %v8370_v40, %s5165_s9 }
 0x510   :  { %v8628_v25 = vpop.permute.xlu0 %3239 }
 0x511   :  { %v8630_v63 = vpop.permute.xlu1 %3241 }
 0x512   :  { %3495 = vrot.lane.b32.xlu0 %v8375_v8, %s5165_s9 }
 0x513   :  { %3497 = vrot.lane.b32.xlu1 %v8381_v7, %s5165_s9 }
 0x514   :  { %v8636_v29 = vpop.permute.xlu0 %3243 }
 0x515   :  { %v8638_v39 = vpop.permute.xlu1 %3245 }
 0x516   :  { %3499 = vrot.lane.b32.xlu0 %v8386_v42, %s5165_s9 }
 0x517   :  { %3501 = vrot.lane.b32.xlu1 %v8392_v41, %s5165_s9 }
 0x518   :  { %v8644_v48 = vpop.permute.xlu0 %3247 }
 0x519   :  { %v8646_v52 = vpop.permute.xlu1 %3249 }
 0x51a   :  { %3503 = vrot.lane.b32.xlu0 %v8397_v46, %s5165_s9 }
 0x51b   :  { %3505 = vrot.lane.b32.xlu1 %v8403_v21, %s5165_s9 }
 0x51c   :  { %v8652_v8 = vpop.permute.xlu0 %3251 }
 0x51d   :  { %v8654_v40 = vpop.permute.xlu1 %3253 }
 0x51e   :  { %3507 = vrot.lane.b32.xlu0 %v8408_v19, %s5165_s9 }
 0x51f   :  { %3509 = vrot.lane.b32.xlu1 %v8414_v62, %s5165_s9 }
 0x520   :  { %v8660_v42 = vpop.permute.xlu0 %3255 }
 0x521   :  { %v8662_v7 = vpop.permute.xlu1 %3257 }
 0x522   :  { %3511 = vrot.lane.b32.xlu0 %v8419_v34, %s5165_s9 }
 0x523   :  { %3513 = vrot.lane.b32.xlu1 %v8425_v10, %s5165_s9 }
 0x524   :  { %v8668_v46 = vpop.permute.xlu0 %3259 }
 0x525   :  { %v8670_v41 = vpop.permute.xlu1 %3261 }
 0x526   :  { %3515 = vrot.lane.b32.xlu0 %v8430_v44, %s5165_s9 }
 0x527   :  { %3517 = vrot.lane.b32.xlu1 %v8436_v14, %s5165_s9 }
 0x528   :  { %v8676_v19 = vpop.permute.xlu0 %3263 }
 0x529   :  { %v8678_v21 = vpop.permute.xlu1 %3265 }
 0x52a   :  { %3519 = vrot.lane.b32.xlu0 %v8441_v0, %s5165_s9 }
 0x52b   :  { %3521 = vrot.lane.b32.xlu1 %v8447_v6, %s5165_s9 }
 0x52c   :  { %v8684_v34 = vpop.permute.xlu0 %3267 }
 0x52d   :  { %v8686_v62 = vpop.permute.xlu1 %3269 }
 0x52e   :  { %3523 = vrot.lane.b32.xlu0 %v8452_v45, %s5165_s9 }
 0x52f   :  { %3525 = vrot.lane.b32.xlu1 %v8458_v2, %s5165_s9 }
 0x530   :  { %v8692_v44 = vpop.permute.xlu0 %3271 }
 0x531   :  { %v8694_v10 = vpop.permute.xlu1 %3273 }
 0x532   :  { %3527 = vrot.lane.b32.xlu0 %v8463_v22, %s5165_s9 }
 0x533   :  { %3529 = vrot.lane.b32.xlu1 %v8469_v27, %s5165_s9 }
 0x534   :  { %v8700_v0 = vpop.permute.xlu0 %3275 }
 0x535   :  { %v8702_v14 = vpop.permute.xlu1 %3277 }
 0x536   :  { %3531 = vrot.lane.b32.xlu0 %v8474_v11, %s5165_s9 }
 0x537   :  { %3533 = vrot.lane.b32.xlu1 %v8480_v16, %s5165_s9 }
 0x538   :  { %v8708_v45 = vpop.permute.xlu0 %3279 }
 0x539   :  { %10913 = vst [vmem:[#allocation58_spill] sm:$0xff] %v8708_v45  ;;  %v8710_v6 = vpop.permute.xlu1 %3281 }
 0x53a   :  { %10914 = vst [vmem:[#allocation59_spill] sm:$0xff] %v8710_v6  ;;  %3535 = vrot.lane.b32.xlu0 %v8485_v56, %s5165_s9  ;;  %v3855_v56 = vld [vmem:[%s10616_s2] sm:$0xff] }
 0x53b   :  { %3537 = vrot.lane.b32.xlu1 %v8491_v43, %s5165_s9  ;;  %v3856_v43 = vld [vmem:[%s10616_s2 + $0x8] sm:$0xff] }
 0x53c   :  { %v8716_v22 = vpop.permute.xlu0 %3283 }
 0x53d   :  { %10915 = vst [vmem:[#allocation60_spill] sm:$0xff] %v8716_v22  ;;  %v8718_v2 = vpop.permute.xlu1 %3285 }
 0x53e   :  { %10916 = vst [vmem:[#allocation61_spill] sm:$0xff] %v8718_v2  ;;  %3539 = vrot.lane.b32.xlu0 %v8496_v57, %s5165_s9 }
 0x53f   :  { %3541 = vrot.lane.b32.xlu1 %v8500_v36, %s5165_s9  ;;  %v3857_v36 = vld [vmem:[%s10616_s2 + $0x10] sm:$0xff] }
 0x540   :  { %v8724_v11 = vpop.permute.xlu0 %3287 }
 0x541   :  { %10917 = vst [vmem:[#allocation62_spill] sm:$0xff] %v8724_v11  ;;  %v8726_v27 = vpop.permute.xlu1 %3289 }
 0x542   :  { %10918 = vst [vmem:[#allocation63_spill] sm:$0xff] %v8726_v27  ;;  %3543 = vrot.lane.b32.xlu0 %v8504_v49, %s5165_s9  ;;  %v3295_v49 = vsel %vm1320_vm14, %v8512_v30, %v8516_v51 }
 0x543   :  { %3545 = vrot.lane.b32.xlu1 %v8508_v24, %s5165_s9  ;;  %v3379_v30 = vsel %vm188_vm7, %v3295_v49, -inf }
 0x544   :  { %v8735_v16 = vpop.permute.xlu0 %3291 }
 0x545   :  { %10919 = vst [vmem:[#allocation64_spill] sm:$0xff] %v8735_v16  ;;  %v8740_v57 = vpop.permute.xlu1 %3293  ;;  %v3858_v16 = vld [vmem:[%s10616_s2 + $0x18] sm:$0xff] }
 0x546   :  { %10920 = vst [vmem:[#allocation65_spill] sm:$0xff] %v8740_v57  ;;  %3887 = vrot.lane.b32.xlu0 %v3855_v56, %s5161_s19  ;;  %v3380_v56 = vsel %vm189_vm15, %v8516_v51, -inf  ;;  %v3859_v51 = vld [vmem:[%s10616_s2 + $0x20] sm:$0xff] }
 0x547   :  { %3889 = vrot.lane.b32.xlu1 %v3856_v43, %s5161_s19 }
 0x548   :  { %v3436_v24 = vpop.permute.xlu0 %3435 }
 0x549   :  { %v3438_v11 = vpop.permute.xlu1 %3437 }
 0x54a   :  { %v3547_v43 = vsel %vm1505_vm6, %v3436_v24, %v3438_v11  ;;  %v3632_v27 = vsel %vm191_vm1, %v3438_v11, -inf  ;;  %3891 = vrot.lane.b32.xlu0 %v3857_v36, %s5161_s19  ;;  %v3296_v24 = vsel %vm1320_vm14, %v8524_v32, %v8526_v20  ;;  %v3860_v36 = vld [vmem:[%s10616_s2 + $0x28] sm:$0xff] }
 0x54b   :  { %v3631_v2 = vsel %vm190_vm8, %v3547_v43, -inf  ;;  %v3688_v45 = vmax.f32 %v3380_v56, %v3632_v27  ;;  %3893 = vrot.lane.b32.xlu1 %v3858_v16, %s5161_s19  ;;  %v3382_v27 = vsel %vm189_vm15, %v8526_v20, -inf }
 0x54c   :  { %v3687_v11 = vmax.f32 %v3379_v30, %v3631_v2  ;;  %v3440_v6 = vpop.permute.xlu0 %3439  ;;  %v3381_v2 = vsel %vm188_vm7, %v3296_v24, -inf }
 0x54d   :  { %v3744_v49 = vmax.f32 %v7788_v5, %v3688_v45  ;;  %v3442_v43 = vpop.permute.xlu1 %3441  ;;  %v3297_v45 = vsel %vm1320_vm14, %v8532_v53, %v8534_v60 }
 0x54e   :  { %v3743_v16 = vmax.f32 %v7793_v59, %v3687_v11  ;;  %v3548_v56 = vsel %vm1505_vm6, %v3440_v6, %v3442_v43  ;;  %v3634_v32 = vsel %vm191_vm1, %v3442_v43, -inf  ;;  %3895 = vrot.lane.b32.xlu0 %v3859_v51, %s5161_s19  ;;  %v3861_v59 = vld [vmem:[%s10616_s2 + $0x30] sm:$0xff]  ;;  %v3862_v51 = vld [vmem:[%s10616_s2 + $0x38] sm:$0xff] }
 0x54f   :  { %3800 = vst.msk [vmem:[%s10615_s4 + $0x148] sm:$0xff] %vm1687_vm9, %v3744_v49  ;;  %v3633_v5 = vsel %vm190_vm8, %v3548_v56, -inf  ;;  %v3690_v20 = vmax.f32 %v3382_v27, %v3634_v32  ;;  %3897 = vrot.lane.b32.xlu1 %v3860_v36, %s5161_s19  ;;  %v3384_v36 = vsel %vm189_vm15, %v8534_v60, -inf  ;;  %v10923_v49 = vld [vmem:[#allocation20_spill] sm:$0xff]  ;;  %v3863_v56 = vld [vmem:[%s10616_s2 + $0x40] sm:$0xff]  ;;  %v3298_v32 = vsel %vm1320_vm14, %v8540_v15, %v8542_v23 }
 0x550   :  { %3799 = vst [vmem:[%s10615_s4 + $0x140] sm:$0xff] %v3743_v16  ;;  %v3689_v6 = vmax.f32 %v3381_v2, %v3633_v5  ;;  %v3444_v30 = vpop.permute.xlu0 %3443  ;;  %v3383_v16 = vsel %vm188_vm7, %v3297_v45, -inf }
 0x551   :  { %v3746_v24 = vmax.f32 %v7803_v58, %v3690_v20  ;;  %v3446_v11 = vpop.permute.xlu1 %3445  ;;  %v3864_v20 = vld [vmem:[%s10616_s2 + $0x48] sm:$0xff] }
 0x552   :  { %v3745_v43 = vmax.f32 %v10923_v49, %v3689_v6  ;;  %v3549_v53 = vsel %vm1505_vm6, %v3444_v30, %v3446_v11  ;;  %v3636_v27 = vsel %vm191_vm1, %v3446_v11, -inf  ;;  %3899 = vrot.lane.b32.xlu0 %v3861_v59, %s5161_s19  ;;  %v10924_v59 = vld [vmem:[#allocation4_spill] sm:$0xff]  ;;  %v3386_v30 = vsel %vm189_vm15, %v8542_v23, -inf }
 0x553   :  { %3802 = vst.msk [vmem:[%s10615_s4 + $0x158] sm:$0xff] %vm1687_vm9, %v3746_v24  ;;  %v3635_v58 = vsel %vm190_vm8, %v3549_v53, -inf  ;;  %v3692_v60 = vmax.f32 %v3384_v36, %v3636_v27  ;;  %3901 = vrot.lane.b32.xlu1 %v3862_v51, %s5161_s19  ;;  %v10925_v51 = vld [vmem:[#allocation5_spill] sm:$0xff]  ;;  %v3385_v36 = vsel %vm188_vm7, %v3298_v32, -inf  ;;  %v3299_v53 = vsel %vm1320_vm14, %v8548_v55, %v8550_v3 }
 0x554   :  { %3801 = vst [vmem:[%s10615_s4 + $0x150] sm:$0xff] %v3745_v43  ;;  %v3691_v2 = vmax.f32 %v3383_v16, %v3635_v58  ;;  %v3448_v5 = vpop.permute.xlu0 %3447  ;;  %v3865_v43 = vld [vmem:[%s10616_s2 + $0x50] sm:$0xff]  ;;  %v3866_v58 = vld [vmem:[%s10616_s2 + $0x58] sm:$0xff] }
 0x555   :  { %v3748_v45 = vmax.f32 %v10924_v59, %v3692_v60  ;;  %v3450_v6 = vpop.permute.xlu1 %3449  ;;  %v10926_v60 = vld [vmem:[#allocation22_spill] sm:$0xff] }
 0x556   :  { %v3747_v24 = vmax.f32 %v10925_v51, %v3691_v2  ;;  %v3550_v15 = vsel %vm1505_vm6, %v3448_v5, %v3450_v6  ;;  %v3638_v11 = vsel %vm191_vm1, %v3450_v6, -inf  ;;  %3903 = vrot.lane.b32.xlu0 %v3863_v56, %s5161_s19  ;;  %v3388_v2 = vsel %vm189_vm15, %v8550_v3, -inf  ;;  %v10927_v5 = vld [vmem:[#allocation6_spill] sm:$0xff] }
 0x557   :  { %3804 = vst.msk [vmem:[%s10615_s4 + $0x168] sm:$0xff] %vm1687_vm9, %v3748_v45  ;;  %v3637_v23 = vsel %vm190_vm8, %v3550_v15, -inf  ;;  %v3694_v49 = vmax.f32 %v3386_v30, %v3638_v11  ;;  %3905 = vrot.lane.b32.xlu1 %v3864_v20, %s5161_s19  ;;  %v3387_v45 = vsel %vm188_vm7, %v3299_v53, -inf  ;;  %v3867_v30 = vld [vmem:[%s10616_s2 + $0x60] sm:$0xff]  ;;  %v3300_v51 = vsel %vm1320_vm14, %v8556_v35, %v8558_v33  ;;  %v3868_v11 = vld [vmem:[%s10616_s2 + $0x68] sm:$0xff] }
 0x558   :  { %3803 = vst [vmem:[%s10615_s4 + $0x160] sm:$0xff] %v3747_v24  ;;  %v3693_v27 = vmax.f32 %v3385_v36, %v3637_v23  ;;  %v3452_v16 = vpop.permute.xlu0 %3451  ;;  %v10928_v36 = vld [vmem:[#allocation7_spill] sm:$0xff] }
 0x559   :  { %v3750_v56 = vmax.f32 %v10926_v60, %v3694_v49  ;;  %v3454_v32 = vpop.permute.xlu1 %3453  ;;  %v10929_v53 = vld [vmem:[#allocation23_spill] sm:$0xff] }
 0x55a   :  { %v3749_v20 = vmax.f32 %v10927_v5, %v3693_v27  ;;  %v3551_v55 = vsel %vm1505_vm6, %v3452_v16, %v3454_v32  ;;  %v3640_v59 = vsel %vm191_vm1, %v3454_v32, -inf  ;;  %3907 = vrot.lane.b32.xlu0 %v3865_v43, %s5161_s19  ;;  %v3390_v43 = vsel %vm189_vm15, %v8558_v33, -inf }
 0x55b   :  { %3806 = vst.msk [vmem:[%s10615_s4 + $0x178] sm:$0xff] %vm1687_vm9, %v3750_v56  ;;  %v3639_v3 = vsel %vm190_vm8, %v3551_v55, -inf  ;;  %v3696_v6 = vmax.f32 %v3388_v2, %v3640_v59  ;;  %3909 = vrot.lane.b32.xlu1 %v3866_v58, %s5161_s19  ;;  %v3389_v58 = vsel %vm188_vm7, %v3300_v51, -inf  ;;  %v3869_v56 = vld [vmem:[%s10616_s2 + $0x70] sm:$0xff]  ;;  %v3301_v32 = vsel %vm1320_vm14, %v8564_v26, %v8566_v38  ;;  %v10930_v55 = vld [vmem:[#allocation8_spill] sm:$0xff] }
 0x55c   :  { %3805 = vst [vmem:[%s10615_s4 + $0x170] sm:$0xff] %v3749_v20  ;;  %v3695_v24 = vmax.f32 %v3387_v45, %v3639_v3  ;;  %v3456_v15 = vpop.permute.xlu0 %3455  ;;  %v3870_v20 = vld [vmem:[%s10616_s2 + $0x78] sm:$0xff]  ;;  %v3392_v3 = vsel %vm189_vm15, %v8566_v38, -inf }
 0x55d   :  { %v3752_v23 = vmax.f32 %v10928_v36, %v3696_v6  ;;  %v3458_v49 = vpop.permute.xlu1 %3457  ;;  %v10931_v6 = vld [vmem:[#allocation9_spill] sm:$0xff] }
 0x55e   :  { %v3751_v27 = vmax.f32 %v10929_v53, %v3695_v24  ;;  %v3552_v35 = vsel %vm1505_vm6, %v3456_v15, %v3458_v49  ;;  %v3642_v16 = vsel %vm191_vm1, %v3458_v49, -inf  ;;  %3911 = vrot.lane.b32.xlu0 %v3867_v30, %s5161_s19  ;;  %v3391_v24 = vsel %vm188_vm7, %v3301_v32, -inf  ;;  %v10932_v49 = vld [vmem:[#allocation25_spill] sm:$0xff] }
 0x55f   :  { %3808 = vst.msk [vmem:[%s10615_s4 + $0x188] sm:$0xff] %vm1687_vm9, %v3752_v23  ;;  %v3641_v33 = vsel %vm190_vm8, %v3552_v35, -inf  ;;  %v3698_v60 = vmax.f32 %v3390_v43, %v3642_v16  ;;  %3913 = vrot.lane.b32.xlu1 %v3868_v11, %s5161_s19  ;;  %v3302_v11 = vsel %vm1320_vm14, %v8572_v54, %v8574_v4  ;;  %v10933_v35 = vld [vmem:[#allocation24_spill] sm:$0xff] }
 0x560   :  { %3807 = vst [vmem:[%s10615_s4 + $0x180] sm:$0xff] %v3751_v27  ;;  %v3697_v2 = vmax.f32 %v3389_v58, %v3641_v33  ;;  %v3460_v5 = vpop.permute.xlu0 %3459  ;;  %v3394_v27 = vsel %vm189_vm15, %v8574_v4, -inf  ;;  %v3393_v33 = vsel %vm188_vm7, %v3302_v11, -inf  ;;  %v3303_v4 = vsel %vm1320_vm14, %v8580_v17, %v8582_v37 }
 0x561   :  { %v3754_v59 = vmax.f32 %v10930_v55, %v3698_v60  ;;  %v3462_v45 = vpop.permute.xlu1 %3461 }
 0x562   :  { %v3753_v30 = vmax.f32 %v10931_v6, %v3697_v2  ;;  %v3553_v26 = vsel %vm1505_vm6, %v3460_v5, %v3462_v45  ;;  %v3644_v51 = vsel %vm191_vm1, %v3462_v45, -inf  ;;  %3915 = vrot.lane.b32.xlu0 %v3869_v56, %s5161_s19  ;;  %v10934_v5 = vld [vmem:[#allocation10_spill] sm:$0xff]  ;;  %v10935_v45 = vld [vmem:[#allocation11_spill] sm:$0xff] }
 0x563   :  { %3810 = vst.msk [vmem:[%s10615_s4 + $0x198] sm:$0xff] %vm1687_vm9, %v3754_v59  ;;  %v3643_v38 = vsel %vm190_vm8, %v3553_v26, -inf  ;;  %v3700_v15 = vmax.f32 %v3392_v3, %v3644_v51  ;;  %3917 = vrot.lane.b32.xlu1 %v3870_v20, %s5161_s19  ;;  %v3396_v59 = vsel %vm189_vm15, %v8582_v37, -inf  ;;  %v3304_v37 = vsel %vm1320_vm14, %v8588_v31, %v8590_v12 }
 0x564   :  { %3809 = vst [vmem:[%s10615_s4 + $0x190] sm:$0xff] %v3753_v30  ;;  %v3699_v36 = vmax.f32 %v3391_v24, %v3643_v38  ;;  %v3464_v23 = vpop.permute.xlu0 %3463  ;;  %v3395_v30 = vsel %vm188_vm7, %v3303_v4, -inf  ;;  %v3400_v4 = vsel %vm189_vm15, %v8598_v47, -inf }
 0x565   :  { %v3756_v43 = vmax.f32 %v10932_v49, %v3700_v15  ;;  %v3466_v53 = vpop.permute.xlu1 %3465  ;;  %v10936_v15 = vld [vmem:[#allocation27_spill] sm:$0xff]  ;;  %v10937_v49 = vld [vmem:[#allocation26_spill] sm:$0xff] }
 0x566   :  { %v3755_v16 = vmax.f32 %v10933_v35, %v3699_v36  ;;  %v3554_v58 = vsel %vm1505_vm6, %v3464_v23, %v3466_v53  ;;  %v3646_v54 = vsel %vm191_vm1, %v3466_v53, -inf  ;;  %v3398_v23 = vsel %vm189_vm15, %v8590_v12, -inf }
 0x567   :  { %3812 = vst.msk [vmem:[%s10615_s4 + $0x1a8] sm:$0xff] %vm1687_vm9, %v3756_v43  ;;  %v3645_v60 = vsel %vm190_vm8, %v3554_v58, -inf  ;;  %v3702_v56 = vmax.f32 %v3394_v27, %v3646_v54  ;;  %v3397_v27 = vsel %vm188_vm7, %v3304_v37, -inf  ;;  %v3305_v12 = vsel %vm1320_vm14, %v8596_v28, %v8598_v47 }
 0x568   :  { %3811 = vst [vmem:[%s10615_s4 + $0x1a0] sm:$0xff] %v3755_v16  ;;  %v3701_v32 = vmax.f32 %v3393_v33, %v3645_v60  ;;  %v3468_v2 = vpop.permute.xlu0 %3467  ;;  %v10938_v33 = vld [vmem:[#allocation12_spill] sm:$0xff]  ;;  %v3306_v47 = vsel %vm1320_vm14, %v8604_v50, %v8606_v9 }
 0x569   :  { %v3758_v20 = vmax.f32 %v10934_v5, %v3702_v56  ;;  %v3470_v55 = vpop.permute.xlu1 %3469 }
 0x56a   :  { %v3757_v3 = vmax.f32 %v10935_v45, %v3701_v32  ;;  %v3555_v6 = vsel %vm1505_vm6, %v3468_v2, %v3470_v55  ;;  %v3648_v17 = vsel %vm191_vm1, %v3470_v55, -inf  ;;  %v10939_v32 = vld [vmem:[#allocation13_spill] sm:$0xff] }
 0x56b   :  { %3814 = vst.msk [vmem:[%s10615_s4 + $0x1b8] sm:$0xff] %vm1687_vm9, %v3758_v20  ;;  %v3647_v26 = vsel %vm190_vm8, %v3555_v6, -inf  ;;  %v3704_v51 = vmax.f32 %v3396_v59, %v3648_v17  ;;  %v3399_v20 = vsel %vm188_vm7, %v3305_v12, -inf  ;;  %v10940_v6 = vld [vmem:[#allocation29_spill] sm:$0xff] }
 0x56c   :  { %3813 = vst [vmem:[%s10615_s4 + $0x1b0] sm:$0xff] %v3757_v3  ;;  %v3703_v24 = vmax.f32 %v3395_v30, %v3647_v26  ;;  %v3472_v38 = vpop.permute.xlu0 %3471  ;;  %v3402_v26 = vsel %vm189_vm15, %v8606_v9, -inf  ;;  %v3307_v9 = vsel %vm1320_vm14, %v8612_v18, %v8614_v61 }
 0x56d   :  { %v3760_v11 = vmax.f32 %v10936_v15, %v3704_v51  ;;  %v3474_v36 = vpop.permute.xlu1 %3473  ;;  %v10941_v51 = vld [vmem:[#allocation28_spill] sm:$0xff]  ;;  %v3403_v12 = vsel %vm188_vm7, %v3307_v9, -inf }
 0x56e   :  { %v3759_v43 = vmax.f32 %v10937_v49, %v3703_v24  ;;  %v3556_v53 = vsel %vm1505_vm6, %v3472_v38, %v3474_v36  ;;  %v3650_v31 = vsel %vm191_vm1, %v3474_v36, -inf  ;;  %v3401_v38 = vsel %vm188_vm7, %v3306_v47, -inf  ;;  %v10942_v49 = vld [vmem:[#allocation14_spill] sm:$0xff] }
 0x56f   :  { %3816 = vst.msk [vmem:[%s10615_s4 + $0x1c8] sm:$0xff] %vm1687_vm9, %v3760_v11  ;;  %v3649_v35 = vsel %vm190_vm8, %v3556_v53, -inf  ;;  %v3706_v16 = vmax.f32 %v3398_v23, %v3650_v31  ;;  %v3404_v31 = vsel %vm189_vm15, %v8614_v61, -inf  ;;  %v3308_v61 = vsel %vm1320_vm14, %v8620_v1, %v8622_v13 }
 0x570   :  { %3815 = vst [vmem:[%s10615_s4 + $0x1c0] sm:$0xff] %v3759_v43  ;;  %v3705_v58 = vmax.f32 %v3397_v27, %v3649_v35  ;;  %v3476_v54 = vpop.permute.xlu0 %3475  ;;  %v10943_v27 = vld [vmem:[#allocation15_spill] sm:$0xff] }
 0x571   :  { %v3762_v60 = vmax.f32 %v10938_v33, %v3706_v16  ;;  %v3478_v56 = vpop.permute.xlu1 %3477 }
 0x572   :  { %v3761_v2 = vmax.f32 %v10939_v32, %v3705_v58  ;;  %v3557_v5 = vsel %vm1505_vm6, %v3476_v54, %v3478_v56  ;;  %v3652_v28 = vsel %vm191_vm1, %v3478_v56, -inf  ;;  %v10944_v56 = vld [vmem:[#allocation33_spill] sm:$0xff] }
 0x573   :  { %3818 = vst.msk [vmem:[%s10615_s4 + $0x1d8] sm:$0xff] %vm1687_vm9, %v3762_v60  ;;  %v3651_v55 = vsel %vm190_vm8, %v3557_v5, -inf  ;;  %v3708_v59 = vmax.f32 %v3400_v4, %v3652_v28  ;;  %v10945_v5 = vld [vmem:[#allocation31_spill] sm:$0xff] }
 0x574   :  { %3817 = vst [vmem:[%s10615_s4 + $0x1d0] sm:$0xff] %v3761_v2  ;;  %v3707_v45 = vmax.f32 %v3399_v20, %v3651_v55  ;;  %v3480_v3 = vpop.permute.xlu0 %3479  ;;  %v3406_v2 = vsel %vm189_vm15, %v8622_v13, -inf  ;;  %v3405_v55 = vsel %vm188_vm7, %v3308_v61, -inf  ;;  %v3309_v13 = vsel %vm1320_vm14, %v8628_v25, %v8630_v63 }
 0x575   :  { %v3764_v17 = vmax.f32 %v10940_v6, %v3708_v59  ;;  %v3482_v30 = vpop.permute.xlu1 %3481  ;;  %v10946_v6 = vld [vmem:[#allocation16_spill] sm:$0xff] }
 0x576   :  { %v3763_v37 = vmax.f32 %v10941_v51, %v3707_v45  ;;  %v3558_v24 = vsel %vm1505_vm6, %v3480_v3, %v3482_v30  ;;  %v3654_v50 = vsel %vm191_vm1, %v3482_v30, -inf  ;;  %v10947_v51 = vld [vmem:[#allocation17_spill] sm:$0xff] }
 0x577   :  { %3820 = vst.msk [vmem:[%s10615_s4 + $0x1e8] sm:$0xff] %vm1687_vm9, %v3764_v17  ;;  %v3653_v15 = vsel %vm190_vm8, %v3558_v24, -inf  ;;  %v3710_v11 = vmax.f32 %v3402_v26, %v3654_v50  ;;  %v3408_v26 = vsel %vm189_vm15, %v8630_v63, -inf  ;;  %v3407_v50 = vsel %vm188_vm7, %v3309_v13, -inf }
 0x578   :  { %3819 = vst [vmem:[%s10615_s4 + $0x1e0] sm:$0xff] %v3763_v37  ;;  %v3709_v36 = vmax.f32 %v3401_v38, %v3653_v15  ;;  %v3484_v23 = vpop.permute.xlu0 %3483  ;;  %v3310_v63 = vsel %vm1320_vm14, %v8636_v29, %v8638_v39  ;;  %v3414_v13 = vsel %vm189_vm15, %v8654_v40, -inf }
 0x579   :  { %v3766_v43 = vmax.f32 %v10942_v49, %v3710_v11  ;;  %v3486_v53 = vpop.permute.xlu1 %3485 }
 0x57a   :  { %v3765_v35 = vmax.f32 %v10943_v27, %v3709_v36  ;;  %v3559_v16 = vsel %vm1505_vm6, %v3484_v23, %v3486_v53  ;;  %v3656_v18 = vsel %vm191_vm1, %v3486_v53, -inf  ;;  %v10948_v36 = vld [vmem:[#allocation18_spill] sm:$0xff]  ;;  %v10949_v53 = vld [vmem:[#allocation19_spill] sm:$0xff] }
 0x57b   :  { %3822 = vst.msk [vmem:[%s10615_s4 + $0x1f8] sm:$0xff] %vm1687_vm9, %v3766_v43  ;;  %v3655_v58 = vsel %vm190_vm8, %v3559_v16, -inf  ;;  %v3712_v54 = vmax.f32 %v3404_v31, %v3656_v18  ;;  %v3410_v43 = vsel %vm189_vm15, %v8638_v39, -inf  ;;  %v3311_v39 = vsel %vm1320_vm14, %v8644_v48, %v8646_v52 }
 0x57c   :  { %3821 = vst [vmem:[%s10615_s4 + $0x1f0] sm:$0xff] %v3765_v35  ;;  %v3711_v33 = vmax.f32 %v3403_v12, %v3655_v58  ;;  %v3488_v60 = vpop.permute.xlu0 %3487  ;;  %v3409_v35 = vsel %vm188_vm7, %v3310_v63, -inf }
 0x57d   :  { %v3768_v4 = vmax.f32 %v10944_v56, %v3712_v54  ;;  %v3490_v32 = vpop.permute.xlu1 %3489  ;;  %v10950_v54 = vld [vmem:[#allocation3_spill] sm:$0xff]  ;;  %v10951_v56 = vld [vmem:[#allocation21_spill] sm:$0xff] }
 0x57e   :  { %v3767_v28 = vmax.f32 %v10945_v5, %v3711_v33  ;;  %v3560_v20 = vsel %vm1505_vm6, %v3488_v60, %v3490_v32  ;;  %v3658_v1 = vsel %vm191_vm1, %v3490_v32, -inf  ;;  %v3412_v60 = vsel %vm189_vm15, %v8646_v52, -inf }
 0x57f   :  { %3824 = vst.msk [vmem:[%s10615_s4 + $0x208] sm:$0xff] %vm1687_vm9, %v3768_v4  ;;  %v3657_v59 = vsel %vm190_vm8, %v3560_v20, -inf  ;;  %v3714_v47 = vmax.f32 %v3406_v2, %v3658_v1  ;;  %v3411_v2 = vsel %vm188_vm7, %v3311_v39, -inf  ;;  %v3312_v52 = vsel %vm1320_vm14, %v8652_v8, %v8654_v40 }
 0x580   :  { %3823 = vst [vmem:[%s10615_s4 + $0x200] sm:$0xff] %v3767_v28  ;;  %v3713_v45 = vmax.f32 %v3405_v55, %v3657_v59  ;;  %v3492_v3 = vpop.permute.xlu0 %3491  ;;  %v10952_v55 = vld [vmem:[#allocation34_spill] sm:$0xff]  ;;  %v3313_v40 = vsel %vm1320_vm14, %v8660_v42, %v8662_v7 }
 0x581   :  { %v3770_v17 = vmax.f32 %v10946_v6, %v3714_v47  ;;  %v3494_v30 = vpop.permute.xlu1 %3493 }
 0x582   :  { %v3769_v37 = vmax.f32 %v10947_v51, %v3713_v45  ;;  %v3561_v24 = vsel %vm1505_vm6, %v3492_v3, %v3494_v30  ;;  %v3660_v25 = vsel %vm191_vm1, %v3494_v30, -inf  ;;  %v10953_v45 = vld [vmem:[#allocation35_spill] sm:$0xff] }
 0x583   :  { %3826 = vst.msk [vmem:[%s10615_s4 + $0x218] sm:$0xff] %vm1687_vm9, %v3770_v17  ;;  %v3659_v38 = vsel %vm190_vm8, %v3561_v24, -inf  ;;  %v3716_v15 = vmax.f32 %v3408_v26, %v3660_v25  ;;  %v3413_v17 = vsel %vm188_vm7, %v3312_v52, -inf  ;;  %v10954_v24 = vld [vmem:[#allocation36_spill] sm:$0xff] }
 0x584   :  { %3825 = vst [vmem:[%s10615_s4 + $0x210] sm:$0xff] %v3769_v37  ;;  %v3715_v11 = vmax.f32 %v3407_v50, %v3659_v38  ;;  %v3496_v9 = vpop.permute.xlu0 %3495  ;;  %v3416_v38 = vsel %vm189_vm15, %v8662_v7, -inf  ;;  %v3314_v7 = vsel %vm1320_vm14, %v8668_v46, %v8670_v41 }
 0x585   :  { %v3772_v23 = vmax.f32 %v10948_v36, %v3716_v15  ;;  %v3498_v49 = vpop.permute.xlu1 %3497  ;;  %v10955_v15 = vld [vmem:[#allocation37_spill] sm:$0xff]  ;;  %v3417_v39 = vsel %vm188_vm7, %v3314_v7, -inf }
 0x586   :  { %v3771_v31 = vmax.f32 %v10949_v53, %v3715_v11  ;;  %v3562_v27 = vsel %vm1505_vm6, %v3496_v9, %v3498_v49  ;;  %v3662_v29 = vsel %vm191_vm1, %v3498_v49, -inf  ;;  %v3415_v9 = vsel %vm188_vm7, %v3313_v40, -inf  ;;  %v10956_v53 = vld [vmem:[#allocation38_spill] sm:$0xff] }
 0x587   :  { %3828 = vst.msk [vmem:[%s10615_s4 + $0x228] sm:$0xff] %vm1687_vm9, %v3772_v23  ;;  %v3661_v16 = vsel %vm190_vm8, %v3562_v27, -inf  ;;  %v3718_v18 = vmax.f32 %v3410_v43, %v3662_v29  ;;  %v3418_v29 = vsel %vm189_vm15, %v8670_v41, -inf  ;;  %v3315_v41 = vsel %vm1320_vm14, %v8676_v19, %v8678_v21 }
 0x588   :  { %3827 = vst [vmem:[%s10615_s4 + $0x220] sm:$0xff] %v3771_v31  ;;  %v3717_v12 = vmax.f32 %v3409_v35, %v3661_v16  ;;  %v3500_v58 = vpop.permute.xlu0 %3499  ;;  %v10957_v35 = vld [vmem:[#allocation39_spill] sm:$0xff] }
 0x589   :  { %v3774_v61 = vmax.f32 %v10950_v54, %v3718_v18  ;;  %v3502_v33 = vpop.permute.xlu1 %3501 }
 0x58a   :  { %v3773_v4 = vmax.f32 %v10951_v56, %v3717_v12  ;;  %v3563_v32 = vsel %vm1505_vm6, %v3500_v58, %v3502_v33  ;;  %v3664_v48 = vsel %vm191_vm1, %v3502_v33, -inf  ;;  %v10958_v33 = vld [vmem:[#allocation40_spill] sm:$0xff] }
 0x58b   :  { %3830 = vst.msk [vmem:[%s10615_s4 + $0x238] sm:$0xff] %vm1687_vm9, %v3774_v61  ;;  %v3663_v5 = vsel %vm190_vm8, %v3563_v32, -inf  ;;  %v3720_v28 = vmax.f32 %v3412_v60, %v3664_v48  ;;  %v10959_v32 = vld [vmem:[#allocation41_spill] sm:$0xff] }
 0x58c   :  { %3829 = vst [vmem:[%s10615_s4 + $0x230] sm:$0xff] %v3773_v4  ;;  %v3719_v20 = vmax.f32 %v3411_v2, %v3663_v5  ;;  %v3504_v1 = vpop.permute.xlu0 %3503  ;;  %v3420_v4 = vsel %vm189_vm15, %v8678_v21, -inf  ;;  %v3419_v5 = vsel %vm188_vm7, %v3315_v41, -inf  ;;  %v3316_v21 = vsel %vm1320_vm14, %v8684_v34, %v8686_v62 }
 0x58d   :  { %v3776_v59 = vmax.f32 %v10952_v55, %v3720_v28  ;;  %v3506_v47 = vpop.permute.xlu1 %3505  ;;  %v10960_v55 = vld [vmem:[#allocation42_spill] sm:$0xff] }
 0x58e   :  { %v3775_v3 = vmax.f32 %v10953_v45, %v3719_v20  ;;  %v3564_v6 = vsel %vm1505_vm6, %v3504_v1, %v3506_v47  ;;  %v3666_v8 = vsel %vm191_vm1, %v3506_v47, -inf  ;;  %v10961_v45 = vld [vmem:[#allocation43_spill] sm:$0xff] }
 0x58f   :  { %3832 = vst.msk [vmem:[%s10615_s4 + $0x248] sm:$0xff] %vm1687_vm9, %v3776_v59  ;;  %v3665_v30 = vsel %vm190_vm8, %v3564_v6, -inf  ;;  %v3722_v26 = vmax.f32 %v3414_v13, %v3666_v8  ;;  %v3422_v13 = vsel %vm189_vm15, %v8686_v62, -inf  ;;  %v3421_v8 = vsel %vm188_vm7, %v3316_v21, -inf }
 0x590   :  { %3831 = vst [vmem:[%s10615_s4 + $0x240] sm:$0xff] %v3775_v3  ;;  %v3721_v51 = vmax.f32 %v3413_v17, %v3665_v30  ;;  %v3508_v37 = vpop.permute.xlu0 %3507  ;;  %v3317_v62 = vsel %vm1320_vm14, %v8692_v44, %v8694_v10 }
 0x591   :  { %v3778_v25 = vmax.f32 %v10954_v24, %v3722_v26  ;;  %v3510_v50 = vpop.permute.xlu1 %3509 }
 0x592   :  { %v3777_v63 = vmax.f32 %v10955_v15, %v3721_v51  ;;  %v3565_v11 = vsel %vm1505_vm6, %v3508_v37, %v3510_v50  ;;  %v3668_v42 = vsel %vm191_vm1, %v3510_v50, -inf  ;;  %v10962_v51 = vld [vmem:[#allocation44_spill] sm:$0xff]  ;;  %v10963_v50 = vld [vmem:[#allocation45_spill] sm:$0xff] }
 0x593   :  { %3834 = vst.msk [vmem:[%s10615_s4 + $0x258] sm:$0xff] %vm1687_vm9, %v3778_v25  ;;  %v3667_v36 = vsel %vm190_vm8, %v3565_v11, -inf  ;;  %v3724_v23 = vmax.f32 %v3416_v38, %v3668_v42  ;;  %v3424_v25 = vsel %vm189_vm15, %v8694_v10, -inf  ;;  %v3318_v10 = vsel %vm1320_vm14, %v8700_v0, %v8702_v14 }
 0x594   :  { %3833 = vst [vmem:[%s10615_s4 + $0x250] sm:$0xff] %v3777_v63  ;;  %v3723_v49 = vmax.f32 %v3415_v9, %v3667_v36  ;;  %v3512_v43 = vpop.permute.xlu0 %3511  ;;  %v3423_v63 = vsel %vm188_vm7, %v3317_v62, -inf }
 0x595   :  { %v3780_v31 = vmax.f32 %v10956_v53, %v3724_v23  ;;  %v3514_v27 = vpop.permute.xlu1 %3513  ;;  %v10964_v23 = vld [vmem:[#allocation46_spill] sm:$0xff]  ;;  %v10965_v53 = vld [vmem:[#allocation47_spill] sm:$0xff] }
 0x596   :  { %v3779_v16 = vmax.f32 %v10957_v35, %v3723_v49  ;;  %v3566_v18 = vsel %vm1505_vm6, %v3512_v43, %v3514_v27  ;;  %v3670_v46 = vsel %vm191_vm1, %v3514_v27, -inf  ;;  %v3426_v43 = vsel %vm189_vm15, %v8702_v14, -inf  ;;  %v10966_v14 = vld [vmem:[#allocation59_spill] sm:$0xff] }
 0x597   :  { %3836 = vst.msk [vmem:[%s10615_s4 + $0x268] sm:$0xff] %vm1687_vm9, %v3780_v31  ;;  %v3669_v12 = vsel %vm190_vm8, %v3566_v18, -inf  ;;  %v3726_v58 = vmax.f32 %v3418_v29, %v3670_v46  ;;  %v3425_v29 = vsel %vm188_vm7, %v3318_v10, -inf  ;;  %v10967_v18 = vld [vmem:[#allocation58_spill] sm:$0xff]  ;;  %v10978_v10 = vld [vmem:[#allocation65_spill] sm:$0xff] }
 0x598   :  { %3835 = vst [vmem:[%s10615_s4 + $0x260] sm:$0xff] %v3779_v16  ;;  %v3725_v54 = vmax.f32 %v3417_v39, %v3669_v12  ;;  %v3516_v61 = vpop.permute.xlu0 %3515  ;;  %v3319_v46 = vsel %vm1320_vm14, %v10967_v18, %v10966_v14 }
 0x599   :  { %v3782_v60 = vmax.f32 %v10958_v33, %v3726_v58  ;;  %v3518_v56 = vpop.permute.xlu1 %3517  ;;  %v10968_v58 = vld [vmem:[#allocation48_spill] sm:$0xff]  ;;  %v10969_v33 = vld [vmem:[#allocation49_spill] sm:$0xff] }
 0x59a   :  { %v3781_v48 = vmax.f32 %v10959_v32, %v3725_v54  ;;  %v3567_v2 = vsel %vm1505_vm6, %v3516_v61, %v3518_v56  ;;  %v3672_v19 = vsel %vm191_vm1, %v3518_v56, -inf  ;;  %v3428_v61 = vsel %vm189_vm15, %v10966_v14, -inf }
 0x59b   :  { %3838 = vst.msk [vmem:[%s10615_s4 + $0x278] sm:$0xff] %vm1687_vm9, %v3782_v60  ;;  %v3671_v28 = vsel %vm190_vm8, %v3567_v2, -inf  ;;  %v3728_v52 = vmax.f32 %v3420_v4, %v3672_v19  ;;  %v3427_v32 = vsel %vm188_vm7, %v3319_v46, -inf  ;;  %v10970_v19 = vld [vmem:[#allocation61_spill] sm:$0xff] }
 0x59c   :  { %3837 = vst [vmem:[%s10615_s4 + $0x270] sm:$0xff] %v3781_v48  ;;  %v3727_v20 = vmax.f32 %v3419_v5, %v3671_v28  ;;  %v3520_v1 = vpop.permute.xlu0 %3519  ;;  %v10971_v5 = vld [vmem:[#allocation60_spill] sm:$0xff] }
 0x59d   :  { %v3784_v59 = vmax.f32 %v10960_v55, %v3728_v52  ;;  %v3522_v47 = vpop.permute.xlu1 %3521  ;;  %v3320_v28 = vsel %vm1320_vm14, %v10971_v5, %v10970_v19 }
 0x59e   :  { %v3783_v3 = vmax.f32 %v10961_v45, %v3727_v20  ;;  %v3568_v6 = vsel %vm1505_vm6, %v3520_v1, %v3522_v47  ;;  %v3674_v34 = vsel %vm191_vm1, %v3522_v47, -inf  ;;  %v10972_v20 = vld [vmem:[#allocation50_spill] sm:$0xff]  ;;  %v10973_v47 = vld [vmem:[#allocation51_spill] sm:$0xff] }
 0x59f   :  { %3840 = vst.msk [vmem:[%s10615_s4 + $0x288] sm:$0xff] %vm1687_vm9, %v3784_v59  ;;  %v3673_v17 = vsel %vm190_vm8, %v3568_v6, -inf  ;;  %v3730_v30 = vmax.f32 %v3422_v13, %v3674_v34  ;;  %v3430_v59 = vsel %vm189_vm15, %v10970_v19, -inf  ;;  %v3429_v6 = vsel %vm188_vm7, %v3320_v28, -inf }
 0x5a0   :  { %3839 = vst [vmem:[%s10615_s4 + $0x280] sm:$0xff] %v3783_v3  ;;  %v3729_v26 = vmax.f32 %v3421_v8, %v3673_v17  ;;  %v3524_v40 = vpop.permute.xlu0 %3523  ;;  %v10974_v17 = vld [vmem:[#allocation63_spill] sm:$0xff] }
 0x5a1   :  { %v3786_v37 = vmax.f32 %v10962_v51, %v3730_v30  ;;  %v3526_v24 = vpop.permute.xlu1 %3525  ;;  %v10975_v30 = vld [vmem:[#allocation62_spill] sm:$0xff]  ;;  %v10976_v51 = vld [vmem:[#allocation52_spill] sm:$0xff] }
 0x5a2   :  { %v3785_v38 = vmax.f32 %v10963_v50, %v3729_v26  ;;  %v3569_v15 = vsel %vm1505_vm6, %v3524_v40, %v3526_v24  ;;  %v3676_v44 = vsel %vm191_vm1, %v3526_v24, -inf  ;;  %v3321_v62 = vsel %vm1320_vm14, %v10975_v30, %v10974_v17  ;;  %v10977_v50 = vld [vmem:[#allocation53_spill] sm:$0xff] }
 0x5a3   :  { %3842 = vst.msk [vmem:[%s10615_s4 + $0x298] sm:$0xff] %vm1687_vm9, %v3786_v37  ;;  %v3675_v11 = vsel %vm190_vm8, %v3569_v15, -inf  ;;  %v3732_v42 = vmax.f32 %v3424_v25, %v3676_v44  ;;  %v3432_v25 = vsel %vm189_vm15, %v10974_v17, -inf }
 0x5a4   :  { %3841 = vst [vmem:[%s10615_s4 + $0x290] sm:$0xff] %v3785_v38  ;;  %v3731_v9 = vmax.f32 %v3423_v63, %v3675_v11  ;;  %v3528_v36 = vpop.permute.xlu0 %3527  ;;  %v3431_v63 = vsel %vm188_vm7, %v3321_v62, -inf }
 0x5a5   :  { %v3788_v7 = vmax.f32 %v10964_v23, %v3732_v42  ;;  %v3530_v49 = vpop.permute.xlu1 %3529 }
 0x5a6   :  { %v3787_v31 = vmax.f32 %v10965_v53, %v3731_v9  ;;  %v3570_v27 = vsel %vm1505_vm6, %v3528_v36, %v3530_v49  ;;  %v3678_v0 = vsel %vm191_vm1, %v3530_v49, -inf  ;;  %v10979_v9 = vld [vmem:[#allocation64_spill] sm:$0xff]  ;;  %v10980_v49 = vld [vmem:[#allocation54_spill] sm:$0xff] }
 0x5a7   :  { %3844 = vst.msk [vmem:[%s10615_s4 + $0x2a8] sm:$0xff] %vm1687_vm9, %v3788_v7  ;;  %v3677_v35 = vsel %vm190_vm8, %v3570_v27, -inf  ;;  %v3734_v16 = vmax.f32 %v3426_v43, %v3678_v0  ;;  %v3322_v36 = vsel %vm1320_vm14, %v10979_v9, %v10978_v10  ;;  %v10981_v27 = vld [vmem:[#allocation55_spill] sm:$0xff]  ;;  %v9519_v9 = vld [vmem:[%s10617_s3 + $0x10] sm:$0xff] }
 0x5a8   :  { %3843 = vst [vmem:[%s10615_s4 + $0x2a0] sm:$0xff] %v3787_v31  ;;  %v3733_v39 = vmax.f32 %v3425_v29, %v3677_v35  ;;  %v3532_v12 = vpop.permute.xlu0 %3531  ;;  %v3434_v31 = vsel %vm189_vm15, %v10978_v10, -inf  ;;  %v9512_v10 = vld [vmem:[%s10617_s3 + $0x8] sm:$0xff] }
 0x5a9   :  { %v3790_v41 = vmax.f32 %v10968_v58, %v3734_v16  ;;  %v3534_v54 = vpop.permute.xlu1 %3533  ;;  %v3433_v16 = vsel %vm188_vm7, %v3322_v36, -inf  ;;  %v9526_v36 = vld [vmem:[%s10617_s3 + $0x18] sm:$0xff] }
 0x5aa   :  { %v3789_v60 = vmax.f32 %v10969_v33, %v3733_v39  ;;  %v3571_v56 = vsel %vm1505_vm6, %v3532_v12, %v3534_v54  ;;  %v3680_v4 = vsel %vm191_vm1, %v3534_v54, -inf  ;;  %v10982_v12 = vld [vmem:[#allocation56_spill] sm:$0xff]  ;;  %v10983_v54 = vld [vmem:[#allocation57_spill] sm:$0xff] }
 0x5ab   :  { %3846 = vst.msk [vmem:[%s10615_s4 + $0x2b8] sm:$0xff] %vm1687_vm9, %v3790_v41  ;;  %v3679_v48 = vsel %vm190_vm8, %v3571_v56, -inf  ;;  %v3736_v2 = vmax.f32 %v3428_v61, %v3680_v4 }
 0x5ac   :  { %3845 = vst [vmem:[%s10615_s4 + $0x2b0] sm:$0xff] %v3789_v60  ;;  %v3735_v52 = vmax.f32 %v3427_v32, %v3679_v48  ;;  %v3536_v21 = vpop.permute.xlu0 %3535 }
 0x5ad   :  { %v3792_v1 = vmax.f32 %v10972_v20, %v3736_v2  ;;  %v3538_v55 = vpop.permute.xlu1 %3537 }
 0x5ae   :  { %v3791_v13 = vmax.f32 %v10973_v47, %v3735_v52  ;;  %v3572_v45 = vsel %vm1505_vm6, %v3536_v21, %v3538_v55  ;;  %v3682_v3 = vsel %vm191_vm1, %v3538_v55, -inf }
 0x5af   :  { %3848 = vst.msk [vmem:[%s10615_s4 + $0x2c8] sm:$0xff] %vm1687_vm9, %v3792_v1  ;;  %v3681_v34 = vsel %vm190_vm8, %v3572_v45, -inf  ;;  %v3738_v8 = vmax.f32 %v3430_v59, %v3682_v3 }
 0x5b0   :  { %3847 = vst [vmem:[%s10615_s4 + $0x2c0] sm:$0xff] %v3791_v13  ;;  %v3737_v26 = vmax.f32 %v3429_v6, %v3681_v34  ;;  %v3540_v40 = vpop.permute.xlu0 %3539 }
 0x5b1   :  { %v3794_v37 = vmax.f32 %v10976_v51, %v3738_v8  ;;  %v3542_v24 = vpop.permute.xlu1 %3541 }
 0x5b2   :  { %v3793_v38 = vmax.f32 %v10977_v50, %v3737_v26  ;;  %v3573_v15 = vsel %vm1505_vm6, %v3540_v40, %v3542_v24  ;;  %v3684_v44 = vsel %vm191_vm1, %v3542_v24, -inf }
 0x5b3   :  { %3850 = vst.msk [vmem:[%s10615_s4 + $0x2d8] sm:$0xff] %vm1687_vm9, %v3794_v37  ;;  %v3683_v11 = vsel %vm190_vm8, %v3573_v15, -inf  ;;  %v3740_v42 = vmax.f32 %v3432_v25, %v3684_v44 }
 0x5b4   :  { %3849 = vst [vmem:[%s10615_s4 + $0x2d0] sm:$0xff] %v3793_v38  ;;  %v3739_v23 = vmax.f32 %v3431_v63, %v3683_v11  ;;  %v3544_v7 = vpop.permute.xlu0 %3543 }
 0x5b5   :  { %v3796_v43 = vmax.f32 %v10980_v49, %v3740_v42  ;;  %v3546_v53 = vpop.permute.xlu1 %3545  ;;  %v9505_v42 = vld [vmem:[%s10617_s3] sm:$0xff]  ;;  %v9547_v49 = vld [vmem:[%s10617_s3 + $0x30] sm:$0xff] }
 0x5b6   :  { %v3795_v0 = vmax.f32 %v10981_v27, %v3739_v23  ;;  %v3574_v29 = vsel %vm1505_vm6, %v3544_v7, %v3546_v53  ;;  %v3686_v35 = vsel %vm191_vm1, %v3546_v53, -inf  ;;  %v9533_v23 = vld [vmem:[%s10617_s3 + $0x20] sm:$0xff]  ;;  %v9540_v7 = vld [vmem:[%s10617_s3 + $0x28] sm:$0xff]  ;;  %v9575_v27 = vld [vmem:[%s10617_s3 + $0x50] sm:$0xff] }
 0x5b7   :  { %3852 = vst.msk [vmem:[%s10615_s4 + $0x2e8] sm:$0xff] %vm1687_vm9, %v3796_v43  ;;  %v3685_v14 = vsel %vm190_vm8, %v3574_v29, -inf  ;;  %v3742_v18 = vmax.f32 %v3434_v31, %v3686_v35  ;;  %v9554_v43 = vld [vmem:[%s10617_s3 + $0x38] sm:$0xff]  ;;  %v9561_v53 = vld [vmem:[%s10617_s3 + $0x40] sm:$0xff]  ;;  %v9568_v31 = vld [vmem:[%s10617_s3 + $0x48] sm:$0xff] }
 0x5b8   :  { %3851 = vst [vmem:[%s10615_s4 + $0x2e0] sm:$0xff] %v3795_v0  ;;  %v3741_v46 = vmax.f32 %v3433_v16, %v3685_v14  ;;  %v3888_v39 = vpop.permute.xlu0 %3887  ;;  %v9582_v0 = vld [vmem:[%s10617_s3 + $0x58] sm:$0xff]  ;;  %v9589_v29 = vld [vmem:[%s10617_s3 + $0x60] sm:$0xff]  ;;  %v9596_v35 = vld [vmem:[%s10617_s3 + $0x68] sm:$0xff] }
 0x5b9   :  { %v3798_v58 = vmax.f32 %v10982_v12, %v3742_v18  ;;  %v3890_v41 = vpop.permute.xlu1 %3889  ;;  %3943 = vst.msk [vmem:[#allocation2 + $0x300] sm:$0xff] %vm412_vm2, %v3888_v39  ;;  %v9603_v16 = vld [vmem:[%s10617_s3 + $0x70] sm:$0xff]  ;;  %v9610_v14 = vld [vmem:[%s10617_s3 + $0x78] sm:$0xff] }
 0x5ba   :  { %v3797_v61 = vmax.f32 %v10983_v54, %v3741_v46  ;;  %v3919_v33 = vsel %vm17_vm0, %v3888_v39, %v3890_v41 }
 0x5bb   :  { %3854 = vst.msk [vmem:[%s10615_s4 + $0x2f8] sm:$0xff] %vm1687_vm9, %v3798_v58 }
 0x5bc   :  { %3944 = vst.msk [vmem:[#allocation2 + $0x308] sm:$0xff] %vm414_vm3, %v3919_v33  ;;  %3853 = vst [vmem:[%s10615_s4 + $0x2f0] sm:$0xff] %v3797_v61  ;;  %v3892_v60 = vpop.permute.xlu0 %3891 }
 0x5bd   :  { %v3894_v56 = vpop.permute.xlu1 %3893  ;;  %3945 = vst.msk [vmem:[#allocation2 + $0x310] sm:$0xff] %vm412_vm2, %v3892_v60 }
 0x5be   :  { %v3920_v4 = vsel %vm17_vm0, %v3892_v60, %v3894_v56 }
 0x5bf   :  { %3946 = vst.msk [vmem:[#allocation2 + $0x318] sm:$0xff] %vm414_vm3, %v3920_v4 }
 0x5c0   :  { %v3896_v32 = vpop.permute.xlu0 %3895  ;;  %v9422_v48 = vld [vmem:[#allocation2 + $0x300] sm:$0xff] }
 0x5c1   :  { %v3898_v2 = vpop.permute.xlu1 %3897  ;;  %3947 = vst.msk [vmem:[#allocation2 + $0x320] sm:$0xff] %vm412_vm2, %v3896_v32  ;;  %3991 = vrot.lane.b32.xlu0 %v9422_v48, %s5162_s21 }
 0x5c2   :  { %v3921_v19 = vsel %vm17_vm0, %v3896_v32, %v3898_v2 }
 0x5c3   :  { %v9428_v5 = vld [vmem:[#allocation2 + $0x308] sm:$0xff]  ;;  %3948 = vst.msk [vmem:[#allocation2 + $0x328] sm:$0xff] %vm414_vm3, %v3921_v19 }
 0x5c4   :  { %3993 = vrot.lane.b32.xlu1 %v9428_v5, %s5162_s21  ;;  %v3900_v28 = vpop.permute.xlu0 %3899  ;;  %v9433_v52 = vld [vmem:[#allocation2 + $0x310] sm:$0xff] }
 0x5c5   :  { %v3902_v21 = vpop.permute.xlu1 %3901  ;;  %3949 = vst.msk [vmem:[#allocation2 + $0x330] sm:$0xff] %vm412_vm2, %v3900_v28  ;;  %3995 = vrot.lane.b32.xlu0 %v9433_v52, %s5162_s21 }
 0x5c6   :  { %v3922_v20 = vsel %vm17_vm0, %v3900_v28, %v3902_v21  ;;  %v9439_v1 = vld [vmem:[#allocation2 + $0x318] sm:$0xff] }
 0x5c7   :  { %3950 = vst.msk [vmem:[#allocation2 + $0x338] sm:$0xff] %vm414_vm3, %v3922_v20 }
 0x5c8   :  { %3997 = vrot.lane.b32.xlu1 %v9439_v1, %s5162_s21  ;;  %v3904_v55 = vpop.permute.xlu0 %3903  ;;  %v9444_v59 = vld [vmem:[#allocation2 + $0x320] sm:$0xff] }
 0x5c9   :  { %v3906_v47 = vpop.permute.xlu1 %3905  ;;  %3951 = vst.msk [vmem:[#allocation2 + $0x340] sm:$0xff] %vm412_vm2, %v3904_v55  ;;  %3999 = vrot.lane.b32.xlu0 %v9444_v59, %s5162_s21 }
 0x5ca   :  { %v3923_v13 = vsel %vm17_vm0, %v3904_v55, %v3906_v47  ;;  %v9450_v45 = vld [vmem:[#allocation2 + $0x328] sm:$0xff] }
 0x5cb   :  { %3952 = vst.msk [vmem:[#allocation2 + $0x348] sm:$0xff] %vm414_vm3, %v3923_v13 }
 0x5cc   :  { %4001 = vrot.lane.b32.xlu1 %v9450_v45, %s5162_s21  ;;  %v3908_v3 = vpop.permute.xlu0 %3907  ;;  %v9455_v6 = vld [vmem:[#allocation2 + $0x330] sm:$0xff] }
 0x5cd   :  { %v3910_v34 = vpop.permute.xlu1 %3909  ;;  %3953 = vst.msk [vmem:[#allocation2 + $0x350] sm:$0xff] %vm412_vm2, %v3908_v3  ;;  %4003 = vrot.lane.b32.xlu0 %v9455_v6, %s5162_s21 }
 0x5ce   :  { %v3924_v8 = vsel %vm17_vm0, %v3908_v3, %v3910_v34  ;;  %v9461_v17 = vld [vmem:[#allocation2 + $0x338] sm:$0xff] }
 0x5cf   :  { %3954 = vst.msk [vmem:[#allocation2 + $0x358] sm:$0xff] %vm414_vm3, %v3924_v8 }
 0x5d0   :  { %4005 = vrot.lane.b32.xlu1 %v9461_v17, %s5162_s21  ;;  %v3912_v30 = vpop.permute.xlu0 %3911  ;;  %v9466_v62 = vld [vmem:[#allocation2 + $0x340] sm:$0xff] }
 0x5d1   :  { %v3914_v26 = vpop.permute.xlu1 %3913  ;;  %3955 = vst.msk [vmem:[#allocation2 + $0x360] sm:$0xff] %vm412_vm2, %v3912_v30  ;;  %4007 = vrot.lane.b32.xlu0 %v9466_v62, %s5162_s21 }
 0x5d2   :  { %v3925_v40 = vsel %vm17_vm0, %v3912_v30, %v3914_v26  ;;  %v9472_v51 = vld [vmem:[#allocation2 + $0x348] sm:$0xff] }
 0x5d3   :  { %3956 = vst.msk [vmem:[#allocation2 + $0x368] sm:$0xff] %vm414_vm3, %v3925_v40 }
 0x5d4   :  { %4009 = vrot.lane.b32.xlu1 %v9472_v51, %s5162_s21  ;;  %v3916_v37 = vpop.permute.xlu0 %3915  ;;  %v9477_v24 = vld [vmem:[#allocation2 + $0x350] sm:$0xff] }
 0x5d5   :  { %v3918_v25 = vpop.permute.xlu1 %3917  ;;  %3957 = vst.msk [vmem:[#allocation2 + $0x370] sm:$0xff] %vm412_vm2, %v3916_v37  ;;  %4011 = vrot.lane.b32.xlu0 %v9477_v24, %s5162_s21 }
 0x5d6   :  { %v3926_v50 = vsel %vm17_vm0, %v3916_v37, %v3918_v25  ;;  %v9483_v38 = vld [vmem:[#allocation2 + $0x358] sm:$0xff] }
 0x5d7   :  { %3958 = vst.msk [vmem:[#allocation2 + $0x378] sm:$0xff] %vm414_vm3, %v3926_v50 }
 0x5d8   :  { %4013 = vrot.lane.b32.xlu1 %v9483_v38, %s5162_s21  ;;  %v9488_v15 = vld [vmem:[#allocation2 + $0x360] sm:$0xff] }
 0x5d9   :  { %4015 = vrot.lane.b32.xlu0 %v9488_v15, %s5162_s21 }
 0x5da   :  { %v9492_v44 = vld [vmem:[#allocation2 + $0x368] sm:$0xff] }
 0x5dc   :  { %4017 = vrot.lane.b32.xlu1 %v9492_v44, %s5162_s21  ;;  %v9496_v63 = vld [vmem:[#allocation2 + $0x370] sm:$0xff] }
 0x5dd   :  { %4019 = vrot.lane.b32.xlu0 %v9496_v63, %s5162_s21 }
 0x5de   :  { %v9500_v11 = vld [vmem:[#allocation2 + $0x378] sm:$0xff] }
 0x5e0   :  { %4021 = vrot.lane.b32.xlu1 %v9500_v11, %s5162_s21 }
 0x5e1   :  { %4495 = vrot.lane.b32.xlu0 %v9505_v42, %s5161_s19 }
 0x5e4   :  { %4497 = vrot.lane.b32.xlu1 %v9512_v10, %s5161_s19 }
 0x5e5   :  { %4499 = vrot.lane.b32.xlu0 %v9519_v9, %s5161_s19 }
 0x5e8   :  { %4501 = vrot.lane.b32.xlu1 %v9526_v36, %s5161_s19 }
 0x5e9   :  { %4503 = vrot.lane.b32.xlu0 %v9533_v23, %s5161_s19 }
 0x5ec   :  { %4505 = vrot.lane.b32.xlu1 %v9540_v7, %s5161_s19 }
 0x5ed   :  { %4507 = vrot.lane.b32.xlu0 %v9547_v49, %s5161_s19 }
 0x5f0   :  { %4509 = vrot.lane.b32.xlu1 %v9554_v43, %s5161_s19 }
 0x5f1   :  { %4511 = vrot.lane.b32.xlu0 %v9561_v53, %s5161_s19 }
 0x5f4   :  { %4513 = vrot.lane.b32.xlu1 %v9568_v31, %s5161_s19 }
 0x5f5   :  { %4515 = vrot.lane.b32.xlu0 %v9575_v27, %s5161_s19 }
 0x5f8   :  { %4517 = vrot.lane.b32.xlu1 %v9582_v0, %s5161_s19 }
 0x5f9   :  { %4519 = vrot.lane.b32.xlu0 %v9589_v29, %s5161_s19 }
 0x5fc   :  { %4521 = vrot.lane.b32.xlu1 %v9596_v35, %s5161_s19 }
 0x5fd   :  { %4523 = vrot.lane.b32.xlu0 %v9603_v16, %s5161_s19 }
 0x600   :  { %4525 = vrot.lane.b32.xlu1 %v9610_v14, %s5161_s19 }
 0x633   :  { %v3992_v18 = vpop.permute.xlu0 %3991 }
 0x636   :  { %v3994_v46 = vpop.permute.xlu1 %3993 }
 0x637   :  { %v4023_v39 = vsel %vm614_vm4, %v3992_v18, %v3994_v46  ;;  %v4048_v12 = vmax.f32 %v9428_v5, %v3994_v46  ;;  %v3996_v41 = vpop.permute.xlu0 %3995 }
 0x638   :  { %v4047_v58 = vmax.f32 %v9422_v48, %v4023_v39 }
 0x639   :  { %4081 = vrot.lane.b32.xlu1 %v4048_v12, %s5163_s28 }
 0x63a   :  { %v3998_v54 = vpop.permute.xlu1 %3997  ;;  %4079 = vrot.lane.b32.xlu0 %v4047_v58, %s5163_s28 }
 0x63b   :  { %v4050_v61 = vmax.f32 %v9439_v1, %v3998_v54  ;;  %v4024_v33 = vsel %vm614_vm4, %v3996_v41, %v3998_v54  ;;  %v4000_v56 = vpop.permute.xlu0 %3999 }
 0x63c   :  { %v4049_v60 = vmax.f32 %v9433_v52, %v4024_v33 }
 0x63d   :  { %4085 = vrot.lane.b32.xlu1 %v4050_v61, %s5163_s28 }
 0x63e   :  { %v4002_v4 = vpop.permute.xlu1 %4001  ;;  %4083 = vrot.lane.b32.xlu0 %v4049_v60, %s5163_s28 }
 0x63f   :  { %v4052_v32 = vmax.f32 %v9450_v45, %v4002_v4  ;;  %v4025_v48 = vsel %vm614_vm4, %v4000_v56, %v4002_v4  ;;  %v4004_v19 = vpop.permute.xlu0 %4003 }
 0x640   :  { %v4051_v2 = vmax.f32 %v9444_v59, %v4025_v48 }
 0x641   :  { %4089 = vrot.lane.b32.xlu1 %v4052_v32, %s5163_s28 }
 0x642   :  { %v4006_v5 = vpop.permute.xlu1 %4005  ;;  %4087 = vrot.lane.b32.xlu0 %v4051_v2, %s5163_s28 }
 0x643   :  { %v4054_v28 = vmax.f32 %v9461_v17, %v4006_v5  ;;  %v4026_v52 = vsel %vm614_vm4, %v4004_v19, %v4006_v5  ;;  %v4008_v20 = vpop.permute.xlu0 %4007 }
 0x644   :  { %v4053_v21 = vmax.f32 %v9455_v6, %v4026_v52 }
 0x645   :  { %4093 = vrot.lane.b32.xlu1 %v4054_v28, %s5163_s28 }
 0x646   :  { %v4010_v1 = vpop.permute.xlu1 %4009  ;;  %4091 = vrot.lane.b32.xlu0 %v4053_v21, %s5163_s28  ;;  %v5144_v21 = vld [vmem:[%s10616_s2 + $0x8] sm:$0xff] }
 0x647   :  { %v4056_v55 = vmax.f32 %v9472_v51, %v4010_v1  ;;  %v4027_v59 = vsel %vm614_vm4, %v4008_v20, %v4010_v1  ;;  %v4012_v13 = vpop.permute.xlu0 %4011 }
 0x648   :  { %v4055_v47 = vmax.f32 %v9466_v62, %v4027_v59  ;;  %v5145_v59 = vld [vmem:[%s10616_s2] sm:$0xff] }
 0x649   :  { %4097 = vrot.lane.b32.xlu1 %v4056_v55, %s5163_s28 }
 0x64a   :  { %v4014_v45 = vpop.permute.xlu1 %4013  ;;  %4095 = vrot.lane.b32.xlu0 %v4055_v47, %s5163_s28 }
 0x64b   :  { %v4058_v3 = vmax.f32 %v9483_v38, %v4014_v45  ;;  %v4028_v6 = vsel %vm614_vm4, %v4012_v13, %v4014_v45  ;;  %v4016_v8 = vpop.permute.xlu0 %4015 }
 0x64c   :  { %v4057_v34 = vmax.f32 %v9477_v24, %v4028_v6 }
 0x64d   :  { %4101 = vrot.lane.b32.xlu1 %v4058_v3, %s5163_s28 }
 0x64e   :  { %v4018_v17 = vpop.permute.xlu1 %4017  ;;  %4099 = vrot.lane.b32.xlu0 %v4057_v34, %s5163_s28 }
 0x64f   :  { %v4060_v30 = vmax.f32 %v9492_v44, %v4018_v17  ;;  %v4029_v62 = vsel %vm614_vm4, %v4016_v8, %v4018_v17  ;;  %v4020_v40 = vpop.permute.xlu0 %4019 }
 0x650   :  { %v4059_v26 = vmax.f32 %v9488_v15, %v4029_v62 }
 0x651   :  { %4105 = vrot.lane.b32.xlu1 %v4060_v30, %s5163_s28 }
 0x652   :  { %v4022_v51 = vpop.permute.xlu1 %4021  ;;  %4103 = vrot.lane.b32.xlu0 %v4059_v26, %s5163_s28 }
 0x653   :  { %v4062_v37 = vmax.f32 %v9500_v11, %v4022_v51  ;;  %v4030_v24 = vsel %vm614_vm4, %v4020_v40, %v4022_v51  ;;  %v4496_v50 = vpop.permute.xlu0 %4495 }
 0x654   :  { %v4061_v25 = vmax.f32 %v9496_v63, %v4030_v24  ;;  %4551 = vst.msk [vmem:[#allocation2 + $0x380] sm:$0xff] %vm412_vm2, %v4496_v50 }
 0x655   :  { %4109 = vrot.lane.b32.xlu1 %v4062_v37, %s5163_s28 }
 0x656   :  { %4107 = vrot.lane.b32.xlu0 %v4061_v25, %s5163_s28  ;;  %v4498_v38 = vpop.permute.xlu1 %4497 }
 0x657   :  { %v4527_v15 = vsel %vm17_vm0, %v4496_v50, %v4498_v38  ;;  %v4500_v44 = vpop.permute.xlu0 %4499 }
 0x658   :  { %4552 = vst.msk [vmem:[#allocation2 + $0x388] sm:$0xff] %vm414_vm3, %v4527_v15 }
 0x659   :  { %4553 = vst.msk [vmem:[#allocation2 + $0x390] sm:$0xff] %vm412_vm2, %v4500_v44 }
 0x65a   :  { %v4502_v11 = vpop.permute.xlu1 %4501 }
 0x65b   :  { %v4528_v18 = vsel %vm17_vm0, %v4500_v44, %v4502_v11  ;;  %v4504_v63 = vpop.permute.xlu0 %4503  ;;  %v9699_v45 = vld [vmem:[#allocation2 + $0x380] sm:$0xff] }
 0x65c   :  { %4554 = vst.msk [vmem:[#allocation2 + $0x398] sm:$0xff] %vm414_vm3, %v4528_v18 }
 0x65d   :  { %4555 = vst.msk [vmem:[#allocation2 + $0x3a0] sm:$0xff] %vm412_vm2, %v4504_v63 }
 0x65e   :  { %v4506_v46 = vpop.permute.xlu1 %4505 }
 0x65f   :  { %v4529_v39 = vsel %vm17_vm0, %v4504_v63, %v4506_v46  ;;  %v4508_v12 = vpop.permute.xlu0 %4507  ;;  %v9695_v13 = vld [vmem:[#allocation2 + $0x388] sm:$0xff] }
 0x660   :  { %4556 = vst.msk [vmem:[#allocation2 + $0x3a8] sm:$0xff] %vm414_vm3, %v4529_v39  ;;  %v9707_v6 = vld [vmem:[#allocation2 + $0x390] sm:$0xff]  ;;  %v5146_v39 = vld [vmem:[%s10616_s2 + $0x18] sm:$0xff] }
 0x661   :  { %4557 = vst.msk [vmem:[#allocation2 + $0x3b0] sm:$0xff] %vm412_vm2, %v4508_v12 }
 0x662   :  { %v4510_v58 = vpop.permute.xlu1 %4509 }
 0x663   :  { %v4530_v41 = vsel %vm17_vm0, %v4508_v12, %v4510_v58  ;;  %v4512_v54 = vpop.permute.xlu0 %4511  ;;  %v9703_v3 = vld [vmem:[#allocation2 + $0x398] sm:$0xff]  ;;  %v5147_v58 = vld [vmem:[%s10616_s2 + $0x10] sm:$0xff] }
 0x664   :  { %4558 = vst.msk [vmem:[#allocation2 + $0x3b8] sm:$0xff] %vm414_vm3, %v4530_v41  ;;  %v9715_v8 = vld [vmem:[#allocation2 + $0x3a0] sm:$0xff] }
 0x665   :  { %4559 = vst.msk [vmem:[#allocation2 + $0x3c0] sm:$0xff] %vm412_vm2, %v4512_v54 }
 0x666   :  { %v4514_v61 = vpop.permute.xlu1 %4513 }
 0x667   :  { %v4531_v33 = vsel %vm17_vm0, %v4512_v54, %v4514_v61  ;;  %v4516_v60 = vpop.permute.xlu0 %4515  ;;  %v9711_v34 = vld [vmem:[#allocation2 + $0x3a8] sm:$0xff] }
 0x668   :  { %4560 = vst.msk [vmem:[#allocation2 + $0x3c8] sm:$0xff] %vm414_vm3, %v4531_v33  ;;  %v9723_v30 = vld [vmem:[#allocation2 + $0x3b0] sm:$0xff] }
 0x669   :  { %4561 = vst.msk [vmem:[#allocation2 + $0x3d0] sm:$0xff] %vm412_vm2, %v4516_v60 }
 0x66a   :  { %v4518_v56 = vpop.permute.xlu1 %4517 }
 0x66b   :  { %v4532_v4 = vsel %vm17_vm0, %v4516_v60, %v4518_v56  ;;  %v4520_v32 = vpop.permute.xlu0 %4519  ;;  %v9719_v17 = vld [vmem:[#allocation2 + $0x3b8] sm:$0xff]  ;;  %v5148_v60 = vld [vmem:[%s10616_s2 + $0x28] sm:$0xff] }
 0x66c   :  { %4562 = vst.msk [vmem:[#allocation2 + $0x3d8] sm:$0xff] %vm414_vm3, %v4532_v4  ;;  %v9731_v51 = vld [vmem:[#allocation2 + $0x3c0] sm:$0xff] }
 0x66d   :  { %4563 = vst.msk [vmem:[#allocation2 + $0x3e0] sm:$0xff] %vm412_vm2, %v4520_v32  ;;  %v5149_v4 = vld [vmem:[%s10616_s2 + $0x20] sm:$0xff] }
 0x66e   :  { %v4522_v48 = vpop.permute.xlu1 %4521 }
 0x66f   :  { %v4533_v2 = vsel %vm17_vm0, %v4520_v32, %v4522_v48  ;;  %v4524_v19 = vpop.permute.xlu0 %4523  ;;  %v9727_v40 = vld [vmem:[#allocation2 + $0x3c8] sm:$0xff] }
 0x670   :  { %4564 = vst.msk [vmem:[#allocation2 + $0x3e8] sm:$0xff] %vm414_vm3, %v4533_v2  ;;  %v9739_v50 = vld [vmem:[#allocation2 + $0x3d0] sm:$0xff]  ;;  %v5150_v2 = vld [vmem:[%s10616_s2 + $0x38] sm:$0xff] }
 0x671   :  { %4565 = vst.msk [vmem:[#allocation2 + $0x3f0] sm:$0xff] %vm412_vm2, %v4524_v19 }
 0x672   :  { %v4526_v5 = vpop.permute.xlu1 %4525 }
 0x673   :  { %v4534_v28 = vsel %vm17_vm0, %v4524_v19, %v4526_v5  ;;  %v9735_v37 = vld [vmem:[#allocation2 + $0x3d8] sm:$0xff] }
 0x674   :  { %4566 = vst.msk [vmem:[#allocation2 + $0x3f8] sm:$0xff] %vm414_vm3, %v4534_v28  ;;  %v9747_v15 = vld [vmem:[#allocation2 + $0x3e0] sm:$0xff] }
 0x677   :  { %v9743_v38 = vld [vmem:[#allocation2 + $0x3e8] sm:$0xff] }
 0x678   :  { %v9756_v46 = vld [vmem:[#allocation2 + $0x3f0] sm:$0xff] }
 0x67b   :  { %v9751_v18 = vld [vmem:[#allocation2 + $0x3f8] sm:$0xff] }
 0x6ab   :  { %v4082_v52 = vpop.permute.xlu1 %4081 }
 0x6ac   :  { %v9683_v20 = vmax.f32 %v5144_v21, %v4082_v52  ;;  %v4080_v1 = vpop.permute.xlu0 %4079 }
 0x6ad   :  { %v4111_v55 = vsel %vm835_vm5, %v4080_v1, %v4082_v52  ;;  %v5151_v52 = vld [vmem:[%s10616_s2 + $0x30] sm:$0xff] }
 0x6ae   :  { %v9689_v47 = vmax.f32 %v5145_v59, %v4111_v55  ;;  %4169 = vrot.lane.b32.xlu1 %v9683_v20, %s5161_s19  ;;  %v5152_v55 = vld [vmem:[%s10616_s2 + $0x48] sm:$0xff] }
 0x6af   :  { %v4086_v62 = vpop.permute.xlu1 %4085 }
 0x6b0   :  { %4167 = vrot.lane.b32.xlu0 %v9689_v47, %s5161_s19  ;;  %v4084_v26 = vpop.permute.xlu0 %4083  ;;  %v9761_v12 = vmax.f32 %v5146_v39, %v4086_v62  ;;  %v5155_v39 = vld [vmem:[%s10616_s2 + $0x50] sm:$0xff] }
 0x6b1   :  { %v4112_v63 = vsel %vm835_vm5, %v4084_v26, %v4086_v62  ;;  %v5153_v62 = vld [vmem:[%s10616_s2 + $0x40] sm:$0xff] }
 0x6b2   :  { %4601 = vrot.lane.b32.xlu1 %v9695_v13, %s5162_s21  ;;  %v9768_v41 = vmax.f32 %v5147_v58, %v4112_v63 }
 0x6b3   :  { %v4090_v24 = vpop.permute.xlu1 %4089 }
 0x6b4   :  { %4599 = vrot.lane.b32.xlu0 %v9699_v45, %s5162_s21  ;;  %v4088_v25 = vpop.permute.xlu0 %4087  ;;  %v9776_v56 = vmax.f32 %v5148_v60, %v4090_v24 }
 0x6b5   :  { %v4113_v33 = vsel %vm835_vm5, %v4088_v25, %v4090_v24 }
 0x6b6   :  { %4605 = vrot.lane.b32.xlu1 %v9703_v3, %s5162_s21  ;;  %v9783_v32 = vmax.f32 %v5149_v4, %v4113_v33 }
 0x6b7   :  { %v4094_v44 = vpop.permute.xlu1 %4093 }
 0x6b8   :  { %4603 = vrot.lane.b32.xlu0 %v9707_v6, %s5162_s21  ;;  %v4092_v11 = vpop.permute.xlu0 %4091  ;;  %v9791_v19 = vmax.f32 %v5150_v2, %v4094_v44 }
 0x6b9   :  { %v4114_v48 = vsel %vm835_vm5, %v4092_v11, %v4094_v44  ;;  %v5154_v11 = vld [vmem:[%s10616_s2 + $0x58] sm:$0xff] }
 0x6ba   :  { %4609 = vrot.lane.b32.xlu1 %v9711_v34, %s5162_s21  ;;  %v9798_v21 = vmax.f32 %v5151_v52, %v4114_v48  ;;  %v5157_v48 = vld [vmem:[%s10616_s2 + $0x60] sm:$0xff] }
 0x6bb   :  { %v4098_v54 = vpop.permute.xlu1 %4097 }
 0x6bc   :  { %4607 = vrot.lane.b32.xlu0 %v9715_v8, %s5162_s21  ;;  %v4096_v61 = vpop.permute.xlu0 %4095  ;;  %v9806_v59 = vmax.f32 %v5152_v55, %v4098_v54 }
 0x6bd   :  { %v4115_v1 = vsel %vm835_vm5, %v4096_v61, %v4098_v54  ;;  %v5156_v61 = vld [vmem:[%s10616_s2 + $0x68] sm:$0xff] }
 0x6be   :  { %4613 = vrot.lane.b32.xlu1 %v9719_v17, %s5162_s21  ;;  %v9813_v26 = vmax.f32 %v5153_v62, %v4115_v1  ;;  %v5159_v1 = vld [vmem:[%s10616_s2 + $0x70] sm:$0xff] }
 0x6bf   :  { %v4102_v5 = vpop.permute.xlu1 %4101 }
 0x6c0   :  { %4611 = vrot.lane.b32.xlu0 %v9723_v30, %s5162_s21  ;;  %v4100_v28 = vpop.permute.xlu0 %4099  ;;  %v9821_v63 = vmax.f32 %v5154_v11, %v4102_v5 }
 0x6c1   :  { %v4116_v44 = vsel %vm835_vm5, %v4100_v28, %v4102_v5  ;;  %v5158_v28 = vld [vmem:[%s10616_s2 + $0x78] sm:$0xff] }
 0x6c2   :  { %4617 = vrot.lane.b32.xlu1 %v9727_v40, %s5162_s21  ;;  %v9828_v58 = vmax.f32 %v5155_v39, %v4116_v44 }
 0x6c3   :  { %v4106_v24 = vpop.permute.xlu1 %4105 }
 0x6c4   :  { %4615 = vrot.lane.b32.xlu0 %v9731_v51, %s5162_s21  ;;  %v4104_v25 = vpop.permute.xlu0 %4103  ;;  %v9836_v33 = vmax.f32 %v5156_v61, %v4106_v24 }
 0x6c5   :  { %v4117_v54 = vsel %vm835_vm5, %v4104_v25, %v4106_v24 }
 0x6c6   :  { %4621 = vrot.lane.b32.xlu1 %v9735_v37, %s5162_s21  ;;  %v9843_v2 = vmax.f32 %v5157_v48, %v4117_v54 }
 0x6c7   :  { %v4110_v60 = vpop.permute.xlu1 %4109 }
 0x6c8   :  { %4619 = vrot.lane.b32.xlu0 %v9739_v50, %s5162_s21  ;;  %v4108_v4 = vpop.permute.xlu0 %4107  ;;  %v9851_v52 = vmax.f32 %v5158_v28, %v4110_v60 }
 0x6c9   :  { %v4118_v5 = vsel %vm835_vm5, %v4108_v4, %v4110_v60 }
 0x6ca   :  { %4625 = vrot.lane.b32.xlu1 %v9743_v38, %s5162_s21  ;;  %v9858_v55 = vmax.f32 %v5159_v1, %v4118_v5 }
 0x6cc   :  { %4623 = vrot.lane.b32.xlu0 %v9747_v15, %s5162_s21 }
 0x6ce   :  { %4629 = vrot.lane.b32.xlu1 %v9751_v18, %s5162_s21 }
 0x6d0   :  { %4627 = vrot.lane.b32.xlu0 %v9756_v46, %s5162_s21 }
 0x6d2   :  { %4173 = vrot.lane.b32.xlu1 %v9761_v12, %s5161_s19 }
 0x6d4   :  { %4171 = vrot.lane.b32.xlu0 %v9768_v41, %s5161_s19 }
 0x6d6   :  { %4177 = vrot.lane.b32.xlu1 %v9776_v56, %s5161_s19 }
 0x6d8   :  { %4175 = vrot.lane.b32.xlu0 %v9783_v32, %s5161_s19 }
 0x6da   :  { %4181 = vrot.lane.b32.xlu1 %v9791_v19, %s5161_s19 }
 0x6dc   :  { %4179 = vrot.lane.b32.xlu0 %v9798_v21, %s5161_s19 }
 0x6de   :  { %4185 = vrot.lane.b32.xlu1 %v9806_v59, %s5161_s19 }
 0x6e0   :  { %4183 = vrot.lane.b32.xlu0 %v9813_v26, %s5161_s19 }
 0x6e2   :  { %4189 = vrot.lane.b32.xlu1 %v9821_v63, %s5161_s19 }
 0x6e4   :  { %4187 = vrot.lane.b32.xlu0 %v9828_v58, %s5161_s19 }
 0x6e6   :  { %4193 = vrot.lane.b32.xlu1 %v9836_v33, %s5161_s19 }
 0x6e8   :  { %4191 = vrot.lane.b32.xlu0 %v9843_v2, %s5161_s19 }
 0x6ea   :  { %4197 = vrot.lane.b32.xlu1 %v9851_v52, %s5161_s19 }
 0x6ec   :  { %4195 = vrot.lane.b32.xlu0 %v9858_v55, %s5161_s19 }
 0x720   :  { %v4170_v62 = vpop.permute.xlu1 %4169 }
 0x722   :  { %v4168_v24 = vpop.permute.xlu0 %4167 }
 0x723   :  { %v4199_v25 = vsel %vm17_vm0, %v4168_v24, %v4170_v62  ;;  %4223 = vst.msk [vmem:[#allocation2 + $0x300] sm:$0xff] %vm412_vm2, %v4168_v24 }
 0x724   :  { %4224 = vst.msk [vmem:[#allocation2 + $0x308] sm:$0xff] %vm414_vm3, %v4199_v25  ;;  %v4602_v44 = vpop.permute.xlu1 %4601 }
 0x725   :  { %v4656_v11 = vmax.f32 %v9695_v13, %v4602_v44 }
 0x726   :  { %v4600_v39 = vpop.permute.xlu0 %4599 }
 0x727   :  { %v4631_v54 = vsel %vm614_vm4, %v4600_v39, %v4602_v44  ;;  %4689 = vrot.lane.b32.xlu1 %v4656_v11, %s5163_s28 }
 0x728   :  { %v4655_v61 = vmax.f32 %v9699_v45, %v4631_v54  ;;  %v4606_v60 = vpop.permute.xlu1 %4605 }
 0x729   :  { %v4658_v4 = vmax.f32 %v9703_v3, %v4606_v60 }
 0x72a   :  { %4687 = vrot.lane.b32.xlu0 %v4655_v61, %s5163_s28  ;;  %v4604_v48 = vpop.permute.xlu0 %4603 }
 0x72b   :  { %v4632_v5 = vsel %vm614_vm4, %v4604_v48, %v4606_v60  ;;  %4693 = vrot.lane.b32.xlu1 %v4658_v4, %s5163_s28 }
 0x72c   :  { %v4657_v28 = vmax.f32 %v9707_v6, %v4632_v5  ;;  %v4610_v13 = vpop.permute.xlu1 %4609 }
 0x72d   :  { %v4660_v1 = vmax.f32 %v9711_v34, %v4610_v13 }
 0x72e   :  { %4691 = vrot.lane.b32.xlu0 %v4657_v28, %s5163_s28  ;;  %v4608_v62 = vpop.permute.xlu0 %4607 }
 0x72f   :  { %v4633_v45 = vsel %vm614_vm4, %v4608_v62, %v4610_v13  ;;  %4697 = vrot.lane.b32.xlu1 %v4660_v1, %s5163_s28 }
 0x730   :  { %v4659_v3 = vmax.f32 %v9715_v8, %v4633_v45  ;;  %v4614_v24 = vpop.permute.xlu1 %4613 }
 0x731   :  { %v4662_v25 = vmax.f32 %v9719_v17, %v4614_v24 }
 0x732   :  { %4695 = vrot.lane.b32.xlu0 %v4659_v3, %s5163_s28  ;;  %v4612_v44 = vpop.permute.xlu0 %4611 }
 0x733   :  { %v4634_v6 = vsel %vm614_vm4, %v4612_v44, %v4614_v24  ;;  %4701 = vrot.lane.b32.xlu1 %v4662_v25, %s5163_s28  ;;  %v9907_v24 = vld [vmem:[#allocation2 + $0x308] sm:$0xff]  ;;  %v9914_v25 = vld [vmem:[#allocation2 + $0x300] sm:$0xff] }
 0x734   :  { %v4661_v34 = vmax.f32 %v9723_v30, %v4634_v6  ;;  %v4618_v11 = vpop.permute.xlu1 %4617 }
 0x735   :  { %v4664_v39 = vmax.f32 %v9727_v40, %v4618_v11 }
 0x736   :  { %4699 = vrot.lane.b32.xlu0 %v4661_v34, %s5163_s28  ;;  %v4616_v54 = vpop.permute.xlu0 %4615 }
 0x737   :  { %v4635_v8 = vsel %vm614_vm4, %v4616_v54, %v4618_v11  ;;  %4705 = vrot.lane.b32.xlu1 %v4664_v39, %s5163_s28 }
 0x738   :  { %v4663_v17 = vmax.f32 %v9731_v51, %v4635_v8  ;;  %v4622_v61 = vpop.permute.xlu1 %4621 }
 0x739   :  { %v4666_v60 = vmax.f32 %v9735_v37, %v4622_v61 }
 0x73a   :  { %4703 = vrot.lane.b32.xlu0 %v4663_v17, %s5163_s28  ;;  %v4620_v4 = vpop.permute.xlu0 %4619 }
 0x73b   :  { %v4636_v30 = vsel %vm614_vm4, %v4620_v4, %v4622_v61  ;;  %4709 = vrot.lane.b32.xlu1 %v4666_v60, %s5163_s28 }
 0x73c   :  { %v4665_v40 = vmax.f32 %v9739_v50, %v4636_v30  ;;  %v4626_v48 = vpop.permute.xlu1 %4625 }
 0x73d   :  { %v4668_v5 = vmax.f32 %v9743_v38, %v4626_v48 }
 0x73e   :  { %4707 = vrot.lane.b32.xlu0 %v4665_v40, %s5163_s28  ;;  %v4624_v28 = vpop.permute.xlu0 %4623 }
 0x73f   :  { %v4637_v51 = vsel %vm614_vm4, %v4624_v28, %v4626_v48  ;;  %4713 = vrot.lane.b32.xlu1 %v4668_v5, %s5163_s28 }
 0x740   :  { %v4667_v37 = vmax.f32 %v9747_v15, %v4637_v51  ;;  %v4630_v13 = vpop.permute.xlu1 %4629 }
 0x741   :  { %v4670_v1 = vmax.f32 %v9751_v18, %v4630_v13 }
 0x742   :  { %4711 = vrot.lane.b32.xlu0 %v4667_v37, %s5163_s28  ;;  %v4628_v62 = vpop.permute.xlu0 %4627 }
 0x743   :  { %v4638_v50 = vsel %vm614_vm4, %v4628_v62, %v4630_v13  ;;  %4717 = vrot.lane.b32.xlu1 %v4670_v1, %s5163_s28 }
 0x744   :  { %v4669_v38 = vmax.f32 %v9756_v46, %v4638_v50  ;;  %v4174_v45 = vpop.permute.xlu1 %4173 }
 0x746   :  { %4715 = vrot.lane.b32.xlu0 %v4669_v38, %s5163_s28  ;;  %v4172_v3 = vpop.permute.xlu0 %4171 }
 0x747   :  { %v4200_v15 = vsel %vm17_vm0, %v4172_v3, %v4174_v45  ;;  %4225 = vst.msk [vmem:[#allocation2 + $0x310] sm:$0xff] %vm412_vm2, %v4172_v3  ;;  %4273 = vrot.lane.b32.xlu1 %v9907_v24, %s5164_s0 }
 0x748   :  { %4226 = vst.msk [vmem:[#allocation2 + $0x318] sm:$0xff] %vm414_vm3, %v4200_v15  ;;  %v4178_v18 = vpop.permute.xlu1 %4177 }
 0x74a   :  { %4271 = vrot.lane.b32.xlu0 %v9914_v25, %s5164_s0  ;;  %v4176_v46 = vpop.permute.xlu0 %4175 }
 0x74b   :  { %v4201_v44 = vsel %vm17_vm0, %v4176_v46, %v4178_v18  ;;  %4227 = vst.msk [vmem:[#allocation2 + $0x320] sm:$0xff] %vm412_vm2, %v4176_v46 }
 0x74c   :  { %4228 = vst.msk [vmem:[#allocation2 + $0x328] sm:$0xff] %vm414_vm3, %v4201_v44  ;;  %v4182_v6 = vpop.permute.xlu1 %4181 }
 0x74e   :  { %v4180_v34 = vpop.permute.xlu0 %4179  ;;  %v9921_v11 = vld [vmem:[#allocation2 + $0x310] sm:$0xff] }
 0x74f   :  { %v4202_v39 = vsel %vm17_vm0, %v4180_v34, %v4182_v6  ;;  %4229 = vst.msk [vmem:[#allocation2 + $0x330] sm:$0xff] %vm412_vm2, %v4180_v34  ;;  %4275 = vrot.lane.b32.xlu0 %v9921_v11, %s5164_s0  ;;  %v9927_v54 = vld [vmem:[#allocation2 + $0x318] sm:$0xff] }
 0x750   :  { %4230 = vst.msk [vmem:[#allocation2 + $0x338] sm:$0xff] %vm414_vm3, %v4202_v39  ;;  %v4186_v8 = vpop.permute.xlu1 %4185  ;;  %4277 = vrot.lane.b32.xlu1 %v9927_v54, %s5164_s0 }
 0x752   :  { %v4184_v17 = vpop.permute.xlu0 %4183  ;;  %v9932_v61 = vld [vmem:[#allocation2 + $0x320] sm:$0xff] }
 0x753   :  { %v4203_v60 = vsel %vm17_vm0, %v4184_v17, %v4186_v8  ;;  %4231 = vst.msk [vmem:[#allocation2 + $0x340] sm:$0xff] %vm412_vm2, %v4184_v17  ;;  %4279 = vrot.lane.b32.xlu0 %v9932_v61, %s5164_s0  ;;  %v9938_v4 = vld [vmem:[#allocation2 + $0x328] sm:$0xff] }
 0x754   :  { %4232 = vst.msk [vmem:[#allocation2 + $0x348] sm:$0xff] %vm414_vm3, %v4203_v60  ;;  %v4190_v30 = vpop.permute.xlu1 %4189  ;;  %4281 = vrot.lane.b32.xlu1 %v9938_v4, %s5164_s0 }
 0x756   :  { %v4188_v40 = vpop.permute.xlu0 %4187  ;;  %v9943_v48 = vld [vmem:[#allocation2 + $0x330] sm:$0xff] }
 0x757   :  { %v4204_v5 = vsel %vm17_vm0, %v4188_v40, %v4190_v30  ;;  %4233 = vst.msk [vmem:[#allocation2 + $0x350] sm:$0xff] %vm412_vm2, %v4188_v40  ;;  %4283 = vrot.lane.b32.xlu0 %v9943_v48, %s5164_s0  ;;  %v9949_v28 = vld [vmem:[#allocation2 + $0x338] sm:$0xff] }
 0x758   :  { %4234 = vst.msk [vmem:[#allocation2 + $0x358] sm:$0xff] %vm414_vm3, %v4204_v5  ;;  %v4194_v51 = vpop.permute.xlu1 %4193  ;;  %4285 = vrot.lane.b32.xlu1 %v9949_v28, %s5164_s0 }
 0x75a   :  { %v4192_v37 = vpop.permute.xlu0 %4191  ;;  %v9954_v13 = vld [vmem:[#allocation2 + $0x340] sm:$0xff] }
 0x75b   :  { %v4205_v1 = vsel %vm17_vm0, %v4192_v37, %v4194_v51  ;;  %4235 = vst.msk [vmem:[#allocation2 + $0x360] sm:$0xff] %vm412_vm2, %v4192_v37  ;;  %4287 = vrot.lane.b32.xlu0 %v9954_v13, %s5164_s0  ;;  %v9960_v62 = vld [vmem:[#allocation2 + $0x348] sm:$0xff] }
 0x75c   :  { %4236 = vst.msk [vmem:[#allocation2 + $0x368] sm:$0xff] %vm414_vm3, %v4205_v1  ;;  %4289 = vrot.lane.b32.xlu1 %v9960_v62, %s5164_s0  ;;  %v4198_v50 = vpop.permute.xlu1 %4197 }
 0x75e   :  { %v4196_v38 = vpop.permute.xlu0 %4195  ;;  %v9965_v45 = vld [vmem:[#allocation2 + $0x350] sm:$0xff] }
 0x75f   :  { %v4206_v3 = vsel %vm17_vm0, %v4196_v38, %v4198_v50  ;;  %4237 = vst.msk [vmem:[#allocation2 + $0x370] sm:$0xff] %vm412_vm2, %v4196_v38  ;;  %4291 = vrot.lane.b32.xlu0 %v9965_v45, %s5164_s0  ;;  %v9971_v15 = vld [vmem:[#allocation2 + $0x358] sm:$0xff] }
 0x760   :  { %4238 = vst.msk [vmem:[#allocation2 + $0x378] sm:$0xff] %vm414_vm3, %v4206_v3  ;;  %4293 = vrot.lane.b32.xlu1 %v9971_v15, %s5164_s0 }
 0x762   :  { %v9976_v18 = vld [vmem:[#allocation2 + $0x360] sm:$0xff] }
 0x763   :  { %4295 = vrot.lane.b32.xlu0 %v9976_v18, %s5164_s0  ;;  %v9980_v46 = vld [vmem:[#allocation2 + $0x368] sm:$0xff] }
 0x764   :  { %4297 = vrot.lane.b32.xlu1 %v9980_v46, %s5164_s0 }
 0x766   :  { %v9984_v44 = vld [vmem:[#allocation2 + $0x370] sm:$0xff] }
 0x767   :  { %4299 = vrot.lane.b32.xlu0 %v9984_v44, %s5164_s0 }
 0x799   :  { %v4690_v6 = vpop.permute.xlu1 %4689 }
 0x79a   :  { %v9989_v34 = vmax.f32 %v9512_v10, %v4690_v6 }
 0x79c   :  { %4777 = vrot.lane.b32.xlu0 %v9989_v34, %s5161_s19  ;;  %v4688_v39 = vpop.permute.xlu0 %4687 }
 0x79d   :  { %v4719_v8 = vsel %vm835_vm5, %v4688_v39, %v4690_v6  ;;  %v4694_v17 = vpop.permute.xlu1 %4693 }
 0x79e   :  { %v9995_v60 = vmax.f32 %v9505_v42, %v4719_v8  ;;  %v9998_v30 = vmax.f32 %v9526_v36, %v4694_v17 }
 0x7a0   :  { %10984 = vst [vmem:[#allocation30_spill] sm:$0xff] %v9995_v60  ;;  %10985 = vst [vmem:[#allocation32_spill] sm:$0xff] %v9998_v30  ;;  %4781 = vrot.lane.b32.xlu0 %v9998_v30, %s5161_s19  ;;  %4775 = vrot.lane.b32.xlu1 %v9995_v60, %s5161_s19  ;;  %v4692_v10 = vpop.permute.xlu0 %4691 }
 0x7a1   :  { %v4720_v40 = vsel %vm835_vm5, %v4692_v10, %v4694_v17  ;;  %v4698_v5 = vpop.permute.xlu1 %4697 }
 0x7a2   :  { %v10006_v51 = vmax.f32 %v9519_v9, %v4720_v40  ;;  %v10009_v37 = vmax.f32 %v9540_v7, %v4698_v5 }
 0x7a4   :  { %10986 = vst [vmem:[#allocation20_spill] sm:$0xff] %v10006_v51  ;;  %10987 = vst [vmem:[#allocation4_spill] sm:$0xff] %v10009_v37  ;;  %4785 = vrot.lane.b32.xlu0 %v10009_v37, %s5161_s19  ;;  %4779 = vrot.lane.b32.xlu1 %v10006_v51, %s5161_s19  ;;  %v4696_v42 = vpop.permute.xlu0 %4695 }
 0x7a5   :  { %v4721_v36 = vsel %vm835_vm5, %v4696_v42, %v4698_v5  ;;  %v4702_v1 = vpop.permute.xlu1 %4701 }
 0x7a6   :  { %v10017_v50 = vmax.f32 %v9533_v23, %v4721_v36  ;;  %v10020_v38 = vmax.f32 %v9554_v43, %v4702_v1 }
 0x7a8   :  { %10988 = vst [vmem:[#allocation5_spill] sm:$0xff] %v10017_v50  ;;  %10989 = vst [vmem:[#allocation22_spill] sm:$0xff] %v10020_v38  ;;  %4789 = vrot.lane.b32.xlu0 %v10020_v38, %s5161_s19  ;;  %4783 = vrot.lane.b32.xlu1 %v10017_v50, %s5161_s19  ;;  %v4700_v9 = vpop.permute.xlu0 %4699 }
 0x7a9   :  { %v4722_v7 = vsel %vm835_vm5, %v4700_v9, %v4702_v1  ;;  %v4706_v3 = vpop.permute.xlu1 %4705 }
 0x7aa   :  { %v10028_v6 = vmax.f32 %v9547_v49, %v4722_v7  ;;  %v10031_v39 = vmax.f32 %v9568_v31, %v4706_v3 }
 0x7ac   :  { %10990 = vst [vmem:[#allocation6_spill] sm:$0xff] %v10028_v6  ;;  %10991 = vst [vmem:[#allocation7_spill] sm:$0xff] %v10031_v39  ;;  %4793 = vrot.lane.b32.xlu0 %v10031_v39, %s5161_s19  ;;  %4787 = vrot.lane.b32.xlu1 %v10028_v6, %s5161_s19  ;;  %v4704_v23 = vpop.permute.xlu0 %4703 }
 0x7ad   :  { %v4723_v43 = vsel %vm835_vm5, %v4704_v23, %v4706_v3  ;;  %v4710_v8 = vpop.permute.xlu1 %4709  ;;  %v4254_v23 = vld [vmem:[#allocation2 + $0x378] sm:$0xff] }
 0x7ae   :  { %v10039_v17 = vmax.f32 %v9561_v53, %v4723_v43  ;;  %v10042_v10 = vmax.f32 %v9582_v0, %v4710_v8 }
 0x7b0   :  { %10992 = vst [vmem:[#allocation23_spill] sm:$0xff] %v10039_v17  ;;  %10993 = vst [vmem:[#allocation8_spill] sm:$0xff] %v10042_v10  ;;  %4797 = vrot.lane.b32.xlu0 %v10042_v10, %s5161_s19  ;;  %4791 = vrot.lane.b32.xlu1 %v10039_v17, %s5161_s19  ;;  %v4708_v49 = vpop.permute.xlu0 %4707 }
 0x7b1   :  { %v4724_v31 = vsel %vm835_vm5, %v4708_v49, %v4710_v8  ;;  %v4714_v40 = vpop.permute.xlu1 %4713 }
 0x7b2   :  { %v10050_v5 = vmax.f32 %v9575_v27, %v4724_v31  ;;  %v10053_v42 = vmax.f32 %v9596_v35, %v4714_v40 }
 0x7b4   :  { %10994 = vst [vmem:[#allocation9_spill] sm:$0xff] %v10050_v5  ;;  %10995 = vst [vmem:[#allocation25_spill] sm:$0xff] %v10053_v42  ;;  %4801 = vrot.lane.b32.xlu0 %v10053_v42, %s5161_s19  ;;  %4795 = vrot.lane.b32.xlu1 %v10050_v5, %s5161_s19  ;;  %v4712_v53 = vpop.permute.xlu0 %4711 }
 0x7b5   :  { %v4725_v0 = vsel %vm835_vm5, %v4712_v53, %v4714_v40  ;;  %v4718_v36 = vpop.permute.xlu1 %4717 }
 0x7b6   :  { %v10061_v1 = vmax.f32 %v9589_v29, %v4725_v0  ;;  %v10064_v9 = vmax.f32 %v9610_v14, %v4718_v36 }
 0x7b8   :  { %10996 = vst [vmem:[#allocation24_spill] sm:$0xff] %v10061_v1  ;;  %10997 = vst [vmem:[#allocation10_spill] sm:$0xff] %v10064_v9  ;;  %4805 = vrot.lane.b32.xlu0 %v10064_v9, %s5161_s19  ;;  %4799 = vrot.lane.b32.xlu1 %v10061_v1, %s5161_s19  ;;  %v4716_v27 = vpop.permute.xlu0 %4715 }
 0x7b9   :  { %v4726_v35 = vsel %vm835_vm5, %v4716_v27, %v4718_v36  ;;  %v10074_v3 = vpop.permute.xlu1 %4273 }
 0x7ba   :  { %v10072_v7 = vmax.f32 %v9603_v16, %v4726_v35 }
 0x7bc   :  { %10998 = vst [vmem:[#allocation11_spill] sm:$0xff] %v10072_v7  ;;  %4343 = vrot.lane.b32.xlu0 %v9914_v25, %s5165_s9  ;;  %4803 = vrot.lane.b32.xlu1 %v10072_v7, %s5161_s19  ;;  %v4272_v29 = vpop.permute.xlu0 %4271 }
 0x7bd   :  { %v10082_v14 = vsel %vm1320_vm14, %v4272_v29, %v10074_v3 }
 0x7be   :  { %v4327_v38 = vsel %vm188_vm7, %v10082_v14, -inf }
 0x7c0   :  { %4347 = vrot.lane.b32.xlu0 %v9921_v11, %s5165_s9  ;;  %4301 = vrot.lane.b32.xlu1 %v4254_v23, %s5164_s0 }
 0x7c1   :  { %v4276_v16 = vpop.permute.xlu0 %4275 }
 0x7c2   :  { %v10087_v43 = vpop.permute.xlu1 %4277 }
 0x7c3   :  { %v10091_v25 = vsel %vm1320_vm14, %v4276_v16, %v10087_v43  ;;  %v4330_v30 = vsel %vm189_vm15, %v10087_v43, -inf }
 0x7c4   :  { %4351 = vrot.lane.b32.xlu0 %v9932_v61, %s5165_s9  ;;  %4345 = vrot.lane.b32.xlu1 %v9907_v24, %s5165_s9 }
 0x7c5   :  { %v4280_v8 = vpop.permute.xlu0 %4279 }
 0x7c6   :  { %v10097_v49 = vpop.permute.xlu1 %4281 }
 0x7c7   :  { %v10101_v11 = vsel %vm1320_vm14, %v4280_v8, %v10097_v49  ;;  %v4332_v43 = vsel %vm189_vm15, %v10097_v49, -inf }
 0x7c8   :  { %4355 = vrot.lane.b32.xlu0 %v9943_v48, %s5165_s9  ;;  %4349 = vrot.lane.b32.xlu1 %v9927_v54, %s5165_s9 }
 0x7c9   :  { %v4284_v31 = vpop.permute.xlu0 %4283 }
 0x7ca   :  { %v10107_v40 = vpop.permute.xlu1 %4285 }
 0x7cb   :  { %v10111_v61 = vsel %vm1320_vm14, %v4284_v31, %v10107_v40 }
 0x7cc   :  { %4359 = vrot.lane.b32.xlu0 %v9954_v13, %s5165_s9  ;;  %4353 = vrot.lane.b32.xlu1 %v9938_v4, %s5165_s9 }
 0x7cd   :  { %v4288_v24 = vpop.permute.xlu0 %4287 }
 0x7ce   :  { %v10117_v53 = vpop.permute.xlu1 %4289 }
 0x7cf   :  { %v10121_v48 = vsel %vm1320_vm14, %v4288_v24, %v10117_v53 }
 0x7d0   :  { %4363 = vrot.lane.b32.xlu0 %v9965_v45, %s5165_s9  ;;  %4357 = vrot.lane.b32.xlu1 %v9949_v28, %s5165_s9 }
 0x7d1   :  { %v4292_v54 = vpop.permute.xlu0 %4291 }
 0x7d2   :  { %v10127_v0 = vpop.permute.xlu1 %4293 }
 0x7d3   :  { %v10131_v13 = vsel %vm1320_vm14, %v4292_v54, %v10127_v0 }
 0x7d4   :  { %4367 = vrot.lane.b32.xlu0 %v9976_v18, %s5165_s9  ;;  %4361 = vrot.lane.b32.xlu1 %v9960_v62, %s5165_s9 }
 0x7d5   :  { %v4296_v4 = vpop.permute.xlu0 %4295 }
 0x7d6   :  { %v10137_v36 = vpop.permute.xlu1 %4297 }
 0x7d7   :  { %v10141_v45 = vsel %vm1320_vm14, %v4296_v4, %v10137_v36 }
 0x7d8   :  { %4371 = vrot.lane.b32.xlu0 %v9984_v44, %s5165_s9  ;;  %4365 = vrot.lane.b32.xlu1 %v9971_v15, %s5165_s9 }
 0x7d9   :  { %v10150_v28 = vpop.permute.xlu0 %4299 }
 0x7dc   :  { %4369 = vrot.lane.b32.xlu1 %v9980_v46, %s5165_s9 }
 0x7e0   :  { %4373 = vrot.lane.b32.xlu1 %v4254_v23, %s5165_s9 }
 0x80e   :  { %v4778_v62 = vpop.permute.xlu0 %4777 }
 0x812   :  { %v4776_v18 = vpop.permute.xlu1 %4775  ;;  %v4782_v27 = vpop.permute.xlu0 %4781 }
 0x813   :  { %v4807_v35 = vsel %vm17_vm0, %v4776_v18, %v4778_v62  ;;  %4831 = vst.msk [vmem:[#allocation2 + $0x380] sm:$0xff] %vm412_vm2, %v4776_v18 }
 0x814   :  { %4832 = vst.msk [vmem:[#allocation2 + $0x388] sm:$0xff] %vm414_vm3, %v4807_v35 }
 0x816   :  { %v4780_v44 = vpop.permute.xlu1 %4779  ;;  %v4786_v29 = vpop.permute.xlu0 %4785 }
 0x817   :  { %v4808_v15 = vsel %vm17_vm0, %v4780_v44, %v4782_v27  ;;  %4833 = vst.msk [vmem:[#allocation2 + $0x390] sm:$0xff] %vm412_vm2, %v4780_v44 }
 0x818   :  { %4834 = vst.msk [vmem:[#allocation2 + $0x398] sm:$0xff] %vm414_vm3, %v4808_v15 }
 0x81a   :  { %v4784_v46 = vpop.permute.xlu1 %4783  ;;  %v4790_v23 = vpop.permute.xlu0 %4789  ;;  %v10158_v16 = vld [vmem:[#allocation2 + $0x380] sm:$0xff] }
 0x81b   :  { %v4809_v8 = vsel %vm17_vm0, %v4784_v46, %v4786_v29  ;;  %4835 = vst.msk [vmem:[#allocation2 + $0x3a0] sm:$0xff] %vm412_vm2, %v4784_v46  ;;  %4879 = vrot.lane.b32.xlu0 %v10158_v16, %s5164_s0  ;;  %v10164_v31 = vld [vmem:[#allocation2 + $0x388] sm:$0xff] }
 0x81c   :  { %4836 = vst.msk [vmem:[#allocation2 + $0x3a8] sm:$0xff] %vm414_vm3, %v4809_v8  ;;  %4881 = vrot.lane.b32.xlu1 %v10164_v31, %s5164_s0 }
 0x81e   :  { %v4788_v24 = vpop.permute.xlu1 %4787  ;;  %v4794_v54 = vpop.permute.xlu0 %4793  ;;  %v10169_v4 = vld [vmem:[#allocation2 + $0x390] sm:$0xff] }
 0x81f   :  { %v4810_v62 = vsel %vm17_vm0, %v4788_v24, %v4790_v23  ;;  %4837 = vst.msk [vmem:[#allocation2 + $0x3b0] sm:$0xff] %vm412_vm2, %v4788_v24  ;;  %4883 = vrot.lane.b32.xlu0 %v10169_v4, %s5164_s0  ;;  %v10175_v18 = vld [vmem:[#allocation2 + $0x398] sm:$0xff] }
 0x820   :  { %4838 = vst.msk [vmem:[#allocation2 + $0x3b8] sm:$0xff] %vm414_vm3, %v4810_v62  ;;  %4885 = vrot.lane.b32.xlu1 %v10175_v18, %s5164_s0 }
 0x822   :  { %v4792_v27 = vpop.permute.xlu1 %4791  ;;  %v4798_v35 = vpop.permute.xlu0 %4797  ;;  %v10180_v44 = vld [vmem:[#allocation2 + $0x3a0] sm:$0xff] }
 0x823   :  { %v4811_v29 = vsel %vm17_vm0, %v4792_v27, %v4794_v54  ;;  %4839 = vst.msk [vmem:[#allocation2 + $0x3c0] sm:$0xff] %vm412_vm2, %v4792_v27  ;;  %4887 = vrot.lane.b32.xlu0 %v10180_v44, %s5164_s0  ;;  %v10186_v15 = vld [vmem:[#allocation2 + $0x3a8] sm:$0xff] }
 0x824   :  { %4840 = vst.msk [vmem:[#allocation2 + $0x3c8] sm:$0xff] %vm414_vm3, %v4811_v29  ;;  %4889 = vrot.lane.b32.xlu1 %v10186_v15, %s5164_s0 }
 0x826   :  { %v4796_v46 = vpop.permute.xlu1 %4795  ;;  %v4802_v23 = vpop.permute.xlu0 %4801  ;;  %v10191_v8 = vld [vmem:[#allocation2 + $0x3b0] sm:$0xff] }
 0x827   :  { %v4812_v24 = vsel %vm17_vm0, %v4796_v46, %v4798_v35  ;;  %4841 = vst.msk [vmem:[#allocation2 + $0x3d0] sm:$0xff] %vm412_vm2, %v4796_v46  ;;  %4891 = vrot.lane.b32.xlu0 %v10191_v8, %s5164_s0  ;;  %v10197_v54 = vld [vmem:[#allocation2 + $0x3b8] sm:$0xff] }
 0x828   :  { %4842 = vst.msk [vmem:[#allocation2 + $0x3d8] sm:$0xff] %vm414_vm3, %v4812_v24  ;;  %4893 = vrot.lane.b32.xlu1 %v10197_v54, %s5164_s0 }
 0x82a   :  { %v4800_v62 = vpop.permute.xlu1 %4799  ;;  %v4806_v27 = vpop.permute.xlu0 %4805  ;;  %v10202_v29 = vld [vmem:[#allocation2 + $0x3c0] sm:$0xff] }
 0x82b   :  { %v4813_v7 = vsel %vm17_vm0, %v4800_v62, %v4802_v23  ;;  %4843 = vst.msk [vmem:[#allocation2 + $0x3e0] sm:$0xff] %vm412_vm2, %v4800_v62  ;;  %4895 = vrot.lane.b32.xlu0 %v10202_v29, %s5164_s0  ;;  %v10208_v35 = vld [vmem:[#allocation2 + $0x3c8] sm:$0xff] }
 0x82c   :  { %4844 = vst.msk [vmem:[#allocation2 + $0x3e8] sm:$0xff] %vm414_vm3, %v4813_v7  ;;  %4897 = vrot.lane.b32.xlu1 %v10208_v35, %s5164_s0 }
 0x82e   :  { %v4804_v46 = vpop.permute.xlu1 %4803  ;;  %v4344_v24 = vpop.permute.xlu0 %4343  ;;  %v10213_v9 = vld [vmem:[#allocation2 + $0x3d0] sm:$0xff] }
 0x82f   :  { %v4814_v1 = vsel %vm17_vm0, %v4804_v46, %v4806_v27  ;;  %4845 = vst.msk [vmem:[#allocation2 + $0x3f0] sm:$0xff] %vm412_vm2, %v4804_v46  ;;  %4899 = vrot.lane.b32.xlu0 %v10213_v9, %s5164_s0  ;;  %v10219_v23 = vld [vmem:[#allocation2 + $0x3d8] sm:$0xff] }
 0x830   :  { %4846 = vst.msk [vmem:[#allocation2 + $0x3f8] sm:$0xff] %vm414_vm3, %v4814_v1  ;;  %4901 = vrot.lane.b32.xlu1 %v10219_v23, %s5164_s0  ;;  %v4328_v1 = vsel %vm189_vm15, %v10074_v3, -inf }
 0x832   :  { %v10224_v7 = vpop.permute.xlu1 %4301  ;;  %v4348_v62 = vpop.permute.xlu0 %4347  ;;  %v10226_v42 = vld [vmem:[#allocation2 + $0x3e0] sm:$0xff] }
 0x833   :  { %4903 = vrot.lane.b32.xlu0 %v10226_v42, %s5164_s0  ;;  %v10230_v27 = vld [vmem:[#allocation2 + $0x3e8] sm:$0xff] }
 0x834   :  { %4905 = vrot.lane.b32.xlu1 %v10230_v27, %s5164_s0 }
 0x836   :  { %v4346_v46 = vpop.permute.xlu1 %4345  ;;  %v4352_v5 = vpop.permute.xlu0 %4351  ;;  %v10234_v10 = vld [vmem:[#allocation2 + $0x3f0] sm:$0xff] }
 0x837   :  { %v4375_v17 = vsel %vm1505_vm6, %v4344_v24, %v4346_v46  ;;  %v4400_v39 = vsel %vm191_vm1, %v4346_v46, -inf  ;;  %4907 = vrot.lane.b32.xlu0 %v10234_v10, %s5164_s0  ;;  %v10244_v6 = vld [vmem:[#allocation2 + $0x3f8] sm:$0xff] }
 0x838   :  { %v4399_v50 = vsel %vm190_vm8, %v4375_v17, -inf  ;;  %v4416_v37 = vmax.f32 %v4328_v1, %v4400_v39  ;;  %4909 = vrot.lane.b32.xlu1 %v10244_v6, %s5164_s0 }
 0x839   :  { %v4415_v3 = vmax.f32 %v4327_v38, %v4399_v50 }
 0x83a   :  { %v4432_v24 = vmax.f32 %v9683_v20, %v4416_v37  ;;  %v4350_v46 = vpop.permute.xlu1 %4349  ;;  %v4356_v51 = vpop.permute.xlu0 %4355  ;;  %v4329_v20 = vsel %vm188_vm7, %v10091_v25, -inf }
 0x83b   :  { %v4431_v60 = vmax.f32 %v9689_v47, %v4415_v3  ;;  %v4376_v14 = vsel %vm1505_vm6, %v4348_v62, %v4350_v46  ;;  %v4402_v17 = vsel %vm191_vm1, %v4350_v46, -inf  ;;  %4951 = vrot.lane.b32.xlu0 %v10158_v16, %s5165_s9 }
 0x83c   :  { %4448 = vst.msk [vmem:[%s10615_s4 + $0x308] sm:$0xff] %vm1687_vm9, %v4432_v24  ;;  %v4401_v47 = vsel %vm190_vm8, %v4376_v14, -inf  ;;  %v4418_v37 = vmax.f32 %v4330_v30, %v4402_v17  ;;  %4953 = vrot.lane.b32.xlu1 %v10164_v31, %s5165_s9  ;;  %v4336_v24 = vsel %vm189_vm15, %v10117_v53, -inf }
 0x83d   :  { %4447 = vst [vmem:[%s10615_s4 + $0x300] sm:$0xff] %v4431_v60  ;;  %v4417_v50 = vmax.f32 %v4329_v20, %v4401_v47  ;;  %v4331_v60 = vsel %vm188_vm7, %v10101_v11, -inf  ;;  %v4338_v20 = vsel %vm189_vm15, %v10127_v0, -inf }
 0x83e   :  { %v4434_v38 = vmax.f32 %v9761_v12, %v4418_v37  ;;  %v4354_v39 = vpop.permute.xlu1 %4353 }
 0x83f   :  { %v4433_v25 = vmax.f32 %v9768_v41, %v4417_v50  ;;  %v4377_v16 = vsel %vm1505_vm6, %v4352_v5, %v4354_v39  ;;  %v4404_v30 = vsel %vm191_vm1, %v4354_v39, -inf  ;;  %4955 = vrot.lane.b32.xlu0 %v10169_v4, %s5165_s9  ;;  %v4360_v5 = vpop.permute.xlu0 %4359  ;;  %v4334_v4 = vsel %vm189_vm15, %v10107_v40, -inf }
 0x840   :  { %4450 = vst.msk [vmem:[%s10615_s4 + $0x318] sm:$0xff] %vm1687_vm9, %v4434_v38  ;;  %v4403_v12 = vsel %vm190_vm8, %v4377_v16, -inf  ;;  %v4420_v41 = vmax.f32 %v4332_v43, %v4404_v30  ;;  %4957 = vrot.lane.b32.xlu1 %v10175_v18, %s5165_s9  ;;  %v4333_v18 = vsel %vm188_vm7, %v10111_v61, -inf  ;;  %v4340_v39 = vsel %vm189_vm15, %v10137_v36, -inf }
 0x841   :  { %4449 = vst [vmem:[%s10615_s4 + $0x310] sm:$0xff] %v4433_v25  ;;  %v4419_v49 = vmax.f32 %v4331_v60, %v4403_v12  ;;  %v4342_v12 = vsel %vm189_vm15, %v10224_v7, -inf }
 0x842   :  { %v4436_v11 = vmax.f32 %v9776_v56, %v4420_v41  ;;  %v4358_v31 = vpop.permute.xlu1 %4357 }
 0x843   :  { %v4435_v62 = vmax.f32 %v9783_v32, %v4419_v49  ;;  %v4378_v1 = vsel %vm1505_vm6, %v4356_v51, %v4358_v31  ;;  %v4406_v3 = vsel %vm191_vm1, %v4358_v31, -inf  ;;  %4959 = vrot.lane.b32.xlu0 %v10180_v44, %s5165_s9  ;;  %v4364_v61 = vpop.permute.xlu0 %4363 }
 0x844   :  { %4452 = vst.msk [vmem:[%s10615_s4 + $0x328] sm:$0xff] %vm1687_vm9, %v4436_v11  ;;  %v4405_v56 = vsel %vm190_vm8, %v4378_v1, -inf  ;;  %v4422_v32 = vmax.f32 %v4334_v4, %v4406_v3  ;;  %4961 = vrot.lane.b32.xlu1 %v10186_v15, %s5165_s9 }
 0x845   :  { %4451 = vst [vmem:[%s10615_s4 + $0x320] sm:$0xff] %v4435_v62  ;;  %v4421_v51 = vmax.f32 %v4333_v18, %v4405_v56 }
 0x846   :  { %v4438_v40 = vmax.f32 %v9791_v19, %v4422_v32  ;;  %v4362_v44 = vpop.permute.xlu1 %4361  ;;  %v4335_v19 = vsel %vm188_vm7, %v10121_v48, -inf }
 0x847   :  { %v4437_v46 = vmax.f32 %v9798_v21, %v4421_v51  ;;  %v4379_v14 = vsel %vm1505_vm6, %v4360_v5, %v4362_v44  ;;  %v4408_v15 = vsel %vm191_vm1, %v4362_v44, -inf  ;;  %4963 = vrot.lane.b32.xlu0 %v10191_v8, %s5165_s9 }
 0x848   :  { %4454 = vst.msk [vmem:[%s10615_s4 + $0x338] sm:$0xff] %vm1687_vm9, %v4438_v40  ;;  %v4407_v21 = vsel %vm190_vm8, %v4379_v14, -inf  ;;  %v4424_v53 = vmax.f32 %v4336_v24, %v4408_v15  ;;  %4965 = vrot.lane.b32.xlu1 %v10197_v54, %s5165_s9  ;;  %v4337_v54 = vsel %vm188_vm7, %v10131_v13, -inf }
 0x849   :  { %4453 = vst [vmem:[%s10615_s4 + $0x330] sm:$0xff] %v4437_v46  ;;  %v4423_v8 = vmax.f32 %v4335_v19, %v4407_v21 }
 0x84a   :  { %v4440_v17 = vmax.f32 %v9806_v59, %v4424_v53  ;;  %v4366_v48 = vpop.permute.xlu1 %4365  ;;  %v4368_v59 = vpop.permute.xlu0 %4367 }
 0x84b   :  { %v4439_v47 = vmax.f32 %v9813_v26, %v4423_v8  ;;  %v4380_v37 = vsel %vm1505_vm6, %v4364_v61, %v4366_v48  ;;  %v4410_v50 = vsel %vm191_vm1, %v4366_v48, -inf  ;;  %4967 = vrot.lane.b32.xlu0 %v10202_v29, %s5165_s9 }
 0x84c   :  { %4456 = vst.msk [vmem:[%s10615_s4 + $0x348] sm:$0xff] %vm1687_vm9, %v4440_v17  ;;  %v4409_v26 = vsel %vm190_vm8, %v4380_v37, -inf  ;;  %v4426_v0 = vmax.f32 %v4338_v20, %v4410_v50  ;;  %4969 = vrot.lane.b32.xlu1 %v10208_v35, %s5165_s9  ;;  %v4339_v35 = vsel %vm188_vm7, %v10141_v45, -inf  ;;  %v10999_v50 = vld [vmem:[#allocation30_spill] sm:$0xff] }
 0x84d   :  { %4455 = vst [vmem:[%s10615_s4 + $0x340] sm:$0xff] %v4439_v47  ;;  %v4425_v29 = vmax.f32 %v4337_v54, %v4409_v26 }
 0x84e   :  { %v4442_v13 = vmax.f32 %v9821_v63, %v4426_v0  ;;  %v4370_v38 = vpop.permute.xlu1 %4369  ;;  %v4372_v45 = vpop.permute.xlu0 %4371 }
 0x84f   :  { %v4441_v43 = vmax.f32 %v9828_v58, %v4425_v29  ;;  %v4381_v25 = vsel %vm1505_vm6, %v4368_v59, %v4370_v38  ;;  %v4412_v16 = vsel %vm191_vm1, %v4370_v38, -inf  ;;  %4971 = vrot.lane.b32.xlu0 %v10213_v9, %s5165_s9  ;;  %v4310_v9 = vsel %vm1320_vm14, %v10150_v28, %v10224_v7 }
 0x850   :  { %4458 = vst.msk [vmem:[%s10615_s4 + $0x358] sm:$0xff] %vm1687_vm9, %v4442_v13  ;;  %v4411_v63 = vsel %vm190_vm8, %v4381_v25, -inf  ;;  %v4428_v58 = vmax.f32 %v4340_v39, %v4412_v16  ;;  %4973 = vrot.lane.b32.xlu1 %v10219_v23, %s5165_s9  ;;  %v4341_v5 = vsel %vm188_vm7, %v4310_v9, -inf }
 0x851   :  { %4457 = vst [vmem:[%s10615_s4 + $0x350] sm:$0xff] %v4441_v43  ;;  %v4427_v36 = vmax.f32 %v4339_v35, %v4411_v63  ;;  %v11000_v43 = vld [vmem:[#allocation32_spill] sm:$0xff] }
 0x852   :  { %v4444_v30 = vmax.f32 %v9836_v33, %v4428_v58  ;;  %v4374_v60 = vpop.permute.xlu1 %4373  ;;  %v11001_v63 = vld [vmem:[#allocation20_spill] sm:$0xff] }
 0x853   :  { %v4443_v41 = vmax.f32 %v9843_v2, %v4427_v36  ;;  %v4382_v23 = vsel %vm1505_vm6, %v4372_v45, %v4374_v60  ;;  %v4414_v28 = vsel %vm191_vm1, %v4374_v60, -inf  ;;  %4975 = vrot.lane.b32.xlu0 %v10226_v42, %s5165_s9 }
 0x854   :  { %4460 = vst.msk [vmem:[%s10615_s4 + $0x368] sm:$0xff] %vm1687_vm9, %v4444_v30  ;;  %v4413_v33 = vsel %vm190_vm8, %v4382_v23, -inf  ;;  %v4430_v2 = vmax.f32 %v4342_v12, %v4414_v28  ;;  %4977 = vrot.lane.b32.xlu1 %v10230_v27, %s5165_s9  ;;  %v11002_v28 = vld [vmem:[#allocation4_spill] sm:$0xff] }
 0x855   :  { %4459 = vst [vmem:[%s10615_s4 + $0x360] sm:$0xff] %v4443_v41  ;;  %v4429_v42 = vmax.f32 %v4341_v5, %v4413_v33 }
 0x856   :  { %v4446_v7 = vmax.f32 %v9851_v52, %v4430_v2 }
 0x857   :  { %v4445_v49 = vmax.f32 %v9858_v55, %v4429_v42  ;;  %4979 = vrot.lane.b32.xlu0 %v10234_v10, %s5165_s9  ;;  %v11003_v42 = vld [vmem:[#allocation5_spill] sm:$0xff] }
 0x858   :  { %4462 = vst.msk [vmem:[%s10615_s4 + $0x378] sm:$0xff] %vm1687_vm9, %v4446_v7  ;;  %4981 = vrot.lane.b32.xlu1 %v10244_v6, %s5165_s9 }
 0x859   :  { %4461 = vst [vmem:[%s10615_s4 + $0x370] sm:$0xff] %v4445_v49 }
 0x88d   :  { %v4880_v27 = vpop.permute.xlu0 %4879 }
 0x88e   :  { %v4882_v11 = vpop.permute.xlu1 %4881 }
 0x88f   :  { %v4911_v61 = vsel %vm1320_vm14, %v4880_v27, %v4882_v11  ;;  %v4936_v46 = vsel %vm189_vm15, %v4882_v11, -inf }
 0x890   :  { %v4935_v19 = vsel %vm188_vm7, %v4911_v61, -inf }
 0x891   :  { %v4884_v52 = vpop.permute.xlu0 %4883 }
 0x892   :  { %v4886_v31 = vpop.permute.xlu1 %4885 }
 0x893   :  { %v4912_v8 = vsel %vm1320_vm14, %v4884_v52, %v4886_v31  ;;  %v4938_v37 = vsel %vm189_vm15, %v4886_v31, -inf }
 0x894   :  { %v4937_v0 = vsel %vm188_vm7, %v4912_v8, -inf }
 0x895   :  { %v4888_v55 = vpop.permute.xlu0 %4887 }
 0x896   :  { %v4890_v4 = vpop.permute.xlu1 %4889 }
 0x897   :  { %v4913_v13 = vsel %vm1320_vm14, %v4888_v55, %v4890_v4  ;;  %v4940_v35 = vsel %vm189_vm15, %v4890_v4, -inf }
 0x898   :  { %v4939_v45 = vsel %vm188_vm7, %v4913_v13, -inf }
 0x899   :  { %v4892_v62 = vpop.permute.xlu0 %4891 }
 0x89a   :  { %v4894_v10 = vpop.permute.xlu1 %4893 }
 0x89b   :  { %v4914_v12 = vsel %vm1320_vm14, %v4892_v62, %v4894_v10  ;;  %v4942_v2 = vsel %vm189_vm15, %v4894_v10, -inf  ;;  %v11004_v10 = vld [vmem:[#allocation22_spill] sm:$0xff] }
 0x89c   :  { %v4941_v11 = vsel %vm188_vm7, %v4914_v12, -inf }
 0x89d   :  { %v4896_v1 = vpop.permute.xlu0 %4895 }
 0x89e   :  { %v10436_v3 = vpop.permute.xlu1 %4897 }
 0x89f   :  { %v4915_v55 = vsel %vm1320_vm14, %v4896_v1, %v10436_v3 }
 0x8a1   :  { %v10438_v18 = vpop.permute.xlu0 %4899 }
 0x8a2   :  { %v10440_v56 = vpop.permute.xlu1 %4901 }
 0x8a5   :  { %v10442_v6 = vpop.permute.xlu0 %4903 }
 0x8a6   :  { %v10444_v32 = vpop.permute.xlu1 %4905 }
 0x8a9   :  { %v10446_v51 = vpop.permute.xlu0 %4907 }
 0x8aa   :  { %v10448_v40 = vpop.permute.xlu1 %4909 }
 0x8ad   :  { %v4952_v44 = vpop.permute.xlu0 %4951 }
 0x8ae   :  { %v4954_v24 = vpop.permute.xlu1 %4953 }
 0x8af   :  { %v4983_v14 = vsel %vm1505_vm6, %v4952_v44, %v4954_v24  ;;  %v5008_v15 = vsel %vm191_vm1, %v4954_v24, -inf  ;;  %v4944_v24 = vsel %vm189_vm15, %v10436_v3, -inf  ;;  %v4916_v3 = vsel %vm1320_vm14, %v10438_v18, %v10440_v56 }
 0x8b0   :  { %v5007_v21 = vsel %vm190_vm8, %v4983_v14, -inf  ;;  %v5024_v53 = vmax.f32 %v4936_v46, %v5008_v15  ;;  %v11005_v46 = vld [vmem:[#allocation6_spill] sm:$0xff] }
 0x8b1   :  { %v5023_v17 = vmax.f32 %v4935_v19, %v5007_v21  ;;  %v4956_v48 = vpop.permute.xlu0 %4955  ;;  %v4943_v19 = vsel %vm188_vm7, %v4915_v55, -inf }
 0x8b2   :  { %v5040_v20 = vmax.f32 %v9989_v34, %v5024_v53  ;;  %v4958_v47 = vpop.permute.xlu1 %4957 }
 0x8b3   :  { %v5039_v54 = vmax.f32 %v10999_v50, %v5023_v17  ;;  %v4984_v59 = vsel %vm1505_vm6, %v4956_v48, %v4958_v47  ;;  %v5010_v26 = vsel %vm191_vm1, %v4958_v47, -inf  ;;  %v11006_v48 = vld [vmem:[#allocation7_spill] sm:$0xff] }
 0x8b4   :  { %5056 = vst.msk [vmem:[%s10615_s4 + $0x388] sm:$0xff] %vm1687_vm9, %v5040_v20  ;;  %v5009_v34 = vsel %vm190_vm8, %v4984_v59, -inf  ;;  %v5026_v29 = vmax.f32 %v4938_v37, %v5010_v26  ;;  %v4946_v37 = vsel %vm189_vm15, %v10440_v56, -inf  ;;  %v11007_v50 = vld [vmem:[#allocation23_spill] sm:$0xff]  ;;  %v4945_v26 = vsel %vm188_vm7, %v4916_v3, -inf }
 0x8b5   :  { %5055 = vst [vmem:[%s10615_s4 + $0x380] sm:$0xff] %v5039_v54  ;;  %v5025_v38 = vmax.f32 %v4937_v0, %v5009_v34  ;;  %v4960_v39 = vpop.permute.xlu0 %4959  ;;  %v4917_v56 = vsel %vm1320_vm14, %v10442_v6, %v10444_v32 }
 0x8b6   :  { %v5042_v25 = vmax.f32 %v11000_v43, %v5026_v29  ;;  %v4962_v16 = vpop.permute.xlu1 %4961 }
 0x8b7   :  { %v5041_v58 = vmax.f32 %v11001_v63, %v5025_v38  ;;  %v4985_v9 = vsel %vm1505_vm6, %v4960_v39, %v4962_v16  ;;  %v5012_v36 = vsel %vm191_vm1, %v4962_v16, -inf  ;;  %v11008_v38 = vld [vmem:[#allocation8_spill] sm:$0xff]  ;;  %v11009_v16 = vld [vmem:[#allocation9_spill] sm:$0xff] }
 0x8b8   :  { %5058 = vst.msk [vmem:[%s10615_s4 + $0x398] sm:$0xff] %vm1687_vm9, %v5042_v25  ;;  %v5011_v30 = vsel %vm190_vm8, %v4985_v9, -inf  ;;  %v5028_v60 = vmax.f32 %v4940_v35, %v5012_v36  ;;  %v4948_v25 = vsel %vm189_vm15, %v10444_v32, -inf  ;;  %v4918_v32 = vsel %vm1320_vm14, %v10446_v51, %v10448_v40 }
 0x8b9   :  { %5057 = vst [vmem:[%s10615_s4 + $0x390] sm:$0xff] %v5041_v58  ;;  %v5027_v41 = vmax.f32 %v4939_v45, %v5011_v30  ;;  %v4964_v23 = vpop.permute.xlu0 %4963  ;;  %v4947_v58 = vsel %vm188_vm7, %v4917_v56, -inf }
 0x8ba   :  { %v5044_v5 = vmax.f32 %v11002_v28, %v5028_v60  ;;  %v4966_v33 = vpop.permute.xlu1 %4965  ;;  %v11010_v60 = vld [vmem:[#allocation25_spill] sm:$0xff]  ;;  %v11011_v28 = vld [vmem:[#allocation24_spill] sm:$0xff] }
 0x8bb   :  { %v5043_v7 = vmax.f32 %v11003_v42, %v5027_v41  ;;  %v4986_v49 = vsel %vm1505_vm6, %v4964_v23, %v4966_v33  ;;  %v5014_v27 = vsel %vm191_vm1, %v4966_v33, -inf  ;;  %v4950_v23 = vsel %vm189_vm15, %v10448_v40, -inf }
 0x8bc   :  { %5060 = vst.msk [vmem:[%s10615_s4 + $0x3a8] sm:$0xff] %vm1687_vm9, %v5044_v5  ;;  %v5013_v52 = vsel %vm190_vm8, %v4986_v49, -inf  ;;  %v5030_v31 = vmax.f32 %v4942_v2, %v5014_v27  ;;  %v4949_v2 = vsel %vm188_vm7, %v4918_v32, -inf  ;;  %v11012_v49 = vld [vmem:[#allocation10_spill] sm:$0xff]  ;;  %v11013_v27 = vld [vmem:[#allocation11_spill] sm:$0xff] }
 0x8bd   :  { %5059 = vst [vmem:[%s10615_s4 + $0x3a0] sm:$0xff] %v5043_v7  ;;  %v5029_v4 = vmax.f32 %v4941_v11, %v5013_v52  ;;  %v4968_v62 = vpop.permute.xlu0 %4967 }
 0x8be   :  { %v5046_v61 = vmax.f32 %v11004_v10, %v5030_v31  ;;  %v4970_v44 = vpop.permute.xlu1 %4969 }
 0x8bf   :  { %v5045_v14 = vmax.f32 %v11005_v46, %v5029_v4  ;;  %v4987_v15 = vsel %vm1505_vm6, %v4968_v62, %v4970_v44  ;;  %v5016_v1 = vsel %vm191_vm1, %v4970_v44, -inf }
 0x8c0   :  { %5062 = vst.msk [vmem:[%s10615_s4 + $0x3b8] sm:$0xff] %vm1687_vm9, %v5046_v61  ;;  %v5015_v21 = vsel %vm190_vm8, %v4987_v15, -inf  ;;  %v5032_v53 = vmax.f32 %v4944_v24, %v5016_v1 }
 0x8c1   :  { %5061 = vst [vmem:[%s10615_s4 + $0x3b0] sm:$0xff] %v5045_v14  ;;  %v5031_v8 = vmax.f32 %v4943_v19, %v5015_v21  ;;  %v4972_v17 = vpop.permute.xlu0 %4971 }
 0x8c2   :  { %v5048_v20 = vmax.f32 %v11006_v48, %v5032_v53  ;;  %v4974_v47 = vpop.permute.xlu1 %4973 }
 0x8c3   :  { %v5047_v54 = vmax.f32 %v11007_v50, %v5031_v8  ;;  %v4988_v59 = vsel %vm1505_vm6, %v4972_v17, %v4974_v47  ;;  %v5018_v18 = vsel %vm191_vm1, %v4974_v47, -inf }
 0x8c4   :  { %5064 = vst.msk [vmem:[%s10615_s4 + $0x3c8] sm:$0xff] %vm1687_vm9, %v5048_v20  ;;  %v5017_v0 = vsel %vm190_vm8, %v4988_v59, -inf  ;;  %v5034_v34 = vmax.f32 %v4946_v37, %v5018_v18 }
 0x8c5   :  { %5063 = vst [vmem:[%s10615_s4 + $0x3c0] sm:$0xff] %v5047_v54  ;;  %v5033_v29 = vmax.f32 %v4945_v26, %v5017_v0  ;;  %v4976_v13 = vpop.permute.xlu0 %4975 }
 0x8c6   :  { %v5050_v39 = vmax.f32 %v11008_v38, %v5034_v34  ;;  %v4978_v43 = vpop.permute.xlu1 %4977 }
 0x8c7   :  { %v5049_v35 = vmax.f32 %v11009_v16, %v5033_v29  ;;  %v4989_v63 = vsel %vm1505_vm6, %v4976_v13, %v4978_v43  ;;  %v5020_v6 = vsel %vm191_vm1, %v4978_v43, -inf }
 0x8c8   :  { %5066 = vst.msk [vmem:[%s10615_s4 + $0x3d8] sm:$0xff] %vm1687_vm9, %v5050_v39  ;;  %v5019_v9 = vsel %vm190_vm8, %v4989_v63, -inf  ;;  %v5036_v36 = vmax.f32 %v4948_v25, %v5020_v6 }
 0x8c9   :  { %5065 = vst [vmem:[%s10615_s4 + $0x3d0] sm:$0xff] %v5049_v35  ;;  %v5035_v45 = vmax.f32 %v4947_v58, %v5019_v9  ;;  %v4980_v30 = vpop.permute.xlu0 %4979 }
 0x8ca   :  { %v5052_v12 = vmax.f32 %v11010_v60, %v5036_v36  ;;  %v4982_v41 = vpop.permute.xlu1 %4981 }
 0x8cb   :  { %v5051_v5 = vmax.f32 %v11011_v28, %v5035_v45  ;;  %v4990_v33 = vsel %vm1505_vm6, %v4980_v30, %v4982_v41  ;;  %v5022_v51 = vsel %vm191_vm1, %v4982_v41, -inf }
 0x8cc   :  { %5068 = vst.msk [vmem:[%s10615_s4 + $0x3e8] sm:$0xff] %vm1687_vm9, %v5052_v12  ;;  %v5021_v42 = vsel %vm190_vm8, %v4990_v33, -inf  ;;  %v5038_v7 = vmax.f32 %v4950_v23, %v5022_v51 }
 0x8cd   :  { %5067 = vst [vmem:[%s10615_s4 + $0x3e0] sm:$0xff] %v5051_v5  ;;  %v5037_v40 = vmax.f32 %v4949_v2, %v5021_v42 }
 0x8ce   :  { %v5054_v57 = vmax.f32 %v11012_v49, %v5038_v7 }
 0x8cf   :  { %v5053_v11 = vmax.f32 %v11013_v27, %v5037_v40 }
 0x8d0   :  { %5070 = vst.msk [vmem:[%s10615_s4 + $0x3f8] sm:$0xff] %vm1687_vm9, %v5054_v57 }
 0x8d1   :  { %5069 = vst [vmem:[%s10615_s4 + $0x3f0] sm:$0xff] %v5053_v11 }

</bundles_post_ra>
